<compile_context>
chip_gen: v6e
topology: v6e:2x2x1
jax: 0.10.0
libtpu: 0.0.40
codegen_flags: <defaults>
</compile_context>

<pallas_src>
import math

import numpy as np
import jax
import jax.numpy as jnp
from jax.experimental import pallas as pl
from jax.experimental.pallas import tpu as pltpu

SAMPLE_RATE = 16000
N_FFT = 1024
WIN_LENGTH = 1024
HOP_LENGTH = 160
N_MELS = 128
N_FREQS = N_FFT // 2 + 1      # 513 (onesided)
N_FREQS_PAD = 640             # 513 rounded up to a multiple of 128


# ----------------------------------------------------------------------------
# Parameter construction (deterministic, mirrors torchaudio's melscale_fbanks)
# ----------------------------------------------------------------------------
def _hz_to_mel_slaney(freq: float) -> float:
    f_sp = 200.0 / 3
    mels = freq / f_sp
    min_log_hz = 1000.0
    min_log_mel = min_log_hz / f_sp
    logstep = math.log(6.4) / 27.0
    if freq >= min_log_hz:
        mels = min_log_mel + math.log(freq / min_log_hz) / logstep
    return mels


def _mel_to_hz_slaney(mels: np.ndarray) -> np.ndarray:
    f_sp = 200.0 / 3
    freqs = f_sp * mels
    min_log_hz = 1000.0
    min_log_mel = min_log_hz / f_sp
    logstep = math.log(6.4) / 27.0
    log_t = mels >= min_log_mel
    return np.where(log_t, min_log_hz * np.exp(logstep * (mels - min_log_mel)), freqs)


def make_mel_filterbank_t() -> np.ndarray:
    """Slaney filterbank, transposed and zero-padded: (N_MELS, N_FREQS_PAD)."""
    all_freqs = np.linspace(0.0, SAMPLE_RATE // 2, N_FREQS)
    m_min = _hz_to_mel_slaney(0.0)
    m_max = _hz_to_mel_slaney(float(SAMPLE_RATE // 2))
    m_pts = np.linspace(m_min, m_max, N_MELS + 2)
    f_pts = _mel_to_hz_slaney(m_pts)

    f_diff = f_pts[1:] - f_pts[:-1]                       # (N_MELS + 1,)
    slopes = f_pts[None, :] - all_freqs[:, None]          # (N_FREQS, N_MELS + 2)
    down_slopes = (-1.0 * slopes[:, :-2]) / f_diff[:-1]
    up_slopes = slopes[:, 2:] / f_diff[1:]
    fb = np.maximum(0.0, np.minimum(down_slopes, up_slopes))

    # norm='slaney'
    enorm = 2.0 / (f_pts[2 : N_MELS + 2] - f_pts[:N_MELS])
    fb = fb * enorm[None, :]                              # (N_FREQS, N_MELS)

    fb_t = np.zeros((N_MELS, N_FREQS_PAD), dtype=np.float32)
    fb_t[:, :N_FREQS] = fb.T.astype(np.float32)
    return fb_t


def make_windowed_dft_t() -> np.ndarray:
    """[win*cos ; -win*sin] onesided DFT, shape (2*N_FREQS_PAD, N_FFT).

    The periodic Hann window is folded into the matrix rows; frequency rows
    513..639 (and their imaginary counterparts) are zero so that the padding
    contributes nothing downstream.
    """
    n = np.arange(N_FFT, dtype=np.float64)
    k = np.arange(N_FREQS, dtype=np.float64)
    win = 0.5 - 0.5 * np.cos(2.0 * np.pi * n / N_FFT)      # periodic hann
    ang = 2.0 * np.pi * np.outer(k, n) / N_FFT             # (N_FREQS, N_FFT)
    wr = np.cos(ang) * win[None, :]
    wi = -np.sin(ang) * win[None, :]

    m = np.zeros((2 * N_FREQS_PAD, N_FFT), dtype=np.float32)
    m[:N_FREQS] = wr.astype(np.float32)
    m[N_FREQS_PAD : N_FREQS_PAD + N_FREQS] = wi.astype(np.float32)
    return m


# ----------------------------------------------------------------------------
# Pallas kernel: fused (windowed) DFT matmul -> |.| -> mel matmul -> log clamp
# ----------------------------------------------------------------------------
def logmel_kernel(frames_ref, wdft_ref, fb_ref, out_ref):
    # frames_ref: (1, N_FFT, TF)            bf16  time tile, time on lanes
    # wdft_ref:   (2*N_FREQS_PAD, N_FFT)    bf16  windowed [cos; -sin] DFT
    # fb_ref:     (N_MELS, N_FREQS_PAD)     bf16  mel filterbank (transposed)
    # out_ref:    (1, N_MELS, TF)           f32
    spec = jnp.dot(wdft_ref[...], frames_ref[0],
                   preferred_element_type=jnp.float32)       # (2*NF_PAD, TF)
    re = spec[:N_FREQS_PAD, :]
    im = spec[N_FREQS_PAD:, :]
    mag = jnp.sqrt(re * re + im * im)                        # power=1.0
    mel = jnp.dot(fb_ref[...], mag.astype(jnp.bfloat16),
                  preferred_element_type=jnp.float32)        # (N_MELS, TF)
    out_ref[0] = jnp.log(jnp.maximum(mel, 1e-5))


def log_mel_spectrogram(wav: jax.Array) -> jax.Array:
    """wav: (B, T) float32  ->  logmel: (B, N_MELS, num_frames) float32."""
    wav = wav.astype(jnp.float32)
    B, T = wav.shape

    padding = (N_FFT - HOP_LENGTH) // 2  # 432, reflect pad (as in the module)
    padded = jnp.pad(wav, ((0, 0), (padding, padding)), mode="reflect")
    t_padded = T + 2 * padding
    num_frames = (t_padded - N_FFT) // HOP_LENGTH + 1  # center=False framing

    # Frame-axis tiling: lane-dense tiles (multiple of 128), capped at 512 so
    # VMEM per grid step stays ~12 MB regardless of audio length.
    if num_frames >= 512:
        tf = 512
    else:
        tf = ((num_frames + 127) // 128) * 128
    f_pad = ((num_frames + tf - 1) // tf) * tf

    # Frame extraction (glue), transposed: (B, N_FFT, f_pad).  Padding frames
    # replicate the last valid frame; their outputs are sliced off below.
    # bf16 halves the HBM traffic of the framed (6.4x blown-up) array.
    # TODO(synk): build frame tiles in-kernel from the raw padded wav to avoid
    # the 6.4x framing blow-up entirely (needs overlapping-window DMA).
    padded_bf16 = padded.astype(jnp.bfloat16)
    f_idx = jnp.minimum(jnp.arange(f_pad, dtype=jnp.int32), num_frames - 1)
    idx = f_idx[None, :] * HOP_LENGTH + jnp.arange(N_FFT, dtype=jnp.int32)[:, None]
    frames_t = jnp.take(padded_bf16, idx, axis=1)            # (B, N_FFT, f_pad)

    wdft = jnp.asarray(make_windowed_dft_t(), dtype=jnp.bfloat16)
    fb_t = jnp.asarray(make_mel_filterbank_t(), dtype=jnp.bfloat16)

    out = pl.pallas_call(
        logmel_kernel,
        out_shape=jax.ShapeDtypeStruct((B, N_MELS, f_pad), jnp.float32),
        grid_spec=pltpu.PrefetchScalarGridSpec(
            num_scalar_prefetch=0,
            grid=(B, f_pad // tf),
            in_specs=[
                pl.BlockSpec((1, N_FFT, tf), lambda b, t: (b, 0, t)),
                pl.BlockSpec((2 * N_FREQS_PAD, N_FFT), lambda b, t: (0, 0)),
                pl.BlockSpec((N_MELS, N_FREQS_PAD), lambda b, t: (0, 0)),
            ],
            out_specs=pl.BlockSpec((1, N_MELS, tf), lambda b, t: (b, 0, t)),
        ),
        compiler_params=pltpu.CompilerParams(
            # Both axes independent -> let v7x's two TensorCores split the grid.
            dimension_semantics=("parallel", "parallel"),
            # ~12 MB actual footprint at tf=512; 32 MB leaves headroom and fits
            # comfortably inside v7x's 64 MiB physical VMEM.
            vmem_limit_bytes=32 << 20,
        ),
    )(frames_t, wdft, fb_t)

    # Output already (B, n_mels, time); just drop padded frames.
    return out[:, :, :num_frames]


if __name__ == "__main__":
    key = jax.random.PRNGKey(0)
    B, T = 2, 1600  # 0.1 s of 16 kHz audio -> 10 frames after reflect padding
    wav = 0.1 * jax.random.normal(key, (B, T), dtype=jnp.float32)

    logmel = log_mel_spectrogram(wav)
    jax.block_until_ready(logmel)

    expected_frames = (T + 2 * ((N_FFT - HOP_LENGTH) // 2) - N_FFT) // HOP_LENGTH + 1
    assert logmel.shape == (B, N_MELS, expected_frames), logmel.shape
    assert logmel.dtype == jnp.float32
    assert bool(jnp.all(jnp.isfinite(logmel)))
    print("KERNEL_OK")
</pallas_src>

<mosaic_0001>
module attributes {stable_mosaic.version = 11 : i64} {
  func.func @logmel_kernel(%arg0: i32, %arg1: i32, %arg2: memref<1x1024x128xbf16, #tpu.memory_space<vmem>>, %arg3: memref<1280x1024xbf16, #tpu.memory_space<vmem>>, %arg4: memref<128x640xbf16, #tpu.memory_space<vmem>>, %arg5: memref<1x128x128xf32, #tpu.memory_space<vmem>>) attributes {dimension_semantics = [#tpu.dimension_semantics<parallel>, #tpu.dimension_semantics<parallel>], iteration_bounds = array<i64: 2, 1>, scalar_prefetch = 0 : i64, scratch_operands = 0 : i64, tpu.core_type = #tpu.core_type<tc>, window_params = [{transform_indices = @transform_0, window_bounds = array<i64: 1, 1024, 128>}, {pipeline_mode = #tpu.pipeline_mode<synchronous>, transform_indices = @transform_1, window_bounds = array<i64: 1280, 1024>}, {pipeline_mode = #tpu.pipeline_mode<synchronous>, transform_indices = @transform_2, window_bounds = array<i64: 128, 640>}, {transform_indices = @transform_3, window_bounds = array<i64: 1, 128, 128>}]} {
    %c0 = arith.constant 0 : index
    %c0_0 = arith.constant 0 : index
    %0 = vector.load %arg3[%c0, %c0_0] : memref<1280x1024xbf16, #tpu.memory_space<vmem>>, vector<1280x1024xbf16>
    %c0_1 = arith.constant 0 : index
    %c0_2 = arith.constant 0 : index
    %c0_3 = arith.constant 0 : index
    %1 = vector.load %arg2[%c0_1, %c0_2, %c0_3] : memref<1x1024x128xbf16, #tpu.memory_space<vmem>>, vector<1x1024x128xbf16>
    %2 = vector.shape_cast %1 : vector<1x1024x128xbf16> to vector<1024x128xbf16>
    %cst = arith.constant dense<0.000000e+00> : vector<1280x128xf32>
    %3 = tpu.matmul %0, %2, %cst {dimension_numbers = #tpu.dot_dimension_numbers<[1], [0], [0], [1], [0, 0, 1, 1], [], []>} : vector<1280x1024xbf16>, vector<1024x128xbf16>, vector<1280x128xf32> -> vector<1280x128xf32>
    %4 = vector.extract_strided_slice %3 {offsets = [0, 0], sizes = [640, 128], strides = [1, 1]} : vector<1280x128xf32> to vector<640x128xf32>
    %5 = vector.extract_strided_slice %3 {offsets = [640, 0], sizes = [640, 128], strides = [1, 1]} : vector<1280x128xf32> to vector<640x128xf32>
    %6 = arith.mulf %4, %4 : vector<640x128xf32>
    %7 = arith.mulf %5, %5 : vector<640x128xf32>
    %8 = arith.addf %6, %7 : vector<640x128xf32>
    %9 = math.sqrt %8 : vector<640x128xf32>
    %c0_4 = arith.constant 0 : index
    %c0_5 = arith.constant 0 : index
    %10 = vector.load %arg4[%c0_4, %c0_5] : memref<128x640xbf16, #tpu.memory_space<vmem>>, vector<128x640xbf16>
    %11 = arith.truncf %9 : vector<640x128xf32> to vector<640x128xbf16>
    %cst_6 = arith.constant dense<0.000000e+00> : vector<128x128xf32>
    %12 = tpu.matmul %10, %11, %cst_6 {dimension_numbers = #tpu.dot_dimension_numbers<[1], [0], [0], [1], [0, 0, 1, 1], [], []>} : vector<128x640xbf16>, vector<640x128xbf16>, vector<128x128xf32> -> vector<128x128xf32>
    %cst_7 = arith.constant 9.99999974E-6 : f32
    %13 = vector.broadcast %cst_7 : f32 to vector<128x128xf32>
    %14 = arith.maximumf %12, %13 : vector<128x128xf32>
    %15 = math.log %14 : vector<128x128xf32>
    %c0_8 = arith.constant 0 : index
    %c0_9 = arith.constant 0 : index
    %c0_10 = arith.constant 0 : index
    %16 = vector.load %arg5[%c0_8, %c0_9, %c0_10] : memref<1x128x128xf32, #tpu.memory_space<vmem>>, vector<1x128x128xf32>
    %17 = vector.shape_cast %16 : vector<1x128x128xf32> to vector<128x128xf32>
    %18 = vector.shape_cast %15 : vector<128x128xf32> to vector<1x128x128xf32>
    tpu.vector_store %arg5[%c0_8, %c0_9, %c0_10], %18 {strides = array<i32>} : memref<1x128x128xf32, #tpu.memory_space<vmem>>, vector<1x128x128xf32>,
    return
  }
  func.func @transform_0(%arg0: i32, %arg1: i32) -> (i32, i32, i32) {
    %c0_i32 = arith.constant 0 : i32
    %c0_i32_0 = arith.constant 0 : i32
    return %arg0, %c0_i32, %arg1 : i32, i32, i32
  }
  func.func @transform_1(%arg0: i32, %arg1: i32) -> (i32, i32) {
    %c0_i32 = arith.constant 0 : i32
    %c0_i32_0 = arith.constant 0 : i32
    %c0_i32_1 = arith.constant 0 : i32
    return %c0_i32, %c0_i32_0 : i32, i32
  }
  func.func @transform_2(%arg0: i32, %arg1: i32) -> (i32, i32) {
    %c0_i32 = arith.constant 0 : i32
    %c0_i32_0 = arith.constant 0 : i32
    %c0_i32_1 = arith.constant 0 : i32
    return %c0_i32, %c0_i32_0 : i32, i32
  }
  func.func @transform_3(%arg0: i32, %arg1: i32) -> (i32, i32, i32) {
    %c0_i32 = arith.constant 0 : i32
    %c0_i32_0 = arith.constant 0 : i32
    return %arg0, %c0_i32, %arg1 : i32, i32, i32
  }
}

</mosaic_0001>

<bundles_post_ra>
// kernel: tpu_custom_call.1
= control target key start
LH: loop header
LB: loop body
LE: loop exit
PB: predicated region body
PF: predicated region fallthrough
CT: control target
= control target key end

     0   :  { %8 = vsyncpa [#allocation3], 0  ;;  %s12700_s0 = inlined_call_operand.hbm [shape: bf16[2,1024,128], index: 0, kind: input, shape index: {}]   ;;  %s12701_s1 = inlined_call_operand.hbm [shape: bf16[1280,1024], index: 1, kind: input, shape index: {}]   ;;  %s12702_s2 = inlined_call_operand.hbm [shape: bf16[128,640], index: 2, kind: input, shape index: {}]   ;;  %s12703_s3 = inlined_call_operand.hbm [shape: f32[2,128,128], index: 3, kind: output, shape index: {}]  }
   0x1   :  { %10 = vsyncpa [#allocation3 + $0x1], 0 }
   0x2   :  { %11 = vsyncpa [#allocation6], 0 }
   0x3   :  { %12 = vsyncpa [#allocation4], 0 }
   0x4   :  { %14 = vsyncpa [#allocation4 + $0x1], 0  ;;  %s10410_s12 = smov 0   ;;  %s10412_s13 = smov 0  }
   0x5   :  { %s10414_s14 = smov 0   ;;  %s10416_s15 = smov 0  }
   0x6   :  { %s10418_s16 = smov 0   ;;  %s10420_s17 = smov 0  }
   0x7 LB: > { %s8850_s18 = sadd.s32 4294967295, %s10375_s17   ;;  %s8851_s19 = sadd.s32 4294967294, %s10375_s17   ;;  %s10375_s17 = sphi %s10420_s17, %s20_s17   ;;  %s10371_s16 = sphi %s10418_s16, %s13081_s16   ;;  %s10367_s15 = sphi %s10416_s15, %s13080_s15   ;;  %s10363_s14 = sphi %s10414_s14, %s13079_s14   ;;  %s10359_s13 = sphi %s10412_s13, %s13078_s13   ;;  %s10355_s12 = sphi %s10410_s12, %s13077_s12  }
   0x8   : > { %p54_p0 = scmp.ne.s32.totalorder %s10359_s13, %s10355_s12  ;;  %p10444_p1 = scmp.eq.s32.totalorder %s8850_s18, 0 }
   0x9   : > { %p10448_p2 = scmp.eq.s32.totalorder %s8850_s18, 1  ;;  %p128_p3 = scmp.eq.s32.totalorder %s8851_s19, 1 }
   0xa   : > { %s12710_s20 = scalar_select %p10444_p1, 1, 0 }
   0xb   : > { %p10454_p4 = por %p10444_p1, %p54_p0  ;;  %p8852_p5 = scmp.ge.s32.totalorder %s10375_s17, 1 }
   0xc   : > { %p10459_p6 = por %p128_p3, %p54_p0  ;;  %p135_p7 = scmp.lt.s32.totalorder %s10375_s17, 3 }
   0xd   : > { %s12712_s22 = scalar_select %p10454_p4, 1, 0 }
   0xe   : > { %s12713_s23 = scalar_select %p10459_p6, 1, 0 }
   0xf   : > { %p10464_p8 = pnand %p8852_p5, %p135_p7  ;;  %s10377_s25 = smov [#allocation5]  }
  0x10   : > { %s147_s26 = sshll.u32 %s10377_s25, 4  ;;  %s10378_s28 = smov [#allocation7]   ;;  %s148_s26 = int_to_ptr.vmem [resolvable:$true] %s147_s26 }
  0x11   : > { %p9819_p9 = pneg %p10464_p8  ;;  %s160_s29 = sshll.u32 %s10378_s28, 4  ;;  %s161_s29 = int_to_ptr.vmem [resolvable:$true] %s160_s29 }
  0x12   : > { %s10222_s30 = scalar_lea.vmem %s148_s26, 81920  ;;  %p10230_p5 = scmp.lt.s32.totalorder %s148_s26, %s148_s26 }
  0x13   : > { %p10473_p11 = pnand %p9819_p9, %p10444_p1  ;;  %p10223_p13 = scmp.ne.s32.totalorder %s148_s26, %s10222_s30 }
  0x14   : > { %p10231_p7 = scmp.lt.s32.totalorder %s10222_s30, %s10222_s30 }
  0x15   : > { %p10213_p12 = pneg %p10473_p11 }
  0x16   : > { %p10232_p10 = por %p10231_p7, %p10230_p5 }
  0x17   : > { %p10225_p0 = pnand %p10223_p13, %p10213_p12 }
  0x19   : > { %p10226_p3 = pneg %p10225_p0 }
  0x1b   : > { %p10233_p9 = pnand %p10232_p10, %p10226_p3 }
  0x1d   : > { %10236 = shalt.err (!%p10233_p9)
}
  0x1e   : > { %s10379_s4 = smov 512   ;;  %s10380_s5 = smov 32  }
  0x1f   : > { %9822 = dma.hbm_to_vmem [thread:$0]  (!%p10473_p11), %s12701_s1, 81920, %s148_s26, [#allocation6], %s10379_s4, %s10379_s4, %s10380_s5  }
  0x20   : > { %s10248_s8 = scalar_lea.vmem %s161_s29, 5120  ;;  %p10256_p1 = scmp.lt.s32.totalorder %s161_s29, %s161_s29 }
  0x21   : > { %p10249_p6 = scmp.ne.s32.totalorder %s161_s29, %s10248_s8  ;;  %p10257_p4 = scmp.lt.s32.totalorder %s10248_s8, %s10248_s8 }
  0x23   : > { %p10251_p13 = pnand %p10249_p6, %p10213_p12  ;;  %p10258_p5 = por %p10257_p4, %p10256_p1 }
  0x25   : > { %p10252_p0 = pneg %p10251_p13 }
  0x27   : > { %p10259_p10 = pnand %p10258_p5, %p10252_p0 }
  0x29   : > { %10262 = shalt.err (!%p10259_p10)
}
  0x2a   : > { %s10381_s9 = smov 320   ;;  %s10382_s10 = smov 20  }
  0x2b   : > { %9825 = dma.hbm_to_vmem [thread:$0]  (!%p10473_p11), %s12702_s2, 5120, %s161_s29, [#allocation6], %s10381_s9, %s10381_s9, %s10382_s10  }
  0x2c   : > { %s32_s19 = sadd.s32 1, %s10371_s16  ;;  %s41_s25 = sadd.s32 1, %s10363_s14 }
  0x2d   : > { %p34_p1 = scmp.ge.s32.totalorder %s32_s19, 2  ;;  %p48_p4 = scmp.ne.s32.totalorder %s10363_s14, %s10359_s13 }
  0x2e   : > { %p49_p6 = scmp.eq.s32.totalorder %s10375_s17, 0  ;;  %p9836_p12 = scmp.lt.s32.totalorder %s10375_s17, 2 }
  0x2f   : > { %s13083_s19 = smov (%p34_p1, %s32_s19), 0  ;;  %p10505_p7 = por %p10448_p2, %p48_p4 }
  0x30   : > { %p50_p3 = por %p49_p6, %p48_p4  ;;  %s36_s27 = ssub.s32 %s10371_s16, %s13083_s19 }
  0x31   : > { %s174_s28 = sand.u32 1, %s10363_s14   ;;  %p39_p9 = scmp.eq.s32.totalorder %s36_s27, 0 }
  0x32   : > { %s8856_s29 = sshll.u32 %s174_s28, 9  ;;  %s9613_s30 = sshll.u32 %s10371_s16, 13 }
  0x33   : > { %s10514_s4 = scalar_select %p39_p9, %s10363_s14, %s41_s25  }
  0x34   : > { %s185_s7 = scalar_lea.hbm %s12700_s0, %s9613_s30  ;;  %s178_s8 = scalar_lea.vmem [#allocation2], %s8856_s29 }
  0x35   : > { %s186_s9 = sshll.u32 %s178_s8, 4  ;;  %p10521_p11 = pnand %p9836_p12, %p50_p3  ;;  %s187_s9 = int_to_ptr.vmem [resolvable:$true] %s186_s9 }
  0x36   : > { %s175_s10 = scalar_lea.sflag [#allocation3], %s174_s28  ;;  %s10276_s11 = scalar_lea.vmem %s187_s9, 8192 }
  0x37   : > { %p10265_p2 = pneg %p10521_p11  ;;  %p10277_p13 = scmp.ne.s32.totalorder %s187_s9, %s10276_s11 }
  0x38   : > { %s10383_s18 = smov [#allocation2]  }
  0x39   : > { %p10279_p0 = pnand %p10277_p13, %p10265_p2  ;;  %s10281_s25 = sshll.u32 %s10383_s18, 4  ;;  %s10282_s25 = int_to_ptr.vmem [resolvable:$false] %s10281_s25 }
  0x3a   : > { %s10283_s27 = scalar_lea.vmem %s10282_s25, 16384  ;;  %p10284_p10 = scmp.lt.s32.totalorder %s187_s9, %s10282_s25 }
  0x3b   : > { %p10280_p5 = pneg %p10279_p0  ;;  %p10285_p1 = scmp.lt.s32.totalorder %s10283_s27, %s10276_s11 }
  0x3d   : > { %p10286_p4 = por %p10285_p1, %p10284_p10 }
  0x3f   : > { %p10287_p6 = pnand %p10286_p4, %p10280_p5 }
  0x41   : > { %10290 = shalt.err (!%p10287_p6)
}
  0x42   : > { %s10384_s29 = smov 64   ;;  %s10385_s30 = smov 4  }
  0x43   : > { %9829 = dma.hbm_to_vmem [thread:$0]  (!%p10521_p11), %s185_s7, 8192, %s187_s9, %s175_s10, %s10384_s29, %s10384_s29, %s10385_s30  }
  0x44   : > { %198 = sbr.rel (%p10464_p8) target bundleno = 1918 (0x77e), region = 32 }
  0x49   : > { %s10532_s28 = sand.u32 1, %s10359_s13   ;;  %p12718_p12 = scmp.ne.s32.totalorder %s12712_s22, 0 }
  0x4a   : > { %s8860_s5 = sshll.u32 %s10532_s28, 9  ;;  %s201_s6 = scalar_lea.sflag [#allocation3], %s10532_s28 }
  0x4b   : > { %s10536_s8 = scalar_lea.vmem [#allocation2], %s8860_s5 }
  0x4c   : > { %10342 = dma.done.wait (%p12718_p12), %s201_s6, 8192  }
  0x4d   : > { %10344 = vsyncadd (%p12718_p12), %s201_s6, 4294959104  ;;  %p12719_p3 = scmp.ne.s32.totalorder %s12710_s20, 0 }
  0x4f   : > { %10346 = dma.done.wait (%p12719_p3), [#allocation6], 87040  }
  0x50   : > { %10348 = vsyncadd (%p12719_p3), [#allocation6], 4294880256  ;;  %v12707_v0 = vmov 0   ;;  %v9899_v1 = vld [vmem:[%s10536_s8 + $0x38] sm:$0xff]   ;;  %v9901_v3 = vld [vmem:[%s10536_s8 + $0x30] sm:$0xff]   ;;  %s8863_s20 = sshll.u32 %s10532_s28, 7 }
  0x51   : > { %4588 = vmatprep.subr.bf16.mxu0 %v12707_v0  ;;  %5261 = vmatprep.subr.bf16.mxu1 %v12707_v0  ;;  %v9900_v2 = vld [vmem:[%s10536_s8 + $0xb8] sm:$0xff]   ;;  %v9902_v4 = vld [vmem:[%s10536_s8 + $0xb0] sm:$0xff]   ;;  %v9903_v5 = vld [vmem:[%s10536_s8 + $0x28] sm:$0xff]   ;;  %s12627_s22 = scalar_lea.vmem [#allocation8], %s8863_s20  ;;  %s9614_s24 = sshll.u32 %s10367_s15, 11 }
  0x52   : > { %4589 = vmatpush1.bf16.msra.mxu0 %v9899_v1  ;;  %5262 = vmatpush1.bf16.msra.mxu1 %v9900_v2  ;;  %v9904_v6 = vld [vmem:[%s10536_s8 + $0xa8] sm:$0xff]   ;;  %v9905_v7 = vld [vmem:[%s10536_s8 + $0x20] sm:$0xff]   ;;  %v9907_v9 = vld [vmem:[%s10536_s8 + $0x18] sm:$0xff]   ;;  %s8746_s7 = sshll.u32 %s12627_s22, 4  ;;  %s12648_s10 = scalar_lea.hbm %s12703_s3, %s9614_s24  ;;  %s12650_s7 = int_to_ptr.vmem [resolvable:$true] %s8746_s7 }
  0x53   : > { %4590 = vmatprep.subr.bf16.mxu0 %v12707_v0  ;;  %5263 = vmatprep.subr.bf16.mxu1 %v12707_v0  ;;  %v9906_v8 = vld [vmem:[%s10536_s8 + $0xa0] sm:$0xff]   ;;  %v9908_v10 = vld [vmem:[%s10536_s8 + $0x98] sm:$0xff]   ;;  %v9909_v11 = vld [vmem:[%s10536_s8 + $0x10] sm:$0xff]   ;;  %s8732_s15 = scalar_lea.sflag [#allocation4], %s10532_s28  ;;  %s10291_s11 = scalar_lea.vmem %s12650_s7, 2048 }
  0x54   : > { %v9910_v12 = vld [vmem:[%s10536_s8 + $0x90] sm:$0xff]   ;;  %v9911_v13 = vld [vmem:[%s10536_s8 + $0x8] sm:$0xff]   ;;  %v9913_v15 = vld [vmem:[%s10536_s8] sm:$0xff]   ;;  %p10292_p8 = scmp.ne.s32.totalorder %s12650_s7, %s10291_s11  ;;  %s10387_s18 = smov [#allocation8]  }
  0x55   : > { %v9912_v14 = vld [vmem:[%s10536_s8 + $0x88] sm:$0xff]   ;;  %v9914_v16 = vld [vmem:[%s10536_s8 + $0x80] sm:$0xff]   ;;  %v9915_v17 = vld [vmem:[%s10536_s8 + $0x78] sm:$0xff]   ;;  %s10295_s25 = sshll.u32 %s10387_s18, 4  ;;  %s10296_s25 = int_to_ptr.vmem [resolvable:$false] %s10295_s25 }
  0x56   : > { %4591 = vmatpush1.bf16.msra.mxu0 %v9901_v3  ;;  %5264 = vmatpush1.bf16.msra.mxu1 %v9902_v4  ;;  %v9916_v18 = vld [vmem:[%s10536_s8 + $0xf8] sm:$0xff]   ;;  %v236_v19 = vld [vmem:[#allocation5] sm:$0xff]  ;;  %v237_v21 = vld [vmem:[#allocation5 + $0x8] sm:$0xff]  ;;  %p10293_p9 = pnand %p10292_p8, %p10505_p7  ;;  %s10297_s27 = scalar_lea.vmem %s10296_s25, 4096 }
  0x57   : > { %4592 = vmatprep.subr.bf16.mxu0 %v12707_v0  ;;  %5265 = vmatprep.subr.bf16.mxu1 %v12707_v0  ;;  %v240_v20 = vld [vmem:[#allocation5 + $0x20] sm:$0xff]  ;;  %v241_v23 = vld [vmem:[#allocation5 + $0x28] sm:$0xff]  ;;  %v9917_v24 = vld [vmem:[%s10536_s8 + $0x70] sm:$0xff]   ;;  %p10298_p2 = scmp.lt.s32.totalorder %s12650_s7, %s10296_s25  ;;  %p10299_p13 = scmp.lt.s32.totalorder %s10297_s27, %s10291_s11 }
  0x58   : > { %v8865_v22 = vcombine.high %v236_v19, %v240_v20  ;;  %v8867_v25 = vcombine.high %v237_v21, %v241_v23  ;;  %v9918_v26 = vld [vmem:[%s10536_s8 + $0xf0] sm:$0xff]   ;;  %v9919_v27 = vld [vmem:[%s10536_s8 + $0x68] sm:$0xff]   ;;  %v9921_v29 = vld [vmem:[%s10536_s8 + $0x60] sm:$0xff]   ;;  %v8864_v43 = vcombine.low %v236_v19, %v240_v20  ;;  %v8866_v44 = vcombine.low %v237_v21, %v241_v23  ;;  %p10294_p11 = pneg %p10293_p9 }
  0x59   : > { %v9920_v28 = vld [vmem:[%s10536_s8 + $0xe8] sm:$0xff]   ;;  %v9922_v30 = vld [vmem:[%s10536_s8 + $0xe0] sm:$0xff]   ;;  %v9923_v31 = vld [vmem:[%s10536_s8 + $0x58] sm:$0xff]   ;;  %p10300_p0 = por %p10299_p13, %p10298_p2 }
  0x5a   : > { %4593 = vmatpush1.bf16.msra.mxu0 %v9903_v5  ;;  %5266 = vmatpush1.bf16.msra.mxu1 %v9904_v6  ;;  %v9924_v32 = vld [vmem:[%s10536_s8 + $0xd8] sm:$0xff]   ;;  %v9925_v33 = vld [vmem:[%s10536_s8 + $0x50] sm:$0xff]   ;;  %v9927_v35 = vld [vmem:[%s10536_s8 + $0x48] sm:$0xff]  }
  0x5b   : > { %4594 = vmatprep.subr.bf16.mxu0 %v12707_v0  ;;  %5267 = vmatprep.subr.bf16.mxu1 %v12707_v0  ;;  %v9926_v34 = vld [vmem:[%s10536_s8 + $0xd0] sm:$0xff]   ;;  %v9928_v36 = vld [vmem:[%s10536_s8 + $0xc8] sm:$0xff]   ;;  %v9929_v37 = vld [vmem:[%s10536_s8 + $0x40] sm:$0xff]   ;;  %p10301_p5 = pnand %p10300_p0, %p10294_p11 }
  0x5c   : > { %4620 = vmatprep.mubr.bf16.mxu0 %v8865_v22  ;;  %5293 = vmatprep.mubr.bf16.mxu1 %v8867_v25  ;;  %v9930_v38 = vld [vmem:[%s10536_s8 + $0xc0] sm:$0xff]   ;;  %v245_v41 = vld [vmem:[#allocation5 + $0x48] sm:$0xff] }
  0x5d   : > { %v244_v39 = vld [vmem:[#allocation5 + $0x40] sm:$0xff]  ;;  %v249_v42 = vld [vmem:[#allocation5 + $0x68] sm:$0xff] }
  0x5e   : > { %4595 = vmatpush1.bf16.msra.mxu0 %v9905_v7  ;;  %5268 = vmatpush1.bf16.msra.mxu1 %v9906_v8  ;;  %v248_v40 = vld [vmem:[#allocation5 + $0x60] sm:$0xff]  ;;  %v8875_v46 = vcombine.high %v245_v41, %v249_v42  ;;  %v253_v49 = vld [vmem:[#allocation5 + $0x88] sm:$0xff]  ;;  %v8874_v52 = vcombine.low %v245_v41, %v249_v42 }
  0x5f   : > { %4596 = vmatprep.subr.bf16.mxu0 %v12707_v0  ;;  %5269 = vmatprep.subr.bf16.mxu1 %v12707_v0  ;;  %v8873_v45 = vcombine.high %v244_v39, %v248_v40  ;;  %v252_v47 = vld [vmem:[#allocation5 + $0x80] sm:$0xff]  ;;  %v257_v50 = vld [vmem:[#allocation5 + $0xa8] sm:$0xff]  ;;  %v8872_v51 = vcombine.low %v244_v39, %v248_v40 }
  0x60   : > { %v256_v48 = vld [vmem:[#allocation5 + $0xa0] sm:$0xff]  ;;  %v8883_v54 = vcombine.high %v253_v49, %v257_v50  ;;  %v261_v57 = vld [vmem:[#allocation5 + $0xc8] sm:$0xff]  ;;  %v8882_v60 = vcombine.low %v253_v49, %v257_v50 }
  0x61   : > { %v8881_v53 = vcombine.high %v252_v47, %v256_v48  ;;  %v260_v55 = vld [vmem:[#allocation5 + $0xc0] sm:$0xff]  ;;  %v265_v58 = vld [vmem:[#allocation5 + $0xe8] sm:$0xff]  ;;  %v8880_v59 = vcombine.low %v252_v47, %v256_v48 }
  0x62   : > { %4597 = vmatpush1.bf16.msra.mxu0 %v9907_v9  ;;  %5270 = vmatpush1.bf16.msra.mxu1 %v9908_v10  ;;  %v264_v56 = vld [vmem:[#allocation5 + $0xe0] sm:$0xff]  ;;  %v8891_v62 = vcombine.high %v261_v57, %v265_v58  ;;  %v269_v2 = vld [vmem:[#allocation5 + $0x108] sm:$0xff]  ;;  %v8890_v5 = vcombine.low %v261_v57, %v265_v58 }
  0x63   : > { %4598 = vmatprep.subr.bf16.mxu0 %v12707_v0  ;;  %5271 = vmatprep.subr.bf16.mxu1 %v12707_v0  ;;  %v8889_v61 = vcombine.high %v260_v55, %v264_v56  ;;  %v268_v63 = vld [vmem:[#allocation5 + $0x100] sm:$0xff]  ;;  %v273_v3 = vld [vmem:[#allocation5 + $0x128] sm:$0xff]  ;;  %v8888_v4 = vcombine.low %v260_v55, %v264_v56 }
  0x64   : > { %v272_v1 = vld [vmem:[#allocation5 + $0x120] sm:$0xff]  ;;  %v8899_v7 = vcombine.high %v269_v2, %v273_v3  ;;  %v277_v10 = vld [vmem:[#allocation5 + $0x148] sm:$0xff] }
  0x65   : > { %v8897_v6 = vcombine.high %v268_v63, %v272_v1  ;;  %v276_v8 = vld [vmem:[#allocation5 + $0x140] sm:$0xff]  ;;  %v289_v19 = vld [vmem:[#allocation5 + $0x1a8] sm:$0xff] }
  0x66   : > { %4599 = vmatpush1.bf16.msra.mxu0 %v9909_v11  ;;  %5272 = vmatpush1.bf16.msra.mxu1 %v9910_v12  ;;  %v280_v9 = vld [vmem:[#allocation5 + $0x160] sm:$0xff]  ;;  %v281_v11 = vld [vmem:[#allocation5 + $0x168] sm:$0xff]  ;;  %v8896_v12 = vcombine.low %v268_v63, %v272_v1 }
  0x67   : > { %4600 = vmatprep.subr.bf16.mxu0 %v12707_v0  ;;  %5273 = vmatprep.subr.bf16.mxu1 %v12707_v0  ;;  %v8904_v20 = vcombine.low %v276_v8, %v280_v9  ;;  %v8906_v21 = vcombine.low %v277_v10, %v281_v11  ;;  %v296_v25 = vld [vmem:[#allocation5 + $0x1e0] sm:$0xff]  ;;  %v309_v42 = vld [vmem:[#allocation5 + $0x248] sm:$0xff] }
  0x68   : > { %v308_v40 = vld [vmem:[#allocation5 + $0x240] sm:$0xff]  ;;  %v317_v50 = vld [vmem:[#allocation5 + $0x288] sm:$0xff] }
  0x69   : > { %v312_v41 = vld [vmem:[#allocation5 + $0x260] sm:$0xff]  ;;  %v325_v58 = vld [vmem:[#allocation5 + $0x2c8] sm:$0xff] }
  0x6a   : > { %4601 = vmatpush1.bf16.msra.mxu0 %v9911_v13  ;;  %5274 = vmatpush1.bf16.msra.mxu1 %v9912_v14  ;;  %v8898_v13 = vcombine.low %v269_v2, %v273_v3  ;;  %v8905_v14 = vcombine.high %v276_v8, %v280_v9  ;;  %v316_v48 = vld [vmem:[#allocation5 + $0x280] sm:$0xff]  ;;  %v333_v3 = vld [vmem:[#allocation5 + $0x308] sm:$0xff] }
  0x6b   : > { %4602 = vmatprep.subr.bf16.mxu0 %v12707_v0  ;;  %5275 = vmatprep.subr.bf16.mxu1 %v12707_v0  ;;  %v320_v49 = vld [vmem:[#allocation5 + $0x2a0] sm:$0xff] }
  0x6c   : > { %v324_v56 = vld [vmem:[#allocation5 + $0x2c0] sm:$0xff] }
  0x6d   : > { %v328_v57 = vld [vmem:[#allocation5 + $0x2e0] sm:$0xff] }
  0x6e   : > { %4603 = vmatpush1.bf16.msra.mxu0 %v9913_v15  ;;  %5276 = vmatpush1.bf16.msra.mxu1 %v9914_v16  ;;  %v8907_v15 = vcombine.high %v277_v10, %v281_v11  ;;  %v284_v16 = vld [vmem:[#allocation5 + $0x180] sm:$0xff]  ;;  %v341_v11 = vld [vmem:[#allocation5 + $0x348] sm:$0xff] }
  0x6f   : > { %4604 = vmatprep.subr.bf16.mxu0 %v12707_v0  ;;  %5277 = vmatprep.subr.bf16.mxu1 %v12707_v0  ;;  %v332_v1 = vld [vmem:[#allocation5 + $0x300] sm:$0xff] }
  0x70   : > { %v336_v2 = vld [vmem:[#allocation5 + $0x320] sm:$0xff] }
  0x71   : > { %v340_v9 = vld [vmem:[#allocation5 + $0x340] sm:$0xff] }
  0x72   : > { %4605 = vmatpush2.bf16.msra.mxu0 %v9915_v17  ;;  %5278 = vmatpush2.bf16.msra.mxu1 %v9916_v18  ;;  %v288_v17 = vld [vmem:[#allocation5 + $0x1a0] sm:$0xff]  ;;  %v285_v18 = vld [vmem:[#allocation5 + $0x188] sm:$0xff] }
  0x73   : > { %4606 = vmatprep.subr.bf16.mxu0 %v12707_v0  ;;  %5279 = vmatprep.subr.bf16.mxu1 %v12707_v0  ;;  %v8913_v22 = vcombine.high %v284_v16, %v288_v17  ;;  %v8915_v23 = vcombine.high %v285_v18, %v289_v19  ;;  %v344_v10 = vld [vmem:[#allocation5 + $0x360] sm:$0xff] }
  0x76   : > { %4607 = vmatpush2.bf16.msra.mxu0 %v9917_v24  ;;  %5280 = vmatpush2.bf16.msra.mxu1 %v9918_v26  ;;  %v292_v24 = vld [vmem:[#allocation5 + $0x1c0] sm:$0xff]  ;;  %v293_v26 = vld [vmem:[#allocation5 + $0x1c8] sm:$0xff] }
  0x77   : > { %4608 = vmatprep.subr.bf16.mxu0 %v12707_v0  ;;  %5281 = vmatprep.subr.bf16.mxu1 %v12707_v0 }
  0x7a   : > { %4609 = vmatpush2.bf16.msra.mxu0 %v9919_v27  ;;  %5282 = vmatpush2.bf16.msra.mxu1 %v9920_v28  ;;  %v297_v27 = vld [vmem:[#allocation5 + $0x1e8] sm:$0xff]  ;;  %v8912_v28 = vcombine.low %v284_v16, %v288_v17  ;;  %v348_v17 = vld [vmem:[#allocation5 + $0x380] sm:$0xff] }
  0x7b   : > { %4610 = vmatprep.subr.bf16.mxu0 %v12707_v0  ;;  %5283 = vmatprep.subr.bf16.mxu1 %v12707_v0 }
  0x7e   : > { %4611 = vmatpush2.bf16.msra.mxu0 %v9921_v29  ;;  %5284 = vmatpush2.bf16.msra.mxu1 %v9922_v30  ;;  %v8914_v29 = vcombine.low %v285_v18, %v289_v19  ;;  %v8921_v30 = vcombine.high %v292_v24, %v296_v25  ;;  %v352_v18 = vld [vmem:[#allocation5 + $0x3a0] sm:$0xff]  ;;  %v349_v19 = vld [vmem:[#allocation5 + $0x388] sm:$0xff] }
  0x7f   : > { %4612 = vmatprep.subr.bf16.mxu0 %v12707_v0  ;;  %5285 = vmatprep.subr.bf16.mxu1 %v12707_v0 }
  0x82   : > { %4613 = vmatpush2.bf16.msra.mxu0 %v9923_v31  ;;  %5286 = vmatpush2.bf16.msra.mxu1 %v9924_v32  ;;  %v8923_v31 = vcombine.high %v293_v26, %v297_v27  ;;  %v300_v32 = vld [vmem:[#allocation5 + $0x200] sm:$0xff] }
  0x83   : > { %4614 = vmatprep.subr.bf16.mxu0 %v12707_v0  ;;  %5287 = vmatprep.subr.bf16.mxu1 %v12707_v0 }
  0x86   : > { %4615 = vmatpush2.bf16.msra.mxu0 %v9925_v33  ;;  %5288 = vmatpush2.bf16.msra.mxu1 %v9926_v34  ;;  %v304_v33 = vld [vmem:[#allocation5 + $0x220] sm:$0xff]  ;;  %v301_v34 = vld [vmem:[#allocation5 + $0x208] sm:$0xff] }
  0x87   : > { %4616 = vmatprep.subr.bf16.mxu0 %v12707_v0  ;;  %5289 = vmatprep.subr.bf16.mxu1 %v12707_v0 }
  0x8a   : > { %4617 = vmatpush2.bf16.msra.mxu0 %v9927_v35  ;;  %5290 = vmatpush2.bf16.msra.mxu1 %v9928_v36  ;;  %v305_v35 = vld [vmem:[#allocation5 + $0x228] sm:$0xff]  ;;  %v8920_v36 = vcombine.low %v292_v24, %v296_v25  ;;  %v356_v25 = vld [vmem:[#allocation5 + $0x3c0] sm:$0xff] }
  0x8b   : > { %4618 = vmatprep.subr.bf16.mxu0 %v12707_v0  ;;  %5291 = vmatprep.subr.bf16.mxu1 %v12707_v0  ;;  %v8931_v39 = vcombine.high %v301_v34, %v305_v35 }
  0x8e   : > { %4619 = vmatpush2.bf16.msra.mxu0 %v9929_v37  ;;  %5292 = vmatpush2.bf16.msra.mxu1 %v9930_v38  ;;  %v8922_v37 = vcombine.low %v293_v26, %v297_v27  ;;  %v8929_v38 = vcombine.high %v300_v32, %v304_v33  ;;  %v360_v26 = vld [vmem:[#allocation5 + $0x3e0] sm:$0xff]  ;;  %v357_v27 = vld [vmem:[#allocation5 + $0x3c8] sm:$0xff] }
  0x8f   : > { %5934 = vmatprep.subr.bf16.mxu0 %v12707_v0  ;;  %6607 = vmatprep.subr.bf16.mxu1 %v12707_v0 }
  0x91   : > { %4621 = vmatmul.mubr.bf16.vlgmr.msra.gmra.mxu0 %v8864_v43  ;;  %5294 = vmatmul.mubr.bf16.vlgmr.msra.gmra.mxu1 %v8866_v44  ;;  %v313_v43 = vld [vmem:[#allocation5 + $0x268] sm:$0xff]  ;;  %v8928_v44 = vcombine.low %v300_v32, %v304_v33  ;;  %v364_v33 = vld [vmem:[#allocation5 + $0x400] sm:$0xff] }
  0x92   : > { %4628 = vmatprep.mubr.bf16.mxu0 %v8873_v45  ;;  %5301 = vmatprep.mubr.bf16.mxu1 %v8875_v46  ;;  %v8930_v45 = vcombine.low %v301_v34, %v305_v35  ;;  %v8937_v46 = vcombine.high %v308_v40, %v312_v41  ;;  %v8939_v47 = vcombine.high %v309_v42, %v313_v43  ;;  %v368_v34 = vld [vmem:[#allocation5 + $0x420] sm:$0xff]  ;;  %v365_v35 = vld [vmem:[#allocation5 + $0x408] sm:$0xff] }
  0x99   : > { %4629 = vmatmul.mubr.bf16.gmra.mxu0 %v8872_v51  ;;  %5302 = vmatmul.mubr.bf16.gmra.mxu1 %v8874_v52  ;;  %v321_v51 = vld [vmem:[#allocation5 + $0x2a8] sm:$0xff]  ;;  %v8936_v52 = vcombine.low %v308_v40, %v312_v41  ;;  %v372_v41 = vld [vmem:[#allocation5 + $0x440] sm:$0xff] }
  0x9a   : > { %4636 = vmatprep.mubr.bf16.mxu0 %v8881_v53  ;;  %5309 = vmatprep.mubr.bf16.mxu1 %v8883_v54  ;;  %v8938_v53 = vcombine.low %v309_v42, %v313_v43  ;;  %v8945_v54 = vcombine.high %v316_v48, %v320_v49  ;;  %v8947_v55 = vcombine.high %v317_v50, %v321_v51  ;;  %v376_v42 = vld [vmem:[#allocation5 + $0x460] sm:$0xff]  ;;  %v373_v43 = vld [vmem:[#allocation5 + $0x448] sm:$0xff] }
  0xa1   : > { %4637 = vmatmul.mubr.bf16.gmra.mxu0 %v8880_v59  ;;  %5310 = vmatmul.mubr.bf16.gmra.mxu1 %v8882_v60  ;;  %v329_v59 = vld [vmem:[#allocation5 + $0x2e8] sm:$0xff]  ;;  %v8944_v60 = vcombine.low %v316_v48, %v320_v49  ;;  %v380_v49 = vld [vmem:[#allocation5 + $0x480] sm:$0xff] }
  0xa2   : > { %4644 = vmatprep.mubr.bf16.mxu0 %v8889_v61  ;;  %5317 = vmatprep.mubr.bf16.mxu1 %v8891_v62  ;;  %v8946_v61 = vcombine.low %v317_v50, %v321_v51  ;;  %v8953_v62 = vcombine.high %v324_v56, %v328_v57  ;;  %v8955_v63 = vcombine.high %v325_v58, %v329_v59  ;;  %v384_v50 = vld [vmem:[#allocation5 + $0x4a0] sm:$0xff]  ;;  %v381_v51 = vld [vmem:[#allocation5 + $0x488] sm:$0xff] }
  0xa9   : > { %4645 = vmatmul.mubr.bf16.gmra.mxu0 %v8888_v4  ;;  %5318 = vmatmul.mubr.bf16.gmra.mxu1 %v8890_v5  ;;  %v337_v4 = vld [vmem:[#allocation5 + $0x328] sm:$0xff]  ;;  %v8952_v5 = vcombine.low %v324_v56, %v328_v57  ;;  %v388_v57 = vld [vmem:[#allocation5 + $0x4c0] sm:$0xff] }
  0xaa   : > { %4652 = vmatprep.mubr.bf16.mxu0 %v8897_v6  ;;  %5325 = vmatprep.mubr.bf16.mxu1 %v8899_v7  ;;  %v8954_v6 = vcombine.low %v325_v58, %v329_v59  ;;  %v8961_v7 = vcombine.high %v332_v1, %v336_v2  ;;  %v8963_v8 = vcombine.high %v333_v3, %v337_v4  ;;  %v392_v58 = vld [vmem:[#allocation5 + $0x4e0] sm:$0xff]  ;;  %v389_v59 = vld [vmem:[#allocation5 + $0x4c8] sm:$0xff] }
  0xb1   : > { %4653 = vmatmul.mubr.bf16.gmra.mxu0 %v8896_v12  ;;  %5326 = vmatmul.mubr.bf16.gmra.mxu1 %v8898_v13  ;;  %v345_v12 = vld [vmem:[#allocation5 + $0x368] sm:$0xff]  ;;  %v8960_v13 = vcombine.low %v332_v1, %v336_v2  ;;  %v396_v2 = vld [vmem:[#allocation5 + $0x500] sm:$0xff] }
  0xb2   : > { %4660 = vmatprep.mubr.bf16.mxu0 %v8905_v14  ;;  %5333 = vmatprep.mubr.bf16.mxu1 %v8907_v15  ;;  %v8962_v14 = vcombine.low %v333_v3, %v337_v4  ;;  %v8969_v15 = vcombine.high %v340_v9, %v344_v10  ;;  %v8971_v16 = vcombine.high %v341_v11, %v345_v12  ;;  %v400_v3 = vld [vmem:[#allocation5 + $0x520] sm:$0xff]  ;;  %v397_v4 = vld [vmem:[#allocation5 + $0x508] sm:$0xff] }
  0xb9   : > { %4661 = vmatmul.mubr.bf16.gmra.mxu0 %v8904_v20  ;;  %5334 = vmatmul.mubr.bf16.gmra.mxu1 %v8906_v21  ;;  %v353_v20 = vld [vmem:[#allocation5 + $0x3a8] sm:$0xff]  ;;  %v8968_v21 = vcombine.low %v340_v9, %v344_v10  ;;  %v404_v10 = vld [vmem:[#allocation5 + $0x540] sm:$0xff] }
  0xba   : > { %4668 = vmatprep.mubr.bf16.mxu0 %v8913_v22  ;;  %5341 = vmatprep.mubr.bf16.mxu1 %v8915_v23  ;;  %v8970_v22 = vcombine.low %v341_v11, %v345_v12  ;;  %v8977_v23 = vcombine.high %v348_v17, %v352_v18  ;;  %v8979_v24 = vcombine.high %v349_v19, %v353_v20  ;;  %v408_v11 = vld [vmem:[#allocation5 + $0x560] sm:$0xff]  ;;  %v405_v12 = vld [vmem:[#allocation5 + $0x548] sm:$0xff] }
  0xc1   : > { %4669 = vmatmul.mubr.bf16.gmra.mxu0 %v8912_v28  ;;  %5342 = vmatmul.mubr.bf16.gmra.mxu1 %v8914_v29  ;;  %v361_v28 = vld [vmem:[#allocation5 + $0x3e8] sm:$0xff]  ;;  %v8976_v29 = vcombine.low %v348_v17, %v352_v18  ;;  %v412_v18 = vld [vmem:[#allocation5 + $0x580] sm:$0xff] }
  0xc2   : > { %4676 = vmatprep.mubr.bf16.mxu0 %v8921_v30  ;;  %5349 = vmatprep.mubr.bf16.mxu1 %v8923_v31  ;;  %v8978_v30 = vcombine.low %v349_v19, %v353_v20  ;;  %v8985_v31 = vcombine.high %v356_v25, %v360_v26  ;;  %v8987_v32 = vcombine.high %v357_v27, %v361_v28  ;;  %v416_v19 = vld [vmem:[#allocation5 + $0x5a0] sm:$0xff]  ;;  %v413_v20 = vld [vmem:[#allocation5 + $0x588] sm:$0xff] }
  0xc9   : > { %4677 = vmatmul.mubr.bf16.gmra.mxu0 %v8920_v36  ;;  %5350 = vmatmul.mubr.bf16.gmra.mxu1 %v8922_v37  ;;  %v369_v36 = vld [vmem:[#allocation5 + $0x428] sm:$0xff]  ;;  %v8984_v37 = vcombine.low %v356_v25, %v360_v26  ;;  %v420_v26 = vld [vmem:[#allocation5 + $0x5c0] sm:$0xff] }
  0xca   : > { %4684 = vmatprep.mubr.bf16.mxu0 %v8929_v38  ;;  %5357 = vmatprep.mubr.bf16.mxu1 %v8931_v39  ;;  %v8986_v38 = vcombine.low %v357_v27, %v361_v28  ;;  %v8993_v39 = vcombine.high %v364_v33, %v368_v34  ;;  %v8995_v40 = vcombine.high %v365_v35, %v369_v36  ;;  %v424_v27 = vld [vmem:[#allocation5 + $0x5e0] sm:$0xff]  ;;  %v421_v28 = vld [vmem:[#allocation5 + $0x5c8] sm:$0xff] }
  0xd1   : > { %4685 = vmatmul.mubr.bf16.gmra.mxu0 %v8928_v44  ;;  %5358 = vmatmul.mubr.bf16.gmra.mxu1 %v8930_v45  ;;  %v377_v44 = vld [vmem:[#allocation5 + $0x468] sm:$0xff]  ;;  %v8992_v45 = vcombine.low %v364_v33, %v368_v34  ;;  %v428_v34 = vld [vmem:[#allocation5 + $0x600] sm:$0xff] }
  0xd2   : > { %4692 = vmatprep.mubr.bf16.mxu0 %v8937_v46  ;;  %5365 = vmatprep.mubr.bf16.mxu1 %v8939_v47  ;;  %v8994_v46 = vcombine.low %v365_v35, %v369_v36  ;;  %v9001_v47 = vcombine.high %v372_v41, %v376_v42  ;;  %v9003_v48 = vcombine.high %v373_v43, %v377_v44  ;;  %v432_v35 = vld [vmem:[#allocation5 + $0x620] sm:$0xff]  ;;  %v429_v36 = vld [vmem:[#allocation5 + $0x608] sm:$0xff] }
  0xd9   : > { %4693 = vmatmul.mubr.bf16.gmra.mxu0 %v8936_v52  ;;  %5366 = vmatmul.mubr.bf16.gmra.mxu1 %v8938_v53  ;;  %v385_v52 = vld [vmem:[#allocation5 + $0x4a8] sm:$0xff]  ;;  %v9000_v53 = vcombine.low %v372_v41, %v376_v42  ;;  %v436_v42 = vld [vmem:[#allocation5 + $0x640] sm:$0xff] }
  0xda   : > { %4700 = vmatprep.mubr.bf16.mxu0 %v8945_v54  ;;  %5373 = vmatprep.mubr.bf16.mxu1 %v8947_v55  ;;  %v9002_v54 = vcombine.low %v373_v43, %v377_v44  ;;  %v9009_v55 = vcombine.high %v380_v49, %v384_v50  ;;  %v9011_v56 = vcombine.high %v381_v51, %v385_v52  ;;  %v440_v43 = vld [vmem:[#allocation5 + $0x660] sm:$0xff]  ;;  %v437_v44 = vld [vmem:[#allocation5 + $0x648] sm:$0xff] }
  0xe1   : > { %4701 = vmatmul.mubr.bf16.gmra.mxu0 %v8944_v60  ;;  %5374 = vmatmul.mubr.bf16.gmra.mxu1 %v8946_v61  ;;  %v393_v60 = vld [vmem:[#allocation5 + $0x4e8] sm:$0xff]  ;;  %v9008_v61 = vcombine.low %v380_v49, %v384_v50 }
  0xe2   : > { %4708 = vmatprep.mubr.bf16.mxu0 %v8953_v62  ;;  %5381 = vmatprep.mubr.bf16.mxu1 %v8955_v63  ;;  %v9010_v62 = vcombine.low %v381_v51, %v385_v52  ;;  %v9017_v63 = vcombine.high %v388_v57, %v392_v58  ;;  %v9019_v1 = vcombine.high %v389_v59, %v393_v60 }
  0xe9   : > { %4709 = vmatmul.mubr.bf16.gmra.mxu0 %v8952_v5  ;;  %5382 = vmatmul.mubr.bf16.gmra.mxu1 %v8954_v6  ;;  %v401_v5 = vld [vmem:[#allocation5 + $0x528] sm:$0xff]  ;;  %v9016_v6 = vcombine.low %v388_v57, %v392_v58 }
  0xea   : > { %4716 = vmatprep.mubr.bf16.mxu0 %v8961_v7  ;;  %5389 = vmatprep.mubr.bf16.mxu1 %v8963_v8  ;;  %v9018_v7 = vcombine.low %v389_v59, %v393_v60  ;;  %v9025_v8 = vcombine.high %v396_v2, %v400_v3  ;;  %v9027_v9 = vcombine.high %v397_v4, %v401_v5  ;;  %v445_v57 = vld [vmem:[#allocation5 + $0x688] sm:$0xff] }
  0xeb   : > { %v449_v58 = vld [vmem:[#allocation5 + $0x6a8] sm:$0xff]  ;;  %v9064_v60 = vcombine.low %v436_v42, %v440_v43 }
  0xf1   : > { %4717 = vmatmul.mubr.bf16.gmra.mxu0 %v8960_v13  ;;  %5390 = vmatmul.mubr.bf16.gmra.mxu1 %v8962_v14  ;;  %v409_v13 = vld [vmem:[#allocation5 + $0x568] sm:$0xff]  ;;  %v9024_v14 = vcombine.low %v396_v2, %v400_v3  ;;  %v9075_v3 = vcombine.high %v445_v57, %v449_v58 }
  0xf2   : > { %4724 = vmatprep.mubr.bf16.mxu0 %v8969_v15  ;;  %5397 = vmatprep.mubr.bf16.mxu1 %v8971_v16  ;;  %v9026_v15 = vcombine.low %v397_v4, %v401_v5  ;;  %v9033_v16 = vcombine.high %v404_v10, %v408_v11  ;;  %v9035_v17 = vcombine.high %v405_v12, %v409_v13 }
  0xf9   : > { %4725 = vmatmul.mubr.bf16.gmra.mxu0 %v8968_v21  ;;  %5398 = vmatmul.mubr.bf16.gmra.mxu1 %v8970_v22  ;;  %v417_v21 = vld [vmem:[#allocation5 + $0x5a8] sm:$0xff]  ;;  %v9032_v22 = vcombine.low %v404_v10, %v408_v11  ;;  %v456_v10 = vld [vmem:[#allocation5 + $0x6e0] sm:$0xff] }
  0xfa   : > { %4732 = vmatprep.mubr.bf16.mxu0 %v8977_v23  ;;  %5405 = vmatprep.mubr.bf16.mxu1 %v8979_v24  ;;  %v9034_v23 = vcombine.low %v405_v12, %v409_v13  ;;  %v9041_v24 = vcombine.high %v412_v18, %v416_v19  ;;  %v9043_v25 = vcombine.high %v413_v20, %v417_v21  ;;  %v453_v12 = vld [vmem:[#allocation5 + $0x6c8] sm:$0xff] }
  0xfb   : > { %v457_v13 = vld [vmem:[#allocation5 + $0x6e8] sm:$0xff] }
 0x101   : > { %4733 = vmatmul.mubr.bf16.gmra.mxu0 %v8976_v29  ;;  %5406 = vmatmul.mubr.bf16.gmra.mxu1 %v8978_v30  ;;  %v425_v29 = vld [vmem:[#allocation5 + $0x5e8] sm:$0xff]  ;;  %v9040_v30 = vcombine.low %v412_v18, %v416_v19 }
 0x102   : > { %4740 = vmatprep.mubr.bf16.mxu0 %v8985_v31  ;;  %5413 = vmatprep.mubr.bf16.mxu1 %v8987_v32  ;;  %v9042_v31 = vcombine.low %v413_v20, %v417_v21  ;;  %v9049_v32 = vcombine.high %v420_v26, %v424_v27  ;;  %v9051_v33 = vcombine.high %v421_v28, %v425_v29 }
 0x103   : > { %v9083_v21 = vcombine.high %v453_v12, %v457_v13 }
 0x109   : > { %4741 = vmatmul.mubr.bf16.gmra.mxu0 %v8984_v37  ;;  %5414 = vmatmul.mubr.bf16.gmra.mxu1 %v8986_v38  ;;  %v433_v37 = vld [vmem:[#allocation5 + $0x628] sm:$0xff]  ;;  %v9048_v38 = vcombine.low %v420_v26, %v424_v27  ;;  %v460_v27 = vld [vmem:[#allocation5 + $0x700] sm:$0xff] }
 0x10a   : > { %4748 = vmatprep.mubr.bf16.mxu0 %v8993_v39  ;;  %5421 = vmatprep.mubr.bf16.mxu1 %v8995_v40  ;;  %v9050_v39 = vcombine.low %v421_v28, %v425_v29  ;;  %v9057_v40 = vcombine.high %v428_v34, %v432_v35  ;;  %v9059_v41 = vcombine.high %v429_v36, %v433_v37  ;;  %v464_v28 = vld [vmem:[#allocation5 + $0x720] sm:$0xff] }
 0x111   : > { %4749 = vmatmul.mubr.bf16.gmra.mxu0 %v8992_v45  ;;  %5422 = vmatmul.mubr.bf16.gmra.mxu1 %v8994_v46  ;;  %v441_v45 = vld [vmem:[#allocation5 + $0x668] sm:$0xff]  ;;  %v9056_v46 = vcombine.low %v428_v34, %v432_v35  ;;  %v9082_v35 = vcombine.low %v453_v12, %v457_v13 }
 0x112   : > { %4756 = vmatprep.mubr.bf16.mxu0 %v9001_v47  ;;  %5429 = vmatprep.mubr.bf16.mxu1 %v9003_v48  ;;  %v9058_v47 = vcombine.low %v429_v36, %v433_v37  ;;  %v9065_v48 = vcombine.high %v436_v42, %v440_v43  ;;  %v9067_v49 = vcombine.high %v437_v44, %v441_v45 }
 0x113   : > { %v9089_v36 = vcombine.high %v460_v27, %v464_v28 }
 0x119   : > { %4757 = vmatmul.mubr.bf16.gmra.mxu0 %v9000_v53  ;;  %5430 = vmatmul.mubr.bf16.gmra.mxu1 %v9002_v54  ;;  %v444_v54 = vld [vmem:[#allocation5 + $0x680] sm:$0xff] }
 0x11a   : > { %4764 = vmatprep.mubr.bf16.mxu0 %v9009_v55  ;;  %5437 = vmatprep.mubr.bf16.mxu1 %v9011_v56  ;;  %v448_v55 = vld [vmem:[#allocation5 + $0x6a0] sm:$0xff] }
 0x121   : > { %4765 = vmatmul.mubr.bf16.gmra.mxu0 %v9008_v61  ;;  %5438 = vmatmul.mubr.bf16.gmra.mxu1 %v9010_v62  ;;  %v9066_v62 = vcombine.low %v437_v44, %v441_v45  ;;  %v468_v45 = vld [vmem:[#allocation5 + $0x740] sm:$0xff] }
 0x122   : > { %4772 = vmatprep.mubr.bf16.mxu0 %v9017_v63  ;;  %5445 = vmatprep.mubr.bf16.mxu1 %v9019_v1  ;;  %v9073_v63 = vcombine.high %v444_v54, %v448_v55 }
 0x129   : > { %4773 = vmatmul.mubr.bf16.gmra.mxu0 %v9016_v6  ;;  %5446 = vmatmul.mubr.bf16.gmra.mxu1 %v9018_v7 }
 0x12a   : > { %4780 = vmatprep.mubr.bf16.mxu0 %v9025_v8  ;;  %5453 = vmatprep.mubr.bf16.mxu1 %v9027_v9  ;;  %v452_v9 = vld [vmem:[#allocation5 + $0x6c0] sm:$0xff] }
 0x12b   : > { %v9081_v18 = vcombine.high %v452_v9, %v456_v10 }
 0x131   : > { %4781 = vmatmul.mubr.bf16.gmra.mxu0 %v9024_v14  ;;  %5454 = vmatmul.mubr.bf16.gmra.mxu1 %v9026_v15  ;;  %v9072_v15 = vcombine.low %v444_v54, %v448_v55 }
 0x132   : > { %4788 = vmatprep.mubr.bf16.mxu0 %v9033_v16  ;;  %5461 = vmatprep.mubr.bf16.mxu1 %v9035_v17  ;;  %v9074_v17 = vcombine.low %v445_v57, %v449_v58 }
 0x139   : > { %4789 = vmatmul.mubr.bf16.gmra.mxu0 %v9032_v22  ;;  %5462 = vmatmul.mubr.bf16.gmra.mxu1 %v9034_v23 }
 0x13a   : > { %4796 = vmatprep.mubr.bf16.mxu0 %v9041_v24  ;;  %5469 = vmatprep.mubr.bf16.mxu1 %v9043_v25 }
 0x141   : > { %4797 = vmatmul.mubr.bf16.gmra.mxu0 %v9040_v30  ;;  %5470 = vmatmul.mubr.bf16.gmra.mxu1 %v9042_v31  ;;  %v461_v30 = vld [vmem:[#allocation5 + $0x708] sm:$0xff] }
 0x142   : > { %4804 = vmatprep.mubr.bf16.mxu0 %v9049_v32  ;;  %5477 = vmatprep.mubr.bf16.mxu1 %v9051_v33  ;;  %v465_v31 = vld [vmem:[#allocation5 + $0x728] sm:$0xff]  ;;  %v9080_v33 = vcombine.low %v452_v9, %v456_v10 }
 0x143   : > { %v9090_v54 = vcombine.low %v461_v30, %v465_v31 }
 0x149   : > { %4805 = vmatmul.mubr.bf16.gmra.mxu0 %v9048_v38  ;;  %5478 = vmatmul.mubr.bf16.gmra.mxu1 %v9050_v39  ;;  %v9091_v39 = vcombine.high %v461_v30, %v465_v31 }
 0x14a   : > { %4812 = vmatprep.mubr.bf16.mxu0 %v9057_v40  ;;  %5485 = vmatprep.mubr.bf16.mxu1 %v9059_v41 }
 0x151   : > { %v4622_v50 = vpop.f32.mrf.mxu0  ;;  %4813 = vmatmul.mubr.bf16.gmra.mxu0 %v9056_v46  ;;  %v5295_v51 = vpop.f32.mrf.mxu1  ;;  %5486 = vmatmul.mubr.bf16.gmra.mxu1 %v9058_v47  ;;  %v472_v46 = vld [vmem:[#allocation5 + $0x760] sm:$0xff] }
 0x152   : > { %4820 = vmatprep.mubr.bf16.mxu0 %v9065_v48  ;;  %v10612_v52 = vadd.f32 %v5295_v51, %v4622_v50  ;;  %5493 = vmatprep.mubr.bf16.mxu1 %v9067_v49  ;;  %v469_v48 = vld [vmem:[#allocation5 + $0x748] sm:$0xff]  ;;  %v9088_v51 = vcombine.low %v460_v27, %v464_v28  ;;  %v9097_v55 = vcombine.high %v468_v45, %v472_v46 }
 0x153   : > { %v4624_v53 = vpop.f32.mrf.mxu0  ;;  %v5297_v56 = vpop.f32.mrf.mxu1  ;;  %v473_v49 = vld [vmem:[#allocation5 + $0x768] sm:$0xff]  ;;  %v9096_v9 = vcombine.low %v468_v45, %v472_v46 }
 0x154   : > { %v9099_v58 = vcombine.high %v469_v48, %v473_v49  ;;  %v489_v27 = vld [vmem:[#allocation5 + $0x7e8] sm:$0xff] }
 0x155   : > { %v4625_v59 = vpop.f32.mrf.mxu0  ;;  %v5298_v61 = vpop.f32.mrf.mxu1  ;;  %v493_v46 = vld [vmem:[#allocation5 + $0x808] sm:$0xff] }
 0x156   : > { %v10614_v1 = vadd.f32 %v5298_v61, %v4625_v59 }
 0x157   : > { %v4627_v2 = vpop.f32.mrf.mxu0  ;;  %v5300_v4 = vpop.f32.mrf.mxu1 }
 0x158   : > { %v476_v2 = vld [vmem:[#allocation5 + $0x780] sm:$0xff] }
 0x159   : > { %v4630_v5 = vpop.f32.mrf.mxu0  ;;  %4821 = vmatmul.mubr.bf16.gmra.mxu0 %v9064_v60  ;;  %v5303_v6 = vpop.f32.mrf.mxu1  ;;  %5494 = vmatmul.mubr.bf16.gmra.mxu1 %v9066_v62 }
 0x15a   : > { %4828 = vmatprep.mubr.bf16.mxu0 %v9073_v63  ;;  %v10616_v7 = vadd.f32 %v5303_v6, %v4630_v5  ;;  %5501 = vmatprep.mubr.bf16.mxu1 %v9075_v3  ;;  %v480_v3 = vld [vmem:[#allocation5 + $0x7a0] sm:$0xff]  ;;  %v477_v5 = vld [vmem:[#allocation5 + $0x788] sm:$0xff] }
 0x15b   : > { %v4632_v8 = vpop.f32.mrf.mxu0  ;;  %v5305_v11 = vpop.f32.mrf.mxu1  ;;  %v481_v6 = vld [vmem:[#allocation5 + $0x7a8] sm:$0xff]  ;;  %v9105_v12 = vcombine.high %v476_v2, %v480_v3 }
 0x15c   : > { %v9098_v11 = vcombine.low %v469_v48, %v473_v49  ;;  %v9106_v31 = vcombine.low %v477_v5, %v481_v6 }
 0x15d   : > { %v4633_v14 = vpop.f32.mrf.mxu0  ;;  %v5306_v16 = vpop.f32.mrf.mxu1 }
 0x15e   : > { %v10618_v19 = vadd.f32 %v5306_v16, %v4633_v14 }
 0x15f   : > { %v4635_v20 = vpop.f32.mrf.mxu0  ;;  %v5308_v22 = vpop.f32.mrf.mxu1 }
 0x160   : > { %v484_v22 = vld [vmem:[#allocation5 + $0x7c0] sm:$0xff] }
 0x161   : > { %v4638_v23 = vpop.f32.mrf.mxu0  ;;  %4829 = vmatmul.mubr.bf16.gmra.mxu0 %v9072_v15  ;;  %v5311_v24 = vpop.f32.mrf.mxu1  ;;  %5502 = vmatmul.mubr.bf16.gmra.mxu1 %v9074_v17  ;;  %v9107_v15 = vcombine.high %v477_v5, %v481_v6  ;;  %v501_v5 = vld [vmem:[#allocation5 + $0x848] sm:$0xff] }
 0x162   : > { %4836 = vmatprep.mubr.bf16.mxu0 %v9081_v18  ;;  %v10620_v25 = vadd.f32 %v5311_v24, %v4638_v23  ;;  %5509 = vmatprep.mubr.bf16.mxu1 %v9083_v21  ;;  %v488_v23 = vld [vmem:[#allocation5 + $0x7e0] sm:$0xff]  ;;  %v505_v6 = vld [vmem:[#allocation5 + $0x868] sm:$0xff] }
 0x163   : > { %v4640_v26 = vpop.f32.mrf.mxu0  ;;  %v5313_v29 = vpop.f32.mrf.mxu1  ;;  %v9112_v49 = vcombine.low %v484_v22, %v488_v23 }
 0x164   : > { %v485_v26 = vld [vmem:[#allocation5 + $0x7c8] sm:$0xff]  ;;  %v9104_v29 = vcombine.low %v476_v2, %v480_v3  ;;  %v500_v2 = vld [vmem:[#allocation5 + $0x840] sm:$0xff] }
 0x165   : > { %v4641_v32 = vpop.f32.mrf.mxu0  ;;  %v5314_v34 = vpop.f32.mrf.mxu1  ;;  %v504_v3 = vld [vmem:[#allocation5 + $0x860] sm:$0xff] }
 0x166   : > { %v10622_v37 = vadd.f32 %v5314_v34, %v4641_v32  ;;  %v9113_v32 = vcombine.high %v484_v22, %v488_v23 }
 0x167   : > { %v4643_v38 = vpop.f32.mrf.mxu0  ;;  %v5316_v40 = vpop.f32.mrf.mxu1 }
 0x169   : > { %v4646_v41 = vpop.f32.mrf.mxu0  ;;  %4837 = vmatmul.mubr.bf16.gmra.mxu0 %v9080_v33  ;;  %v5319_v42 = vpop.f32.mrf.mxu1  ;;  %5510 = vmatmul.mubr.bf16.gmra.mxu1 %v9082_v35  ;;  %v9115_v35 = vcombine.high %v485_v26, %v489_v27 }
 0x16a   : > { %4844 = vmatprep.mubr.bf16.mxu0 %v9089_v36  ;;  %v10624_v43 = vadd.f32 %v5319_v42, %v4646_v41  ;;  %5517 = vmatprep.mubr.bf16.mxu1 %v9091_v39  ;;  %v492_v42 = vld [vmem:[#allocation5 + $0x800] sm:$0xff] }
 0x16b   : > { %v4648_v44 = vpop.f32.mrf.mxu0  ;;  %v5321_v47 = vpop.f32.mrf.mxu1 }
 0x16c   : > { %v496_v44 = vld [vmem:[#allocation5 + $0x820] sm:$0xff]  ;;  %v497_v47 = vld [vmem:[#allocation5 + $0x828] sm:$0xff] }
 0x16d   : > { %v4649_v50 = vpop.f32.mrf.mxu0  ;;  %v5322_v53 = vpop.f32.mrf.mxu1 }
 0x16e   : > { %v10626_v56 = vadd.f32 %v5322_v53, %v4649_v50  ;;  %v9121_v53 = vcombine.high %v492_v42, %v496_v44 }
 0x16f   : > { %v4651_v57 = vpop.f32.mrf.mxu0  ;;  %v5324_v59 = vpop.f32.mrf.mxu1 }
 0x170   : > { %v9123_v57 = vcombine.high %v493_v46, %v497_v47 }
 0x171   : > { %v4654_v60 = vpop.f32.mrf.mxu0  ;;  %4845 = vmatmul.mubr.bf16.gmra.mxu0 %v9088_v51  ;;  %v5327_v61 = vpop.f32.mrf.mxu1  ;;  %5518 = vmatmul.mubr.bf16.gmra.mxu1 %v9090_v54  ;;  %v9114_v51 = vcombine.low %v485_v26, %v489_v27  ;;  %v512_v26 = vld [vmem:[#allocation5 + $0x8a0] sm:$0xff] }
 0x172   : > { %4852 = vmatprep.mubr.bf16.mxu0 %v9097_v55  ;;  %v10628_v62 = vadd.f32 %v5327_v61, %v4654_v60  ;;  %5525 = vmatprep.mubr.bf16.mxu1 %v9099_v58 }
 0x173   : > { %v4656_v63 = vpop.f32.mrf.mxu0  ;;  %v5329_v4 = vpop.f32.mrf.mxu1 }
 0x175   : > { %v4657_v8 = vpop.f32.mrf.mxu0  ;;  %v5330_v10 = vpop.f32.mrf.mxu1 }
 0x176   : > { %v10630_v13 = vadd.f32 %v5330_v10, %v4657_v8 }
 0x177   : > { %v4659_v14 = vpop.f32.mrf.mxu0  ;;  %v5332_v16 = vpop.f32.mrf.mxu1 }
 0x178   : > { %v9131_v16 = vcombine.high %v501_v5, %v505_v6 }
 0x179   : > { %v4662_v17 = vpop.f32.mrf.mxu0  ;;  %4853 = vmatmul.mubr.bf16.gmra.mxu0 %v9096_v9  ;;  %v5335_v18 = vpop.f32.mrf.mxu1  ;;  %5526 = vmatmul.mubr.bf16.gmra.mxu1 %v9098_v11  ;;  %v9120_v9 = vcombine.low %v492_v42, %v496_v44  ;;  %v9122_v11 = vcombine.low %v493_v46, %v497_v47  ;;  %v516_v47 = vld [vmem:[#allocation5 + $0x8c0] sm:$0xff] }
 0x17a   : > { %4860 = vmatprep.mubr.bf16.mxu0 %v9105_v12  ;;  %v10632_v20 = vadd.f32 %v5335_v18, %v4662_v17  ;;  %5533 = vmatprep.mubr.bf16.mxu1 %v9107_v15  ;;  %v9129_v12 = vcombine.high %v500_v2, %v504_v3 }
 0x17b   : > { %v4664_v21 = vpop.f32.mrf.mxu0  ;;  %v5337_v24 = vpop.f32.mrf.mxu1 }
 0x17c   : > { %v508_v24 = vld [vmem:[#allocation5 + $0x880] sm:$0xff] }
 0x17d   : > { %v4665_v28 = vpop.f32.mrf.mxu0  ;;  %v5338_v30 = vpop.f32.mrf.mxu1 }
 0x17e   : > { %v10634_v33 = vadd.f32 %v5338_v30, %v4665_v28  ;;  %v509_v28 = vld [vmem:[#allocation5 + $0x888] sm:$0xff] }
 0x17f   : > { %v4667_v34 = vpop.f32.mrf.mxu0  ;;  %v5340_v36 = vpop.f32.mrf.mxu1 }
 0x180   : > { %v9130_v34 = vcombine.low %v501_v5, %v505_v6 }
 0x181   : > { %v4670_v38 = vpop.f32.mrf.mxu0  ;;  %4861 = vmatmul.mubr.bf16.gmra.mxu0 %v9104_v29  ;;  %v5343_v39 = vpop.f32.mrf.mxu1  ;;  %5534 = vmatmul.mubr.bf16.gmra.mxu1 %v9106_v31  ;;  %v513_v29 = vld [vmem:[#allocation5 + $0x8a8] sm:$0xff]  ;;  %v9128_v31 = vcombine.low %v500_v2, %v504_v3 }
 0x182   : > { %4868 = vmatprep.mubr.bf16.mxu0 %v9113_v32  ;;  %v10636_v40 = vadd.f32 %v5343_v39, %v4670_v38  ;;  %5541 = vmatprep.mubr.bf16.mxu1 %v9115_v35  ;;  %v9137_v35 = vcombine.high %v508_v24, %v512_v26  ;;  %v9139_v39 = vcombine.high %v509_v28, %v513_v29 }
 0x183   : > { %v4672_v41 = vpop.f32.mrf.mxu0  ;;  %v5345_v45 = vpop.f32.mrf.mxu1 }
 0x185   : > { %v4673_v48 = vpop.f32.mrf.mxu0  ;;  %v5346_v50 = vpop.f32.mrf.mxu1 }
 0x186   : > { %v10638_v54 = vadd.f32 %v5346_v50, %v4673_v48  ;;  %v520_v48 = vld [vmem:[#allocation5 + $0x8e0] sm:$0xff]  ;;  %v517_v50 = vld [vmem:[#allocation5 + $0x8c8] sm:$0xff] }
 0x187   : > { %v4675_v55 = vpop.f32.mrf.mxu0  ;;  %v5348_v58 = vpop.f32.mrf.mxu1 }
 0x188   : > { %v9136_v55 = vcombine.low %v508_v24, %v512_v26  ;;  %v9138_v58 = vcombine.low %v509_v28, %v513_v29 }
 0x189   : > { %v4678_v59 = vpop.f32.mrf.mxu0  ;;  %4869 = vmatmul.mubr.bf16.gmra.mxu0 %v9112_v49  ;;  %v5351_v60 = vpop.f32.mrf.mxu1  ;;  %5542 = vmatmul.mubr.bf16.gmra.mxu1 %v9114_v51  ;;  %v521_v51 = vld [vmem:[#allocation5 + $0x8e8] sm:$0xff] }
 0x18a   : > { %4876 = vmatprep.mubr.bf16.mxu0 %v9121_v53  ;;  %v10640_v61 = vadd.f32 %v5351_v60, %v4678_v59  ;;  %5549 = vmatprep.mubr.bf16.mxu1 %v9123_v57  ;;  %v9145_v59 = vcombine.high %v516_v47, %v520_v48  ;;  %v9147_v2 = vcombine.high %v517_v50, %v521_v51 }
 0x18b   : > { %v4680_v63 = vpop.f32.mrf.mxu0  ;;  %v5353_v4 = vpop.f32.mrf.mxu1 }
 0x18d   : > { %v4681_v8 = vpop.f32.mrf.mxu0  ;;  %v5354_v10 = vpop.f32.mrf.mxu1 }
 0x18e   : > { %v10642_v14 = vadd.f32 %v5354_v10, %v4681_v8  ;;  %v528_v10 = vld [vmem:[#allocation5 + $0x920] sm:$0xff] }
 0x18f   : > { %v4683_v15 = vpop.f32.mrf.mxu0  ;;  %v5356_v17 = vpop.f32.mrf.mxu1 }
 0x190   : > { %v529_v15 = vld [vmem:[#allocation5 + $0x928] sm:$0xff]  ;;  %v9144_v17 = vcombine.low %v516_v47, %v520_v48 }
 0x191   : > { %v4686_v18 = vpop.f32.mrf.mxu0  ;;  %4877 = vmatmul.mubr.bf16.gmra.mxu0 %v9120_v9  ;;  %v5359_v21 = vpop.f32.mrf.mxu1  ;;  %5550 = vmatmul.mubr.bf16.gmra.mxu1 %v9122_v11  ;;  %v524_v9 = vld [vmem:[#allocation5 + $0x900] sm:$0xff] }
 0x192   : > { %4884 = vmatprep.mubr.bf16.mxu0 %v9129_v12  ;;  %v10644_v22 = vadd.f32 %v5359_v21, %v4686_v18  ;;  %5557 = vmatprep.mubr.bf16.mxu1 %v9131_v16  ;;  %v525_v12 = vld [vmem:[#allocation5 + $0x908] sm:$0xff]  ;;  %v9146_v21 = vcombine.low %v517_v50, %v521_v51 }
 0x193   : > { %v4688_v23 = vpop.f32.mrf.mxu0  ;;  %v5361_v27 = vpop.f32.mrf.mxu1  ;;  %v9154_v47 = vcombine.low %v525_v12, %v529_v15 }
 0x194   : > { %v9153_v23 = vcombine.high %v524_v9, %v528_v10  ;;  %v9155_v27 = vcombine.high %v525_v12, %v529_v15 }
 0x195   : > { %v4689_v30 = vpop.f32.mrf.mxu0  ;;  %v5362_v32 = vpop.f32.mrf.mxu1 }
 0x196   : > { %v10646_v36 = vadd.f32 %v5362_v32, %v4689_v30 }
 0x197   : > { %v4691_v38 = vpop.f32.mrf.mxu0  ;;  %v5364_v41 = vpop.f32.mrf.mxu1 }
 0x198   : > { %v537_v41 = vld [vmem:[#allocation5 + $0x968] sm:$0xff] }
 0x199   : > { %v4694_v42 = vpop.f32.mrf.mxu0  ;;  %4885 = vmatmul.mubr.bf16.gmra.mxu0 %v9128_v31  ;;  %v5367_v44 = vpop.f32.mrf.mxu1  ;;  %5558 = vmatmul.mubr.bf16.gmra.mxu1 %v9130_v34  ;;  %v532_v34 = vld [vmem:[#allocation5 + $0x940] sm:$0xff] }
 0x19a   : > { %4892 = vmatprep.mubr.bf16.mxu0 %v9137_v35  ;;  %v10648_v45 = vadd.f32 %v5367_v44, %v4694_v42  ;;  %5565 = vmatprep.mubr.bf16.mxu1 %v9139_v39  ;;  %v536_v35 = vld [vmem:[#allocation5 + $0x960] sm:$0xff]  ;;  %v533_v39 = vld [vmem:[#allocation5 + $0x948] sm:$0xff]  ;;  %v9152_v44 = vcombine.low %v524_v9, %v528_v10 }
 0x19b   : > { %v4696_v46 = vpop.f32.mrf.mxu0  ;;  %v5369_v49 = vpop.f32.mrf.mxu1  ;;  %v9161_v48 = vcombine.high %v532_v34, %v536_v35  ;;  %v9163_v51 = vcombine.high %v533_v39, %v537_v41  ;;  %v9160_v9 = vcombine.low %v532_v34, %v536_v35  ;;  %v553_v34 = vld [vmem:[#allocation5 + $0x9e8] sm:$0xff] }
 0x19d   : > { %v4697_v53 = vpop.f32.mrf.mxu0  ;;  %v5370_v57 = vpop.f32.mrf.mxu1 }
 0x19e   : > { %v10650_v60 = vadd.f32 %v5370_v57, %v4697_v53 }
 0x19f   : > { %v4699_v63 = vpop.f32.mrf.mxu0  ;;  %v5372_v3 = vpop.f32.mrf.mxu1 }
 0x1a0   : > { %v540_v63 = vld [vmem:[#allocation5 + $0x980] sm:$0xff] }
 0x1a1   : > { %v4702_v4 = vpop.f32.mrf.mxu0  ;;  %4893 = vmatmul.mubr.bf16.gmra.mxu0 %v9136_v55  ;;  %v5375_v5 = vpop.f32.mrf.mxu1  ;;  %5566 = vmatmul.mubr.bf16.gmra.mxu1 %v9138_v58 }
 0x1a2   : > { %4900 = vmatprep.mubr.bf16.mxu0 %v9145_v59  ;;  %v10652_v6 = vadd.f32 %v5375_v5, %v4702_v4  ;;  %5573 = vmatprep.mubr.bf16.mxu1 %v9147_v2  ;;  %v544_v2 = vld [vmem:[#allocation5 + $0x9a0] sm:$0xff]  ;;  %v541_v4 = vld [vmem:[#allocation5 + $0x988] sm:$0xff] }
 0x1a3   : > { %v4704_v8 = vpop.f32.mrf.mxu0  ;;  %v5377_v11 = vpop.f32.mrf.mxu1  ;;  %v545_v5 = vld [vmem:[#allocation5 + $0x9a8] sm:$0xff]  ;;  %v9169_v12 = vcombine.high %v540_v63, %v544_v2 }
 0x1a4   : > { %v9162_v11 = vcombine.low %v533_v39, %v537_v41  ;;  %v9170_v41 = vcombine.low %v541_v4, %v545_v5 }
 0x1a5   : > { %v4705_v16 = vpop.f32.mrf.mxu0  ;;  %v5378_v18 = vpop.f32.mrf.mxu1 }
 0x1a6   : > { %v10654_v24 = vadd.f32 %v5378_v18, %v4705_v16 }
 0x1a7   : > { %v4707_v26 = vpop.f32.mrf.mxu0  ;;  %v5380_v28 = vpop.f32.mrf.mxu1 }
 0x1a8   : > { %v548_v28 = vld [vmem:[#allocation5 + $0x9c0] sm:$0xff] }
 0x1a9   : > { %v4710_v29 = vpop.f32.mrf.mxu0  ;;  %4901 = vmatmul.mubr.bf16.gmra.mxu0 %v9144_v17  ;;  %v5383_v30 = vpop.f32.mrf.mxu1  ;;  %5574 = vmatmul.mubr.bf16.gmra.mxu1 %v9146_v21  ;;  %v9171_v17 = vcombine.high %v541_v4, %v545_v5 }
 0x1aa   : > { %4908 = vmatprep.mubr.bf16.mxu0 %v9153_v23  ;;  %v10656_v31 = vadd.f32 %v5383_v30, %v4710_v29  ;;  %5581 = vmatprep.mubr.bf16.mxu1 %v9155_v27  ;;  %v552_v29 = vld [vmem:[#allocation5 + $0x9e0] sm:$0xff] }
 0x1ab   : > { %v4712_v32 = vpop.f32.mrf.mxu0  ;;  %v5385_v38 = vpop.f32.mrf.mxu1  ;;  %v9176_v5 = vcombine.low %v548_v28, %v552_v29 }
 0x1ac   : > { %v549_v32 = vld [vmem:[#allocation5 + $0x9c8] sm:$0xff]  ;;  %v9168_v38 = vcombine.low %v540_v63, %v544_v2 }
 0x1ad   : > { %v4713_v42 = vpop.f32.mrf.mxu0  ;;  %v5386_v46 = vpop.f32.mrf.mxu1  ;;  %v557_v2 = vld [vmem:[#allocation5 + $0xa08] sm:$0xff] }
 0x1ae   : > { %v10658_v49 = vadd.f32 %v5386_v46, %v4713_v42  ;;  %v9177_v42 = vcombine.high %v548_v28, %v552_v29  ;;  %v565_v29 = vld [vmem:[#allocation5 + $0xa48] sm:$0xff] }
 0x1af   : > { %v4715_v50 = vpop.f32.mrf.mxu0  ;;  %v5388_v53 = vpop.f32.mrf.mxu1 }
 0x1b1   : > { %v4718_v55 = vpop.f32.mrf.mxu0  ;;  %4909 = vmatmul.mubr.bf16.gmra.mxu0 %v9152_v44  ;;  %v5391_v57 = vpop.f32.mrf.mxu1  ;;  %5582 = vmatmul.mubr.bf16.gmra.mxu1 %v9154_v47  ;;  %v9179_v47 = vcombine.high %v549_v32, %v553_v34 }
 0x1b2   : > { %4916 = vmatprep.mubr.bf16.mxu0 %v9161_v48  ;;  %v10660_v58 = vadd.f32 %v5391_v57, %v4718_v55  ;;  %5589 = vmatprep.mubr.bf16.mxu1 %v9163_v51  ;;  %v556_v57 = vld [vmem:[#allocation5 + $0xa00] sm:$0xff] }
 0x1b3   : > { %v4720_v59 = vpop.f32.mrf.mxu0  ;;  %v5393_v3 = vpop.f32.mrf.mxu1 }
 0x1b4   : > { %v560_v59 = vld [vmem:[#allocation5 + $0xa20] sm:$0xff]  ;;  %v561_v3 = vld [vmem:[#allocation5 + $0xa28] sm:$0xff] }
 0x1b5   : > { %v4721_v8 = vpop.f32.mrf.mxu0  ;;  %v5394_v10 = vpop.f32.mrf.mxu1 }
 0x1b6   : > { %v10662_v15 = vadd.f32 %v5394_v10, %v4721_v8  ;;  %v9185_v10 = vcombine.high %v556_v57, %v560_v59 }
 0x1b7   : > { %v4723_v16 = vpop.f32.mrf.mxu0  ;;  %v5396_v18 = vpop.f32.mrf.mxu1 }
 0x1b8   : > { %v9187_v16 = vcombine.high %v557_v2, %v561_v3 }
 0x1b9   : > { %v4726_v21 = vpop.f32.mrf.mxu0  ;;  %4917 = vmatmul.mubr.bf16.gmra.mxu0 %v9160_v9  ;;  %v5399_v23 = vpop.f32.mrf.mxu1  ;;  %5590 = vmatmul.mubr.bf16.gmra.mxu1 %v9162_v11  ;;  %v9178_v9 = vcombine.low %v549_v32, %v553_v34  ;;  %v569_v32 = vld [vmem:[#allocation5 + $0xa68] sm:$0xff] }
 0x1ba   : > { %4924 = vmatprep.mubr.bf16.mxu0 %v9169_v12  ;;  %v10664_v26 = vadd.f32 %v5399_v23, %v4726_v21  ;;  %5597 = vmatprep.mubr.bf16.mxu1 %v9171_v17 }
 0x1bb   : > { %v4728_v27 = vpop.f32.mrf.mxu0  ;;  %v5401_v30 = vpop.f32.mrf.mxu1 }
 0x1bc   : > { %v564_v30 = vld [vmem:[#allocation5 + $0xa40] sm:$0xff] }
 0x1bd   : > { %v4729_v35 = vpop.f32.mrf.mxu0  ;;  %v5402_v39 = vpop.f32.mrf.mxu1 }
 0x1be   : > { %v10666_v44 = vadd.f32 %v5402_v39, %v4729_v35  ;;  %v568_v35 = vld [vmem:[#allocation5 + $0xa60] sm:$0xff] }
 0x1bf   : > { %v4731_v46 = vpop.f32.mrf.mxu0  ;;  %v5404_v48 = vpop.f32.mrf.mxu1 }
 0x1c0   : > { %v9195_v48 = vcombine.high %v565_v29, %v569_v32 }
 0x1c1   : > { %v4734_v50 = vpop.f32.mrf.mxu0  ;;  %4925 = vmatmul.mubr.bf16.gmra.mxu0 %v9168_v38  ;;  %v5407_v51 = vpop.f32.mrf.mxu1  ;;  %5598 = vmatmul.mubr.bf16.gmra.mxu1 %v9170_v41  ;;  %v9184_v38 = vcombine.low %v556_v57, %v560_v59  ;;  %v9186_v41 = vcombine.low %v557_v2, %v561_v3  ;;  %v573_v59 = vld [vmem:[#allocation5 + $0xa88] sm:$0xff] }
 0x1c2   : > { %4932 = vmatprep.mubr.bf16.mxu0 %v9177_v42  ;;  %v10668_v53 = vadd.f32 %v5407_v51, %v4734_v50  ;;  %5605 = vmatprep.mubr.bf16.mxu1 %v9179_v47  ;;  %v9193_v42 = vcombine.high %v564_v30, %v568_v35  ;;  %v577_v2 = vld [vmem:[#allocation5 + $0xaa8] sm:$0xff] }
 0x1c3   : > { %v4736_v55 = vpop.f32.mrf.mxu0  ;;  %v5409_v63 = vpop.f32.mrf.mxu1 }
 0x1c5   : > { %v4737_v4 = vpop.f32.mrf.mxu0  ;;  %v5410_v8 = vpop.f32.mrf.mxu1 }
 0x1c6   : > { %v10670_v11 = vadd.f32 %v5410_v8, %v4737_v4  ;;  %v576_v8 = vld [vmem:[#allocation5 + $0xaa0] sm:$0xff] }
 0x1c7   : > { %v4739_v12 = vpop.f32.mrf.mxu0  ;;  %v5412_v17 = vpop.f32.mrf.mxu1 }
 0x1c8   : > { %v9194_v12 = vcombine.low %v565_v29, %v569_v32  ;;  %v585_v29 = vld [vmem:[#allocation5 + $0xae8] sm:$0xff] }
 0x1c9   : > { %v4742_v18 = vpop.f32.mrf.mxu0  ;;  %4933 = vmatmul.mubr.bf16.gmra.mxu0 %v9176_v5  ;;  %v5415_v21 = vpop.f32.mrf.mxu1  ;;  %5606 = vmatmul.mubr.bf16.gmra.mxu1 %v9178_v9  ;;  %v572_v5 = vld [vmem:[#allocation5 + $0xa80] sm:$0xff]  ;;  %v9192_v9 = vcombine.low %v564_v30, %v568_v35  ;;  %v581_v35 = vld [vmem:[#allocation5 + $0xac8] sm:$0xff] }
 0x1ca   : > { %4940 = vmatprep.mubr.bf16.mxu0 %v9185_v10  ;;  %v10672_v23 = vadd.f32 %v5415_v21, %v4742_v18  ;;  %5613 = vmatprep.mubr.bf16.mxu1 %v9187_v16  ;;  %v9201_v16 = vcombine.high %v572_v5, %v576_v8  ;;  %v9203_v21 = vcombine.high %v573_v59, %v577_v2 }
 0x1cb   : > { %v4744_v27 = vpop.f32.mrf.mxu0  ;;  %v5417_v28 = vpop.f32.mrf.mxu1 }
 0x1cd   : > { %v4745_v34 = vpop.f32.mrf.mxu0  ;;  %v5418_v39 = vpop.f32.mrf.mxu1 }
 0x1ce   : > { %v10674_v46 = vadd.f32 %v5418_v39, %v4745_v34 }
 0x1cf   : > { %v4747_v47 = vpop.f32.mrf.mxu0  ;;  %v5420_v50 = vpop.f32.mrf.mxu1 }
 0x1d0   : > { %v9200_v47 = vcombine.low %v572_v5, %v576_v8  ;;  %v9202_v50 = vcombine.low %v573_v59, %v577_v2  ;;  %v589_v8 = vld [vmem:[#allocation5 + $0xb08] sm:$0xff] }
 0x1d1   : > { %v4750_v51 = vpop.f32.mrf.mxu0  ;;  %4941 = vmatmul.mubr.bf16.gmra.mxu0 %v9184_v38  ;;  %v5423_v55 = vpop.f32.mrf.mxu1  ;;  %5614 = vmatmul.mubr.bf16.gmra.mxu1 %v9186_v41  ;;  %v580_v41 = vld [vmem:[#allocation5 + $0xac0] sm:$0xff]  ;;  %v593_v59 = vld [vmem:[#allocation5 + $0xb28] sm:$0xff] }
 0x1d2   : > { %4948 = vmatprep.mubr.bf16.mxu0 %v9193_v42  ;;  %v10676_v63 = vadd.f32 %v5423_v55, %v4750_v51  ;;  %5621 = vmatprep.mubr.bf16.mxu1 %v9195_v48  ;;  %v584_v42 = vld [vmem:[#allocation5 + $0xae0] sm:$0xff] }
 0x1d3   : > { %v4752_v4 = vpop.f32.mrf.mxu0  ;;  %v5425_v57 = vpop.f32.mrf.mxu1  ;;  %v9209_v51 = vcombine.high %v580_v41, %v584_v42 }
 0x1d4   : > { %v9211_v57 = vcombine.high %v581_v35, %v585_v29 }
 0x1d5   : > { %v4753_v3 = vpop.f32.mrf.mxu0  ;;  %v5426_v10 = vpop.f32.mrf.mxu1 }
 0x1d6   : > { %v10678_v17 = vadd.f32 %v5426_v10, %v4753_v3 }
 0x1d7   : > { %v4755_v18 = vpop.f32.mrf.mxu0  ;;  %v5428_v27 = vpop.f32.mrf.mxu1 }
 0x1d8   : > { %v588_v18 = vld [vmem:[#allocation5 + $0xb00] sm:$0xff]  ;;  %v9208_v27 = vcombine.low %v580_v41, %v584_v42  ;;  %v597_v42 = vld [vmem:[#allocation5 + $0xb48] sm:$0xff] }
 0x1d9   : > { %v4758_v28 = vpop.f32.mrf.mxu0  ;;  %4949 = vmatmul.mubr.bf16.gmra.mxu0 %v9192_v9  ;;  %v5431_v34 = vpop.f32.mrf.mxu1  ;;  %5622 = vmatmul.mubr.bf16.gmra.mxu1 %v9194_v12 }
 0x1da   : > { %4956 = vmatprep.mubr.bf16.mxu0 %v9201_v16  ;;  %v10680_v38 = vadd.f32 %v5431_v34, %v4758_v28  ;;  %5629 = vmatprep.mubr.bf16.mxu1 %v9203_v21  ;;  %v592_v21 = vld [vmem:[#allocation5 + $0xb20] sm:$0xff]  ;;  %v9210_v34 = vcombine.low %v581_v35, %v585_v29  ;;  %v601_v35 = vld [vmem:[#allocation5 + $0xb68] sm:$0xff] }
 0x1db   : > { %v4760_v39 = vpop.f32.mrf.mxu0  ;;  %v5433_v30 = vpop.f32.mrf.mxu1 }
 0x1dc   : > { %v9217_v39 = vcombine.high %v588_v18, %v592_v21 }
 0x1dd   : > { %v4761_v32 = vpop.f32.mrf.mxu0  ;;  %v5434_v48 = vpop.f32.mrf.mxu1 }
 0x1de   : > { %v10682_v55 = vadd.f32 %v5434_v48, %v4761_v32 }
 0x1df   : > { %v4763_v4 = vpop.f32.mrf.mxu0  ;;  %v5436_v3 = vpop.f32.mrf.mxu1 }
 0x1e0   : > { %v596_v3 = vld [vmem:[#allocation5 + $0xb40] sm:$0xff] }
 0x1e1   : > { %v4766_v9 = vpop.f32.mrf.mxu0  ;;  %4957 = vmatmul.mubr.bf16.gmra.mxu0 %v9200_v47  ;;  %v5439_v10 = vpop.f32.mrf.mxu1  ;;  %5630 = vmatmul.mubr.bf16.gmra.mxu1 %v9202_v50  ;;  %v9219_v47 = vcombine.high %v589_v8, %v593_v59 }
 0x1e2   : > { %4964 = vmatprep.mubr.bf16.mxu0 %v9209_v51  ;;  %v10684_v12 = vadd.f32 %v5439_v10, %v4766_v9  ;;  %5637 = vmatprep.mubr.bf16.mxu1 %v9211_v57  ;;  %v600_v9 = vld [vmem:[#allocation5 + $0xb60] sm:$0xff]  ;;  %v9216_v10 = vcombine.low %v588_v18, %v592_v21  ;;  %v605_v21 = vld [vmem:[#allocation5 + $0xb88] sm:$0xff] }
 0x1e3   : > { %v4768_v16 = vpop.f32.mrf.mxu0  ;;  %v5441_v5 = vpop.f32.mrf.mxu1 }
 0x1e4   : > { %v9218_v5 = vcombine.low %v589_v8, %v593_v59  ;;  %v609_v8 = vld [vmem:[#allocation5 + $0xba8] sm:$0xff] }
 0x1e5   : > { %v4769_v2 = vpop.f32.mrf.mxu0  ;;  %v5442_v28 = vpop.f32.mrf.mxu1  ;;  %v9235_v0 = vcombine.high %v605_v21, %v609_v8 }
 0x1e6   : > { %v10686_v30 = vadd.f32 %v5442_v28, %v4769_v2  ;;  %v9225_v2 = vcombine.high %v596_v3, %v600_v9 }
 0x1e7   : > { %v4771_v32 = vpop.f32.mrf.mxu0  ;;  %v5444_v48 = vpop.f32.mrf.mxu1 }
 0x1e8   : > { %v9227_v32 = vcombine.high %v597_v42, %v601_v35 }
 0x1e9   : > { %v4774_v50 = vpop.f32.mrf.mxu0  ;;  %4965 = vmatmul.mubr.bf16.gmra.mxu0 %v9208_v27  ;;  %v5447_v51 = vpop.f32.mrf.mxu1  ;;  %5638 = vmatmul.mubr.bf16.gmra.mxu1 %v9210_v34 }
 0x1ea   : > { %4972 = vmatprep.mubr.bf16.mxu0 %v9217_v39  ;;  %v10688_v4 = vadd.f32 %v5447_v51, %v4774_v50  ;;  %5645 = vmatprep.mubr.bf16.mxu1 %v9219_v47  ;;  %v604_v51 = vld [vmem:[#allocation5 + $0xb80] sm:$0xff] }
 0x1eb   : > { %v4776_v57 = vpop.f32.mrf.mxu0  ;;  %v5449_v41 = vpop.f32.mrf.mxu1 }
 0x1ec   : > { %v608_v57 = vld [vmem:[#allocation5 + $0xba0] sm:$0xff]  ;;  %v9224_v41 = vcombine.low %v596_v3, %v600_v9  ;;  %v613_v9 = vld [vmem:[#allocation5 + $0xbc8] sm:$0xff] }
 0x1ed   : > { %v4777_v29 = vpop.f32.mrf.mxu0  ;;  %v5450_v16 = vpop.f32.mrf.mxu1 }
 0x1ee   : > { %v10690_v28 = vadd.f32 %v5450_v16, %v4777_v29  ;;  %v9226_v16 = vcombine.low %v597_v42, %v601_v35  ;;  %v617_v42 = vld [vmem:[#allocation5 + $0xbe8] sm:$0xff] }
 0x1ef   : > { %v4779_v27 = vpop.f32.mrf.mxu0  ;;  %v5452_v34 = vpop.f32.mrf.mxu1 }
 0x1f0   : > { %v9233_v27 = vcombine.high %v604_v51, %v608_v57 }
 0x1f1   : > { %v4782_v39 = vpop.f32.mrf.mxu0  ;;  %4973 = vmatmul.mubr.bf16.gmra.mxu0 %v9216_v10  ;;  %v5455_v48 = vpop.f32.mrf.mxu1  ;;  %5646 = vmatmul.mubr.bf16.gmra.mxu1 %v9218_v5 }
 0x1f2   : > { %4980 = vmatprep.mubr.bf16.mxu0 %v9225_v2  ;;  %v10692_v47 = vadd.f32 %v5455_v48, %v4782_v39  ;;  %5653 = vmatprep.mubr.bf16.mxu1 %v9227_v32 }
 0x1f3   : > { %v4784_v50 = vpop.f32.mrf.mxu0  ;;  %v5457_v18 = vpop.f32.mrf.mxu1 }
 0x1f4   : > { %12720 = vst [vmem:[#allocation12_spill] sm:$0xff] %v10692_v47  ;;  %v612_v50 = vld [vmem:[#allocation5 + $0xbc0] sm:$0xff]  ;;  %v9243_v47 = vcombine.high %v613_v9, %v617_v42 }
 0x1f5   : > { %v4785_v59 = vpop.f32.mrf.mxu0  ;;  %v5458_v29 = vpop.f32.mrf.mxu1  ;;  %v616_v18 = vld [vmem:[#allocation5 + $0xbe0] sm:$0xff] }
 0x1f6   : > { %v10694_v34 = vadd.f32 %v5458_v29, %v4785_v59  ;;  %v9232_v59 = vcombine.low %v604_v51, %v608_v57  ;;  %v621_v57 = vld [vmem:[#allocation5 + $0xc08] sm:$0xff] }
 0x1f7   : > { %v4787_v10 = vpop.f32.mrf.mxu0  ;;  %v5460_v5 = vpop.f32.mrf.mxu1 }
 0x1f8   : > { %12721 = vst [vmem:[#allocation13_spill] sm:$0xff] %v10694_v34  ;;  %v9234_v10 = vcombine.low %v605_v21, %v609_v8  ;;  %v9241_v34 = vcombine.high %v612_v50, %v616_v18  ;;  %v625_v21 = vld [vmem:[#allocation5 + $0xc28] sm:$0xff] }
 0x1f9   : > { %v4790_v2 = vpop.f32.mrf.mxu0  ;;  %4981 = vmatmul.mubr.bf16.gmra.mxu0 %v9224_v41  ;;  %v5463_v39 = vpop.f32.mrf.mxu1  ;;  %5654 = vmatmul.mubr.bf16.gmra.mxu1 %v9226_v16 }
 0x1fa   : > { %4988 = vmatprep.mubr.bf16.mxu0 %v9233_v27  ;;  %v10696_v32 = vadd.f32 %v5463_v39, %v4790_v2  ;;  %5661 = vmatprep.mubr.bf16.mxu1 %v9235_v0 }
 0x1fb   : > { %v4792_v48 = vpop.f32.mrf.mxu0  ;;  %v5465_v3 = vpop.f32.mrf.mxu1 }
 0x1fc   : > { %12722 = vst [vmem:[#allocation14_spill] sm:$0xff] %v10696_v32  ;;  %v620_v48 = vld [vmem:[#allocation5 + $0xc00] sm:$0xff]  ;;  %v9251_v32 = vcombine.high %v621_v57, %v625_v21 }
 0x1fd   : > { %v4793_v35 = vpop.f32.mrf.mxu0  ;;  %v5466_v29 = vpop.f32.mrf.mxu1  ;;  %v624_v3 = vld [vmem:[#allocation5 + $0xc20] sm:$0xff] }
 0x1fe   : > { %v10698_v5 = vadd.f32 %v5466_v29, %v4793_v35  ;;  %v9240_v35 = vcombine.low %v612_v50, %v616_v18  ;;  %v629_v18 = vld [vmem:[#allocation5 + $0xc48] sm:$0xff] }
 0x1ff   : > { %v4795_v41 = vpop.f32.mrf.mxu0  ;;  %v5468_v16 = vpop.f32.mrf.mxu1 }
 0x200   : > { %12723 = vst [vmem:[#allocation15_spill] sm:$0xff] %v10698_v5  ;;  %v9242_v41 = vcombine.low %v613_v9, %v617_v42  ;;  %v9249_v5 = vcombine.high %v620_v48, %v624_v3  ;;  %v633_v9 = vld [vmem:[#allocation5 + $0xc68] sm:$0xff] }
 0x201   : > { %v4798_v27 = vpop.f32.mrf.mxu0  ;;  %4989 = vmatmul.mubr.bf16.gmra.mxu0 %v9232_v59  ;;  %v5471_v2 = vpop.f32.mrf.mxu1  ;;  %5662 = vmatmul.mubr.bf16.gmra.mxu1 %v9234_v10 }
 0x202   : > { %4996 = vmatprep.mubr.bf16.mxu0 %v9241_v34  ;;  %v10700_v0 = vadd.f32 %v5471_v2, %v4798_v27  ;;  %5669 = vmatprep.mubr.bf16.mxu1 %v9243_v47 }
 0x203   : > { %v4800_v39 = vpop.f32.mrf.mxu0  ;;  %v5473_v51 = vpop.f32.mrf.mxu1 }
 0x204   : > { %12724 = vst [vmem:[#allocation16_spill] sm:$0xff] %v10700_v0  ;;  %v628_v39 = vld [vmem:[#allocation5 + $0xc40] sm:$0xff]  ;;  %v9259_v0 = vcombine.high %v629_v18, %v633_v9 }
 0x205   : > { %v4801_v8 = vpop.f32.mrf.mxu0  ;;  %v5474_v29 = vpop.f32.mrf.mxu1  ;;  %v632_v51 = vld [vmem:[#allocation5 + $0xc60] sm:$0xff] }
 0x206   : > { %v10702_v16 = vadd.f32 %v5474_v29, %v4801_v8  ;;  %v9248_v8 = vcombine.low %v620_v48, %v624_v3  ;;  %v637_v3 = vld [vmem:[#allocation5 + $0xc88] sm:$0xff] }
 0x207   : > { %v4803_v59 = vpop.f32.mrf.mxu0  ;;  %v5476_v10 = vpop.f32.mrf.mxu1 }
 0x208   : > { %12725 = vst [vmem:[#allocation17_spill] sm:$0xff] %v10702_v16  ;;  %v9250_v59 = vcombine.low %v621_v57, %v625_v21  ;;  %v9257_v16 = vcombine.high %v628_v39, %v632_v51  ;;  %v641_v57 = vld [vmem:[#allocation5 + $0xca8] sm:$0xff] }
 0x209   : > { %v4806_v34 = vpop.f32.mrf.mxu0  ;;  %4997 = vmatmul.mubr.bf16.gmra.mxu0 %v9240_v35  ;;  %v5479_v27 = vpop.f32.mrf.mxu1  ;;  %5670 = vmatmul.mubr.bf16.gmra.mxu1 %v9242_v41 }
 0x20a   : > { %5004 = vmatprep.mubr.bf16.mxu0 %v9249_v5  ;;  %v10704_v47 = vadd.f32 %v5479_v27, %v4806_v34  ;;  %5677 = vmatprep.mubr.bf16.mxu1 %v9251_v32 }
 0x20b   : > { %v4808_v2 = vpop.f32.mrf.mxu0  ;;  %v5481_v50 = vpop.f32.mrf.mxu1 }
 0x20c   : > { %12726 = vst [vmem:[#allocation18_spill] sm:$0xff] %v10704_v47  ;;  %v636_v2 = vld [vmem:[#allocation5 + $0xc80] sm:$0xff]  ;;  %v9267_v47 = vcombine.high %v637_v3, %v641_v57 }
 0x20d   : > { %v4809_v42 = vpop.f32.mrf.mxu0  ;;  %v5482_v29 = vpop.f32.mrf.mxu1  ;;  %v640_v50 = vld [vmem:[#allocation5 + $0xca0] sm:$0xff] }
 0x20e   : > { %v10706_v10 = vadd.f32 %v5482_v29, %v4809_v42  ;;  %v9256_v42 = vcombine.low %v628_v39, %v632_v51  ;;  %v645_v51 = vld [vmem:[#allocation5 + $0xcc8] sm:$0xff] }
 0x20f   : > { %v4811_v35 = vpop.f32.mrf.mxu0  ;;  %v5484_v41 = vpop.f32.mrf.mxu1 }
 0x210   : > { %12727 = vst [vmem:[#allocation19_spill] sm:$0xff] %v10706_v10  ;;  %v9258_v35 = vcombine.low %v629_v18, %v633_v9  ;;  %v9265_v10 = vcombine.high %v636_v2, %v640_v50  ;;  %v649_v18 = vld [vmem:[#allocation5 + $0xce8] sm:$0xff] }
 0x211   : > { %v4814_v5 = vpop.f32.mrf.mxu0  ;;  %5005 = vmatmul.mubr.bf16.gmra.mxu0 %v9248_v8  ;;  %v5487_v34 = vpop.f32.mrf.mxu1  ;;  %5678 = vmatmul.mubr.bf16.gmra.mxu1 %v9250_v59 }
 0x212   : > { %5012 = vmatprep.mubr.bf16.mxu0 %v9257_v16  ;;  %v10708_v32 = vadd.f32 %v5487_v34, %v4814_v5  ;;  %5685 = vmatprep.mubr.bf16.mxu1 %v9259_v0 }
 0x213   : > { %v4816_v27 = vpop.f32.mrf.mxu0  ;;  %v5489_v48 = vpop.f32.mrf.mxu1 }
 0x214   : > { %12728 = vst [vmem:[#allocation20_spill] sm:$0xff] %v10708_v32  ;;  %v644_v27 = vld [vmem:[#allocation5 + $0xcc0] sm:$0xff]  ;;  %v9275_v32 = vcombine.high %v645_v51, %v649_v18 }
 0x215   : > { %v4817_v21 = vpop.f32.mrf.mxu0  ;;  %v5490_v29 = vpop.f32.mrf.mxu1  ;;  %v648_v48 = vld [vmem:[#allocation5 + $0xce0] sm:$0xff] }
 0x216   : > { %v10710_v41 = vadd.f32 %v5490_v29, %v4817_v21  ;;  %v9264_v21 = vcombine.low %v636_v2, %v640_v50  ;;  %v653_v50 = vld [vmem:[#allocation5 + $0xd08] sm:$0xff] }
 0x217   : > { %v4819_v8 = vpop.f32.mrf.mxu0  ;;  %v5492_v59 = vpop.f32.mrf.mxu1 }
 0x218   : > { %12729 = vst [vmem:[#allocation21_spill] sm:$0xff] %v10710_v41  ;;  %v9266_v8 = vcombine.low %v637_v3, %v641_v57  ;;  %v9273_v41 = vcombine.high %v644_v27, %v648_v48  ;;  %v657_v3 = vld [vmem:[#allocation5 + $0xd28] sm:$0xff] }
 0x219   : > { %v4822_v16 = vpop.f32.mrf.mxu0  ;;  %5013 = vmatmul.mubr.bf16.gmra.mxu0 %v9256_v42  ;;  %v5495_v5 = vpop.f32.mrf.mxu1  ;;  %5686 = vmatmul.mubr.bf16.gmra.mxu1 %v9258_v35 }
 0x21a   : > { %5020 = vmatprep.mubr.bf16.mxu0 %v9265_v10  ;;  %v10712_v0 = vadd.f32 %v5495_v5, %v4822_v16  ;;  %5693 = vmatprep.mubr.bf16.mxu1 %v9267_v47 }
 0x21b   : > { %v4824_v34 = vpop.f32.mrf.mxu0  ;;  %v5497_v39 = vpop.f32.mrf.mxu1 }
 0x21c   : > { %12730 = vst [vmem:[#allocation22_spill] sm:$0xff] %v10712_v0  ;;  %v652_v34 = vld [vmem:[#allocation5 + $0xd00] sm:$0xff]  ;;  %v9283_v0 = vcombine.high %v653_v50, %v657_v3 }
 0x21d   : > { %v4825_v9 = vpop.f32.mrf.mxu0  ;;  %v5498_v29 = vpop.f32.mrf.mxu1  ;;  %v656_v39 = vld [vmem:[#allocation5 + $0xd20] sm:$0xff] }
 0x21e   : > { %v10714_v59 = vadd.f32 %v5498_v29, %v4825_v9  ;;  %v9272_v9 = vcombine.low %v644_v27, %v648_v48  ;;  %v661_v48 = vld [vmem:[#allocation5 + $0xd48] sm:$0xff] }
 0x21f   : > { %v4827_v42 = vpop.f32.mrf.mxu0  ;;  %v5500_v35 = vpop.f32.mrf.mxu1 }
 0x220   : > { %12731 = vst [vmem:[#allocation23_spill] sm:$0xff] %v10714_v59  ;;  %v9274_v42 = vcombine.low %v645_v51, %v649_v18  ;;  %v9281_v59 = vcombine.high %v652_v34, %v656_v39  ;;  %v665_v51 = vld [vmem:[#allocation5 + $0xd68] sm:$0xff] }
 0x221   : > { %v4830_v10 = vpop.f32.mrf.mxu0  ;;  %5021 = vmatmul.mubr.bf16.gmra.mxu0 %v9264_v21  ;;  %v5503_v16 = vpop.f32.mrf.mxu1  ;;  %5694 = vmatmul.mubr.bf16.gmra.mxu1 %v9266_v8 }
 0x222   : > { %5028 = vmatprep.mubr.bf16.mxu0 %v9273_v41  ;;  %v10716_v47 = vadd.f32 %v5503_v16, %v4830_v10  ;;  %5701 = vmatprep.mubr.bf16.mxu1 %v9275_v32 }
 0x223   : > { %v4832_v5 = vpop.f32.mrf.mxu0  ;;  %v5505_v2 = vpop.f32.mrf.mxu1 }
 0x224   : > { %12732 = vst [vmem:[#allocation24_spill] sm:$0xff] %v10716_v47  ;;  %v660_v5 = vld [vmem:[#allocation5 + $0xd40] sm:$0xff]  ;;  %v9291_v47 = vcombine.high %v661_v48, %v665_v51 }
 0x225   : > { %v4833_v57 = vpop.f32.mrf.mxu0  ;;  %v5506_v29 = vpop.f32.mrf.mxu1  ;;  %v664_v2 = vld [vmem:[#allocation5 + $0xd60] sm:$0xff] }
 0x226   : > { %v10718_v35 = vadd.f32 %v5506_v29, %v4833_v57  ;;  %v9280_v57 = vcombine.low %v652_v34, %v656_v39  ;;  %v669_v39 = vld [vmem:[#allocation5 + $0xd88] sm:$0xff] }
 0x227   : > { %v4835_v21 = vpop.f32.mrf.mxu0  ;;  %v5508_v8 = vpop.f32.mrf.mxu1 }
 0x228   : > { %12733 = vst [vmem:[#allocation25_spill] sm:$0xff] %v10718_v35  ;;  %v9282_v21 = vcombine.low %v653_v50, %v657_v3  ;;  %v9289_v35 = vcombine.high %v660_v5, %v664_v2  ;;  %v673_v50 = vld [vmem:[#allocation5 + $0xda8] sm:$0xff] }
 0x229   : > { %v4838_v41 = vpop.f32.mrf.mxu0  ;;  %5029 = vmatmul.mubr.bf16.gmra.mxu0 %v9272_v9  ;;  %v5511_v10 = vpop.f32.mrf.mxu1  ;;  %5702 = vmatmul.mubr.bf16.gmra.mxu1 %v9274_v42 }
 0x22a   : > { %5036 = vmatprep.mubr.bf16.mxu0 %v9281_v59  ;;  %v10720_v32 = vadd.f32 %v5511_v10, %v4838_v41  ;;  %5709 = vmatprep.mubr.bf16.mxu1 %v9283_v0 }
 0x22b   : > { %v4840_v16 = vpop.f32.mrf.mxu0  ;;  %v5513_v27 = vpop.f32.mrf.mxu1 }
 0x22c   : > { %12734 = vst [vmem:[#allocation26_spill] sm:$0xff] %v10720_v32  ;;  %v668_v16 = vld [vmem:[#allocation5 + $0xd80] sm:$0xff]  ;;  %v9299_v32 = vcombine.high %v669_v39, %v673_v50 }
 0x22d   : > { %v4841_v18 = vpop.f32.mrf.mxu0  ;;  %v5514_v29 = vpop.f32.mrf.mxu1  ;;  %v672_v27 = vld [vmem:[#allocation5 + $0xda0] sm:$0xff] }
 0x22e   : > { %v10722_v8 = vadd.f32 %v5514_v29, %v4841_v18  ;;  %v9288_v18 = vcombine.low %v660_v5, %v664_v2  ;;  %v677_v2 = vld [vmem:[#allocation5 + $0xdc8] sm:$0xff] }
 0x22f   : > { %v4843_v9 = vpop.f32.mrf.mxu0  ;;  %v5516_v42 = vpop.f32.mrf.mxu1 }
 0x230   : > { %12735 = vst [vmem:[#allocation27_spill] sm:$0xff] %v10722_v8  ;;  %v9290_v9 = vcombine.low %v661_v48, %v665_v51  ;;  %v9297_v8 = vcombine.high %v668_v16, %v672_v27  ;;  %v681_v48 = vld [vmem:[#allocation5 + $0xde8] sm:$0xff] }
 0x231   : > { %v4846_v59 = vpop.f32.mrf.mxu0  ;;  %5037 = vmatmul.mubr.bf16.gmra.mxu0 %v9280_v57  ;;  %v5519_v41 = vpop.f32.mrf.mxu1  ;;  %5710 = vmatmul.mubr.bf16.gmra.mxu1 %v9282_v21 }
 0x232   : > { %5044 = vmatprep.mubr.bf16.mxu0 %v9289_v35  ;;  %v10724_v0 = vadd.f32 %v5519_v41, %v4846_v59  ;;  %5717 = vmatprep.mubr.bf16.mxu1 %v9291_v47 }
 0x233   : > { %v4848_v10 = vpop.f32.mrf.mxu0  ;;  %v5521_v34 = vpop.f32.mrf.mxu1 }
 0x234   : > { %12736 = vst [vmem:[#allocation28_spill] sm:$0xff] %v10724_v0  ;;  %v676_v10 = vld [vmem:[#allocation5 + $0xdc0] sm:$0xff]  ;;  %v9307_v0 = vcombine.high %v677_v2, %v681_v48 }
 0x235   : > { %v4849_v3 = vpop.f32.mrf.mxu0  ;;  %v5522_v29 = vpop.f32.mrf.mxu1  ;;  %v680_v34 = vld [vmem:[#allocation5 + $0xde0] sm:$0xff] }
 0x236   : > { %v10726_v42 = vadd.f32 %v5522_v29, %v4849_v3  ;;  %v9296_v3 = vcombine.low %v668_v16, %v672_v27  ;;  %v685_v27 = vld [vmem:[#allocation5 + $0xe08] sm:$0xff] }
 0x237   : > { %v4851_v57 = vpop.f32.mrf.mxu0  ;;  %v5524_v21 = vpop.f32.mrf.mxu1 }
 0x238   : > { %12737 = vst [vmem:[#allocation29_spill] sm:$0xff] %v10726_v42  ;;  %v9298_v57 = vcombine.low %v669_v39, %v673_v50  ;;  %v9305_v42 = vcombine.high %v676_v10, %v680_v34  ;;  %v689_v39 = vld [vmem:[#allocation5 + $0xe28] sm:$0xff] }
 0x239   : > { %v4854_v35 = vpop.f32.mrf.mxu0  ;;  %5045 = vmatmul.mubr.bf16.gmra.mxu0 %v9288_v18  ;;  %v5527_v59 = vpop.f32.mrf.mxu1  ;;  %5718 = vmatmul.mubr.bf16.gmra.mxu1 %v9290_v9 }
 0x23a   : > { %5052 = vmatprep.mubr.bf16.mxu0 %v9297_v8  ;;  %v10728_v47 = vadd.f32 %v5527_v59, %v4854_v35  ;;  %5725 = vmatprep.mubr.bf16.mxu1 %v9299_v32 }
 0x23b   : > { %v4856_v41 = vpop.f32.mrf.mxu0  ;;  %v5529_v5 = vpop.f32.mrf.mxu1 }
 0x23c   : > { %12738 = vst [vmem:[#allocation30_spill] sm:$0xff] %v10728_v47  ;;  %v684_v41 = vld [vmem:[#allocation5 + $0xe00] sm:$0xff]  ;;  %v9315_v47 = vcombine.high %v685_v27, %v689_v39 }
 0x23d   : > { %v4857_v51 = vpop.f32.mrf.mxu0  ;;  %v5530_v29 = vpop.f32.mrf.mxu1  ;;  %v688_v5 = vld [vmem:[#allocation5 + $0xe20] sm:$0xff] }
 0x23e   : > { %v10730_v21 = vadd.f32 %v5530_v29, %v4857_v51  ;;  %v9304_v51 = vcombine.low %v676_v10, %v680_v34  ;;  %v696_v10 = vld [vmem:[#allocation5 + $0xe60] sm:$0xff] }
 0x23f   : > { %v4859_v18 = vpop.f32.mrf.mxu0  ;;  %v5532_v9 = vpop.f32.mrf.mxu1 }
 0x240   : > { %12739 = vst [vmem:[#allocation31_spill] sm:$0xff] %v10730_v21  ;;  %v9306_v18 = vcombine.low %v677_v2, %v681_v48  ;;  %v9313_v21 = vcombine.high %v684_v41, %v688_v5  ;;  %v693_v2 = vld [vmem:[#allocation5 + $0xe48] sm:$0xff] }
 0x241   : > { %v4862_v8 = vpop.f32.mrf.mxu0  ;;  %5053 = vmatmul.mubr.bf16.gmra.mxu0 %v9296_v3  ;;  %v5535_v35 = vpop.f32.mrf.mxu1  ;;  %5726 = vmatmul.mubr.bf16.gmra.mxu1 %v9298_v57  ;;  %v697_v48 = vld [vmem:[#allocation5 + $0xe68] sm:$0xff] }
 0x242   : > { %5060 = vmatprep.mubr.bf16.mxu0 %v9305_v42  ;;  %v10732_v32 = vadd.f32 %v5535_v35, %v4862_v8  ;;  %5733 = vmatprep.mubr.bf16.mxu1 %v9307_v0 }
 0x243   : > { %v4864_v59 = vpop.f32.mrf.mxu0  ;;  %v5537_v16 = vpop.f32.mrf.mxu1 }
 0x244   : > { %12740 = vst [vmem:[#allocation32_spill] sm:$0xff] %v10732_v32  ;;  %v692_v59 = vld [vmem:[#allocation5 + $0xe40] sm:$0xff] }
 0x245   : > { %v4865_v50 = vpop.f32.mrf.mxu0  ;;  %v5538_v29 = vpop.f32.mrf.mxu1 }
 0x246   : > { %v10734_v9 = vadd.f32 %v5538_v29, %v4865_v50  ;;  %v9312_v50 = vcombine.low %v684_v41, %v688_v5  ;;  %v700_v5 = vld [vmem:[#allocation5 + $0xe80] sm:$0xff] }
 0x247   : > { %v4867_v3 = vpop.f32.mrf.mxu0  ;;  %v5540_v57 = vpop.f32.mrf.mxu1 }
 0x248   : > { %12741 = vst [vmem:[#allocation33_spill] sm:$0xff] %v10734_v9  ;;  %v9314_v3 = vcombine.low %v685_v27, %v689_v39  ;;  %v9321_v57 = vcombine.high %v692_v59, %v696_v10  ;;  %v704_v27 = vld [vmem:[#allocation5 + $0xea0] sm:$0xff] }
 0x249   : > { %v4870_v42 = vpop.f32.mrf.mxu0  ;;  %5061 = vmatmul.mubr.bf16.gmra.mxu0 %v9304_v51  ;;  %v5543_v8 = vpop.f32.mrf.mxu1  ;;  %5734 = vmatmul.mubr.bf16.gmra.mxu1 %v9306_v18  ;;  %v768_v9 = vld [vmem:[#allocation5 + $0x10a0] sm:$0xff] }
 0x24a   : > { %5068 = vmatprep.mubr.bf16.mxu0 %v9313_v21  ;;  %v10736_v0 = vadd.f32 %v5543_v8, %v4870_v42  ;;  %5741 = vmatprep.mubr.bf16.mxu1 %v9315_v47  ;;  %v9323_v21 = vcombine.high %v693_v2, %v697_v48  ;;  %v9931_v47 = vld [vmem:[%s10536_s8 + $0x138] sm:$0xff]  }
 0x24b   : > { %v4872_v35 = vpop.f32.mrf.mxu0  ;;  %v5545_v34 = vpop.f32.mrf.mxu1  ;;  %5935 = vmatpush1.bf16.msra.mxu0 %v9931_v47 }
 0x24c   : > { %12742 = vst [vmem:[#allocation34_spill] sm:$0xff] %v10736_v0  ;;  %v9932_v35 = vld [vmem:[%s10536_s8 + $0x1b8] sm:$0xff]  }
 0x24d   : > { %v4873_v16 = vpop.f32.mrf.mxu0  ;;  %v5546_v29 = vpop.f32.mrf.mxu1  ;;  %6608 = vmatpush1.bf16.msra.mxu1 %v9932_v35 }
 0x24e   : > { %v10738_v51 = vadd.f32 %v5546_v29, %v4873_v16  ;;  %v701_v16 = vld [vmem:[#allocation5 + $0xe88] sm:$0xff] }
 0x24f   : > { %v4875_v18 = vpop.f32.mrf.mxu0  ;;  %v5548_v42 = vpop.f32.mrf.mxu1  ;;  %v705_v29 = vld [vmem:[#allocation5 + $0xea8] sm:$0xff] }
 0x250   : > { %12743 = vst [vmem:[#allocation35_spill] sm:$0xff] %v10738_v51  ;;  %v12745_v18 = vmov 0   ;;  %v9320_v42 = vcombine.low %v692_v59, %v696_v10  ;;  %v9935_v59 = vld [vmem:[%s10536_s8 + $0x128] sm:$0xff]  }
 0x251   : > { %v4878_v8 = vpop.f32.mrf.mxu0  ;;  %5069 = vmatmul.mubr.bf16.gmra.mxu0 %v9312_v50  ;;  %v5551_v0 = vpop.f32.mrf.mxu1  ;;  %5742 = vmatmul.mubr.bf16.gmra.mxu1 %v9314_v3  ;;  %v9933_v3 = vld [vmem:[%s10536_s8 + $0x130] sm:$0xff]   ;;  %v9936_v10 = vld [vmem:[%s10536_s8 + $0x1a8] sm:$0xff]  }
 0x252   : > { %5076 = vmatprep.mubr.bf16.mxu0 %v9321_v57  ;;  %v10742_v34 = vadd.f32 %v5551_v0, %v4878_v8  ;;  %5749 = vmatprep.mubr.bf16.mxu1 %v9323_v21  ;;  %v9934_v0 = vld [vmem:[%s10536_s8 + $0x1b0] sm:$0xff]   ;;  %v9322_v8 = vcombine.low %v693_v2, %v697_v48  ;;  %v9329_v21 = vcombine.high %v700_v5, %v704_v27 }
 0x253   : > { %v4880_v41 = vpop.f32.mrf.mxu0  ;;  %v5553_v39 = vpop.f32.mrf.mxu1  ;;  %5936 = vmatprep.subr.bf16.mxu0 %v12745_v18  ;;  %6609 = vmatprep.subr.bf16.mxu1 %v12745_v18 }
 0x254   : > { %12744 = vst [vmem:[#allocation36_spill] sm:$0xff] %v10742_v34  ;;  %v9331_v39 = vcombine.high %v701_v16, %v705_v29  ;;  %5937 = vmatpush1.bf16.msra.mxu0 %v9933_v3  ;;  %6610 = vmatpush1.bf16.msra.mxu1 %v9934_v0  ;;  %v709_v0 = vld [vmem:[#allocation5 + $0xec8] sm:$0xff] }
 0x255   : > { %v4881_v50 = vpop.f32.mrf.mxu0  ;;  %v5554_v57 = vpop.f32.mrf.mxu1  ;;  %5938 = vmatprep.subr.bf16.mxu0 %v12745_v18  ;;  %6611 = vmatprep.subr.bf16.mxu1 %v12745_v18 }
 0x256   : > { %v10748_v41 = vadd.f32 %v5554_v57, %v4881_v50  ;;  %v708_v50 = vld [vmem:[#allocation5 + $0xec0] sm:$0xff]  ;;  %v713_v57 = vld [vmem:[#allocation5 + $0xee8] sm:$0xff] }
 0x257   : > { %v4883_v47 = vpop.f32.mrf.mxu0  ;;  %v5556_v34 = vpop.f32.mrf.mxu1 }
 0x258   : > { %12746 = vst [vmem:[#allocation37_spill] sm:$0xff] %v10748_v41  ;;  %v712_v34 = vld [vmem:[#allocation5 + $0xee0] sm:$0xff]  ;;  %5939 = vmatpush1.bf16.msra.mxu0 %v9935_v59  ;;  %6612 = vmatpush1.bf16.msra.mxu1 %v9936_v10  ;;  %v9328_v47 = vcombine.low %v700_v5, %v704_v27  ;;  %v9939_v5 = vld [vmem:[%s10536_s8 + $0x118] sm:$0xff]  }
 0x259   : > { %v4886_v35 = vpop.f32.mrf.mxu0  ;;  %5077 = vmatmul.mubr.bf16.gmra.mxu0 %v9320_v42  ;;  %v5559_v51 = vpop.f32.mrf.mxu1  ;;  %5750 = vmatmul.mubr.bf16.gmra.mxu1 %v9322_v8  ;;  %v9937_v8 = vld [vmem:[%s10536_s8 + $0x120] sm:$0xff]   ;;  %v9940_v27 = vld [vmem:[%s10536_s8 + $0x198] sm:$0xff]  }
 0x25a   : > { %5084 = vmatprep.mubr.bf16.mxu0 %v9329_v21  ;;  %v10754_v2 = vadd.f32 %v5559_v51, %v4886_v35  ;;  %5757 = vmatprep.mubr.bf16.mxu1 %v9331_v39  ;;  %v9938_v51 = vld [vmem:[%s10536_s8 + $0x1a0] sm:$0xff]   ;;  %v9330_v35 = vcombine.low %v701_v16, %v705_v29  ;;  %v9337_v39 = vcombine.high %v708_v50, %v712_v34 }
 0x25b   : > { %v4888_v48 = vpop.f32.mrf.mxu0  ;;  %v5561_v3 = vpop.f32.mrf.mxu1  ;;  %5940 = vmatprep.subr.bf16.mxu0 %v12745_v18  ;;  %6613 = vmatprep.subr.bf16.mxu1 %v12745_v18 }
 0x25c   : > { %12747 = vst [vmem:[#allocation38_spill] sm:$0xff] %v10754_v2  ;;  %v9339_v3 = vcombine.high %v709_v0, %v713_v57  ;;  %5941 = vmatpush1.bf16.msra.mxu0 %v9937_v8  ;;  %6614 = vmatpush1.bf16.msra.mxu1 %v9938_v51  ;;  %v717_v51 = vld [vmem:[#allocation5 + $0xf08] sm:$0xff] }
 0x25d   : > { %v4889_v42 = vpop.f32.mrf.mxu0  ;;  %v5562_v21 = vpop.f32.mrf.mxu1  ;;  %5942 = vmatprep.subr.bf16.mxu0 %v12745_v18  ;;  %6615 = vmatprep.subr.bf16.mxu1 %v12745_v18 }
 0x25e   : > { %v10760_v48 = vadd.f32 %v5562_v21, %v4889_v42  ;;  %v716_v42 = vld [vmem:[#allocation5 + $0xf00] sm:$0xff]  ;;  %v721_v21 = vld [vmem:[#allocation5 + $0xf28] sm:$0xff] }
 0x25f   : > { %v4891_v59 = vpop.f32.mrf.mxu0  ;;  %v5564_v2 = vpop.f32.mrf.mxu1 }
 0x260   : > { %12748 = vst [vmem:[#allocation39_spill] sm:$0xff] %v10760_v48  ;;  %v720_v2 = vld [vmem:[#allocation5 + $0xf20] sm:$0xff]  ;;  %5943 = vmatpush1.bf16.msra.mxu0 %v9939_v5  ;;  %6616 = vmatpush1.bf16.msra.mxu1 %v9940_v27  ;;  %v9336_v59 = vcombine.low %v708_v50, %v712_v34  ;;  %v9943_v50 = vld [vmem:[%s10536_s8 + $0x108] sm:$0xff]  }
 0x261   : > { %v4894_v10 = vpop.f32.mrf.mxu0  ;;  %5085 = vmatmul.mubr.bf16.gmra.mxu0 %v9328_v47  ;;  %v5567_v41 = vpop.f32.mrf.mxu1  ;;  %5758 = vmatmul.mubr.bf16.gmra.mxu1 %v9330_v35  ;;  %v9941_v35 = vld [vmem:[%s10536_s8 + $0x110] sm:$0xff]   ;;  %v9944_v34 = vld [vmem:[%s10536_s8 + $0x188] sm:$0xff]  }
 0x262   : > { %5092 = vmatprep.mubr.bf16.mxu0 %v9337_v39  ;;  %v10766_v16 = vadd.f32 %v5567_v41, %v4894_v10  ;;  %5765 = vmatprep.mubr.bf16.mxu1 %v9339_v3  ;;  %v9942_v41 = vld [vmem:[%s10536_s8 + $0x190] sm:$0xff]   ;;  %v9338_v10 = vcombine.low %v709_v0, %v713_v57  ;;  %v9345_v3 = vcombine.high %v716_v42, %v720_v2 }
 0x263   : > { %v4896_v29 = vpop.f32.mrf.mxu0  ;;  %v5569_v8 = vpop.f32.mrf.mxu1  ;;  %5944 = vmatprep.subr.bf16.mxu0 %v12745_v18  ;;  %6617 = vmatprep.subr.bf16.mxu1 %v12745_v18 }
 0x264   : > { %12749 = vst [vmem:[#allocation40_spill] sm:$0xff] %v10766_v16  ;;  %v9347_v8 = vcombine.high %v717_v51, %v721_v21  ;;  %5945 = vmatpush1.bf16.msra.mxu0 %v9941_v35  ;;  %6618 = vmatpush1.bf16.msra.mxu1 %v9942_v41  ;;  %v725_v41 = vld [vmem:[#allocation5 + $0xf48] sm:$0xff] }
 0x265   : > { %v4897_v47 = vpop.f32.mrf.mxu0  ;;  %v5570_v39 = vpop.f32.mrf.mxu1  ;;  %5946 = vmatprep.subr.bf16.mxu0 %v12745_v18  ;;  %6619 = vmatprep.subr.bf16.mxu1 %v12745_v18 }
 0x266   : > { %v10772_v29 = vadd.f32 %v5570_v39, %v4897_v47  ;;  %v724_v47 = vld [vmem:[#allocation5 + $0xf40] sm:$0xff]  ;;  %v729_v39 = vld [vmem:[#allocation5 + $0xf68] sm:$0xff] }
 0x267   : > { %v4899_v5 = vpop.f32.mrf.mxu0  ;;  %v5572_v16 = vpop.f32.mrf.mxu1 }
 0x268   : > { %12750 = vst [vmem:[#allocation41_spill] sm:$0xff] %v10772_v29  ;;  %v728_v16 = vld [vmem:[#allocation5 + $0xf60] sm:$0xff]  ;;  %5947 = vmatpush1.bf16.msra.mxu0 %v9943_v50  ;;  %6620 = vmatpush1.bf16.msra.mxu1 %v9944_v34  ;;  %v9344_v5 = vcombine.low %v716_v42, %v720_v2  ;;  %v9947_v42 = vld [vmem:[%s10536_s8 + $0x178] sm:$0xff]  }
 0x269   : > { %v4902_v27 = vpop.f32.mrf.mxu0  ;;  %5093 = vmatmul.mubr.bf16.gmra.mxu0 %v9336_v59  ;;  %v5575_v48 = vpop.f32.mrf.mxu1  ;;  %5766 = vmatmul.mubr.bf16.gmra.mxu1 %v9338_v10  ;;  %v9945_v10 = vld [vmem:[%s10536_s8 + $0x100] sm:$0xff]   ;;  %v9948_v2 = vld [vmem:[%s10536_s8 + $0x1f8] sm:$0xff]  }
 0x26a   : > { %5100 = vmatprep.mubr.bf16.mxu0 %v9345_v3  ;;  %v10778_v0 = vadd.f32 %v5575_v48, %v4902_v27  ;;  %5773 = vmatprep.mubr.bf16.mxu1 %v9347_v8  ;;  %v9946_v48 = vld [vmem:[%s10536_s8 + $0x180] sm:$0xff]   ;;  %v9346_v27 = vcombine.low %v717_v51, %v721_v21  ;;  %v9353_v8 = vcombine.high %v724_v47, %v728_v16 }
 0x26b   : > { %v4904_v57 = vpop.f32.mrf.mxu0  ;;  %v5577_v35 = vpop.f32.mrf.mxu1  ;;  %5948 = vmatprep.subr.bf16.mxu0 %v12745_v18  ;;  %6621 = vmatprep.subr.bf16.mxu1 %v12745_v18 }
 0x26c   : > { %12751 = vst [vmem:[#allocation42_spill] sm:$0xff] %v10778_v0  ;;  %v9355_v35 = vcombine.high %v725_v41, %v729_v39  ;;  %5949 = vmatpush1.bf16.msra.mxu0 %v9945_v10  ;;  %6622 = vmatpush1.bf16.msra.mxu1 %v9946_v48  ;;  %v733_v48 = vld [vmem:[#allocation5 + $0xf88] sm:$0xff] }
 0x26d   : > { %v4905_v59 = vpop.f32.mrf.mxu0  ;;  %v5578_v3 = vpop.f32.mrf.mxu1  ;;  %5950 = vmatprep.subr.bf16.mxu0 %v12745_v18  ;;  %6623 = vmatprep.subr.bf16.mxu1 %v12745_v18 }
 0x26e   : > { %v10784_v57 = vadd.f32 %v5578_v3, %v4905_v59  ;;  %v732_v59 = vld [vmem:[#allocation5 + $0xf80] sm:$0xff]  ;;  %v737_v3 = vld [vmem:[#allocation5 + $0xfa8] sm:$0xff] }
 0x26f   : > { %v4907_v50 = vpop.f32.mrf.mxu0  ;;  %v5580_v0 = vpop.f32.mrf.mxu1 }
 0x270   : > { %12752 = vst [vmem:[#allocation43_spill] sm:$0xff] %v10784_v57  ;;  %v736_v0 = vld [vmem:[#allocation5 + $0xfa0] sm:$0xff]  ;;  %5951 = vmatpush2.bf16.msra.mxu0 %v9947_v42  ;;  %6624 = vmatpush2.bf16.msra.mxu1 %v9948_v2  ;;  %v9352_v50 = vcombine.low %v724_v47, %v728_v16  ;;  %v9951_v47 = vld [vmem:[%s10536_s8 + $0x168] sm:$0xff]  }
 0x271   : > { %v4910_v34 = vpop.f32.mrf.mxu0  ;;  %5101 = vmatmul.mubr.bf16.gmra.mxu0 %v9344_v5  ;;  %v5583_v29 = vpop.f32.mrf.mxu1  ;;  %5774 = vmatmul.mubr.bf16.gmra.mxu1 %v9346_v27  ;;  %v9949_v27 = vld [vmem:[%s10536_s8 + $0x170] sm:$0xff]   ;;  %v9952_v16 = vld [vmem:[%s10536_s8 + $0x1e8] sm:$0xff]  }
 0x272   : > { %5108 = vmatprep.mubr.bf16.mxu0 %v9353_v8  ;;  %v10790_v51 = vadd.f32 %v5583_v29, %v4910_v34  ;;  %5781 = vmatprep.mubr.bf16.mxu1 %v9355_v35  ;;  %v9950_v29 = vld [vmem:[%s10536_s8 + $0x1f0] sm:$0xff]   ;;  %v9354_v34 = vcombine.low %v725_v41, %v729_v39  ;;  %v9361_v35 = vcombine.high %v732_v59, %v736_v0 }
 0x273   : > { %v4912_v21 = vpop.f32.mrf.mxu0  ;;  %v5585_v10 = vpop.f32.mrf.mxu1  ;;  %5952 = vmatprep.subr.bf16.mxu0 %v12745_v18  ;;  %6625 = vmatprep.subr.bf16.mxu1 %v12745_v18 }
 0x274   : > { %12753 = vst [vmem:[#allocation44_spill] sm:$0xff] %v10790_v51  ;;  %v9363_v10 = vcombine.high %v733_v48, %v737_v3  ;;  %5953 = vmatpush2.bf16.msra.mxu0 %v9949_v27  ;;  %6626 = vmatpush2.bf16.msra.mxu1 %v9950_v29  ;;  %v741_v29 = vld [vmem:[#allocation5 + $0xfc8] sm:$0xff] }
 0x275   : > { %v4913_v5 = vpop.f32.mrf.mxu0  ;;  %v5586_v8 = vpop.f32.mrf.mxu1  ;;  %5954 = vmatprep.subr.bf16.mxu0 %v12745_v18  ;;  %6627 = vmatprep.subr.bf16.mxu1 %v12745_v18 }
 0x276   : > { %v10796_v21 = vadd.f32 %v5586_v8, %v4913_v5  ;;  %v740_v5 = vld [vmem:[#allocation5 + $0xfc0] sm:$0xff]  ;;  %v745_v8 = vld [vmem:[#allocation5 + $0xfe8] sm:$0xff] }
 0x277   : > { %v4915_v42 = vpop.f32.mrf.mxu0  ;;  %v5588_v51 = vpop.f32.mrf.mxu1 }
 0x278   : > { %12754 = vst [vmem:[#allocation45_spill] sm:$0xff] %v10796_v21  ;;  %v744_v51 = vld [vmem:[#allocation5 + $0xfe0] sm:$0xff]  ;;  %5955 = vmatpush2.bf16.msra.mxu0 %v9951_v47  ;;  %6628 = vmatpush2.bf16.msra.mxu1 %v9952_v16  ;;  %v9360_v42 = vcombine.low %v732_v59, %v736_v0  ;;  %v9955_v59 = vld [vmem:[%s10536_s8 + $0x158] sm:$0xff]  }
 0x279   : > { %v4918_v2 = vpop.f32.mrf.mxu0  ;;  %5109 = vmatmul.mubr.bf16.gmra.mxu0 %v9352_v50  ;;  %v5591_v57 = vpop.f32.mrf.mxu1  ;;  %5782 = vmatmul.mubr.bf16.gmra.mxu1 %v9354_v34  ;;  %v9953_v34 = vld [vmem:[%s10536_s8 + $0x160] sm:$0xff]   ;;  %v9956_v0 = vld [vmem:[%s10536_s8 + $0x1d8] sm:$0xff]  }
 0x27a   : > { %5116 = vmatprep.mubr.bf16.mxu0 %v9361_v35  ;;  %v10802_v41 = vadd.f32 %v5591_v57, %v4918_v2  ;;  %5789 = vmatprep.mubr.bf16.mxu1 %v9363_v10  ;;  %v9954_v57 = vld [vmem:[%s10536_s8 + $0x1e0] sm:$0xff]   ;;  %v9362_v2 = vcombine.low %v733_v48, %v737_v3  ;;  %v9369_v10 = vcombine.high %v740_v5, %v744_v51 }
 0x27b   : > { %v4920_v39 = vpop.f32.mrf.mxu0  ;;  %v5593_v27 = vpop.f32.mrf.mxu1  ;;  %5956 = vmatprep.subr.bf16.mxu0 %v12745_v18  ;;  %6629 = vmatprep.subr.bf16.mxu1 %v12745_v18 }
 0x27c   : > { %12755 = vst [vmem:[#allocation46_spill] sm:$0xff] %v10802_v41  ;;  %v9371_v27 = vcombine.high %v741_v29, %v745_v8  ;;  %5957 = vmatpush2.bf16.msra.mxu0 %v9953_v34  ;;  %6630 = vmatpush2.bf16.msra.mxu1 %v9954_v57  ;;  %v749_v57 = vld [vmem:[#allocation5 + $0x1008] sm:$0xff] }
 0x27d   : > { %v4921_v50 = vpop.f32.mrf.mxu0  ;;  %v5594_v35 = vpop.f32.mrf.mxu1  ;;  %5958 = vmatprep.subr.bf16.mxu0 %v12745_v18  ;;  %6631 = vmatprep.subr.bf16.mxu1 %v12745_v18 }
 0x27e   : > { %v10808_v39 = vadd.f32 %v5594_v35, %v4921_v50  ;;  %v748_v50 = vld [vmem:[#allocation5 + $0x1000] sm:$0xff]  ;;  %v753_v35 = vld [vmem:[#allocation5 + $0x1028] sm:$0xff] }
 0x27f   : > { %v4923_v47 = vpop.f32.mrf.mxu0  ;;  %v5596_v41 = vpop.f32.mrf.mxu1 }
 0x280   : > { %12756 = vst [vmem:[#allocation47_spill] sm:$0xff] %v10808_v39  ;;  %v752_v41 = vld [vmem:[#allocation5 + $0x1020] sm:$0xff]  ;;  %5959 = vmatpush2.bf16.msra.mxu0 %v9955_v59  ;;  %6632 = vmatpush2.bf16.msra.mxu1 %v9956_v0  ;;  %v9368_v47 = vcombine.low %v740_v5, %v744_v51  ;;  %v9959_v5 = vld [vmem:[%s10536_s8 + $0x148] sm:$0xff]  }
 0x281   : > { %v4926_v16 = vpop.f32.mrf.mxu0  ;;  %5117 = vmatmul.mubr.bf16.gmra.mxu0 %v9360_v42  ;;  %v5599_v21 = vpop.f32.mrf.mxu1  ;;  %5790 = vmatmul.mubr.bf16.gmra.mxu1 %v9362_v2  ;;  %v9957_v2 = vld [vmem:[%s10536_s8 + $0x150] sm:$0xff]   ;;  %v9960_v51 = vld [vmem:[%s10536_s8 + $0x1c8] sm:$0xff]  }
 0x282   : > { %5124 = vmatprep.mubr.bf16.mxu0 %v9369_v10  ;;  %v10814_v48 = vadd.f32 %v5599_v21, %v4926_v16  ;;  %5797 = vmatprep.mubr.bf16.mxu1 %v9371_v27  ;;  %v9958_v21 = vld [vmem:[%s10536_s8 + $0x1d0] sm:$0xff]   ;;  %v9370_v16 = vcombine.low %v741_v29, %v745_v8  ;;  %v9377_v27 = vcombine.high %v748_v50, %v752_v41 }
 0x283   : > { %v4928_v3 = vpop.f32.mrf.mxu0  ;;  %v5601_v34 = vpop.f32.mrf.mxu1  ;;  %5960 = vmatprep.subr.bf16.mxu0 %v12745_v18  ;;  %6633 = vmatprep.subr.bf16.mxu1 %v12745_v18 }
 0x284   : > { %12757 = vst [vmem:[#allocation48_spill] sm:$0xff] %v10814_v48  ;;  %v9379_v34 = vcombine.high %v749_v57, %v753_v35  ;;  %5961 = vmatpush2.bf16.msra.mxu0 %v9957_v2  ;;  %6634 = vmatpush2.bf16.msra.mxu1 %v9958_v21  ;;  %v757_v21 = vld [vmem:[#allocation5 + $0x1048] sm:$0xff] }
 0x285   : > { %v4929_v42 = vpop.f32.mrf.mxu0  ;;  %v5602_v10 = vpop.f32.mrf.mxu1  ;;  %5962 = vmatprep.subr.bf16.mxu0 %v12745_v18  ;;  %6635 = vmatprep.subr.bf16.mxu1 %v12745_v18 }
 0x286   : > { %v10820_v3 = vadd.f32 %v5602_v10, %v4929_v42  ;;  %v756_v42 = vld [vmem:[#allocation5 + $0x1040] sm:$0xff]  ;;  %v761_v10 = vld [vmem:[#allocation5 + $0x1068] sm:$0xff] }
 0x287   : > { %v4931_v59 = vpop.f32.mrf.mxu0  ;;  %v5604_v48 = vpop.f32.mrf.mxu1 }
 0x288   : > { %12758 = vst [vmem:[#allocation49_spill] sm:$0xff] %v10820_v3  ;;  %v760_v48 = vld [vmem:[#allocation5 + $0x1060] sm:$0xff]  ;;  %5963 = vmatpush2.bf16.msra.mxu0 %v9959_v5  ;;  %6636 = vmatpush2.bf16.msra.mxu1 %v9960_v51  ;;  %v9376_v59 = vcombine.low %v748_v50, %v752_v41 }
 0x289   : > { %v4934_v0 = vpop.f32.mrf.mxu0  ;;  %5125 = vmatmul.mubr.bf16.gmra.mxu0 %v9368_v47  ;;  %v5607_v39 = vpop.f32.mrf.mxu1  ;;  %5798 = vmatmul.mubr.bf16.gmra.mxu1 %v9370_v16  ;;  %v9961_v16 = vld [vmem:[%s10536_s8 + $0x140] sm:$0xff]  }
 0x28a   : > { %5132 = vmatprep.mubr.bf16.mxu0 %v9377_v27  ;;  %v10826_v29 = vadd.f32 %v5607_v39, %v4934_v0  ;;  %5805 = vmatprep.mubr.bf16.mxu1 %v9379_v34  ;;  %v9962_v27 = vld [vmem:[%s10536_s8 + $0x1c0] sm:$0xff]   ;;  %v9378_v39 = vcombine.low %v749_v57, %v753_v35  ;;  %v9385_v0 = vcombine.high %v756_v42, %v760_v48  ;;  %v765_v35 = vld [vmem:[#allocation5 + $0x1088] sm:$0xff] }
 0x28b   : > { %v4936_v8 = vpop.f32.mrf.mxu0  ;;  %v5609_v2 = vpop.f32.mrf.mxu1  ;;  %5964 = vmatprep.subr.bf16.mxu0 %v12745_v18  ;;  %6637 = vmatprep.subr.bf16.mxu1 %v12745_v18  ;;  %v764_v41 = vld [vmem:[#allocation5 + $0x1080] sm:$0xff] }
 0x28c   : > { %12759 = vst [vmem:[#allocation50_spill] sm:$0xff] %v10826_v29  ;;  %v9387_v29 = vcombine.high %v757_v21, %v761_v10  ;;  %5965 = vmatpush2.bf16.msra.mxu0 %v9961_v16  ;;  %6638 = vmatpush2.bf16.msra.mxu1 %v9962_v27  ;;  %v9386_v16 = vcombine.low %v757_v21, %v761_v10  ;;  %v777_v21 = vld [vmem:[#allocation5 + $0x10e8] sm:$0xff] }
 0x28d   : > { %v4937_v47 = vpop.f32.mrf.mxu0  ;;  %v5610_v3 = vpop.f32.mrf.mxu1 }
 0x28e   : > { %v10832_v8 = vadd.f32 %v5610_v3, %v4937_v47  ;;  %v769_v3 = vld [vmem:[#allocation5 + $0x10a8] sm:$0xff] }
 0x28f   : > { %v4939_v34 = vpop.f32.mrf.mxu0  ;;  %v5612_v5 = vpop.f32.mrf.mxu1  ;;  %v9395_v32 = vcombine.high %v765_v35, %v769_v3 }
 0x290   : > { %12760 = vst [vmem:[#allocation51_spill] sm:$0xff] %v10832_v8  ;;  %v9384_v34 = vcombine.low %v756_v42, %v760_v48  ;;  %v9393_v5 = vcombine.high %v764_v41, %v768_v9  ;;  %v773_v48 = vld [vmem:[#allocation5 + $0x10c8] sm:$0xff] }
 0x291   : > { %v4942_v2 = vpop.f32.mrf.mxu0  ;;  %5133 = vmatmul.mubr.bf16.gmra.mxu0 %v9376_v59  ;;  %v5615_v51 = vpop.f32.mrf.mxu1  ;;  %5806 = vmatmul.mubr.bf16.gmra.mxu1 %v9378_v39 }
 0x292   : > { %5140 = vmatprep.mubr.bf16.mxu0 %v9385_v0  ;;  %v10834_v50 = vadd.f32 %v5615_v51, %v4942_v2  ;;  %5813 = vmatprep.mubr.bf16.mxu1 %v9387_v29 }
 0x293   : > { %v4944_v18 = vpop.f32.mrf.mxu0  ;;  %v5617_v57 = vpop.f32.mrf.mxu1 }
 0x294   : > { %12761 = vst [vmem:[#allocation52_spill] sm:$0xff] %v10834_v50  ;;  %v772_v18 = vld [vmem:[#allocation5 + $0x10c0] sm:$0xff]  ;;  %v9403_v50 = vcombine.high %v773_v48, %v777_v21 }
 0x295   : > { %v4945_v47 = vpop.f32.mrf.mxu0  ;;  %v5618_v8 = vpop.f32.mrf.mxu1  ;;  %v776_v57 = vld [vmem:[#allocation5 + $0x10e0] sm:$0xff] }
 0x296   : > { %v10836_v27 = vadd.f32 %v5618_v8, %v4945_v47  ;;  %v9392_v8 = vcombine.low %v764_v41, %v768_v9  ;;  %v781_v41 = vld [vmem:[#allocation5 + $0x1108] sm:$0xff] }
 0x297   : > { %v4947_v59 = vpop.f32.mrf.mxu0  ;;  %v5620_v39 = vpop.f32.mrf.mxu1 }
 0x298   : > { %12762 = vst [vmem:[#allocation53_spill] sm:$0xff] %v10836_v27  ;;  %v9394_v59 = vcombine.low %v765_v35, %v769_v3  ;;  %v9401_v27 = vcombine.high %v772_v18, %v776_v57  ;;  %v785_v35 = vld [vmem:[#allocation5 + $0x1128] sm:$0xff] }
 0x299   : > { %v4950_v0 = vpop.f32.mrf.mxu0  ;;  %5141 = vmatmul.mubr.bf16.gmra.mxu0 %v9384_v34  ;;  %v5623_v2 = vpop.f32.mrf.mxu1  ;;  %5814 = vmatmul.mubr.bf16.gmra.mxu1 %v9386_v16 }
 0x29a   : > { %5148 = vmatprep.mubr.bf16.mxu0 %v9393_v5  ;;  %v10838_v29 = vadd.f32 %v5623_v2, %v4950_v0  ;;  %5821 = vmatprep.mubr.bf16.mxu1 %v9395_v32 }
 0x29b   : > { %v4952_v51 = vpop.f32.mrf.mxu0  ;;  %v5625_v42 = vpop.f32.mrf.mxu1 }
 0x29c   : > { %12763 = vst [vmem:[#allocation54_spill] sm:$0xff] %v10838_v29  ;;  %v780_v51 = vld [vmem:[#allocation5 + $0x1100] sm:$0xff]  ;;  %v9411_v29 = vcombine.high %v781_v41, %v785_v35 }
 0x29d   : > { %v4953_v10 = vpop.f32.mrf.mxu0  ;;  %v5626_v47 = vpop.f32.mrf.mxu1  ;;  %v784_v42 = vld [vmem:[#allocation5 + $0x1120] sm:$0xff] }
 0x29e   : > { %v10840_v39 = vadd.f32 %v5626_v47, %v4953_v10  ;;  %v9400_v10 = vcombine.low %v772_v18, %v776_v57  ;;  %v789_v57 = vld [vmem:[#allocation5 + $0x1148] sm:$0xff] }
 0x29f   : > { %v4955_v34 = vpop.f32.mrf.mxu0  ;;  %v5628_v16 = vpop.f32.mrf.mxu1 }
 0x2a0   : > { %12764 = vst [vmem:[#allocation55_spill] sm:$0xff] %v10840_v39  ;;  %v9402_v34 = vcombine.low %v773_v48, %v777_v21  ;;  %v9409_v39 = vcombine.high %v780_v51, %v784_v42  ;;  %v793_v48 = vld [vmem:[#allocation5 + $0x1168] sm:$0xff] }
 0x2a1   : > { %v4958_v5 = vpop.f32.mrf.mxu0  ;;  %5149 = vmatmul.mubr.bf16.gmra.mxu0 %v9392_v8  ;;  %v5631_v0 = vpop.f32.mrf.mxu1  ;;  %5822 = vmatmul.mubr.bf16.gmra.mxu1 %v9394_v59 }
 0x2a2   : > { %5156 = vmatprep.mubr.bf16.mxu0 %v9401_v27  ;;  %v10842_v32 = vadd.f32 %v5631_v0, %v4958_v5  ;;  %5829 = vmatprep.mubr.bf16.mxu1 %v9403_v50 }
 0x2a3   : > { %v4960_v2 = vpop.f32.mrf.mxu0  ;;  %v5633_v9 = vpop.f32.mrf.mxu1 }
 0x2a4   : > { %12765 = vst [vmem:[#allocation56_spill] sm:$0xff] %v10842_v32  ;;  %v788_v2 = vld [vmem:[#allocation5 + $0x1140] sm:$0xff]  ;;  %v9419_v32 = vcombine.high %v789_v57, %v793_v48 }
 0x2a5   : > { %v4961_v3 = vpop.f32.mrf.mxu0  ;;  %v5634_v47 = vpop.f32.mrf.mxu1  ;;  %v792_v9 = vld [vmem:[#allocation5 + $0x1160] sm:$0xff] }
 0x2a6   : > { %v10844_v16 = vadd.f32 %v5634_v47, %v4961_v3  ;;  %v9408_v3 = vcombine.low %v780_v51, %v784_v42  ;;  %v797_v42 = vld [vmem:[#allocation5 + $0x1188] sm:$0xff] }
 0x2a7   : > { %v4963_v8 = vpop.f32.mrf.mxu0  ;;  %v5636_v59 = vpop.f32.mrf.mxu1 }
 0x2a8   : > { %12766 = vst [vmem:[#allocation57_spill] sm:$0xff] %v10844_v16  ;;  %v9410_v8 = vcombine.low %v781_v41, %v785_v35  ;;  %v9417_v16 = vcombine.high %v788_v2, %v792_v9  ;;  %v801_v41 = vld [vmem:[#allocation5 + $0x11a8] sm:$0xff] }
 0x2a9   : > { %v4966_v27 = vpop.f32.mrf.mxu0  ;;  %5157 = vmatmul.mubr.bf16.gmra.mxu0 %v9400_v10  ;;  %v5639_v5 = vpop.f32.mrf.mxu1  ;;  %5830 = vmatmul.mubr.bf16.gmra.mxu1 %v9402_v34 }
 0x2aa   : > { %5164 = vmatprep.mubr.bf16.mxu0 %v9409_v39  ;;  %v10846_v50 = vadd.f32 %v5639_v5, %v4966_v27  ;;  %5837 = vmatprep.mubr.bf16.mxu1 %v9411_v29 }
 0x2ab   : > { %v4968_v0 = vpop.f32.mrf.mxu0  ;;  %v5641_v18 = vpop.f32.mrf.mxu1 }
 0x2ac   : > { %12767 = vst [vmem:[#allocation58_spill] sm:$0xff] %v10846_v50  ;;  %v796_v0 = vld [vmem:[#allocation5 + $0x1180] sm:$0xff]  ;;  %v9427_v50 = vcombine.high %v797_v42, %v801_v41 }
 0x2ad   : > { %v4969_v21 = vpop.f32.mrf.mxu0  ;;  %v5642_v47 = vpop.f32.mrf.mxu1  ;;  %v800_v18 = vld [vmem:[#allocation5 + $0x11a0] sm:$0xff] }
 0x2ae   : > { %v10848_v59 = vadd.f32 %v5642_v47, %v4969_v21  ;;  %v9416_v21 = vcombine.low %v788_v2, %v792_v9  ;;  %v805_v9 = vld [vmem:[#allocation5 + $0x11c8] sm:$0xff] }
 0x2af   : > { %v4971_v10 = vpop.f32.mrf.mxu0  ;;  %v5644_v34 = vpop.f32.mrf.mxu1 }
 0x2b0   : > { %12768 = vst [vmem:[#allocation59_spill] sm:$0xff] %v10848_v59  ;;  %v9418_v10 = vcombine.low %v789_v57, %v793_v48  ;;  %v9425_v59 = vcombine.high %v796_v0, %v800_v18  ;;  %v809_v57 = vld [vmem:[#allocation5 + $0x11e8] sm:$0xff] }
 0x2b1   : > { %v4974_v39 = vpop.f32.mrf.mxu0  ;;  %5165 = vmatmul.mubr.bf16.gmra.mxu0 %v9408_v3  ;;  %v5647_v27 = vpop.f32.mrf.mxu1  ;;  %5838 = vmatmul.mubr.bf16.gmra.mxu1 %v9410_v8 }
 0x2b2   : > { %5172 = vmatprep.mubr.bf16.mxu0 %v9417_v16  ;;  %v10850_v29 = vadd.f32 %v5647_v27, %v4974_v39  ;;  %5845 = vmatprep.mubr.bf16.mxu1 %v9419_v32 }
 0x2b3   : > { %v4976_v5 = vpop.f32.mrf.mxu0  ;;  %v5649_v51 = vpop.f32.mrf.mxu1 }
 0x2b4   : > { %12769 = vst [vmem:[#allocation60_spill] sm:$0xff] %v10850_v29  ;;  %v804_v5 = vld [vmem:[#allocation5 + $0x11c0] sm:$0xff]  ;;  %v9435_v29 = vcombine.high %v805_v9, %v809_v57 }
 0x2b5   : > { %v4977_v35 = vpop.f32.mrf.mxu0  ;;  %v5650_v47 = vpop.f32.mrf.mxu1  ;;  %v808_v51 = vld [vmem:[#allocation5 + $0x11e0] sm:$0xff] }
 0x2b6   : > { %v10852_v34 = vadd.f32 %v5650_v47, %v4977_v35  ;;  %v9424_v35 = vcombine.low %v796_v0, %v800_v18  ;;  %v813_v18 = vld [vmem:[#allocation5 + $0x1208] sm:$0xff] }
 0x2b7   : > { %v4979_v3 = vpop.f32.mrf.mxu0  ;;  %v5652_v8 = vpop.f32.mrf.mxu1 }
 0x2b8   : > { %12770 = vst [vmem:[#allocation61_spill] sm:$0xff] %v10852_v34  ;;  %v9426_v3 = vcombine.low %v797_v42, %v801_v41  ;;  %v9433_v34 = vcombine.high %v804_v5, %v808_v51  ;;  %v817_v42 = vld [vmem:[#allocation5 + $0x1228] sm:$0xff] }
 0x2b9   : > { %v4982_v16 = vpop.f32.mrf.mxu0  ;;  %5173 = vmatmul.mubr.bf16.gmra.mxu0 %v9416_v21  ;;  %v5655_v39 = vpop.f32.mrf.mxu1  ;;  %5846 = vmatmul.mubr.bf16.gmra.mxu1 %v9418_v10 }
 0x2ba   : > { %5180 = vmatprep.mubr.bf16.mxu0 %v9425_v59  ;;  %v10854_v32 = vadd.f32 %v5655_v39, %v4982_v16  ;;  %5853 = vmatprep.mubr.bf16.mxu1 %v9427_v50 }
 0x2bb   : > { %v4984_v27 = vpop.f32.mrf.mxu0  ;;  %v5657_v2 = vpop.f32.mrf.mxu1 }
 0x2bc   : > { %12771 = vst [vmem:[#allocation62_spill] sm:$0xff] %v10854_v32  ;;  %v812_v27 = vld [vmem:[#allocation5 + $0x1200] sm:$0xff]  ;;  %v9443_v32 = vcombine.high %v813_v18, %v817_v42 }
 0x2bd   : > { %v4985_v48 = vpop.f32.mrf.mxu0  ;;  %v5658_v47 = vpop.f32.mrf.mxu1  ;;  %v816_v2 = vld [vmem:[#allocation5 + $0x1220] sm:$0xff] }
 0x2be   : > { %v10856_v8 = vadd.f32 %v5658_v47, %v4985_v48  ;;  %v9432_v48 = vcombine.low %v804_v5, %v808_v51  ;;  %v821_v51 = vld [vmem:[#allocation5 + $0x1248] sm:$0xff] }
 0x2bf   : > { %v4987_v21 = vpop.f32.mrf.mxu0  ;;  %v5660_v10 = vpop.f32.mrf.mxu1 }
 0x2c0   : > { %12772 = vst [vmem:[#allocation63_spill] sm:$0xff] %v10856_v8  ;;  %v9434_v21 = vcombine.low %v805_v9, %v809_v57  ;;  %v9441_v8 = vcombine.high %v812_v27, %v816_v2  ;;  %v825_v9 = vld [vmem:[#allocation5 + $0x1268] sm:$0xff] }
 0x2c1   : > { %v4990_v59 = vpop.f32.mrf.mxu0  ;;  %5181 = vmatmul.mubr.bf16.gmra.mxu0 %v9424_v35  ;;  %v5663_v16 = vpop.f32.mrf.mxu1  ;;  %5854 = vmatmul.mubr.bf16.gmra.mxu1 %v9426_v3 }
 0x2c2   : > { %5188 = vmatprep.mubr.bf16.mxu0 %v9433_v34  ;;  %v10858_v50 = vadd.f32 %v5663_v16, %v4990_v59  ;;  %5861 = vmatprep.mubr.bf16.mxu1 %v9435_v29 }
 0x2c3   : > { %v4992_v39 = vpop.f32.mrf.mxu0  ;;  %v5665_v0 = vpop.f32.mrf.mxu1 }
 0x2c4   : > { %12773 = vst [vmem:[#allocation64_spill] sm:$0xff] %v10858_v50  ;;  %v820_v39 = vld [vmem:[#allocation5 + $0x1240] sm:$0xff]  ;;  %v9451_v50 = vcombine.high %v821_v51, %v825_v9 }
 0x2c5   : > { %v4993_v41 = vpop.f32.mrf.mxu0  ;;  %v5666_v47 = vpop.f32.mrf.mxu1  ;;  %v824_v0 = vld [vmem:[#allocation5 + $0x1260] sm:$0xff] }
 0x2c6   : > { %v10860_v10 = vadd.f32 %v5666_v47, %v4993_v41  ;;  %v9440_v41 = vcombine.low %v812_v27, %v816_v2  ;;  %v829_v2 = vld [vmem:[#allocation5 + $0x1288] sm:$0xff] }
 0x2c7   : > { %v4995_v35 = vpop.f32.mrf.mxu0  ;;  %v5668_v3 = vpop.f32.mrf.mxu1 }
 0x2c8   : > { %12774 = vst [vmem:[#allocation65_spill] sm:$0xff] %v10860_v10  ;;  %v9442_v35 = vcombine.low %v813_v18, %v817_v42  ;;  %v9449_v10 = vcombine.high %v820_v39, %v824_v0  ;;  %v833_v18 = vld [vmem:[#allocation5 + $0x12a8] sm:$0xff] }
 0x2c9   : > { %v4998_v34 = vpop.f32.mrf.mxu0  ;;  %5189 = vmatmul.mubr.bf16.gmra.mxu0 %v9432_v48  ;;  %v5671_v59 = vpop.f32.mrf.mxu1  ;;  %5862 = vmatmul.mubr.bf16.gmra.mxu1 %v9434_v21 }
 0x2ca   : > { %5196 = vmatprep.mubr.bf16.mxu0 %v9441_v8  ;;  %v10862_v29 = vadd.f32 %v5671_v59, %v4998_v34  ;;  %5869 = vmatprep.mubr.bf16.mxu1 %v9443_v32 }
 0x2cb   : > { %v5000_v16 = vpop.f32.mrf.mxu0  ;;  %v5673_v5 = vpop.f32.mrf.mxu1 }
 0x2cc   : > { %12775 = vst [vmem:[#allocation66_spill] sm:$0xff] %v10862_v29  ;;  %v828_v16 = vld [vmem:[#allocation5 + $0x1280] sm:$0xff]  ;;  %v9459_v29 = vcombine.high %v829_v2, %v833_v18 }
 0x2cd   : > { %v5001_v57 = vpop.f32.mrf.mxu0  ;;  %v5674_v47 = vpop.f32.mrf.mxu1  ;;  %v832_v5 = vld [vmem:[#allocation5 + $0x12a0] sm:$0xff] }
 0x2ce   : > { %v10864_v3 = vadd.f32 %v5674_v47, %v5001_v57  ;;  %v9448_v57 = vcombine.low %v820_v39, %v824_v0  ;;  %v837_v0 = vld [vmem:[#allocation5 + $0x12c8] sm:$0xff] }
 0x2cf   : > { %v5003_v48 = vpop.f32.mrf.mxu0  ;;  %v5676_v21 = vpop.f32.mrf.mxu1 }
 0x2d0   : > { %12776 = vst [vmem:[#allocation67_spill] sm:$0xff] %v10864_v3  ;;  %v9450_v48 = vcombine.low %v821_v51, %v825_v9  ;;  %v9457_v3 = vcombine.high %v828_v16, %v832_v5  ;;  %v841_v51 = vld [vmem:[#allocation5 + $0x12e8] sm:$0xff] }
 0x2d1   : > { %v5006_v8 = vpop.f32.mrf.mxu0  ;;  %5197 = vmatmul.mubr.bf16.gmra.mxu0 %v9440_v41  ;;  %v5679_v34 = vpop.f32.mrf.mxu1  ;;  %5870 = vmatmul.mubr.bf16.gmra.mxu1 %v9442_v35 }
 0x2d2   : > { %5204 = vmatprep.mubr.bf16.mxu0 %v9449_v10  ;;  %v10866_v32 = vadd.f32 %v5679_v34, %v5006_v8  ;;  %5877 = vmatprep.mubr.bf16.mxu1 %v9451_v50 }
 0x2d3   : > { %v5008_v59 = vpop.f32.mrf.mxu0  ;;  %v5681_v27 = vpop.f32.mrf.mxu1 }
 0x2d4   : > { %12777 = vst [vmem:[#allocation68_spill] sm:$0xff] %v10866_v32  ;;  %v836_v59 = vld [vmem:[#allocation5 + $0x12c0] sm:$0xff]  ;;  %v9467_v32 = vcombine.high %v837_v0, %v841_v51 }
 0x2d5   : > { %v5009_v42 = vpop.f32.mrf.mxu0  ;;  %v5682_v47 = vpop.f32.mrf.mxu1  ;;  %v840_v27 = vld [vmem:[#allocation5 + $0x12e0] sm:$0xff] }
 0x2d6   : > { %v10868_v21 = vadd.f32 %v5682_v47, %v5009_v42  ;;  %v9456_v42 = vcombine.low %v828_v16, %v832_v5  ;;  %v845_v5 = vld [vmem:[#allocation5 + $0x1308] sm:$0xff] }
 0x2d7   : > { %v5011_v41 = vpop.f32.mrf.mxu0  ;;  %v5684_v35 = vpop.f32.mrf.mxu1 }
 0x2d8   : > { %12778 = vst [vmem:[#allocation69_spill] sm:$0xff] %v10868_v21  ;;  %v9458_v41 = vcombine.low %v829_v2, %v833_v18  ;;  %v9465_v21 = vcombine.high %v836_v59, %v840_v27  ;;  %v849_v2 = vld [vmem:[#allocation5 + $0x1328] sm:$0xff] }
 0x2d9   : > { %v5014_v10 = vpop.f32.mrf.mxu0  ;;  %5205 = vmatmul.mubr.bf16.gmra.mxu0 %v9448_v57  ;;  %v5687_v8 = vpop.f32.mrf.mxu1  ;;  %5878 = vmatmul.mubr.bf16.gmra.mxu1 %v9450_v48 }
 0x2da   : > { %5212 = vmatprep.mubr.bf16.mxu0 %v9457_v3  ;;  %v10870_v50 = vadd.f32 %v5687_v8, %v5014_v10  ;;  %5885 = vmatprep.mubr.bf16.mxu1 %v9459_v29 }
 0x2db   : > { %v5016_v34 = vpop.f32.mrf.mxu0  ;;  %v5689_v39 = vpop.f32.mrf.mxu1 }
 0x2dc   : > { %12779 = vst [vmem:[#allocation70_spill] sm:$0xff] %v10870_v50  ;;  %v844_v34 = vld [vmem:[#allocation5 + $0x1300] sm:$0xff]  ;;  %v9475_v50 = vcombine.high %v845_v5, %v849_v2 }
 0x2dd   : > { %v5017_v9 = vpop.f32.mrf.mxu0  ;;  %v5690_v47 = vpop.f32.mrf.mxu1  ;;  %v848_v39 = vld [vmem:[#allocation5 + $0x1320] sm:$0xff] }
 0x2de   : > { %v10872_v35 = vadd.f32 %v5690_v47, %v5017_v9  ;;  %v9464_v9 = vcombine.low %v836_v59, %v840_v27  ;;  %v853_v27 = vld [vmem:[#allocation5 + $0x1348] sm:$0xff] }
 0x2df   : > { %v5019_v57 = vpop.f32.mrf.mxu0  ;;  %v5692_v48 = vpop.f32.mrf.mxu1 }
 0x2e0   : > { %12780 = vst [vmem:[#allocation71_spill] sm:$0xff] %v10872_v35  ;;  %v9466_v57 = vcombine.low %v837_v0, %v841_v51  ;;  %v9473_v35 = vcombine.high %v844_v34, %v848_v39  ;;  %v857_v0 = vld [vmem:[#allocation5 + $0x1368] sm:$0xff] }
 0x2e1   : > { %v5022_v3 = vpop.f32.mrf.mxu0  ;;  %5213 = vmatmul.mubr.bf16.gmra.mxu0 %v9456_v42  ;;  %v5695_v10 = vpop.f32.mrf.mxu1  ;;  %5886 = vmatmul.mubr.bf16.gmra.mxu1 %v9458_v41 }
 0x2e2   : > { %5220 = vmatprep.mubr.bf16.mxu0 %v9465_v21  ;;  %v10874_v29 = vadd.f32 %v5695_v10, %v5022_v3  ;;  %5893 = vmatprep.mubr.bf16.mxu1 %v9467_v32 }
 0x2e3   : > { %v5024_v8 = vpop.f32.mrf.mxu0  ;;  %v5697_v16 = vpop.f32.mrf.mxu1 }
 0x2e4   : > { %12781 = vst [vmem:[#allocation72_spill] sm:$0xff] %v10874_v29  ;;  %v852_v8 = vld [vmem:[#allocation5 + $0x1340] sm:$0xff]  ;;  %v9483_v29 = vcombine.high %v853_v27, %v857_v0 }
 0x2e5   : > { %v5025_v18 = vpop.f32.mrf.mxu0  ;;  %v5698_v47 = vpop.f32.mrf.mxu1  ;;  %v856_v16 = vld [vmem:[#allocation5 + $0x1360] sm:$0xff] }
 0x2e6   : > { %v10876_v48 = vadd.f32 %v5698_v47, %v5025_v18  ;;  %v9472_v18 = vcombine.low %v844_v34, %v848_v39  ;;  %v861_v39 = vld [vmem:[#allocation5 + $0x1388] sm:$0xff] }
 0x2e7   : > { %v5027_v42 = vpop.f32.mrf.mxu0  ;;  %v5700_v41 = vpop.f32.mrf.mxu1 }
 0x2e8   : > { %12782 = vst [vmem:[#allocation73_spill] sm:$0xff] %v10876_v48  ;;  %v9474_v42 = vcombine.low %v845_v5, %v849_v2  ;;  %v9481_v48 = vcombine.high %v852_v8, %v856_v16  ;;  %v865_v5 = vld [vmem:[#allocation5 + $0x13a8] sm:$0xff] }
 0x2e9   : > { %v5030_v21 = vpop.f32.mrf.mxu0  ;;  %5221 = vmatmul.mubr.bf16.gmra.mxu0 %v9464_v9  ;;  %v5703_v3 = vpop.f32.mrf.mxu1  ;;  %5894 = vmatmul.mubr.bf16.gmra.mxu1 %v9466_v57 }
 0x2ea   : > { %5228 = vmatprep.mubr.bf16.mxu0 %v9473_v35  ;;  %v10878_v32 = vadd.f32 %v5703_v3, %v5030_v21  ;;  %5901 = vmatprep.mubr.bf16.mxu1 %v9475_v50 }
 0x2eb   : > { %v5032_v10 = vpop.f32.mrf.mxu0  ;;  %v5705_v59 = vpop.f32.mrf.mxu1 }
 0x2ec   : > { %12783 = vst [vmem:[#allocation74_spill] sm:$0xff] %v10878_v32  ;;  %v860_v10 = vld [vmem:[#allocation5 + $0x1380] sm:$0xff]  ;;  %v9491_v32 = vcombine.high %v861_v39, %v865_v5 }
 0x2ed   : > { %v5033_v51 = vpop.f32.mrf.mxu0  ;;  %v5706_v47 = vpop.f32.mrf.mxu1  ;;  %v864_v59 = vld [vmem:[#allocation5 + $0x13a0] sm:$0xff] }
 0x2ee   : > { %v10880_v41 = vadd.f32 %v5706_v47, %v5033_v51  ;;  %v9480_v51 = vcombine.low %v852_v8, %v856_v16  ;;  %v869_v16 = vld [vmem:[#allocation5 + $0x13c8] sm:$0xff] }
 0x2ef   : > { %v5035_v9 = vpop.f32.mrf.mxu0  ;;  %v5708_v57 = vpop.f32.mrf.mxu1 }
 0x2f0   : > { %12784 = vst [vmem:[#allocation75_spill] sm:$0xff] %v10880_v41  ;;  %v9482_v9 = vcombine.low %v853_v27, %v857_v0  ;;  %v9489_v41 = vcombine.high %v860_v10, %v864_v59  ;;  %v873_v27 = vld [vmem:[#allocation5 + $0x13e8] sm:$0xff] }
 0x2f1   : > { %v5038_v35 = vpop.f32.mrf.mxu0  ;;  %5229 = vmatmul.mubr.bf16.gmra.mxu0 %v9472_v18  ;;  %v5711_v21 = vpop.f32.mrf.mxu1  ;;  %5902 = vmatmul.mubr.bf16.gmra.mxu1 %v9474_v42 }
 0x2f2   : > { %5236 = vmatprep.mubr.bf16.mxu0 %v9481_v48  ;;  %v10882_v50 = vadd.f32 %v5711_v21, %v5038_v35  ;;  %5909 = vmatprep.mubr.bf16.mxu1 %v9483_v29 }
 0x2f3   : > { %v5040_v3 = vpop.f32.mrf.mxu0  ;;  %v5713_v34 = vpop.f32.mrf.mxu1 }
 0x2f4   : > { %12785 = vst [vmem:[#allocation76_spill] sm:$0xff] %v10882_v50  ;;  %v868_v3 = vld [vmem:[#allocation5 + $0x13c0] sm:$0xff]  ;;  %v9499_v50 = vcombine.high %v869_v16, %v873_v27 }
 0x2f5   : > { %v5041_v2 = vpop.f32.mrf.mxu0  ;;  %v5714_v47 = vpop.f32.mrf.mxu1  ;;  %v872_v34 = vld [vmem:[#allocation5 + $0x13e0] sm:$0xff] }
 0x2f6   : > { %v10884_v57 = vadd.f32 %v5714_v47, %v5041_v2  ;;  %v9488_v2 = vcombine.low %v860_v10, %v864_v59  ;;  %v239_v59 = vld [vmem:[#allocation5 + $0x18] sm:$0xff] }
 0x2f7   : > { %v5043_v18 = vpop.f32.mrf.mxu0  ;;  %v5716_v42 = vpop.f32.mrf.mxu1 }
 0x2f8   : > { %12786 = vst [vmem:[#allocation77_spill] sm:$0xff] %v10884_v57  ;;  %v9490_v18 = vcombine.low %v861_v39, %v865_v5  ;;  %v9497_v57 = vcombine.high %v868_v3, %v872_v34  ;;  %v243_v39 = vld [vmem:[#allocation5 + $0x38] sm:$0xff] }
 0x2f9   : > { %v5046_v48 = vpop.f32.mrf.mxu0  ;;  %5237 = vmatmul.mubr.bf16.gmra.mxu0 %v9480_v51  ;;  %v5719_v35 = vpop.f32.mrf.mxu1  ;;  %5910 = vmatmul.mubr.bf16.gmra.mxu1 %v9482_v9 }
 0x2fa   : > { %5244 = vmatprep.mubr.bf16.mxu0 %v9489_v41  ;;  %v10886_v29 = vadd.f32 %v5719_v35, %v5046_v48  ;;  %5917 = vmatprep.mubr.bf16.mxu1 %v9491_v32 }
 0x2fb   : > { %v5048_v21 = vpop.f32.mrf.mxu0  ;;  %v5721_v8 = vpop.f32.mrf.mxu1 }
 0x2fc   : > { %12787 = vst [vmem:[#allocation78_spill] sm:$0xff] %v10886_v29  ;;  %v238_v21 = vld [vmem:[#allocation5 + $0x10] sm:$0xff]  ;;  %v8871_v29 = vcombine.high %v239_v59, %v243_v39 }
 0x2fd   : > { %v5049_v0 = vpop.f32.mrf.mxu0  ;;  %v5722_v47 = vpop.f32.mrf.mxu1  ;;  %v242_v8 = vld [vmem:[#allocation5 + $0x30] sm:$0xff] }
 0x2fe   : > { %v10888_v42 = vadd.f32 %v5722_v47, %v5049_v0  ;;  %v9496_v0 = vcombine.low %v868_v3, %v872_v34  ;;  %v247_v34 = vld [vmem:[#allocation5 + $0x58] sm:$0xff] }
 0x2ff   : > { %v5051_v51 = vpop.f32.mrf.mxu0  ;;  %v5724_v9 = vpop.f32.mrf.mxu1 }
 0x300   : > { %12788 = vst [vmem:[#allocation79_spill] sm:$0xff] %v10888_v42  ;;  %v9498_v51 = vcombine.low %v869_v16, %v873_v27  ;;  %v8869_v42 = vcombine.high %v238_v21, %v242_v8  ;;  %v251_v16 = vld [vmem:[#allocation5 + $0x78] sm:$0xff] }
 0x301   : > { %v5054_v41 = vpop.f32.mrf.mxu0  ;;  %5245 = vmatmul.mubr.bf16.gmra.mxu0 %v9488_v2  ;;  %v5727_v48 = vpop.f32.mrf.mxu1  ;;  %5918 = vmatmul.mubr.bf16.gmra.mxu1 %v9490_v18 }
 0x302   : > { %5252 = vmatprep.mubr.bf16.mxu0 %v9497_v57  ;;  %v10890_v32 = vadd.f32 %v5727_v48, %v5054_v41  ;;  %5925 = vmatprep.mubr.bf16.mxu1 %v9499_v50 }
 0x303   : > { %v5056_v35 = vpop.f32.mrf.mxu0  ;;  %v5729_v10 = vpop.f32.mrf.mxu1 }
 0x304   : > { %12789 = vst [vmem:[#allocation80_spill] sm:$0xff] %v10890_v32  ;;  %v246_v35 = vld [vmem:[#allocation5 + $0x50] sm:$0xff]  ;;  %v8879_v32 = vcombine.high %v247_v34, %v251_v16 }
 0x305   : > { %v5057_v5 = vpop.f32.mrf.mxu0  ;;  %v5730_v47 = vpop.f32.mrf.mxu1  ;;  %v250_v10 = vld [vmem:[#allocation5 + $0x70] sm:$0xff] }
 0x306   : > { %v10892_v9 = vadd.f32 %v5730_v47, %v5057_v5  ;;  %v8868_v5 = vcombine.low %v238_v21, %v242_v8  ;;  %v255_v8 = vld [vmem:[#allocation5 + $0x98] sm:$0xff] }
 0x307   : > { %v5059_v2 = vpop.f32.mrf.mxu0  ;;  %v5732_v18 = vpop.f32.mrf.mxu1 }
 0x308   : > { %12790 = vst [vmem:[#allocation81_spill] sm:$0xff] %v10892_v9  ;;  %v8870_v2 = vcombine.low %v239_v59, %v243_v39  ;;  %v8877_v9 = vcombine.high %v246_v35, %v250_v10  ;;  %v259_v59 = vld [vmem:[#allocation5 + $0xb8] sm:$0xff] }
 0x309   : > { %v5062_v57 = vpop.f32.mrf.mxu0  ;;  %5253 = vmatmul.mubr.bf16.gmra.mxu0 %v9496_v0  ;;  %v5735_v41 = vpop.f32.mrf.mxu1  ;;  %5926 = vmatmul.mubr.bf16.gmra.mxu1 %v9498_v51 }
 0x30a   : > { %5966 = vmatprep.mubr.bf16.mxu0 %v8869_v42  ;;  %v10894_v50 = vadd.f32 %v5735_v41, %v5062_v57  ;;  %6639 = vmatprep.mubr.bf16.mxu1 %v8871_v29 }
 0x30b   : > { %v5064_v48 = vpop.f32.mrf.mxu0  ;;  %v5737_v3 = vpop.f32.mrf.mxu1 }
 0x30c   : > { %12791 = vst [vmem:[#allocation82_spill] sm:$0xff] %v10894_v50  ;;  %v254_v48 = vld [vmem:[#allocation5 + $0x90] sm:$0xff]  ;;  %v8887_v50 = vcombine.high %v255_v8, %v259_v59 }
 0x30d   : > { %v5065_v27 = vpop.f32.mrf.mxu0  ;;  %v5738_v47 = vpop.f32.mrf.mxu1  ;;  %v258_v3 = vld [vmem:[#allocation5 + $0xb0] sm:$0xff] }
 0x30e   : > { %v10896_v18 = vadd.f32 %v5738_v47, %v5065_v27  ;;  %v8876_v27 = vcombine.low %v246_v35, %v250_v10  ;;  %v263_v10 = vld [vmem:[#allocation5 + $0xd8] sm:$0xff] }
 0x30f   : > { %v5067_v0 = vpop.f32.mrf.mxu0  ;;  %v5740_v51 = vpop.f32.mrf.mxu1 }
 0x310   : > { %12792 = vst [vmem:[#allocation83_spill] sm:$0xff] %v10896_v18  ;;  %v8878_v0 = vcombine.low %v247_v34, %v251_v16  ;;  %v8885_v18 = vcombine.high %v254_v48, %v258_v3  ;;  %v267_v34 = vld [vmem:[#allocation5 + $0xf8] sm:$0xff] }
 0x311   : > { %v5070_v42 = vpop.f32.mrf.mxu0  ;;  %5967 = vmatmul.mubr.bf16.vlgmr.msra.gmra.mxu0 %v8868_v5  ;;  %v5743_v57 = vpop.f32.mrf.mxu1  ;;  %6640 = vmatmul.mubr.bf16.vlgmr.msra.gmra.mxu1 %v8870_v2 }
 0x312   : > { %5974 = vmatprep.mubr.bf16.mxu0 %v8877_v9  ;;  %v10898_v29 = vadd.f32 %v5743_v57, %v5070_v42  ;;  %6647 = vmatprep.mubr.bf16.mxu1 %v8879_v32 }
 0x313   : > { %v5072_v41 = vpop.f32.mrf.mxu0  ;;  %v5745_v21 = vpop.f32.mrf.mxu1 }
 0x314   : > { %12793 = vst [vmem:[#allocation84_spill] sm:$0xff] %v10898_v29  ;;  %v262_v41 = vld [vmem:[#allocation5 + $0xd0] sm:$0xff]  ;;  %v8895_v29 = vcombine.high %v263_v10, %v267_v34 }
 0x315   : > { %v5073_v39 = vpop.f32.mrf.mxu0  ;;  %v5746_v47 = vpop.f32.mrf.mxu1  ;;  %v266_v21 = vld [vmem:[#allocation5 + $0xf0] sm:$0xff] }
 0x316   : > { %v10900_v51 = vadd.f32 %v5746_v47, %v5073_v39  ;;  %v8884_v39 = vcombine.low %v254_v48, %v258_v3  ;;  %v271_v3 = vld [vmem:[#allocation5 + $0x118] sm:$0xff] }
 0x317   : > { %v5075_v5 = vpop.f32.mrf.mxu0  ;;  %v5748_v2 = vpop.f32.mrf.mxu1 }
 0x318   : > { %12794 = vst [vmem:[#allocation85_spill] sm:$0xff] %v10900_v51  ;;  %v8886_v5 = vcombine.low %v255_v8, %v259_v59  ;;  %v8893_v51 = vcombine.high %v262_v41, %v266_v21  ;;  %v275_v8 = vld [vmem:[#allocation5 + $0x138] sm:$0xff] }
 0x319   : > { %v5078_v9 = vpop.f32.mrf.mxu0  ;;  %5975 = vmatmul.mubr.bf16.gmra.mxu0 %v8876_v27  ;;  %v5751_v42 = vpop.f32.mrf.mxu1  ;;  %6648 = vmatmul.mubr.bf16.gmra.mxu1 %v8878_v0 }
 0x31a   : > { %5982 = vmatprep.mubr.bf16.mxu0 %v8885_v18  ;;  %v10902_v32 = vadd.f32 %v5751_v42, %v5078_v9  ;;  %6655 = vmatprep.mubr.bf16.mxu1 %v8887_v50 }
 0x31b   : > { %v5080_v57 = vpop.f32.mrf.mxu0  ;;  %v5753_v35 = vpop.f32.mrf.mxu1 }
 0x31c   : > { %12795 = vst [vmem:[#allocation86_spill] sm:$0xff] %v10902_v32  ;;  %v270_v57 = vld [vmem:[#allocation5 + $0x110] sm:$0xff]  ;;  %v8903_v32 = vcombine.high %v271_v3, %v275_v8 }
 0x31d   : > { %v5081_v16 = vpop.f32.mrf.mxu0  ;;  %v5754_v47 = vpop.f32.mrf.mxu1  ;;  %v274_v35 = vld [vmem:[#allocation5 + $0x130] sm:$0xff] }
 0x31e   : > { %v10904_v2 = vadd.f32 %v5754_v47, %v5081_v16  ;;  %v8892_v16 = vcombine.low %v262_v41, %v266_v21  ;;  %v279_v21 = vld [vmem:[#allocation5 + $0x158] sm:$0xff] }
 0x31f   : > { %v5083_v27 = vpop.f32.mrf.mxu0  ;;  %v5756_v0 = vpop.f32.mrf.mxu1 }
 0x320   : > { %12796 = vst [vmem:[#allocation87_spill] sm:$0xff] %v10904_v2  ;;  %v8894_v27 = vcombine.low %v263_v10, %v267_v34  ;;  %v8901_v2 = vcombine.high %v270_v57, %v274_v35  ;;  %v283_v10 = vld [vmem:[#allocation5 + $0x178] sm:$0xff] }
 0x321   : > { %v5086_v18 = vpop.f32.mrf.mxu0  ;;  %5983 = vmatmul.mubr.bf16.gmra.mxu0 %v8884_v39  ;;  %v5759_v9 = vpop.f32.mrf.mxu1  ;;  %6656 = vmatmul.mubr.bf16.gmra.mxu1 %v8886_v5 }
 0x322   : > { %5990 = vmatprep.mubr.bf16.mxu0 %v8893_v51  ;;  %v10906_v50 = vadd.f32 %v5759_v9, %v5086_v18  ;;  %6663 = vmatprep.mubr.bf16.mxu1 %v8895_v29 }
 0x323   : > { %v5088_v42 = vpop.f32.mrf.mxu0  ;;  %v5761_v48 = vpop.f32.mrf.mxu1 }
 0x324   : > { %12797 = vst [vmem:[#allocation88_spill] sm:$0xff] %v10906_v50  ;;  %v278_v42 = vld [vmem:[#allocation5 + $0x150] sm:$0xff]  ;;  %v8911_v50 = vcombine.high %v279_v21, %v283_v10 }
 0x325   : > { %v5089_v59 = vpop.f32.mrf.mxu0  ;;  %v5762_v47 = vpop.f32.mrf.mxu1  ;;  %v282_v48 = vld [vmem:[#allocation5 + $0x170] sm:$0xff] }
 0x326   : > { %v10908_v0 = vadd.f32 %v5762_v47, %v5089_v59  ;;  %v8900_v59 = vcombine.low %v270_v57, %v274_v35  ;;  %v287_v35 = vld [vmem:[#allocation5 + $0x198] sm:$0xff] }
 0x327   : > { %v5091_v39 = vpop.f32.mrf.mxu0  ;;  %v5764_v5 = vpop.f32.mrf.mxu1 }
 0x328   : > { %12798 = vst [vmem:[#allocation89_spill] sm:$0xff] %v10908_v0  ;;  %v8902_v39 = vcombine.low %v271_v3, %v275_v8  ;;  %v8909_v0 = vcombine.high %v278_v42, %v282_v48  ;;  %v291_v3 = vld [vmem:[#allocation5 + $0x1b8] sm:$0xff] }
 0x329   : > { %v5094_v51 = vpop.f32.mrf.mxu0  ;;  %5991 = vmatmul.mubr.bf16.gmra.mxu0 %v8892_v16  ;;  %v5767_v18 = vpop.f32.mrf.mxu1  ;;  %6664 = vmatmul.mubr.bf16.gmra.mxu1 %v8894_v27 }
 0x32a   : > { %5998 = vmatprep.mubr.bf16.mxu0 %v8901_v2  ;;  %v10910_v29 = vadd.f32 %v5767_v18, %v5094_v51  ;;  %6671 = vmatprep.mubr.bf16.mxu1 %v8903_v32 }
 0x32b   : > { %v5096_v9 = vpop.f32.mrf.mxu0  ;;  %v5769_v41 = vpop.f32.mrf.mxu1 }
 0x32c   : > { %12799 = vst [vmem:[#allocation90_spill] sm:$0xff] %v10910_v29  ;;  %v286_v9 = vld [vmem:[#allocation5 + $0x190] sm:$0xff]  ;;  %v8919_v29 = vcombine.high %v287_v35, %v291_v3 }
 0x32d   : > { %v5097_v34 = vpop.f32.mrf.mxu0  ;;  %v5770_v47 = vpop.f32.mrf.mxu1  ;;  %v290_v41 = vld [vmem:[#allocation5 + $0x1b0] sm:$0xff] }
 0x32e   : > { %v10912_v5 = vadd.f32 %v5770_v47, %v5097_v34  ;;  %v8908_v34 = vcombine.low %v278_v42, %v282_v48  ;;  %v295_v48 = vld [vmem:[#allocation5 + $0x1d8] sm:$0xff] }
 0x32f   : > { %v5099_v16 = vpop.f32.mrf.mxu0  ;;  %v5772_v27 = vpop.f32.mrf.mxu1 }
 0x330   : > { %12800 = vst [vmem:[#allocation91_spill] sm:$0xff] %v10912_v5  ;;  %v8910_v16 = vcombine.low %v279_v21, %v283_v10  ;;  %v8917_v5 = vcombine.high %v286_v9, %v290_v41  ;;  %v299_v21 = vld [vmem:[#allocation5 + $0x1f8] sm:$0xff] }
 0x331   : > { %v5102_v2 = vpop.f32.mrf.mxu0  ;;  %5999 = vmatmul.mubr.bf16.gmra.mxu0 %v8900_v59  ;;  %v5775_v51 = vpop.f32.mrf.mxu1  ;;  %6672 = vmatmul.mubr.bf16.gmra.mxu1 %v8902_v39 }
 0x332   : > { %6006 = vmatprep.mubr.bf16.mxu0 %v8909_v0  ;;  %v10914_v32 = vadd.f32 %v5775_v51, %v5102_v2  ;;  %6679 = vmatprep.mubr.bf16.mxu1 %v8911_v50 }
 0x333   : > { %v5104_v18 = vpop.f32.mrf.mxu0  ;;  %v5777_v57 = vpop.f32.mrf.mxu1 }
 0x334   : > { %12801 = vst [vmem:[#allocation92_spill] sm:$0xff] %v10914_v32  ;;  %v294_v18 = vld [vmem:[#allocation5 + $0x1d0] sm:$0xff]  ;;  %v8927_v32 = vcombine.high %v295_v48, %v299_v21 }
 0x335   : > { %v5105_v8 = vpop.f32.mrf.mxu0  ;;  %v5778_v47 = vpop.f32.mrf.mxu1  ;;  %v298_v57 = vld [vmem:[#allocation5 + $0x1f0] sm:$0xff] }
 0x336   : > { %v10916_v27 = vadd.f32 %v5778_v47, %v5105_v8  ;;  %v8916_v8 = vcombine.low %v286_v9, %v290_v41  ;;  %v303_v41 = vld [vmem:[#allocation5 + $0x218] sm:$0xff] }
 0x337   : > { %v5107_v59 = vpop.f32.mrf.mxu0  ;;  %v5780_v39 = vpop.f32.mrf.mxu1 }
 0x338   : > { %12802 = vst [vmem:[#allocation93_spill] sm:$0xff] %v10916_v27  ;;  %v8918_v59 = vcombine.low %v287_v35, %v291_v3  ;;  %v8925_v27 = vcombine.high %v294_v18, %v298_v57  ;;  %v307_v35 = vld [vmem:[#allocation5 + $0x238] sm:$0xff] }
 0x339   : > { %v5110_v0 = vpop.f32.mrf.mxu0  ;;  %6007 = vmatmul.mubr.bf16.gmra.mxu0 %v8908_v34  ;;  %v5783_v2 = vpop.f32.mrf.mxu1  ;;  %6680 = vmatmul.mubr.bf16.gmra.mxu1 %v8910_v16 }
 0x33a   : > { %6014 = vmatprep.mubr.bf16.mxu0 %v8917_v5  ;;  %v10918_v50 = vadd.f32 %v5783_v2, %v5110_v0  ;;  %6687 = vmatprep.mubr.bf16.mxu1 %v8919_v29 }
 0x33b   : > { %v5112_v51 = vpop.f32.mrf.mxu0  ;;  %v5785_v42 = vpop.f32.mrf.mxu1 }
 0x33c   : > { %12803 = vst [vmem:[#allocation94_spill] sm:$0xff] %v10918_v50  ;;  %v302_v51 = vld [vmem:[#allocation5 + $0x210] sm:$0xff]  ;;  %v8935_v50 = vcombine.high %v303_v41, %v307_v35 }
 0x33d   : > { %v5113_v10 = vpop.f32.mrf.mxu0  ;;  %v5786_v47 = vpop.f32.mrf.mxu1  ;;  %v306_v42 = vld [vmem:[#allocation5 + $0x230] sm:$0xff] }
 0x33e   : > { %v10920_v39 = vadd.f32 %v5786_v47, %v5113_v10  ;;  %v8924_v10 = vcombine.low %v294_v18, %v298_v57  ;;  %v311_v57 = vld [vmem:[#allocation5 + $0x258] sm:$0xff] }
 0x33f   : > { %v5115_v34 = vpop.f32.mrf.mxu0  ;;  %v5788_v16 = vpop.f32.mrf.mxu1 }
 0x340   : > { %12804 = vst [vmem:[#allocation95_spill] sm:$0xff] %v10920_v39  ;;  %v8926_v34 = vcombine.low %v295_v48, %v299_v21  ;;  %v8933_v39 = vcombine.high %v302_v51, %v306_v42  ;;  %v315_v48 = vld [vmem:[#allocation5 + $0x278] sm:$0xff] }
 0x341   : > { %v5118_v5 = vpop.f32.mrf.mxu0  ;;  %6015 = vmatmul.mubr.bf16.gmra.mxu0 %v8916_v8  ;;  %v5791_v0 = vpop.f32.mrf.mxu1  ;;  %6688 = vmatmul.mubr.bf16.gmra.mxu1 %v8918_v59 }
 0x342   : > { %6022 = vmatprep.mubr.bf16.mxu0 %v8925_v27  ;;  %v10922_v29 = vadd.f32 %v5791_v0, %v5118_v5  ;;  %6695 = vmatprep.mubr.bf16.mxu1 %v8927_v32 }
 0x343   : > { %v5120_v2 = vpop.f32.mrf.mxu0  ;;  %v5793_v9 = vpop.f32.mrf.mxu1 }
 0x344   : > { %12805 = vst [vmem:[#allocation96_spill] sm:$0xff] %v10922_v29  ;;  %v310_v2 = vld [vmem:[#allocation5 + $0x250] sm:$0xff]  ;;  %v8943_v29 = vcombine.high %v311_v57, %v315_v48 }
 0x345   : > { %v5121_v3 = vpop.f32.mrf.mxu0  ;;  %v5794_v47 = vpop.f32.mrf.mxu1  ;;  %v314_v9 = vld [vmem:[#allocation5 + $0x270] sm:$0xff] }
 0x346   : > { %v10924_v16 = vadd.f32 %v5794_v47, %v5121_v3  ;;  %v8932_v3 = vcombine.low %v302_v51, %v306_v42  ;;  %v319_v42 = vld [vmem:[#allocation5 + $0x298] sm:$0xff] }
 0x347   : > { %v5123_v8 = vpop.f32.mrf.mxu0  ;;  %v5796_v59 = vpop.f32.mrf.mxu1 }
 0x348   : > { %12806 = vst [vmem:[#allocation97_spill] sm:$0xff] %v10924_v16  ;;  %v8934_v8 = vcombine.low %v303_v41, %v307_v35  ;;  %v8941_v16 = vcombine.high %v310_v2, %v314_v9  ;;  %v323_v41 = vld [vmem:[#allocation5 + $0x2b8] sm:$0xff] }
 0x349   : > { %v5126_v27 = vpop.f32.mrf.mxu0  ;;  %6023 = vmatmul.mubr.bf16.gmra.mxu0 %v8924_v10  ;;  %v5799_v5 = vpop.f32.mrf.mxu1  ;;  %6696 = vmatmul.mubr.bf16.gmra.mxu1 %v8926_v34 }
 0x34a   : > { %6030 = vmatprep.mubr.bf16.mxu0 %v8933_v39  ;;  %v10926_v32 = vadd.f32 %v5799_v5, %v5126_v27  ;;  %6703 = vmatprep.mubr.bf16.mxu1 %v8935_v50 }
 0x34b   : > { %v5128_v0 = vpop.f32.mrf.mxu0  ;;  %v5801_v18 = vpop.f32.mrf.mxu1 }
 0x34c   : > { %12807 = vst [vmem:[#allocation98_spill] sm:$0xff] %v10926_v32  ;;  %v318_v0 = vld [vmem:[#allocation5 + $0x290] sm:$0xff]  ;;  %v8951_v32 = vcombine.high %v319_v42, %v323_v41 }
 0x34d   : > { %v5129_v21 = vpop.f32.mrf.mxu0  ;;  %v5802_v47 = vpop.f32.mrf.mxu1  ;;  %v322_v18 = vld [vmem:[#allocation5 + $0x2b0] sm:$0xff] }
 0x34e   : > { %v10928_v59 = vadd.f32 %v5802_v47, %v5129_v21  ;;  %v8940_v21 = vcombine.low %v310_v2, %v314_v9  ;;  %v327_v9 = vld [vmem:[#allocation5 + $0x2d8] sm:$0xff] }
 0x34f   : > { %v5131_v10 = vpop.f32.mrf.mxu0  ;;  %v5804_v34 = vpop.f32.mrf.mxu1 }
 0x350   : > { %12808 = vst [vmem:[#allocation99_spill] sm:$0xff] %v10928_v59  ;;  %v8942_v10 = vcombine.low %v311_v57, %v315_v48  ;;  %v8949_v59 = vcombine.high %v318_v0, %v322_v18  ;;  %v331_v57 = vld [vmem:[#allocation5 + $0x2f8] sm:$0xff] }
 0x351   : > { %v5134_v39 = vpop.f32.mrf.mxu0  ;;  %6031 = vmatmul.mubr.bf16.gmra.mxu0 %v8932_v3  ;;  %v5807_v27 = vpop.f32.mrf.mxu1  ;;  %6704 = vmatmul.mubr.bf16.gmra.mxu1 %v8934_v8 }
 0x352   : > { %6038 = vmatprep.mubr.bf16.mxu0 %v8941_v16  ;;  %v10930_v50 = vadd.f32 %v5807_v27, %v5134_v39  ;;  %6711 = vmatprep.mubr.bf16.mxu1 %v8943_v29 }
 0x353   : > { %v5136_v5 = vpop.f32.mrf.mxu0  ;;  %v5809_v51 = vpop.f32.mrf.mxu1 }
 0x354   : > { %12809 = vst [vmem:[#allocation100_spill] sm:$0xff] %v10930_v50  ;;  %v326_v5 = vld [vmem:[#allocation5 + $0x2d0] sm:$0xff]  ;;  %v8959_v50 = vcombine.high %v327_v9, %v331_v57 }
 0x355   : > { %v5137_v35 = vpop.f32.mrf.mxu0  ;;  %v5810_v47 = vpop.f32.mrf.mxu1  ;;  %v330_v51 = vld [vmem:[#allocation5 + $0x2f0] sm:$0xff] }
 0x356   : > { %v10932_v34 = vadd.f32 %v5810_v47, %v5137_v35  ;;  %v8948_v35 = vcombine.low %v318_v0, %v322_v18  ;;  %v335_v18 = vld [vmem:[#allocation5 + $0x318] sm:$0xff] }
 0x357   : > { %v5139_v3 = vpop.f32.mrf.mxu0  ;;  %v5812_v8 = vpop.f32.mrf.mxu1 }
 0x358   : > { %12810 = vst [vmem:[#allocation101_spill] sm:$0xff] %v10932_v34  ;;  %v8950_v3 = vcombine.low %v319_v42, %v323_v41  ;;  %v8957_v34 = vcombine.high %v326_v5, %v330_v51  ;;  %v339_v42 = vld [vmem:[#allocation5 + $0x338] sm:$0xff] }
 0x359   : > { %v5142_v16 = vpop.f32.mrf.mxu0  ;;  %6039 = vmatmul.mubr.bf16.gmra.mxu0 %v8940_v21  ;;  %v5815_v39 = vpop.f32.mrf.mxu1  ;;  %6712 = vmatmul.mubr.bf16.gmra.mxu1 %v8942_v10 }
 0x35a   : > { %6046 = vmatprep.mubr.bf16.mxu0 %v8949_v59  ;;  %v10934_v29 = vadd.f32 %v5815_v39, %v5142_v16  ;;  %6719 = vmatprep.mubr.bf16.mxu1 %v8951_v32 }
 0x35b   : > { %v5144_v27 = vpop.f32.mrf.mxu0  ;;  %v5817_v2 = vpop.f32.mrf.mxu1 }
 0x35c   : > { %12811 = vst [vmem:[#allocation102_spill] sm:$0xff] %v10934_v29  ;;  %v334_v27 = vld [vmem:[#allocation5 + $0x310] sm:$0xff]  ;;  %v8967_v29 = vcombine.high %v335_v18, %v339_v42 }
 0x35d   : > { %v5145_v48 = vpop.f32.mrf.mxu0  ;;  %v5818_v47 = vpop.f32.mrf.mxu1  ;;  %v338_v2 = vld [vmem:[#allocation5 + $0x330] sm:$0xff] }
 0x35e   : > { %v10936_v8 = vadd.f32 %v5818_v47, %v5145_v48  ;;  %v8956_v48 = vcombine.low %v326_v5, %v330_v51  ;;  %v343_v51 = vld [vmem:[#allocation5 + $0x358] sm:$0xff] }
 0x35f   : > { %v5147_v21 = vpop.f32.mrf.mxu0  ;;  %v5820_v10 = vpop.f32.mrf.mxu1 }
 0x360   : > { %12812 = vst [vmem:[#allocation103_spill] sm:$0xff] %v10936_v8  ;;  %v8958_v21 = vcombine.low %v327_v9, %v331_v57  ;;  %v8965_v8 = vcombine.high %v334_v27, %v338_v2  ;;  %v347_v9 = vld [vmem:[#allocation5 + $0x378] sm:$0xff] }
 0x361   : > { %v5150_v59 = vpop.f32.mrf.mxu0  ;;  %6047 = vmatmul.mubr.bf16.gmra.mxu0 %v8948_v35  ;;  %v5823_v16 = vpop.f32.mrf.mxu1  ;;  %6720 = vmatmul.mubr.bf16.gmra.mxu1 %v8950_v3 }
 0x362   : > { %6054 = vmatprep.mubr.bf16.mxu0 %v8957_v34  ;;  %v10938_v32 = vadd.f32 %v5823_v16, %v5150_v59  ;;  %6727 = vmatprep.mubr.bf16.mxu1 %v8959_v50 }
 0x363   : > { %v5152_v39 = vpop.f32.mrf.mxu0  ;;  %v5825_v0 = vpop.f32.mrf.mxu1 }
 0x364   : > { %12813 = vst [vmem:[#allocation104_spill] sm:$0xff] %v10938_v32  ;;  %v342_v39 = vld [vmem:[#allocation5 + $0x350] sm:$0xff]  ;;  %v8975_v32 = vcombine.high %v343_v51, %v347_v9 }
 0x365   : > { %v5153_v41 = vpop.f32.mrf.mxu0  ;;  %v5826_v47 = vpop.f32.mrf.mxu1  ;;  %v346_v0 = vld [vmem:[#allocation5 + $0x370] sm:$0xff] }
 0x366   : > { %v10940_v10 = vadd.f32 %v5826_v47, %v5153_v41  ;;  %v8964_v41 = vcombine.low %v334_v27, %v338_v2  ;;  %v351_v2 = vld [vmem:[#allocation5 + $0x398] sm:$0xff] }
 0x367   : > { %v5155_v35 = vpop.f32.mrf.mxu0  ;;  %v5828_v3 = vpop.f32.mrf.mxu1 }
 0x368   : > { %12814 = vst [vmem:[#allocation105_spill] sm:$0xff] %v10940_v10  ;;  %v8966_v35 = vcombine.low %v335_v18, %v339_v42  ;;  %v8973_v10 = vcombine.high %v342_v39, %v346_v0  ;;  %v355_v18 = vld [vmem:[#allocation5 + $0x3b8] sm:$0xff] }
 0x369   : > { %v5158_v34 = vpop.f32.mrf.mxu0  ;;  %6055 = vmatmul.mubr.bf16.gmra.mxu0 %v8956_v48  ;;  %v5831_v59 = vpop.f32.mrf.mxu1  ;;  %6728 = vmatmul.mubr.bf16.gmra.mxu1 %v8958_v21 }
 0x36a   : > { %6062 = vmatprep.mubr.bf16.mxu0 %v8965_v8  ;;  %v10942_v50 = vadd.f32 %v5831_v59, %v5158_v34  ;;  %6735 = vmatprep.mubr.bf16.mxu1 %v8967_v29 }
 0x36b   : > { %v5160_v16 = vpop.f32.mrf.mxu0  ;;  %v5833_v5 = vpop.f32.mrf.mxu1 }
 0x36c   : > { %12815 = vst [vmem:[#allocation106_spill] sm:$0xff] %v10942_v50  ;;  %v350_v16 = vld [vmem:[#allocation5 + $0x390] sm:$0xff]  ;;  %v8983_v50 = vcombine.high %v351_v2, %v355_v18 }
 0x36d   : > { %v5161_v57 = vpop.f32.mrf.mxu0  ;;  %v5834_v47 = vpop.f32.mrf.mxu1  ;;  %v354_v5 = vld [vmem:[#allocation5 + $0x3b0] sm:$0xff] }
 0x36e   : > { %v10944_v3 = vadd.f32 %v5834_v47, %v5161_v57  ;;  %v8972_v57 = vcombine.low %v342_v39, %v346_v0  ;;  %v359_v0 = vld [vmem:[#allocation5 + $0x3d8] sm:$0xff] }
 0x36f   : > { %v5163_v48 = vpop.f32.mrf.mxu0  ;;  %v5836_v21 = vpop.f32.mrf.mxu1 }
 0x370   : > { %12816 = vst [vmem:[#allocation107_spill] sm:$0xff] %v10944_v3  ;;  %v8974_v48 = vcombine.low %v343_v51, %v347_v9  ;;  %v8981_v3 = vcombine.high %v350_v16, %v354_v5  ;;  %v363_v51 = vld [vmem:[#allocation5 + $0x3f8] sm:$0xff] }
 0x371   : > { %v5166_v8 = vpop.f32.mrf.mxu0  ;;  %6063 = vmatmul.mubr.bf16.gmra.mxu0 %v8964_v41  ;;  %v5839_v34 = vpop.f32.mrf.mxu1  ;;  %6736 = vmatmul.mubr.bf16.gmra.mxu1 %v8966_v35 }
 0x372   : > { %6070 = vmatprep.mubr.bf16.mxu0 %v8973_v10  ;;  %v10946_v29 = vadd.f32 %v5839_v34, %v5166_v8  ;;  %6743 = vmatprep.mubr.bf16.mxu1 %v8975_v32 }
 0x373   : > { %v5168_v59 = vpop.f32.mrf.mxu0  ;;  %v5841_v27 = vpop.f32.mrf.mxu1 }
 0x374   : > { %12817 = vst [vmem:[#allocation108_spill] sm:$0xff] %v10946_v29  ;;  %v358_v59 = vld [vmem:[#allocation5 + $0x3d0] sm:$0xff]  ;;  %v8991_v29 = vcombine.high %v359_v0, %v363_v51 }
 0x375   : > { %v5169_v42 = vpop.f32.mrf.mxu0  ;;  %v5842_v47 = vpop.f32.mrf.mxu1  ;;  %v362_v27 = vld [vmem:[#allocation5 + $0x3f0] sm:$0xff] }
 0x376   : > { %v10948_v21 = vadd.f32 %v5842_v47, %v5169_v42  ;;  %v8980_v42 = vcombine.low %v350_v16, %v354_v5  ;;  %v367_v5 = vld [vmem:[#allocation5 + $0x418] sm:$0xff] }
 0x377   : > { %v5171_v41 = vpop.f32.mrf.mxu0  ;;  %v5844_v35 = vpop.f32.mrf.mxu1 }
 0x378   : > { %12818 = vst [vmem:[#allocation109_spill] sm:$0xff] %v10948_v21  ;;  %v8982_v41 = vcombine.low %v351_v2, %v355_v18  ;;  %v8989_v21 = vcombine.high %v358_v59, %v362_v27  ;;  %v371_v2 = vld [vmem:[#allocation5 + $0x438] sm:$0xff] }
 0x379   : > { %v5174_v10 = vpop.f32.mrf.mxu0  ;;  %6071 = vmatmul.mubr.bf16.gmra.mxu0 %v8972_v57  ;;  %v5847_v8 = vpop.f32.mrf.mxu1  ;;  %6744 = vmatmul.mubr.bf16.gmra.mxu1 %v8974_v48 }
 0x37a   : > { %6078 = vmatprep.mubr.bf16.mxu0 %v8981_v3  ;;  %v10950_v32 = vadd.f32 %v5847_v8, %v5174_v10  ;;  %6751 = vmatprep.mubr.bf16.mxu1 %v8983_v50 }
 0x37b   : > { %v5176_v34 = vpop.f32.mrf.mxu0  ;;  %v5849_v39 = vpop.f32.mrf.mxu1 }
 0x37c   : > { %12819 = vst [vmem:[#allocation110_spill] sm:$0xff] %v10950_v32  ;;  %v366_v34 = vld [vmem:[#allocation5 + $0x410] sm:$0xff]  ;;  %v8999_v32 = vcombine.high %v367_v5, %v371_v2 }
 0x37d   : > { %v5177_v9 = vpop.f32.mrf.mxu0  ;;  %v5850_v47 = vpop.f32.mrf.mxu1  ;;  %v370_v39 = vld [vmem:[#allocation5 + $0x430] sm:$0xff] }
 0x37e   : > { %v10952_v35 = vadd.f32 %v5850_v47, %v5177_v9  ;;  %v8988_v9 = vcombine.low %v358_v59, %v362_v27  ;;  %v375_v27 = vld [vmem:[#allocation5 + $0x458] sm:$0xff] }
 0x37f   : > { %v5179_v57 = vpop.f32.mrf.mxu0  ;;  %v5852_v48 = vpop.f32.mrf.mxu1 }
 0x380   : > { %12820 = vst [vmem:[#allocation111_spill] sm:$0xff] %v10952_v35  ;;  %v8990_v57 = vcombine.low %v359_v0, %v363_v51  ;;  %v8997_v35 = vcombine.high %v366_v34, %v370_v39  ;;  %v379_v0 = vld [vmem:[#allocation5 + $0x478] sm:$0xff] }
 0x381   : > { %v5182_v3 = vpop.f32.mrf.mxu0  ;;  %6079 = vmatmul.mubr.bf16.gmra.mxu0 %v8980_v42  ;;  %v5855_v10 = vpop.f32.mrf.mxu1  ;;  %6752 = vmatmul.mubr.bf16.gmra.mxu1 %v8982_v41 }
 0x382   : > { %6086 = vmatprep.mubr.bf16.mxu0 %v8989_v21  ;;  %v10954_v50 = vadd.f32 %v5855_v10, %v5182_v3  ;;  %6759 = vmatprep.mubr.bf16.mxu1 %v8991_v29 }
 0x383   : > { %v5184_v8 = vpop.f32.mrf.mxu0  ;;  %v5857_v16 = vpop.f32.mrf.mxu1 }
 0x384   : > { %12821 = vst [vmem:[#allocation112_spill] sm:$0xff] %v10954_v50  ;;  %v374_v8 = vld [vmem:[#allocation5 + $0x450] sm:$0xff]  ;;  %v9007_v50 = vcombine.high %v375_v27, %v379_v0 }
 0x385   : > { %v5185_v18 = vpop.f32.mrf.mxu0  ;;  %v5858_v47 = vpop.f32.mrf.mxu1  ;;  %v378_v16 = vld [vmem:[#allocation5 + $0x470] sm:$0xff] }
 0x386   : > { %v10956_v48 = vadd.f32 %v5858_v47, %v5185_v18  ;;  %v8996_v18 = vcombine.low %v366_v34, %v370_v39  ;;  %v383_v39 = vld [vmem:[#allocation5 + $0x498] sm:$0xff] }
 0x387   : > { %v5187_v42 = vpop.f32.mrf.mxu0  ;;  %v5860_v41 = vpop.f32.mrf.mxu1 }
 0x388   : > { %12822 = vst [vmem:[#allocation113_spill] sm:$0xff] %v10956_v48  ;;  %v8998_v42 = vcombine.low %v367_v5, %v371_v2  ;;  %v9005_v48 = vcombine.high %v374_v8, %v378_v16  ;;  %v387_v5 = vld [vmem:[#allocation5 + $0x4b8] sm:$0xff] }
 0x389   : > { %v5190_v21 = vpop.f32.mrf.mxu0  ;;  %6087 = vmatmul.mubr.bf16.gmra.mxu0 %v8988_v9  ;;  %v5863_v3 = vpop.f32.mrf.mxu1  ;;  %6760 = vmatmul.mubr.bf16.gmra.mxu1 %v8990_v57 }
 0x38a   : > { %6094 = vmatprep.mubr.bf16.mxu0 %v8997_v35  ;;  %v10958_v29 = vadd.f32 %v5863_v3, %v5190_v21  ;;  %6767 = vmatprep.mubr.bf16.mxu1 %v8999_v32 }
 0x38b   : > { %v5192_v10 = vpop.f32.mrf.mxu0  ;;  %v5865_v59 = vpop.f32.mrf.mxu1 }
 0x38c   : > { %12823 = vst [vmem:[#allocation114_spill] sm:$0xff] %v10958_v29  ;;  %v382_v10 = vld [vmem:[#allocation5 + $0x490] sm:$0xff]  ;;  %v9015_v29 = vcombine.high %v383_v39, %v387_v5 }
 0x38d   : > { %v5193_v51 = vpop.f32.mrf.mxu0  ;;  %v5866_v47 = vpop.f32.mrf.mxu1  ;;  %v386_v59 = vld [vmem:[#allocation5 + $0x4b0] sm:$0xff] }
 0x38e   : > { %v10960_v41 = vadd.f32 %v5866_v47, %v5193_v51  ;;  %v9004_v51 = vcombine.low %v374_v8, %v378_v16  ;;  %v391_v16 = vld [vmem:[#allocation5 + $0x4d8] sm:$0xff] }
 0x38f   : > { %v5195_v9 = vpop.f32.mrf.mxu0  ;;  %v5868_v57 = vpop.f32.mrf.mxu1 }
 0x390   : > { %12824 = vst [vmem:[#allocation115_spill] sm:$0xff] %v10960_v41  ;;  %v9006_v9 = vcombine.low %v375_v27, %v379_v0  ;;  %v9013_v41 = vcombine.high %v382_v10, %v386_v59  ;;  %v395_v27 = vld [vmem:[#allocation5 + $0x4f8] sm:$0xff] }
 0x391   : > { %v5198_v35 = vpop.f32.mrf.mxu0  ;;  %6095 = vmatmul.mubr.bf16.gmra.mxu0 %v8996_v18  ;;  %v5871_v21 = vpop.f32.mrf.mxu1  ;;  %6768 = vmatmul.mubr.bf16.gmra.mxu1 %v8998_v42 }
 0x392   : > { %6102 = vmatprep.mubr.bf16.mxu0 %v9005_v48  ;;  %v10962_v32 = vadd.f32 %v5871_v21, %v5198_v35  ;;  %6775 = vmatprep.mubr.bf16.mxu1 %v9007_v50 }
 0x393   : > { %v5200_v3 = vpop.f32.mrf.mxu0  ;;  %v5873_v34 = vpop.f32.mrf.mxu1 }
 0x394   : > { %12825 = vst [vmem:[#allocation116_spill] sm:$0xff] %v10962_v32  ;;  %v390_v3 = vld [vmem:[#allocation5 + $0x4d0] sm:$0xff]  ;;  %v9023_v32 = vcombine.high %v391_v16, %v395_v27 }
 0x395   : > { %v5201_v2 = vpop.f32.mrf.mxu0  ;;  %v5874_v47 = vpop.f32.mrf.mxu1  ;;  %v394_v34 = vld [vmem:[#allocation5 + $0x4f0] sm:$0xff] }
 0x396   : > { %v10964_v57 = vadd.f32 %v5874_v47, %v5201_v2  ;;  %v9012_v2 = vcombine.low %v382_v10, %v386_v59  ;;  %v399_v59 = vld [vmem:[#allocation5 + $0x518] sm:$0xff] }
 0x397   : > { %v5203_v18 = vpop.f32.mrf.mxu0  ;;  %v5876_v42 = vpop.f32.mrf.mxu1 }
 0x398   : > { %12826 = vst [vmem:[#allocation117_spill] sm:$0xff] %v10964_v57  ;;  %v9014_v18 = vcombine.low %v383_v39, %v387_v5  ;;  %v9021_v57 = vcombine.high %v390_v3, %v394_v34  ;;  %v403_v39 = vld [vmem:[#allocation5 + $0x538] sm:$0xff] }
 0x399   : > { %v5206_v48 = vpop.f32.mrf.mxu0  ;;  %6103 = vmatmul.mubr.bf16.gmra.mxu0 %v9004_v51  ;;  %v5879_v35 = vpop.f32.mrf.mxu1  ;;  %6776 = vmatmul.mubr.bf16.gmra.mxu1 %v9006_v9 }
 0x39a   : > { %6110 = vmatprep.mubr.bf16.mxu0 %v9013_v41  ;;  %v10966_v50 = vadd.f32 %v5879_v35, %v5206_v48  ;;  %6783 = vmatprep.mubr.bf16.mxu1 %v9015_v29 }
 0x39b   : > { %v5208_v21 = vpop.f32.mrf.mxu0  ;;  %v5881_v8 = vpop.f32.mrf.mxu1 }
 0x39c   : > { %12827 = vst [vmem:[#allocation118_spill] sm:$0xff] %v10966_v50  ;;  %v398_v21 = vld [vmem:[#allocation5 + $0x510] sm:$0xff]  ;;  %v9031_v50 = vcombine.high %v399_v59, %v403_v39 }
 0x39d   : > { %v5209_v0 = vpop.f32.mrf.mxu0  ;;  %v5882_v47 = vpop.f32.mrf.mxu1  ;;  %v402_v8 = vld [vmem:[#allocation5 + $0x530] sm:$0xff] }
 0x39e   : > { %v10968_v42 = vadd.f32 %v5882_v47, %v5209_v0  ;;  %v9020_v0 = vcombine.low %v390_v3, %v394_v34  ;;  %v407_v34 = vld [vmem:[#allocation5 + $0x558] sm:$0xff] }
 0x39f   : > { %v5211_v51 = vpop.f32.mrf.mxu0  ;;  %v5884_v9 = vpop.f32.mrf.mxu1 }
 0x3a0   : > { %12828 = vst [vmem:[#allocation119_spill] sm:$0xff] %v10968_v42  ;;  %v9022_v51 = vcombine.low %v391_v16, %v395_v27  ;;  %v9029_v42 = vcombine.high %v398_v21, %v402_v8  ;;  %v411_v16 = vld [vmem:[#allocation5 + $0x578] sm:$0xff] }
 0x3a1   : > { %v5214_v41 = vpop.f32.mrf.mxu0  ;;  %6111 = vmatmul.mubr.bf16.gmra.mxu0 %v9012_v2  ;;  %v5887_v48 = vpop.f32.mrf.mxu1  ;;  %6784 = vmatmul.mubr.bf16.gmra.mxu1 %v9014_v18 }
 0x3a2   : > { %6118 = vmatprep.mubr.bf16.mxu0 %v9021_v57  ;;  %v10970_v29 = vadd.f32 %v5887_v48, %v5214_v41  ;;  %6791 = vmatprep.mubr.bf16.mxu1 %v9023_v32 }
 0x3a3   : > { %v5216_v35 = vpop.f32.mrf.mxu0  ;;  %v5889_v10 = vpop.f32.mrf.mxu1 }
 0x3a4   : > { %12829 = vst [vmem:[#allocation120_spill] sm:$0xff] %v10970_v29  ;;  %v406_v35 = vld [vmem:[#allocation5 + $0x550] sm:$0xff]  ;;  %v9039_v29 = vcombine.high %v407_v34, %v411_v16 }
 0x3a5   : > { %v5217_v5 = vpop.f32.mrf.mxu0  ;;  %v5890_v47 = vpop.f32.mrf.mxu1  ;;  %v410_v10 = vld [vmem:[#allocation5 + $0x570] sm:$0xff] }
 0x3a6   : > { %v10972_v9 = vadd.f32 %v5890_v47, %v5217_v5  ;;  %v9028_v5 = vcombine.low %v398_v21, %v402_v8  ;;  %v415_v8 = vld [vmem:[#allocation5 + $0x598] sm:$0xff] }
 0x3a7   : > { %v5219_v2 = vpop.f32.mrf.mxu0  ;;  %v5892_v18 = vpop.f32.mrf.mxu1 }
 0x3a8   : > { %12830 = vst [vmem:[#allocation121_spill] sm:$0xff] %v10972_v9  ;;  %v9030_v2 = vcombine.low %v399_v59, %v403_v39  ;;  %v9037_v9 = vcombine.high %v406_v35, %v410_v10  ;;  %v419_v59 = vld [vmem:[#allocation5 + $0x5b8] sm:$0xff] }
 0x3a9   : > { %v5222_v57 = vpop.f32.mrf.mxu0  ;;  %6119 = vmatmul.mubr.bf16.gmra.mxu0 %v9020_v0  ;;  %v5895_v41 = vpop.f32.mrf.mxu1  ;;  %6792 = vmatmul.mubr.bf16.gmra.mxu1 %v9022_v51 }
 0x3aa   : > { %6126 = vmatprep.mubr.bf16.mxu0 %v9029_v42  ;;  %v10974_v32 = vadd.f32 %v5895_v41, %v5222_v57  ;;  %6799 = vmatprep.mubr.bf16.mxu1 %v9031_v50 }
 0x3ab   : > { %v5224_v48 = vpop.f32.mrf.mxu0  ;;  %v5897_v3 = vpop.f32.mrf.mxu1 }
 0x3ac   : > { %12831 = vst [vmem:[#allocation122_spill] sm:$0xff] %v10974_v32  ;;  %v414_v48 = vld [vmem:[#allocation5 + $0x590] sm:$0xff]  ;;  %v9047_v32 = vcombine.high %v415_v8, %v419_v59 }
 0x3ad   : > { %v5225_v27 = vpop.f32.mrf.mxu0  ;;  %v5898_v47 = vpop.f32.mrf.mxu1  ;;  %v418_v3 = vld [vmem:[#allocation5 + $0x5b0] sm:$0xff] }
 0x3ae   : > { %v10976_v18 = vadd.f32 %v5898_v47, %v5225_v27  ;;  %v9036_v27 = vcombine.low %v406_v35, %v410_v10  ;;  %v423_v10 = vld [vmem:[#allocation5 + $0x5d8] sm:$0xff] }
 0x3af   : > { %v5227_v0 = vpop.f32.mrf.mxu0  ;;  %v5900_v51 = vpop.f32.mrf.mxu1 }
 0x3b0   : > { %12832 = vst [vmem:[#allocation123_spill] sm:$0xff] %v10976_v18  ;;  %v9038_v0 = vcombine.low %v407_v34, %v411_v16  ;;  %v9045_v18 = vcombine.high %v414_v48, %v418_v3  ;;  %v427_v34 = vld [vmem:[#allocation5 + $0x5f8] sm:$0xff] }
 0x3b1   : > { %v5230_v42 = vpop.f32.mrf.mxu0  ;;  %6127 = vmatmul.mubr.bf16.gmra.mxu0 %v9028_v5  ;;  %v5903_v57 = vpop.f32.mrf.mxu1  ;;  %6800 = vmatmul.mubr.bf16.gmra.mxu1 %v9030_v2 }
 0x3b2   : > { %6134 = vmatprep.mubr.bf16.mxu0 %v9037_v9  ;;  %v10978_v50 = vadd.f32 %v5903_v57, %v5230_v42  ;;  %6807 = vmatprep.mubr.bf16.mxu1 %v9039_v29 }
 0x3b3   : > { %v5232_v41 = vpop.f32.mrf.mxu0  ;;  %v5905_v21 = vpop.f32.mrf.mxu1 }
 0x3b4   : > { %12833 = vst [vmem:[#allocation124_spill] sm:$0xff] %v10978_v50  ;;  %v422_v41 = vld [vmem:[#allocation5 + $0x5d0] sm:$0xff]  ;;  %v9055_v50 = vcombine.high %v423_v10, %v427_v34 }
 0x3b5   : > { %v5233_v39 = vpop.f32.mrf.mxu0  ;;  %v5906_v47 = vpop.f32.mrf.mxu1  ;;  %v426_v21 = vld [vmem:[#allocation5 + $0x5f0] sm:$0xff] }
 0x3b6   : > { %v10980_v51 = vadd.f32 %v5906_v47, %v5233_v39  ;;  %v9044_v39 = vcombine.low %v414_v48, %v418_v3  ;;  %v431_v3 = vld [vmem:[#allocation5 + $0x618] sm:$0xff] }
 0x3b7   : > { %v5235_v5 = vpop.f32.mrf.mxu0  ;;  %v5908_v2 = vpop.f32.mrf.mxu1 }
 0x3b8   : > { %12834 = vst [vmem:[#allocation125_spill] sm:$0xff] %v10980_v51  ;;  %v9046_v5 = vcombine.low %v415_v8, %v419_v59  ;;  %v9053_v51 = vcombine.high %v422_v41, %v426_v21  ;;  %v435_v8 = vld [vmem:[#allocation5 + $0x638] sm:$0xff] }
 0x3b9   : > { %v5238_v9 = vpop.f32.mrf.mxu0  ;;  %6135 = vmatmul.mubr.bf16.gmra.mxu0 %v9036_v27  ;;  %v5911_v42 = vpop.f32.mrf.mxu1  ;;  %6808 = vmatmul.mubr.bf16.gmra.mxu1 %v9038_v0 }
 0x3ba   : > { %6142 = vmatprep.mubr.bf16.mxu0 %v9045_v18  ;;  %v10982_v29 = vadd.f32 %v5911_v42, %v5238_v9  ;;  %6815 = vmatprep.mubr.bf16.mxu1 %v9047_v32 }
 0x3bb   : > { %v5240_v57 = vpop.f32.mrf.mxu0  ;;  %v5913_v35 = vpop.f32.mrf.mxu1 }
 0x3bc   : > { %12835 = vst [vmem:[#allocation126_spill] sm:$0xff] %v10982_v29  ;;  %v430_v57 = vld [vmem:[#allocation5 + $0x610] sm:$0xff]  ;;  %v9063_v29 = vcombine.high %v431_v3, %v435_v8 }
 0x3bd   : > { %v5241_v16 = vpop.f32.mrf.mxu0  ;;  %v5914_v47 = vpop.f32.mrf.mxu1  ;;  %v434_v35 = vld [vmem:[#allocation5 + $0x630] sm:$0xff] }
 0x3be   : > { %v10984_v2 = vadd.f32 %v5914_v47, %v5241_v16  ;;  %v9052_v16 = vcombine.low %v422_v41, %v426_v21  ;;  %v439_v21 = vld [vmem:[#allocation5 + $0x658] sm:$0xff] }
 0x3bf   : > { %v5243_v27 = vpop.f32.mrf.mxu0  ;;  %v5916_v0 = vpop.f32.mrf.mxu1 }
 0x3c0   : > { %12836 = vst [vmem:[#allocation127_spill] sm:$0xff] %v10984_v2  ;;  %v9054_v27 = vcombine.low %v423_v10, %v427_v34  ;;  %v9061_v2 = vcombine.high %v430_v57, %v434_v35  ;;  %v443_v10 = vld [vmem:[#allocation5 + $0x678] sm:$0xff] }
 0x3c1   : > { %v5246_v18 = vpop.f32.mrf.mxu0  ;;  %6143 = vmatmul.mubr.bf16.gmra.mxu0 %v9044_v39  ;;  %v5919_v9 = vpop.f32.mrf.mxu1  ;;  %6816 = vmatmul.mubr.bf16.gmra.mxu1 %v9046_v5 }
 0x3c2   : > { %6150 = vmatprep.mubr.bf16.mxu0 %v9053_v51  ;;  %v10986_v32 = vadd.f32 %v5919_v9, %v5246_v18  ;;  %6823 = vmatprep.mubr.bf16.mxu1 %v9055_v50 }
 0x3c3   : > { %v5248_v42 = vpop.f32.mrf.mxu0  ;;  %v5921_v48 = vpop.f32.mrf.mxu1 }
 0x3c4   : > { %12837 = vst [vmem:[#allocation128_spill] sm:$0xff] %v10986_v32  ;;  %v438_v42 = vld [vmem:[#allocation5 + $0x650] sm:$0xff]  ;;  %v9071_v32 = vcombine.high %v439_v21, %v443_v10 }
 0x3c5   : > { %v5249_v59 = vpop.f32.mrf.mxu0  ;;  %v5922_v47 = vpop.f32.mrf.mxu1  ;;  %v442_v48 = vld [vmem:[#allocation5 + $0x670] sm:$0xff] }
 0x3c6   : > { %v10988_v0 = vadd.f32 %v5922_v47, %v5249_v59  ;;  %v9060_v59 = vcombine.low %v430_v57, %v434_v35 }
 0x3c7   : > { %v5251_v39 = vpop.f32.mrf.mxu0  ;;  %v5924_v5 = vpop.f32.mrf.mxu1 }
 0x3c8   : > { %12838 = vst [vmem:[#allocation129_spill] sm:$0xff] %v10988_v0  ;;  %v9062_v39 = vcombine.low %v431_v3, %v435_v8  ;;  %v9069_v0 = vcombine.high %v438_v42, %v442_v48  ;;  %v447_v3 = vld [vmem:[#allocation5 + $0x698] sm:$0xff] }
 0x3c9   : > { %v5254_v51 = vpop.f32.mrf.mxu0  ;;  %6151 = vmatmul.mubr.bf16.gmra.mxu0 %v9052_v16  ;;  %v5927_v18 = vpop.f32.mrf.mxu1  ;;  %6824 = vmatmul.mubr.bf16.gmra.mxu1 %v9054_v27  ;;  %v451_v8 = vld [vmem:[#allocation5 + $0x6b8] sm:$0xff] }
 0x3ca   : > { %6158 = vmatprep.mubr.bf16.mxu0 %v9061_v2  ;;  %v10990_v50 = vadd.f32 %v5927_v18, %v5254_v51  ;;  %6831 = vmatprep.mubr.bf16.mxu1 %v9063_v29 }
 0x3cb   : > { %v5256_v9 = vpop.f32.mrf.mxu0  ;;  %v5929_v41 = vpop.f32.mrf.mxu1 }
 0x3cc   : > { %12839 = vst [vmem:[#allocation130_spill] sm:$0xff] %v10990_v50  ;;  %v446_v9 = vld [vmem:[#allocation5 + $0x690] sm:$0xff] }
 0x3cd   : > { %v5257_v34 = vpop.f32.mrf.mxu0  ;;  %v5930_v47 = vpop.f32.mrf.mxu1  ;;  %v450_v41 = vld [vmem:[#allocation5 + $0x6b0] sm:$0xff] }
 0x3ce   : > { %v10992_v5 = vadd.f32 %v5930_v47, %v5257_v34  ;;  %v9068_v47 = vcombine.low %v438_v42, %v442_v48  ;;  %v454_v42 = vld [vmem:[#allocation5 + $0x6d0] sm:$0xff] }
 0x3cf   : > { %v5259_v16 = vpop.f32.mrf.mxu0  ;;  %v5932_v27 = vpop.f32.mrf.mxu1  ;;  %v458_v48 = vld [vmem:[#allocation5 + $0x6f0] sm:$0xff] }
 0x3d0   : > { %12840 = vst [vmem:[#allocation131_spill] sm:$0xff] %v10992_v5  ;;  %v9077_v5 = vcombine.high %v446_v9, %v450_v41 }
 0x3d1   : > { %v5968_v2 = vpop.f32.mrf.mxu0  ;;  %6159 = vmatmul.mubr.bf16.gmra.mxu0 %v9060_v59  ;;  %v6641_v29 = vpop.f32.mrf.mxu1  ;;  %6832 = vmatmul.mubr.bf16.gmra.mxu1 %v9062_v39  ;;  %v9070_v59 = vcombine.low %v439_v21, %v443_v10  ;;  %v455_v10 = vld [vmem:[#allocation5 + $0x6d8] sm:$0xff] }
 0x3d2   : > { %v5969_v51 = vadd.f32 %v5968_v2, %v10612_v52  ;;  %6166 = vmatprep.mubr.bf16.mxu0 %v9069_v0  ;;  %6839 = vmatprep.mubr.bf16.mxu1 %v9071_v32  ;;  %v9079_v2 = vcombine.high %v447_v3, %v451_v8 }
 0x3d3   : > { %v5970_v18 = vpop.f32.mrf.mxu0  ;;  %v6643_v35 = vpop.f32.mrf.mxu1 }
 0x3d4   : > { %v10995_v57 = vadd.f32 %v6641_v29, %v5969_v51  ;;  %v459_v35 = vld [vmem:[#allocation5 + $0x6f8] sm:$0xff] }
 0x3d5   : > { %v5971_v34 = vpop.f32.mrf.mxu0  ;;  %v6644_v27 = vpop.f32.mrf.mxu1 }
 0x3d6   : > { %v5972_v16 = vadd.f32 %v5971_v34, %v10614_v1 }
 0x3d7   : > { %v5973_v52 = vpop.f32.mrf.mxu0  ;;  %v6646_v0 = vpop.f32.mrf.mxu1 }
 0x3d8   : > { %v10998_v39 = vadd.f32 %v6644_v27, %v5972_v16  ;;  %v9076_v16 = vcombine.low %v446_v9, %v450_v41  ;;  %v9085_v0 = vcombine.high %v454_v42, %v458_v48  ;;  %v462_v9 = vld [vmem:[#allocation5 + $0x710] sm:$0xff] }
 0x3d9   : > { %v5976_v32 = vpop.f32.mrf.mxu0  ;;  %6167 = vmatmul.mubr.bf16.gmra.mxu0 %v9068_v47  ;;  %v6649_v29 = vpop.f32.mrf.mxu1  ;;  %6840 = vmatmul.mubr.bf16.gmra.mxu1 %v9070_v59  ;;  %v9078_v47 = vcombine.low %v447_v3, %v451_v8  ;;  %v466_v41 = vld [vmem:[#allocation5 + $0x730] sm:$0xff]  ;;  %v463_v8 = vld [vmem:[#allocation5 + $0x718] sm:$0xff] }
 0x3da   : > { %v5977_v51 = vadd.f32 %v5976_v32, %v10616_v7  ;;  %6174 = vmatprep.mubr.bf16.mxu0 %v9077_v5  ;;  %6847 = vmatprep.mubr.bf16.mxu1 %v9079_v2  ;;  %v9087_v32 = vcombine.high %v455_v10, %v459_v35 }
 0x3db   : > { %v5978_v18 = vpop.f32.mrf.mxu0  ;;  %v6651_v21 = vpop.f32.mrf.mxu1 }
 0x3dc   : > { %v11001_v1 = vadd.f32 %v6649_v29, %v5977_v51  ;;  %v467_v21 = vld [vmem:[#allocation5 + $0x738] sm:$0xff] }
 0x3dd   : > { %v5979_v34 = vpop.f32.mrf.mxu0  ;;  %v6652_v52 = vpop.f32.mrf.mxu1 }
 0x3de   : > { %v5980_v27 = vadd.f32 %v5979_v34, %v10618_v19 }
 0x3df   : > { %v5981_v7 = vpop.f32.mrf.mxu0  ;;  %v6654_v5 = vpop.f32.mrf.mxu1 }
 0x3e0   : > { %v11004_v59 = vadd.f32 %v6652_v52, %v5980_v27  ;;  %v9084_v27 = vcombine.low %v454_v42, %v458_v48  ;;  %v9093_v5 = vcombine.high %v462_v9, %v466_v41  ;;  %v470_v42 = vld [vmem:[#allocation5 + $0x750] sm:$0xff] }
 0x3e1   : > { %v5984_v2 = vpop.f32.mrf.mxu0  ;;  %6175 = vmatmul.mubr.bf16.gmra.mxu0 %v9076_v16  ;;  %v6657_v29 = vpop.f32.mrf.mxu1  ;;  %6848 = vmatmul.mubr.bf16.gmra.mxu1 %v9078_v47  ;;  %v9086_v16 = vcombine.low %v455_v10, %v459_v35  ;;  %v474_v48 = vld [vmem:[#allocation5 + $0x770] sm:$0xff]  ;;  %v471_v35 = vld [vmem:[#allocation5 + $0x758] sm:$0xff] }
 0x3e2   : > { %v5985_v51 = vadd.f32 %v5984_v2, %v10620_v25  ;;  %6182 = vmatprep.mubr.bf16.mxu0 %v9085_v0  ;;  %6855 = vmatprep.mubr.bf16.mxu1 %v9087_v32  ;;  %v9095_v2 = vcombine.high %v463_v8, %v467_v21 }
 0x3e3   : > { %v5986_v18 = vpop.f32.mrf.mxu0  ;;  %v6659_v3 = vpop.f32.mrf.mxu1 }
 0x3e4   : > { %v11007_v19 = vadd.f32 %v6657_v29, %v5985_v51  ;;  %v475_v3 = vld [vmem:[#allocation5 + $0x778] sm:$0xff] }
 0x3e5   : > { %v5987_v34 = vpop.f32.mrf.mxu0  ;;  %v6660_v7 = vpop.f32.mrf.mxu1 }
 0x3e6   : > { %v5988_v52 = vadd.f32 %v5987_v34, %v10622_v37 }
 0x3e7   : > { %v5989_v25 = vpop.f32.mrf.mxu0  ;;  %v6662_v0 = vpop.f32.mrf.mxu1 }
 0x3e8   : > { %v11010_v47 = vadd.f32 %v6660_v7, %v5988_v52  ;;  %v9092_v52 = vcombine.low %v462_v9, %v466_v41  ;;  %v9101_v0 = vcombine.high %v470_v42, %v474_v48  ;;  %v478_v9 = vld [vmem:[#allocation5 + $0x790] sm:$0xff] }
 0x3e9   : > { %v5992_v32 = vpop.f32.mrf.mxu0  ;;  %6183 = vmatmul.mubr.bf16.gmra.mxu0 %v9084_v27  ;;  %v6665_v29 = vpop.f32.mrf.mxu1  ;;  %6856 = vmatmul.mubr.bf16.gmra.mxu1 %v9086_v16  ;;  %v9094_v27 = vcombine.low %v463_v8, %v467_v21  ;;  %v482_v41 = vld [vmem:[#allocation5 + $0x7b0] sm:$0xff]  ;;  %v479_v21 = vld [vmem:[#allocation5 + $0x798] sm:$0xff] }
 0x3ea   : > { %v5993_v51 = vadd.f32 %v5992_v32, %v10624_v43  ;;  %6190 = vmatprep.mubr.bf16.mxu0 %v9093_v5  ;;  %6863 = vmatprep.mubr.bf16.mxu1 %v9095_v2  ;;  %v9103_v32 = vcombine.high %v471_v35, %v475_v3 }
 0x3eb   : > { %v5994_v18 = vpop.f32.mrf.mxu0  ;;  %v6667_v10 = vpop.f32.mrf.mxu1 }
 0x3ec   : > { %v11013_v37 = vadd.f32 %v6665_v29, %v5993_v51  ;;  %v483_v10 = vld [vmem:[#allocation5 + $0x7b8] sm:$0xff] }
 0x3ed   : > { %v5995_v34 = vpop.f32.mrf.mxu0  ;;  %v6668_v25 = vpop.f32.mrf.mxu1 }
 0x3ee   : > { %v5996_v7 = vadd.f32 %v5995_v34, %v10626_v56 }
 0x3ef   : > { %v5997_v43 = vpop.f32.mrf.mxu0  ;;  %v6670_v5 = vpop.f32.mrf.mxu1 }
 0x3f0   : > { %v11016_v16 = vadd.f32 %v6668_v25, %v5996_v7  ;;  %v9100_v7 = vcombine.low %v470_v42, %v474_v48  ;;  %v9109_v5 = vcombine.high %v478_v9, %v482_v41  ;;  %v486_v42 = vld [vmem:[#allocation5 + $0x7d0] sm:$0xff] }
 0x3f1   : > { %v6000_v2 = vpop.f32.mrf.mxu0  ;;  %6191 = vmatmul.mubr.bf16.gmra.mxu0 %v9092_v52  ;;  %v6673_v29 = vpop.f32.mrf.mxu1  ;;  %6864 = vmatmul.mubr.bf16.gmra.mxu1 %v9094_v27  ;;  %v9102_v52 = vcombine.low %v471_v35, %v475_v3  ;;  %v490_v48 = vld [vmem:[#allocation5 + $0x7f0] sm:$0xff]  ;;  %v487_v3 = vld [vmem:[#allocation5 + $0x7d8] sm:$0xff] }
 0x3f2   : > { %v6001_v51 = vadd.f32 %v6000_v2, %v10628_v62  ;;  %6198 = vmatprep.mubr.bf16.mxu0 %v9101_v0  ;;  %6871 = vmatprep.mubr.bf16.mxu1 %v9103_v32  ;;  %v9111_v2 = vcombine.high %v479_v21, %v483_v10 }
 0x3f3   : > { %v6002_v18 = vpop.f32.mrf.mxu0  ;;  %v6675_v8 = vpop.f32.mrf.mxu1 }
 0x3f4   : > { %v11019_v56 = vadd.f32 %v6673_v29, %v6001_v51  ;;  %v491_v8 = vld [vmem:[#allocation5 + $0x7f8] sm:$0xff] }
 0x3f5   : > { %v6003_v34 = vpop.f32.mrf.mxu0  ;;  %v6676_v43 = vpop.f32.mrf.mxu1 }
 0x3f6   : > { %v6004_v25 = vadd.f32 %v6003_v34, %v10630_v13 }
 0x3f7   : > { %v6005_v62 = vpop.f32.mrf.mxu0  ;;  %v6678_v0 = vpop.f32.mrf.mxu1 }
 0x3f8   : > { %v11022_v27 = vadd.f32 %v6676_v43, %v6004_v25  ;;  %v9108_v25 = vcombine.low %v478_v9, %v482_v41  ;;  %v9117_v0 = vcombine.high %v486_v42, %v490_v48  ;;  %v494_v9 = vld [vmem:[#allocation5 + $0x810] sm:$0xff] }
 0x3f9   : > { %v6008_v32 = vpop.f32.mrf.mxu0  ;;  %6199 = vmatmul.mubr.bf16.gmra.mxu0 %v9100_v7  ;;  %v6681_v29 = vpop.f32.mrf.mxu1  ;;  %6872 = vmatmul.mubr.bf16.gmra.mxu1 %v9102_v52  ;;  %v9110_v7 = vcombine.low %v479_v21, %v483_v10  ;;  %v498_v41 = vld [vmem:[#allocation5 + $0x830] sm:$0xff]  ;;  %v495_v10 = vld [vmem:[#allocation5 + $0x818] sm:$0xff] }
 0x3fa   : > { %v6009_v51 = vadd.f32 %v6008_v32, %v10632_v20  ;;  %6206 = vmatprep.mubr.bf16.mxu0 %v9109_v5  ;;  %6879 = vmatprep.mubr.bf16.mxu1 %v9111_v2  ;;  %v9119_v32 = vcombine.high %v487_v3, %v491_v8 }
 0x3fb   : > { %v6010_v18 = vpop.f32.mrf.mxu0  ;;  %v6683_v35 = vpop.f32.mrf.mxu1 }
 0x3fc   : > { %v11025_v13 = vadd.f32 %v6681_v29, %v6009_v51  ;;  %v499_v35 = vld [vmem:[#allocation5 + $0x838] sm:$0xff] }
 0x3fd   : > { %v6011_v34 = vpop.f32.mrf.mxu0  ;;  %v6684_v62 = vpop.f32.mrf.mxu1 }
 0x3fe   : > { %v6012_v43 = vadd.f32 %v6011_v34, %v10634_v33 }
 0x3ff   : > { %v6013_v20 = vpop.f32.mrf.mxu0  ;;  %v6686_v5 = vpop.f32.mrf.mxu1 }
 0x400   : > { %v11028_v52 = vadd.f32 %v6684_v62, %v6012_v43  ;;  %v9116_v43 = vcombine.low %v486_v42, %v490_v48  ;;  %v9125_v5 = vcombine.high %v494_v9, %v498_v41  ;;  %v502_v42 = vld [vmem:[#allocation5 + $0x850] sm:$0xff] }
 0x401   : > { %v6016_v2 = vpop.f32.mrf.mxu0  ;;  %6207 = vmatmul.mubr.bf16.gmra.mxu0 %v9108_v25  ;;  %v6689_v29 = vpop.f32.mrf.mxu1  ;;  %6880 = vmatmul.mubr.bf16.gmra.mxu1 %v9110_v7  ;;  %v9118_v25 = vcombine.low %v487_v3, %v491_v8  ;;  %v506_v48 = vld [vmem:[#allocation5 + $0x870] sm:$0xff]  ;;  %v503_v8 = vld [vmem:[#allocation5 + $0x858] sm:$0xff] }
 0x402   : > { %v6017_v51 = vadd.f32 %v6016_v2, %v10636_v40  ;;  %6214 = vmatprep.mubr.bf16.mxu0 %v9117_v0  ;;  %6887 = vmatprep.mubr.bf16.mxu1 %v9119_v32  ;;  %v9127_v2 = vcombine.high %v495_v10, %v499_v35 }
 0x403   : > { %v6018_v18 = vpop.f32.mrf.mxu0  ;;  %v6691_v21 = vpop.f32.mrf.mxu1 }
 0x404   : > { %v11031_v33 = vadd.f32 %v6689_v29, %v6017_v51  ;;  %v507_v21 = vld [vmem:[#allocation5 + $0x878] sm:$0xff] }
 0x405   : > { %v6019_v34 = vpop.f32.mrf.mxu0  ;;  %v6692_v20 = vpop.f32.mrf.mxu1 }
 0x406   : > { %v6020_v62 = vadd.f32 %v6019_v34, %v10638_v54 }
 0x407   : > { %v6021_v40 = vpop.f32.mrf.mxu0  ;;  %v6694_v0 = vpop.f32.mrf.mxu1 }
 0x408   : > { %v11034_v7 = vadd.f32 %v6692_v20, %v6020_v62  ;;  %v9124_v62 = vcombine.low %v494_v9, %v498_v41  ;;  %v9133_v0 = vcombine.high %v502_v42, %v506_v48  ;;  %v510_v9 = vld [vmem:[#allocation5 + $0x890] sm:$0xff] }
 0x409   : > { %v6024_v32 = vpop.f32.mrf.mxu0  ;;  %6215 = vmatmul.mubr.bf16.gmra.mxu0 %v9116_v43  ;;  %v6697_v29 = vpop.f32.mrf.mxu1  ;;  %6888 = vmatmul.mubr.bf16.gmra.mxu1 %v9118_v25  ;;  %v9126_v43 = vcombine.low %v495_v10, %v499_v35  ;;  %v514_v41 = vld [vmem:[#allocation5 + $0x8b0] sm:$0xff]  ;;  %v511_v35 = vld [vmem:[#allocation5 + $0x898] sm:$0xff] }
 0x40a   : > { %v6025_v51 = vadd.f32 %v6024_v32, %v10640_v61  ;;  %6222 = vmatprep.mubr.bf16.mxu0 %v9125_v5  ;;  %6895 = vmatprep.mubr.bf16.mxu1 %v9127_v2  ;;  %v9135_v32 = vcombine.high %v503_v8, %v507_v21 }
 0x40b   : > { %v6026_v18 = vpop.f32.mrf.mxu0  ;;  %v6699_v3 = vpop.f32.mrf.mxu1 }
 0x40c   : > { %v11037_v54 = vadd.f32 %v6697_v29, %v6025_v51  ;;  %v515_v3 = vld [vmem:[#allocation5 + $0x8b8] sm:$0xff] }
 0x40d   : > { %v6027_v34 = vpop.f32.mrf.mxu0  ;;  %v6700_v40 = vpop.f32.mrf.mxu1 }
 0x40e   : > { %v6028_v20 = vadd.f32 %v6027_v34, %v10642_v14 }
 0x40f   : > { %v6029_v61 = vpop.f32.mrf.mxu0  ;;  %v6702_v5 = vpop.f32.mrf.mxu1 }
 0x410   : > { %v11040_v25 = vadd.f32 %v6700_v40, %v6028_v20  ;;  %v9132_v20 = vcombine.low %v502_v42, %v506_v48  ;;  %v9141_v5 = vcombine.high %v510_v9, %v514_v41  ;;  %v518_v42 = vld [vmem:[#allocation5 + $0x8d0] sm:$0xff] }
 0x411   : > { %v6032_v2 = vpop.f32.mrf.mxu0  ;;  %6223 = vmatmul.mubr.bf16.gmra.mxu0 %v9124_v62  ;;  %v6705_v29 = vpop.f32.mrf.mxu1  ;;  %6896 = vmatmul.mubr.bf16.gmra.mxu1 %v9126_v43  ;;  %v9134_v62 = vcombine.low %v503_v8, %v507_v21  ;;  %v522_v48 = vld [vmem:[#allocation5 + $0x8f0] sm:$0xff]  ;;  %v519_v21 = vld [vmem:[#allocation5 + $0x8d8] sm:$0xff] }
 0x412   : > { %v6033_v51 = vadd.f32 %v6032_v2, %v10644_v22  ;;  %6230 = vmatprep.mubr.bf16.mxu0 %v9133_v0  ;;  %6903 = vmatprep.mubr.bf16.mxu1 %v9135_v32  ;;  %v9143_v2 = vcombine.high %v511_v35, %v515_v3 }
 0x413   : > { %v6034_v18 = vpop.f32.mrf.mxu0  ;;  %v6707_v10 = vpop.f32.mrf.mxu1 }
 0x414   : > { %v11043_v14 = vadd.f32 %v6705_v29, %v6033_v51  ;;  %v523_v10 = vld [vmem:[#allocation5 + $0x8f8] sm:$0xff] }
 0x415   : > { %v6035_v34 = vpop.f32.mrf.mxu0  ;;  %v6708_v61 = vpop.f32.mrf.mxu1 }
 0x416   : > { %v6036_v40 = vadd.f32 %v6035_v34, %v10646_v36 }
 0x417   : > { %v6037_v22 = vpop.f32.mrf.mxu0  ;;  %v6710_v0 = vpop.f32.mrf.mxu1 }
 0x418   : > { %v11046_v43 = vadd.f32 %v6708_v61, %v6036_v40  ;;  %v9140_v40 = vcombine.low %v510_v9, %v514_v41  ;;  %v9149_v0 = vcombine.high %v518_v42, %v522_v48  ;;  %v526_v9 = vld [vmem:[#allocation5 + $0x910] sm:$0xff] }
 0x419   : > { %v6040_v32 = vpop.f32.mrf.mxu0  ;;  %6231 = vmatmul.mubr.bf16.gmra.mxu0 %v9132_v20  ;;  %v6713_v29 = vpop.f32.mrf.mxu1  ;;  %6904 = vmatmul.mubr.bf16.gmra.mxu1 %v9134_v62  ;;  %v9142_v20 = vcombine.low %v511_v35, %v515_v3  ;;  %v530_v41 = vld [vmem:[#allocation5 + $0x930] sm:$0xff]  ;;  %v527_v3 = vld [vmem:[#allocation5 + $0x918] sm:$0xff] }
 0x41a   : > { %v6041_v51 = vadd.f32 %v6040_v32, %v10648_v45  ;;  %6238 = vmatprep.mubr.bf16.mxu0 %v9141_v5  ;;  %6911 = vmatprep.mubr.bf16.mxu1 %v9143_v2  ;;  %v9151_v32 = vcombine.high %v519_v21, %v523_v10 }
 0x41b   : > { %v6042_v18 = vpop.f32.mrf.mxu0  ;;  %v6715_v8 = vpop.f32.mrf.mxu1 }
 0x41c   : > { %v11049_v36 = vadd.f32 %v6713_v29, %v6041_v51  ;;  %v531_v8 = vld [vmem:[#allocation5 + $0x938] sm:$0xff] }
 0x41d   : > { %v6043_v34 = vpop.f32.mrf.mxu0  ;;  %v6716_v22 = vpop.f32.mrf.mxu1 }
 0x41e   : > { %v6044_v61 = vadd.f32 %v6043_v34, %v10650_v60 }
 0x41f   : > { %v6045_v45 = vpop.f32.mrf.mxu0  ;;  %v6718_v5 = vpop.f32.mrf.mxu1 }
 0x420   : > { %v11052_v62 = vadd.f32 %v6716_v22, %v6044_v61  ;;  %v9148_v61 = vcombine.low %v518_v42, %v522_v48  ;;  %v9157_v5 = vcombine.high %v526_v9, %v530_v41  ;;  %v534_v42 = vld [vmem:[#allocation5 + $0x950] sm:$0xff] }
 0x421   : > { %v6048_v2 = vpop.f32.mrf.mxu0  ;;  %6239 = vmatmul.mubr.bf16.gmra.mxu0 %v9140_v40  ;;  %v6721_v29 = vpop.f32.mrf.mxu1  ;;  %6912 = vmatmul.mubr.bf16.gmra.mxu1 %v9142_v20  ;;  %v9150_v40 = vcombine.low %v519_v21, %v523_v10  ;;  %v538_v48 = vld [vmem:[#allocation5 + $0x970] sm:$0xff]  ;;  %v535_v10 = vld [vmem:[#allocation5 + $0x958] sm:$0xff] }
 0x422   : > { %v6049_v51 = vadd.f32 %v6048_v2, %v10652_v6  ;;  %6246 = vmatprep.mubr.bf16.mxu0 %v9149_v0  ;;  %6919 = vmatprep.mubr.bf16.mxu1 %v9151_v32  ;;  %v9159_v2 = vcombine.high %v527_v3, %v531_v8 }
 0x423   : > { %v6050_v18 = vpop.f32.mrf.mxu0  ;;  %v6723_v35 = vpop.f32.mrf.mxu1 }
 0x424   : > { %v11055_v60 = vadd.f32 %v6721_v29, %v6049_v51  ;;  %v539_v35 = vld [vmem:[#allocation5 + $0x978] sm:$0xff] }
 0x425   : > { %v6051_v34 = vpop.f32.mrf.mxu0  ;;  %v6724_v45 = vpop.f32.mrf.mxu1 }
 0x426   : > { %v6052_v22 = vadd.f32 %v6051_v34, %v10654_v24 }
 0x427   : > { %v6053_v6 = vpop.f32.mrf.mxu0  ;;  %v6726_v0 = vpop.f32.mrf.mxu1 }
 0x428   : > { %v11058_v20 = vadd.f32 %v6724_v45, %v6052_v22  ;;  %v9156_v22 = vcombine.low %v526_v9, %v530_v41  ;;  %v9165_v0 = vcombine.high %v534_v42, %v538_v48  ;;  %v542_v9 = vld [vmem:[#allocation5 + $0x990] sm:$0xff] }
 0x429   : > { %v6056_v32 = vpop.f32.mrf.mxu0  ;;  %6247 = vmatmul.mubr.bf16.gmra.mxu0 %v9148_v61  ;;  %v6729_v29 = vpop.f32.mrf.mxu1  ;;  %6920 = vmatmul.mubr.bf16.gmra.mxu1 %v9150_v40  ;;  %v9158_v61 = vcombine.low %v527_v3, %v531_v8  ;;  %v546_v41 = vld [vmem:[#allocation5 + $0x9b0] sm:$0xff]  ;;  %v543_v8 = vld [vmem:[#allocation5 + $0x998] sm:$0xff] }
 0x42a   : > { %v6057_v51 = vadd.f32 %v6056_v32, %v10656_v31  ;;  %6254 = vmatprep.mubr.bf16.mxu0 %v9157_v5  ;;  %6927 = vmatprep.mubr.bf16.mxu1 %v9159_v2  ;;  %v9167_v32 = vcombine.high %v535_v10, %v539_v35 }
 0x42b   : > { %v6058_v18 = vpop.f32.mrf.mxu0  ;;  %v6731_v21 = vpop.f32.mrf.mxu1 }
 0x42c   : > { %v11061_v24 = vadd.f32 %v6729_v29, %v6057_v51  ;;  %v547_v21 = vld [vmem:[#allocation5 + $0x9b8] sm:$0xff] }
 0x42d   : > { %v6059_v34 = vpop.f32.mrf.mxu0  ;;  %v6732_v6 = vpop.f32.mrf.mxu1 }
 0x42e   : > { %v6060_v45 = vadd.f32 %v6059_v34, %v10658_v49 }
 0x42f   : > { %v6061_v31 = vpop.f32.mrf.mxu0  ;;  %v6734_v5 = vpop.f32.mrf.mxu1 }
 0x430   : > { %v11064_v40 = vadd.f32 %v6732_v6, %v6060_v45  ;;  %v9164_v45 = vcombine.low %v534_v42, %v538_v48  ;;  %v9173_v5 = vcombine.high %v542_v9, %v546_v41  ;;  %v550_v42 = vld [vmem:[#allocation5 + $0x9d0] sm:$0xff] }
 0x431   : > { %v6064_v2 = vpop.f32.mrf.mxu0  ;;  %6255 = vmatmul.mubr.bf16.gmra.mxu0 %v9156_v22  ;;  %v6737_v29 = vpop.f32.mrf.mxu1  ;;  %6928 = vmatmul.mubr.bf16.gmra.mxu1 %v9158_v61  ;;  %v9166_v22 = vcombine.low %v535_v10, %v539_v35  ;;  %v554_v48 = vld [vmem:[#allocation5 + $0x9f0] sm:$0xff]  ;;  %v551_v35 = vld [vmem:[#allocation5 + $0x9d8] sm:$0xff] }
 0x432   : > { %v6065_v51 = vadd.f32 %v6064_v2, %v10660_v58  ;;  %6262 = vmatprep.mubr.bf16.mxu0 %v9165_v0  ;;  %6935 = vmatprep.mubr.bf16.mxu1 %v9167_v32  ;;  %v9175_v2 = vcombine.high %v543_v8, %v547_v21 }
 0x433   : > { %v6066_v18 = vpop.f32.mrf.mxu0  ;;  %v6739_v3 = vpop.f32.mrf.mxu1 }
 0x434   : > { %v11067_v49 = vadd.f32 %v6737_v29, %v6065_v51  ;;  %v555_v3 = vld [vmem:[#allocation5 + $0x9f8] sm:$0xff] }
 0x435   : > { %v6067_v34 = vpop.f32.mrf.mxu0  ;;  %v6740_v31 = vpop.f32.mrf.mxu1 }
 0x436   : > { %v6068_v6 = vadd.f32 %v6067_v34, %v10662_v15 }
 0x437   : > { %v6069_v58 = vpop.f32.mrf.mxu0  ;;  %v6742_v0 = vpop.f32.mrf.mxu1 }
 0x438   : > { %v11070_v61 = vadd.f32 %v6740_v31, %v6068_v6  ;;  %v9172_v6 = vcombine.low %v542_v9, %v546_v41  ;;  %v9181_v0 = vcombine.high %v550_v42, %v554_v48  ;;  %v558_v9 = vld [vmem:[#allocation5 + $0xa10] sm:$0xff] }
 0x439   : > { %v6072_v32 = vpop.f32.mrf.mxu0  ;;  %6263 = vmatmul.mubr.bf16.gmra.mxu0 %v9164_v45  ;;  %v6745_v29 = vpop.f32.mrf.mxu1  ;;  %6936 = vmatmul.mubr.bf16.gmra.mxu1 %v9166_v22  ;;  %v9174_v45 = vcombine.low %v543_v8, %v547_v21  ;;  %v562_v41 = vld [vmem:[#allocation5 + $0xa30] sm:$0xff]  ;;  %v559_v21 = vld [vmem:[#allocation5 + $0xa18] sm:$0xff] }
 0x43a   : > { %v6073_v51 = vadd.f32 %v6072_v32, %v10664_v26  ;;  %6270 = vmatprep.mubr.bf16.mxu0 %v9173_v5  ;;  %6943 = vmatprep.mubr.bf16.mxu1 %v9175_v2  ;;  %v9183_v32 = vcombine.high %v551_v35, %v555_v3 }
 0x43b   : > { %v6074_v18 = vpop.f32.mrf.mxu0  ;;  %v6747_v10 = vpop.f32.mrf.mxu1 }
 0x43c   : > { %v11073_v15 = vadd.f32 %v6745_v29, %v6073_v51  ;;  %v563_v10 = vld [vmem:[#allocation5 + $0xa38] sm:$0xff] }
 0x43d   : > { %v6075_v34 = vpop.f32.mrf.mxu0  ;;  %v6748_v58 = vpop.f32.mrf.mxu1 }
 0x43e   : > { %v6076_v31 = vadd.f32 %v6075_v34, %v10666_v44 }
 0x43f   : > { %v6077_v26 = vpop.f32.mrf.mxu0  ;;  %v6750_v5 = vpop.f32.mrf.mxu1 }
 0x440   : > { %v11076_v22 = vadd.f32 %v6748_v58, %v6076_v31  ;;  %v9180_v31 = vcombine.low %v550_v42, %v554_v48  ;;  %v9189_v5 = vcombine.high %v558_v9, %v562_v41  ;;  %v566_v42 = vld [vmem:[#allocation5 + $0xa50] sm:$0xff] }
 0x441   : > { %v6080_v2 = vpop.f32.mrf.mxu0  ;;  %6271 = vmatmul.mubr.bf16.gmra.mxu0 %v9172_v6  ;;  %v6753_v29 = vpop.f32.mrf.mxu1  ;;  %6944 = vmatmul.mubr.bf16.gmra.mxu1 %v9174_v45  ;;  %v9182_v6 = vcombine.low %v551_v35, %v555_v3  ;;  %v570_v48 = vld [vmem:[#allocation5 + $0xa70] sm:$0xff]  ;;  %v567_v3 = vld [vmem:[#allocation5 + $0xa58] sm:$0xff] }
 0x442   : > { %v6081_v51 = vadd.f32 %v6080_v2, %v10668_v53  ;;  %6278 = vmatprep.mubr.bf16.mxu0 %v9181_v0  ;;  %6951 = vmatprep.mubr.bf16.mxu1 %v9183_v32  ;;  %v9191_v2 = vcombine.high %v559_v21, %v563_v10 }
 0x443   : > { %v6082_v18 = vpop.f32.mrf.mxu0  ;;  %v6755_v8 = vpop.f32.mrf.mxu1 }
 0x444   : > { %v11079_v44 = vadd.f32 %v6753_v29, %v6081_v51  ;;  %v571_v8 = vld [vmem:[#allocation5 + $0xa78] sm:$0xff] }
 0x445   : > { %v6083_v34 = vpop.f32.mrf.mxu0  ;;  %v6756_v26 = vpop.f32.mrf.mxu1 }
 0x446   : > { %v6084_v58 = vadd.f32 %v6083_v34, %v10670_v11 }
 0x447   : > { %v6085_v53 = vpop.f32.mrf.mxu0  ;;  %v6758_v0 = vpop.f32.mrf.mxu1 }
 0x448   : > { %v11082_v45 = vadd.f32 %v6756_v26, %v6084_v58  ;;  %v9188_v58 = vcombine.low %v558_v9, %v562_v41  ;;  %v9197_v0 = vcombine.high %v566_v42, %v570_v48  ;;  %v574_v9 = vld [vmem:[#allocation5 + $0xa90] sm:$0xff] }
 0x449   : > { %v6088_v32 = vpop.f32.mrf.mxu0  ;;  %6279 = vmatmul.mubr.bf16.gmra.mxu0 %v9180_v31  ;;  %v6761_v29 = vpop.f32.mrf.mxu1  ;;  %6952 = vmatmul.mubr.bf16.gmra.mxu1 %v9182_v6  ;;  %v9190_v31 = vcombine.low %v559_v21, %v563_v10  ;;  %v578_v41 = vld [vmem:[#allocation5 + $0xab0] sm:$0xff]  ;;  %v575_v10 = vld [vmem:[#allocation5 + $0xa98] sm:$0xff] }
 0x44a   : > { %v6089_v51 = vadd.f32 %v6088_v32, %v10672_v23  ;;  %6286 = vmatprep.mubr.bf16.mxu0 %v9189_v5  ;;  %6959 = vmatprep.mubr.bf16.mxu1 %v9191_v2  ;;  %v9199_v32 = vcombine.high %v567_v3, %v571_v8 }
 0x44b   : > { %v6090_v18 = vpop.f32.mrf.mxu0  ;;  %v6763_v35 = vpop.f32.mrf.mxu1 }
 0x44c   : > { %v11085_v11 = vadd.f32 %v6761_v29, %v6089_v51  ;;  %v579_v35 = vld [vmem:[#allocation5 + $0xab8] sm:$0xff] }
 0x44d   : > { %v6091_v34 = vpop.f32.mrf.mxu0  ;;  %v6764_v53 = vpop.f32.mrf.mxu1 }
 0x44e   : > { %v6092_v26 = vadd.f32 %v6091_v34, %v10674_v46 }
 0x44f   : > { %v6093_v23 = vpop.f32.mrf.mxu0  ;;  %v6766_v5 = vpop.f32.mrf.mxu1 }
 0x450   : > { %v11088_v6 = vadd.f32 %v6764_v53, %v6092_v26  ;;  %v9196_v26 = vcombine.low %v566_v42, %v570_v48  ;;  %v9205_v5 = vcombine.high %v574_v9, %v578_v41  ;;  %v582_v42 = vld [vmem:[#allocation5 + $0xad0] sm:$0xff] }
 0x451   : > { %v6096_v2 = vpop.f32.mrf.mxu0  ;;  %6287 = vmatmul.mubr.bf16.gmra.mxu0 %v9188_v58  ;;  %v6769_v29 = vpop.f32.mrf.mxu1  ;;  %6960 = vmatmul.mubr.bf16.gmra.mxu1 %v9190_v31  ;;  %v9198_v58 = vcombine.low %v567_v3, %v571_v8  ;;  %v586_v48 = vld [vmem:[#allocation5 + $0xaf0] sm:$0xff]  ;;  %v583_v8 = vld [vmem:[#allocation5 + $0xad8] sm:$0xff] }
 0x452   : > { %v6097_v51 = vadd.f32 %v6096_v2, %v10676_v63  ;;  %6294 = vmatprep.mubr.bf16.mxu0 %v9197_v0  ;;  %6967 = vmatprep.mubr.bf16.mxu1 %v9199_v32  ;;  %v9207_v2 = vcombine.high %v575_v10, %v579_v35 }
 0x453   : > { %v6098_v18 = vpop.f32.mrf.mxu0  ;;  %v6771_v21 = vpop.f32.mrf.mxu1 }
 0x454   : > { %v11091_v46 = vadd.f32 %v6769_v29, %v6097_v51  ;;  %v587_v21 = vld [vmem:[#allocation5 + $0xaf8] sm:$0xff] }
 0x455   : > { %v6099_v34 = vpop.f32.mrf.mxu0  ;;  %v6772_v23 = vpop.f32.mrf.mxu1 }
 0x456   : > { %v6100_v53 = vadd.f32 %v6099_v34, %v10678_v17 }
 0x457   : > { %v6101_v63 = vpop.f32.mrf.mxu0  ;;  %v6774_v0 = vpop.f32.mrf.mxu1 }
 0x458   : > { %v11094_v31 = vadd.f32 %v6772_v23, %v6100_v53  ;;  %v9204_v53 = vcombine.low %v574_v9, %v578_v41  ;;  %v9213_v0 = vcombine.high %v582_v42, %v586_v48  ;;  %v590_v9 = vld [vmem:[#allocation5 + $0xb10] sm:$0xff] }
 0x459   : > { %v6104_v32 = vpop.f32.mrf.mxu0  ;;  %6295 = vmatmul.mubr.bf16.gmra.mxu0 %v9196_v26  ;;  %v6777_v29 = vpop.f32.mrf.mxu1  ;;  %6968 = vmatmul.mubr.bf16.gmra.mxu1 %v9198_v58  ;;  %v9206_v26 = vcombine.low %v575_v10, %v579_v35  ;;  %v594_v41 = vld [vmem:[#allocation5 + $0xb30] sm:$0xff]  ;;  %v591_v35 = vld [vmem:[#allocation5 + $0xb18] sm:$0xff] }
 0x45a   : > { %v6105_v51 = vadd.f32 %v6104_v32, %v10680_v38  ;;  %6302 = vmatprep.mubr.bf16.mxu0 %v9205_v5  ;;  %6975 = vmatprep.mubr.bf16.mxu1 %v9207_v2  ;;  %v9215_v32 = vcombine.high %v583_v8, %v587_v21 }
 0x45b   : > { %v6106_v18 = vpop.f32.mrf.mxu0  ;;  %v6779_v3 = vpop.f32.mrf.mxu1 }
 0x45c   : > { %v11097_v17 = vadd.f32 %v6777_v29, %v6105_v51  ;;  %v595_v3 = vld [vmem:[#allocation5 + $0xb38] sm:$0xff] }
 0x45d   : > { %v6107_v34 = vpop.f32.mrf.mxu0  ;;  %v6780_v63 = vpop.f32.mrf.mxu1 }
 0x45e   : > { %v6108_v23 = vadd.f32 %v6107_v34, %v10682_v55 }
 0x45f   : > { %v6109_v38 = vpop.f32.mrf.mxu0  ;;  %v6782_v5 = vpop.f32.mrf.mxu1 }
 0x460   : > { %v11100_v58 = vadd.f32 %v6780_v63, %v6108_v23  ;;  %v9212_v23 = vcombine.low %v582_v42, %v586_v48  ;;  %v9221_v5 = vcombine.high %v590_v9, %v594_v41  ;;  %v598_v42 = vld [vmem:[#allocation5 + $0xb50] sm:$0xff] }
 0x461   : > { %v6112_v2 = vpop.f32.mrf.mxu0  ;;  %6303 = vmatmul.mubr.bf16.gmra.mxu0 %v9204_v53  ;;  %v6785_v29 = vpop.f32.mrf.mxu1  ;;  %6976 = vmatmul.mubr.bf16.gmra.mxu1 %v9206_v26  ;;  %v9214_v53 = vcombine.low %v583_v8, %v587_v21  ;;  %v602_v48 = vld [vmem:[#allocation5 + $0xb70] sm:$0xff]  ;;  %v599_v21 = vld [vmem:[#allocation5 + $0xb58] sm:$0xff] }
 0x462   : > { %v6113_v51 = vadd.f32 %v6112_v2, %v10684_v12  ;;  %6310 = vmatprep.mubr.bf16.mxu0 %v9213_v0  ;;  %6983 = vmatprep.mubr.bf16.mxu1 %v9215_v32  ;;  %v9223_v2 = vcombine.high %v591_v35, %v595_v3 }
 0x463   : > { %v6114_v18 = vpop.f32.mrf.mxu0  ;;  %v6787_v10 = vpop.f32.mrf.mxu1 }
 0x464   : > { %v11103_v55 = vadd.f32 %v6785_v29, %v6113_v51  ;;  %v603_v10 = vld [vmem:[#allocation5 + $0xb78] sm:$0xff] }
 0x465   : > { %v6115_v34 = vpop.f32.mrf.mxu0  ;;  %v6788_v38 = vpop.f32.mrf.mxu1 }
 0x466   : > { %v6116_v63 = vadd.f32 %v6115_v34, %v10686_v30 }
 0x467   : > { %v6117_v12 = vpop.f32.mrf.mxu0  ;;  %v6790_v0 = vpop.f32.mrf.mxu1 }
 0x468   : > { %v11106_v26 = vadd.f32 %v6788_v38, %v6116_v63  ;;  %v9220_v63 = vcombine.low %v590_v9, %v594_v41  ;;  %v9229_v0 = vcombine.high %v598_v42, %v602_v48  ;;  %v606_v9 = vld [vmem:[#allocation5 + $0xb90] sm:$0xff] }
 0x469   : > { %v6120_v32 = vpop.f32.mrf.mxu0  ;;  %6311 = vmatmul.mubr.bf16.gmra.mxu0 %v9212_v23  ;;  %v6793_v29 = vpop.f32.mrf.mxu1  ;;  %6984 = vmatmul.mubr.bf16.gmra.mxu1 %v9214_v53  ;;  %v9222_v23 = vcombine.low %v591_v35, %v595_v3  ;;  %v610_v41 = vld [vmem:[#allocation5 + $0xbb0] sm:$0xff]  ;;  %v607_v3 = vld [vmem:[#allocation5 + $0xb98] sm:$0xff] }
 0x46a   : > { %v6121_v51 = vadd.f32 %v6120_v32, %v10688_v4  ;;  %6318 = vmatprep.mubr.bf16.mxu0 %v9221_v5  ;;  %6991 = vmatprep.mubr.bf16.mxu1 %v9223_v2  ;;  %v9231_v32 = vcombine.high %v599_v21, %v603_v10 }
 0x46b   : > { %v6122_v18 = vpop.f32.mrf.mxu0  ;;  %v6795_v8 = vpop.f32.mrf.mxu1 }
 0x46c   : > { %v11109_v30 = vadd.f32 %v6793_v29, %v6121_v51  ;;  %v12842_v18 = vld [vmem:[#allocation12_spill] sm:$0xff] }
 0x46d   : > { %v6123_v34 = vpop.f32.mrf.mxu0  ;;  %v6796_v12 = vpop.f32.mrf.mxu1 }
 0x46e   : > { %v6124_v38 = vadd.f32 %v6123_v34, %v10690_v28  ;;  %v611_v34 = vld [vmem:[#allocation5 + $0xbb8] sm:$0xff] }
 0x46f   : > { %v6125_v4 = vpop.f32.mrf.mxu0  ;;  %v6798_v5 = vpop.f32.mrf.mxu1 }
 0x470   : > { %v11112_v53 = vadd.f32 %v6796_v12, %v6124_v38  ;;  %v9228_v38 = vcombine.low %v598_v42, %v602_v48  ;;  %v12844_v12 = vld [vmem:[#allocation13_spill] sm:$0xff]  ;;  %v614_v42 = vld [vmem:[#allocation5 + $0xbd0] sm:$0xff] }
 0x471   : > { %v6128_v2 = vpop.f32.mrf.mxu0  ;;  %6319 = vmatmul.mubr.bf16.gmra.mxu0 %v9220_v63  ;;  %v6801_v29 = vpop.f32.mrf.mxu1  ;;  %6992 = vmatmul.mubr.bf16.gmra.mxu1 %v9222_v23  ;;  %v9230_v63 = vcombine.low %v599_v21, %v603_v10  ;;  %v618_v48 = vld [vmem:[#allocation5 + $0xbf0] sm:$0xff]  ;;  %v615_v10 = vld [vmem:[#allocation5 + $0xbd8] sm:$0xff] }
 0x472   : > { %12841 = vst [vmem:[#allocation132_spill] sm:$0xff] %v11112_v53  ;;  %v6129_v51 = vadd.f32 %v6128_v2, %v12842_v18  ;;  %6326 = vmatprep.mubr.bf16.mxu0 %v9229_v0  ;;  %6999 = vmatprep.mubr.bf16.mxu1 %v9231_v32  ;;  %v9237_v53 = vcombine.high %v606_v9, %v610_v41 }
 0x473   : > { %v6130_v8 = vpop.f32.mrf.mxu0  ;;  %v6803_v35 = vpop.f32.mrf.mxu1  ;;  %v9239_v18 = vcombine.high %v607_v3, %v611_v34 }
 0x474   : > { %v11115_v28 = vadd.f32 %v6801_v29, %v6129_v51  ;;  %v12846_v8 = vld [vmem:[#allocation14_spill] sm:$0xff] }
 0x475   : > { %v6131_v4 = vpop.f32.mrf.mxu0  ;;  %v6804_v50 = vpop.f32.mrf.mxu1 }
 0x476   : > { %12843 = vst [vmem:[#allocation12_spill] sm:$0xff] %v11115_v28  ;;  %v6132_v5 = vadd.f32 %v6131_v4, %v12844_v12  ;;  %v619_v12 = vld [vmem:[#allocation5 + $0xbf8] sm:$0xff]  ;;  %v9245_v28 = vcombine.high %v614_v42, %v618_v48 }
 0x477   : > { %v6133_v2 = vpop.f32.mrf.mxu0  ;;  %v6806_v0 = vpop.f32.mrf.mxu1 }
 0x478   : > { %v11118_v23 = vadd.f32 %v6804_v50, %v6132_v5  ;;  %v9236_v50 = vcombine.low %v606_v9, %v610_v41  ;;  %v12848_v5 = vld [vmem:[#allocation15_spill] sm:$0xff]  ;;  %v622_v9 = vld [vmem:[#allocation5 + $0xc10] sm:$0xff] }
 0x479   : > { %v6136_v32 = vpop.f32.mrf.mxu0  ;;  %6327 = vmatmul.mubr.bf16.gmra.mxu0 %v9228_v38  ;;  %v6809_v29 = vpop.f32.mrf.mxu1  ;;  %7000 = vmatmul.mubr.bf16.gmra.mxu1 %v9230_v63  ;;  %v9238_v38 = vcombine.low %v607_v3, %v611_v34  ;;  %v626_v41 = vld [vmem:[#allocation5 + $0xc30] sm:$0xff]  ;;  %v623_v34 = vld [vmem:[#allocation5 + $0xc18] sm:$0xff] }
 0x47a   : > { %12845 = vst [vmem:[#allocation13_spill] sm:$0xff] %v11118_v23  ;;  %v6137_v51 = vadd.f32 %v6136_v32, %v12846_v8  ;;  %6334 = vmatprep.mubr.bf16.mxu0 %v9237_v53  ;;  %7007 = vmatprep.mubr.bf16.mxu1 %v9239_v18  ;;  %v9247_v8 = vcombine.high %v615_v10, %v619_v12 }
 0x47b   : > { %v6138_v35 = vpop.f32.mrf.mxu0  ;;  %v6811_v21 = vpop.f32.mrf.mxu1 }
 0x47c   : > { %v11121_v4 = vadd.f32 %v6809_v29, %v6137_v51  ;;  %v12850_v35 = vld [vmem:[#allocation16_spill] sm:$0xff] }
 0x47d   : > { %v6139_v2 = vpop.f32.mrf.mxu0  ;;  %v6812_v23 = vpop.f32.mrf.mxu1 }
 0x47e   : > { %12847 = vst [vmem:[#allocation14_spill] sm:$0xff] %v11121_v4  ;;  %v6140_v0 = vadd.f32 %v6139_v2, %v12848_v5  ;;  %v627_v5 = vld [vmem:[#allocation5 + $0xc38] sm:$0xff]  ;;  %v9253_v4 = vcombine.high %v622_v9, %v626_v41 }
 0x47f   : > { %v6141_v32 = vpop.f32.mrf.mxu0  ;;  %v6814_v53 = vpop.f32.mrf.mxu1 }
 0x480   : > { %v11124_v63 = vadd.f32 %v6812_v23, %v6140_v0  ;;  %v9244_v23 = vcombine.low %v614_v42, %v618_v48  ;;  %v12852_v0 = vld [vmem:[#allocation17_spill] sm:$0xff]  ;;  %v630_v42 = vld [vmem:[#allocation5 + $0xc50] sm:$0xff] }
 0x481   : > { %v6144_v18 = vpop.f32.mrf.mxu0  ;;  %6335 = vmatmul.mubr.bf16.gmra.mxu0 %v9236_v50  ;;  %v6817_v29 = vpop.f32.mrf.mxu1  ;;  %7008 = vmatmul.mubr.bf16.gmra.mxu1 %v9238_v38  ;;  %v9246_v50 = vcombine.low %v615_v10, %v619_v12  ;;  %v634_v48 = vld [vmem:[#allocation5 + $0xc70] sm:$0xff]  ;;  %v631_v12 = vld [vmem:[#allocation5 + $0xc58] sm:$0xff] }
 0x482   : > { %12849 = vst [vmem:[#allocation15_spill] sm:$0xff] %v11124_v63  ;;  %v6145_v51 = vadd.f32 %v6144_v18, %v12850_v35  ;;  %6342 = vmatprep.mubr.bf16.mxu0 %v9245_v28  ;;  %7015 = vmatprep.mubr.bf16.mxu1 %v9247_v8  ;;  %v9255_v35 = vcombine.high %v623_v34, %v627_v5 }
 0x483   : > { %v6146_v21 = vpop.f32.mrf.mxu0  ;;  %v6819_v3 = vpop.f32.mrf.mxu1 }
 0x484   : > { %v11127_v2 = vadd.f32 %v6817_v29, %v6145_v51  ;;  %v12854_v21 = vld [vmem:[#allocation18_spill] sm:$0xff] }
 0x485   : > { %v6147_v32 = vpop.f32.mrf.mxu0  ;;  %v6820_v63 = vpop.f32.mrf.mxu1 }
 0x486   : > { %12851 = vst [vmem:[#allocation16_spill] sm:$0xff] %v11127_v2  ;;  %v6148_v53 = vadd.f32 %v6147_v32, %v12852_v0  ;;  %v635_v0 = vld [vmem:[#allocation5 + $0xc78] sm:$0xff]  ;;  %v9261_v2 = vcombine.high %v630_v42, %v634_v48 }
 0x487   : > { %v6149_v18 = vpop.f32.mrf.mxu0  ;;  %v6822_v28 = vpop.f32.mrf.mxu1 }
 0x488   : > { %v11130_v38 = vadd.f32 %v6820_v63, %v6148_v53  ;;  %v9252_v63 = vcombine.low %v622_v9, %v626_v41  ;;  %v12856_v53 = vld [vmem:[#allocation19_spill] sm:$0xff]  ;;  %v638_v9 = vld [vmem:[#allocation5 + $0xc90] sm:$0xff] }
 0x489   : > { %v6152_v8 = vpop.f32.mrf.mxu0  ;;  %6343 = vmatmul.mubr.bf16.gmra.mxu0 %v9244_v23  ;;  %v6825_v29 = vpop.f32.mrf.mxu1  ;;  %7016 = vmatmul.mubr.bf16.gmra.mxu1 %v9246_v50  ;;  %v9254_v23 = vcombine.low %v623_v34, %v627_v5  ;;  %v642_v41 = vld [vmem:[#allocation5 + $0xcb0] sm:$0xff]  ;;  %v639_v5 = vld [vmem:[#allocation5 + $0xc98] sm:$0xff] }
 0x48a   : > { %12853 = vst [vmem:[#allocation17_spill] sm:$0xff] %v11130_v38  ;;  %v6153_v51 = vadd.f32 %v6152_v8, %v12854_v21  ;;  %6350 = vmatprep.mubr.bf16.mxu0 %v9253_v4  ;;  %7023 = vmatprep.mubr.bf16.mxu1 %v9255_v35  ;;  %v9263_v21 = vcombine.high %v631_v12, %v635_v0 }
 0x48b   : > { %v6154_v3 = vpop.f32.mrf.mxu0  ;;  %v6827_v10 = vpop.f32.mrf.mxu1 }
 0x48c   : > { %v11133_v32 = vadd.f32 %v6825_v29, %v6153_v51  ;;  %v12858_v3 = vld [vmem:[#allocation20_spill] sm:$0xff] }
 0x48d   : > { %v6155_v18 = vpop.f32.mrf.mxu0  ;;  %v6828_v38 = vpop.f32.mrf.mxu1 }
 0x48e   : > { %12855 = vst [vmem:[#allocation18_spill] sm:$0xff] %v11133_v32  ;;  %v6156_v28 = vadd.f32 %v6155_v18, %v12856_v53  ;;  %v643_v53 = vld [vmem:[#allocation5 + $0xcb8] sm:$0xff]  ;;  %v9269_v32 = vcombine.high %v638_v9, %v642_v41 }
 0x48f   : > { %v6157_v8 = vpop.f32.mrf.mxu0  ;;  %v6830_v4 = vpop.f32.mrf.mxu1 }
 0x490   : > { %v11136_v50 = vadd.f32 %v6828_v38, %v6156_v28  ;;  %v9260_v38 = vcombine.low %v630_v42, %v634_v48  ;;  %v12860_v28 = vld [vmem:[#allocation21_spill] sm:$0xff]  ;;  %v646_v42 = vld [vmem:[#allocation5 + $0xcd0] sm:$0xff] }
 0x491   : > { %v6160_v35 = vpop.f32.mrf.mxu0  ;;  %6351 = vmatmul.mubr.bf16.gmra.mxu0 %v9252_v63  ;;  %v6833_v29 = vpop.f32.mrf.mxu1  ;;  %7024 = vmatmul.mubr.bf16.gmra.mxu1 %v9254_v23  ;;  %v9262_v63 = vcombine.low %v631_v12, %v635_v0  ;;  %v650_v48 = vld [vmem:[#allocation5 + $0xcf0] sm:$0xff]  ;;  %v647_v0 = vld [vmem:[#allocation5 + $0xcd8] sm:$0xff] }
 0x492   : > { %12857 = vst [vmem:[#allocation19_spill] sm:$0xff] %v11136_v50  ;;  %v6161_v51 = vadd.f32 %v6160_v35, %v12858_v3  ;;  %6358 = vmatprep.mubr.bf16.mxu0 %v9261_v2  ;;  %7031 = vmatprep.mubr.bf16.mxu1 %v9263_v21  ;;  %v9271_v3 = vcombine.high %v639_v5, %v643_v53 }
 0x493   : > { %v6162_v10 = vpop.f32.mrf.mxu0  ;;  %v6835_v34 = vpop.f32.mrf.mxu1 }
 0x494   : > { %v11139_v18 = vadd.f32 %v6833_v29, %v6161_v51  ;;  %v12862_v10 = vld [vmem:[#allocation22_spill] sm:$0xff] }
 0x495   : > { %v6163_v8 = vpop.f32.mrf.mxu0  ;;  %v6836_v50 = vpop.f32.mrf.mxu1 }
 0x496   : > { %12859 = vst [vmem:[#allocation20_spill] sm:$0xff] %v11139_v18  ;;  %v6164_v4 = vadd.f32 %v6163_v8, %v12860_v28  ;;  %v651_v28 = vld [vmem:[#allocation5 + $0xcf8] sm:$0xff]  ;;  %v9277_v18 = vcombine.high %v646_v42, %v650_v48 }
 0x497   : > { %v6165_v35 = vpop.f32.mrf.mxu0  ;;  %v6838_v2 = vpop.f32.mrf.mxu1 }
 0x498   : > { %v11142_v23 = vadd.f32 %v6836_v50, %v6164_v4  ;;  %v9268_v50 = vcombine.low %v638_v9, %v642_v41  ;;  %v12864_v4 = vld [vmem:[#allocation23_spill] sm:$0xff]  ;;  %v654_v9 = vld [vmem:[#allocation5 + $0xd10] sm:$0xff] }
 0x499   : > { %v6168_v21 = vpop.f32.mrf.mxu0  ;;  %6359 = vmatmul.mubr.bf16.gmra.mxu0 %v9260_v38  ;;  %v6841_v29 = vpop.f32.mrf.mxu1  ;;  %7032 = vmatmul.mubr.bf16.gmra.mxu1 %v9262_v63  ;;  %v9270_v38 = vcombine.low %v639_v5, %v643_v53  ;;  %v658_v41 = vld [vmem:[#allocation5 + $0xd30] sm:$0xff]  ;;  %v655_v53 = vld [vmem:[#allocation5 + $0xd18] sm:$0xff] }
 0x49a   : > { %12861 = vst [vmem:[#allocation21_spill] sm:$0xff] %v11142_v23  ;;  %v6169_v51 = vadd.f32 %v6168_v21, %v12862_v10  ;;  %6366 = vmatprep.mubr.bf16.mxu0 %v9269_v32  ;;  %7039 = vmatprep.mubr.bf16.mxu1 %v9271_v3  ;;  %v9279_v10 = vcombine.high %v647_v0, %v651_v28 }
 0x49b   : > { %v6170_v34 = vpop.f32.mrf.mxu0  ;;  %v6843_v12 = vpop.f32.mrf.mxu1 }
 0x49c   : > { %v11145_v8 = vadd.f32 %v6841_v29, %v6169_v51  ;;  %v12866_v34 = vld [vmem:[#allocation24_spill] sm:$0xff] }
 0x49d   : > { %v6171_v35 = vpop.f32.mrf.mxu0  ;;  %v6844_v23 = vpop.f32.mrf.mxu1 }
 0x49e   : > { %12863 = vst [vmem:[#allocation22_spill] sm:$0xff] %v11145_v8  ;;  %v6172_v2 = vadd.f32 %v6171_v35, %v12864_v4  ;;  %v659_v4 = vld [vmem:[#allocation5 + $0xd38] sm:$0xff]  ;;  %v9285_v8 = vcombine.high %v654_v9, %v658_v41 }
 0x49f   : > { %v6173_v21 = vpop.f32.mrf.mxu0  ;;  %v6846_v32 = vpop.f32.mrf.mxu1 }
 0x4a0   : > { %v11148_v63 = vadd.f32 %v6844_v23, %v6172_v2  ;;  %v9276_v23 = vcombine.low %v646_v42, %v650_v48  ;;  %v12868_v2 = vld [vmem:[#allocation25_spill] sm:$0xff]  ;;  %v662_v42 = vld [vmem:[#allocation5 + $0xd50] sm:$0xff] }
 0x4a1   : > { %v6176_v3 = vpop.f32.mrf.mxu0  ;;  %6367 = vmatmul.mubr.bf16.gmra.mxu0 %v9268_v50  ;;  %v6849_v29 = vpop.f32.mrf.mxu1  ;;  %7040 = vmatmul.mubr.bf16.gmra.mxu1 %v9270_v38  ;;  %v9278_v50 = vcombine.low %v647_v0, %v651_v28  ;;  %v666_v48 = vld [vmem:[#allocation5 + $0xd70] sm:$0xff]  ;;  %v663_v28 = vld [vmem:[#allocation5 + $0xd58] sm:$0xff] }
 0x4a2   : > { %12865 = vst [vmem:[#allocation23_spill] sm:$0xff] %v11148_v63  ;;  %v6177_v51 = vadd.f32 %v6176_v3, %v12866_v34  ;;  %6374 = vmatprep.mubr.bf16.mxu0 %v9277_v18  ;;  %7047 = vmatprep.mubr.bf16.mxu1 %v9279_v10  ;;  %v9287_v34 = vcombine.high %v655_v53, %v659_v4 }
 0x4a3   : > { %v6178_v12 = vpop.f32.mrf.mxu0  ;;  %v6851_v5 = vpop.f32.mrf.mxu1 }
 0x4a4   : > { %v11151_v35 = vadd.f32 %v6849_v29, %v6177_v51  ;;  %v12870_v12 = vld [vmem:[#allocation26_spill] sm:$0xff] }
 0x4a5   : > { %v6179_v21 = vpop.f32.mrf.mxu0  ;;  %v6852_v63 = vpop.f32.mrf.mxu1 }
 0x4a6   : > { %12867 = vst [vmem:[#allocation24_spill] sm:$0xff] %v11151_v35  ;;  %v6180_v32 = vadd.f32 %v6179_v21, %v12868_v2  ;;  %v667_v2 = vld [vmem:[#allocation5 + $0xd78] sm:$0xff]  ;;  %v9293_v35 = vcombine.high %v662_v42, %v666_v48 }
 0x4a7   : > { %v6181_v3 = vpop.f32.mrf.mxu0  ;;  %v6854_v18 = vpop.f32.mrf.mxu1 }
 0x4a8   : > { %v11154_v38 = vadd.f32 %v6852_v63, %v6180_v32  ;;  %v9284_v63 = vcombine.low %v654_v9, %v658_v41  ;;  %v12872_v32 = vld [vmem:[#allocation27_spill] sm:$0xff]  ;;  %v670_v9 = vld [vmem:[#allocation5 + $0xd90] sm:$0xff] }
 0x4a9   : > { %v6184_v10 = vpop.f32.mrf.mxu0  ;;  %6375 = vmatmul.mubr.bf16.gmra.mxu0 %v9276_v23  ;;  %v6857_v29 = vpop.f32.mrf.mxu1  ;;  %7048 = vmatmul.mubr.bf16.gmra.mxu1 %v9278_v50  ;;  %v9286_v23 = vcombine.low %v655_v53, %v659_v4  ;;  %v674_v41 = vld [vmem:[#allocation5 + $0xdb0] sm:$0xff]  ;;  %v671_v4 = vld [vmem:[#allocation5 + $0xd98] sm:$0xff] }
 0x4aa   : > { %12869 = vst [vmem:[#allocation25_spill] sm:$0xff] %v11154_v38  ;;  %v6185_v51 = vadd.f32 %v6184_v10, %v12870_v12  ;;  %6382 = vmatprep.mubr.bf16.mxu0 %v9285_v8  ;;  %7055 = vmatprep.mubr.bf16.mxu1 %v9287_v34  ;;  %v9295_v12 = vcombine.high %v663_v28, %v667_v2 }
 0x4ab   : > { %v6186_v5 = vpop.f32.mrf.mxu0  ;;  %v6859_v0 = vpop.f32.mrf.mxu1 }
 0x4ac   : > { %v11157_v21 = vadd.f32 %v6857_v29, %v6185_v51  ;;  %v12874_v5 = vld [vmem:[#allocation28_spill] sm:$0xff] }
 0x4ad   : > { %v6187_v3 = vpop.f32.mrf.mxu0  ;;  %v6860_v38 = vpop.f32.mrf.mxu1 }
 0x4ae   : > { %12871 = vst [vmem:[#allocation26_spill] sm:$0xff] %v11157_v21  ;;  %v6188_v18 = vadd.f32 %v6187_v3, %v12872_v32  ;;  %v675_v32 = vld [vmem:[#allocation5 + $0xdb8] sm:$0xff]  ;;  %v9301_v21 = vcombine.high %v670_v9, %v674_v41 }
 0x4af   : > { %v6189_v10 = vpop.f32.mrf.mxu0  ;;  %v6862_v8 = vpop.f32.mrf.mxu1 }
 0x4b0   : > { %v11160_v50 = vadd.f32 %v6860_v38, %v6188_v18  ;;  %v9292_v38 = vcombine.low %v662_v42, %v666_v48  ;;  %v12876_v18 = vld [vmem:[#allocation29_spill] sm:$0xff]  ;;  %v678_v42 = vld [vmem:[#allocation5 + $0xdd0] sm:$0xff] }
 0x4b1   : > { %v6192_v34 = vpop.f32.mrf.mxu0  ;;  %6383 = vmatmul.mubr.bf16.gmra.mxu0 %v9284_v63  ;;  %v6865_v29 = vpop.f32.mrf.mxu1  ;;  %7056 = vmatmul.mubr.bf16.gmra.mxu1 %v9286_v23  ;;  %v9294_v63 = vcombine.low %v663_v28, %v667_v2  ;;  %v682_v48 = vld [vmem:[#allocation5 + $0xdf0] sm:$0xff]  ;;  %v679_v2 = vld [vmem:[#allocation5 + $0xdd8] sm:$0xff] }
 0x4b2   : > { %12873 = vst [vmem:[#allocation27_spill] sm:$0xff] %v11160_v50  ;;  %v6193_v51 = vadd.f32 %v6192_v34, %v12874_v5  ;;  %6390 = vmatprep.mubr.bf16.mxu0 %v9293_v35  ;;  %7063 = vmatprep.mubr.bf16.mxu1 %v9295_v12  ;;  %v9303_v5 = vcombine.high %v671_v4, %v675_v32 }
 0x4b3   : > { %v6194_v0 = vpop.f32.mrf.mxu0  ;;  %v6867_v53 = vpop.f32.mrf.mxu1 }
 0x4b4   : > { %v11163_v3 = vadd.f32 %v6865_v29, %v6193_v51  ;;  %v12878_v0 = vld [vmem:[#allocation30_spill] sm:$0xff] }
 0x4b5   : > { %v6195_v10 = vpop.f32.mrf.mxu0  ;;  %v6868_v50 = vpop.f32.mrf.mxu1 }
 0x4b6   : > { %12875 = vst [vmem:[#allocation28_spill] sm:$0xff] %v11163_v3  ;;  %v6196_v8 = vadd.f32 %v6195_v10, %v12876_v18  ;;  %v683_v18 = vld [vmem:[#allocation5 + $0xdf8] sm:$0xff]  ;;  %v9309_v3 = vcombine.high %v678_v42, %v682_v48 }
 0x4b7   : > { %v6197_v34 = vpop.f32.mrf.mxu0  ;;  %v6870_v35 = vpop.f32.mrf.mxu1 }
 0x4b8   : > { %v11166_v23 = vadd.f32 %v6868_v50, %v6196_v8  ;;  %v9300_v50 = vcombine.low %v670_v9, %v674_v41  ;;  %v12880_v8 = vld [vmem:[#allocation31_spill] sm:$0xff]  ;;  %v686_v9 = vld [vmem:[#allocation5 + $0xe10] sm:$0xff] }
 0x4b9   : > { %v6200_v12 = vpop.f32.mrf.mxu0  ;;  %6391 = vmatmul.mubr.bf16.gmra.mxu0 %v9292_v38  ;;  %v6873_v29 = vpop.f32.mrf.mxu1  ;;  %7064 = vmatmul.mubr.bf16.gmra.mxu1 %v9294_v63  ;;  %v9302_v38 = vcombine.low %v671_v4, %v675_v32  ;;  %v690_v41 = vld [vmem:[#allocation5 + $0xe30] sm:$0xff]  ;;  %v687_v32 = vld [vmem:[#allocation5 + $0xe18] sm:$0xff] }
 0x4ba   : > { %12877 = vst [vmem:[#allocation29_spill] sm:$0xff] %v11166_v23  ;;  %v6201_v51 = vadd.f32 %v6200_v12, %v12878_v0  ;;  %6398 = vmatprep.mubr.bf16.mxu0 %v9301_v21  ;;  %7071 = vmatprep.mubr.bf16.mxu1 %v9303_v5  ;;  %v9311_v0 = vcombine.high %v679_v2, %v683_v18 }
 0x4bb   : > { %v6202_v53 = vpop.f32.mrf.mxu0  ;;  %v6875_v28 = vpop.f32.mrf.mxu1 }
 0x4bc   : > { %v11169_v10 = vadd.f32 %v6873_v29, %v6201_v51  ;;  %v12882_v53 = vld [vmem:[#allocation32_spill] sm:$0xff] }
 0x4bd   : > { %v6203_v34 = vpop.f32.mrf.mxu0  ;;  %v6876_v23 = vpop.f32.mrf.mxu1 }
 0x4be   : > { %12879 = vst [vmem:[#allocation30_spill] sm:$0xff] %v11169_v10  ;;  %v6204_v35 = vadd.f32 %v6203_v34, %v12880_v8  ;;  %v691_v8 = vld [vmem:[#allocation5 + $0xe38] sm:$0xff]  ;;  %v9317_v10 = vcombine.high %v686_v9, %v690_v41 }
 0x4bf   : > { %v6205_v12 = vpop.f32.mrf.mxu0  ;;  %v6878_v21 = vpop.f32.mrf.mxu1 }
 0x4c0   : > { %v11172_v63 = vadd.f32 %v6876_v23, %v6204_v35  ;;  %v9308_v23 = vcombine.low %v678_v42, %v682_v48  ;;  %v12884_v35 = vld [vmem:[#allocation33_spill] sm:$0xff]  ;;  %v694_v42 = vld [vmem:[#allocation5 + $0xe50] sm:$0xff] }
 0x4c1   : > { %v6208_v5 = vpop.f32.mrf.mxu0  ;;  %6399 = vmatmul.mubr.bf16.gmra.mxu0 %v9300_v50  ;;  %v6881_v29 = vpop.f32.mrf.mxu1  ;;  %7072 = vmatmul.mubr.bf16.gmra.mxu1 %v9302_v38  ;;  %v9310_v50 = vcombine.low %v679_v2, %v683_v18  ;;  %v698_v48 = vld [vmem:[#allocation5 + $0xe70] sm:$0xff]  ;;  %v695_v18 = vld [vmem:[#allocation5 + $0xe58] sm:$0xff] }
 0x4c2   : > { %12881 = vst [vmem:[#allocation31_spill] sm:$0xff] %v11172_v63  ;;  %v6209_v51 = vadd.f32 %v6208_v5, %v12882_v53  ;;  %6406 = vmatprep.mubr.bf16.mxu0 %v9309_v3  ;;  %7079 = vmatprep.mubr.bf16.mxu1 %v9311_v0  ;;  %v9319_v53 = vcombine.high %v687_v32, %v691_v8 }
 0x4c3   : > { %v6210_v28 = vpop.f32.mrf.mxu0  ;;  %v6883_v4 = vpop.f32.mrf.mxu1 }
 0x4c4   : > { %v11175_v34 = vadd.f32 %v6881_v29, %v6209_v51  ;;  %v12886_v28 = vld [vmem:[#allocation34_spill] sm:$0xff] }
 0x4c5   : > { %v6211_v12 = vpop.f32.mrf.mxu0  ;;  %v6884_v63 = vpop.f32.mrf.mxu1 }
 0x4c6   : > { %12883 = vst [vmem:[#allocation32_spill] sm:$0xff] %v11175_v34  ;;  %v6212_v21 = vadd.f32 %v6211_v12, %v12884_v35  ;;  %v699_v35 = vld [vmem:[#allocation5 + $0xe78] sm:$0xff]  ;;  %v9325_v34 = vcombine.high %v694_v42, %v698_v48 }
 0x4c7   : > { %v6213_v5 = vpop.f32.mrf.mxu0  ;;  %v6886_v3 = vpop.f32.mrf.mxu1 }
 0x4c8   : > { %v11178_v38 = vadd.f32 %v6884_v63, %v6212_v21  ;;  %v9316_v63 = vcombine.low %v686_v9, %v690_v41  ;;  %v12888_v21 = vld [vmem:[#allocation35_spill] sm:$0xff]  ;;  %v702_v9 = vld [vmem:[#allocation5 + $0xe90] sm:$0xff] }
 0x4c9   : > { %v6216_v0 = vpop.f32.mrf.mxu0  ;;  %6407 = vmatmul.mubr.bf16.gmra.mxu0 %v9308_v23  ;;  %v6889_v29 = vpop.f32.mrf.mxu1  ;;  %7080 = vmatmul.mubr.bf16.gmra.mxu1 %v9310_v50  ;;  %v9318_v23 = vcombine.low %v687_v32, %v691_v8  ;;  %v706_v41 = vld [vmem:[#allocation5 + $0xeb0] sm:$0xff]  ;;  %v703_v8 = vld [vmem:[#allocation5 + $0xe98] sm:$0xff] }
 0x4ca   : > { %12885 = vst [vmem:[#allocation33_spill] sm:$0xff] %v11178_v38  ;;  %v6217_v51 = vadd.f32 %v6216_v0, %v12886_v28  ;;  %6414 = vmatprep.mubr.bf16.mxu0 %v9317_v10  ;;  %7087 = vmatprep.mubr.bf16.mxu1 %v9319_v53  ;;  %v9327_v28 = vcombine.high %v695_v18, %v699_v35 }
 0x4cb   : > { %v6218_v4 = vpop.f32.mrf.mxu0  ;;  %v6891_v2 = vpop.f32.mrf.mxu1 }
 0x4cc   : > { %v11181_v12 = vadd.f32 %v6889_v29, %v6217_v51  ;;  %v12890_v4 = vld [vmem:[#allocation36_spill] sm:$0xff] }
 0x4cd   : > { %v6219_v5 = vpop.f32.mrf.mxu0  ;;  %v6892_v38 = vpop.f32.mrf.mxu1 }
 0x4ce   : > { %12887 = vst [vmem:[#allocation34_spill] sm:$0xff] %v11181_v12  ;;  %v6220_v3 = vadd.f32 %v6219_v5, %v12888_v21  ;;  %v707_v21 = vld [vmem:[#allocation5 + $0xeb8] sm:$0xff]  ;;  %v9333_v12 = vcombine.high %v702_v9, %v706_v41 }
 0x4cf   : > { %v6221_v0 = vpop.f32.mrf.mxu0  ;;  %v6894_v10 = vpop.f32.mrf.mxu1 }
 0x4d0   : > { %v11184_v50 = vadd.f32 %v6892_v38, %v6220_v3  ;;  %v9324_v38 = vcombine.low %v694_v42, %v698_v48  ;;  %v12892_v3 = vld [vmem:[#allocation37_spill] sm:$0xff]  ;;  %v710_v42 = vld [vmem:[#allocation5 + $0xed0] sm:$0xff] }
 0x4d1   : > { %v6224_v53 = vpop.f32.mrf.mxu0  ;;  %6415 = vmatmul.mubr.bf16.gmra.mxu0 %v9316_v63  ;;  %v6897_v29 = vpop.f32.mrf.mxu1  ;;  %7088 = vmatmul.mubr.bf16.gmra.mxu1 %v9318_v23  ;;  %v9326_v63 = vcombine.low %v695_v18, %v699_v35  ;;  %v714_v48 = vld [vmem:[#allocation5 + $0xef0] sm:$0xff]  ;;  %v711_v35 = vld [vmem:[#allocation5 + $0xed8] sm:$0xff] }
 0x4d2   : > { %12889 = vst [vmem:[#allocation35_spill] sm:$0xff] %v11184_v50  ;;  %v6225_v51 = vadd.f32 %v6224_v53, %v12890_v4  ;;  %6422 = vmatprep.mubr.bf16.mxu0 %v9325_v34  ;;  %7095 = vmatprep.mubr.bf16.mxu1 %v9327_v28  ;;  %v9335_v4 = vcombine.high %v703_v8, %v707_v21 }
 0x4d3   : > { %v6226_v2 = vpop.f32.mrf.mxu0  ;;  %v6899_v32 = vpop.f32.mrf.mxu1 }
 0x4d4   : > { %v11187_v5 = vadd.f32 %v6897_v29, %v6225_v51  ;;  %v12894_v2 = vld [vmem:[#allocation38_spill] sm:$0xff] }
 0x4d5   : > { %v6227_v0 = vpop.f32.mrf.mxu0  ;;  %v6900_v50 = vpop.f32.mrf.mxu1 }
 0x4d6   : > { %12891 = vst [vmem:[#allocation36_spill] sm:$0xff] %v11187_v5  ;;  %v6228_v10 = vadd.f32 %v6227_v0, %v12892_v3  ;;  %v715_v3 = vld [vmem:[#allocation5 + $0xef8] sm:$0xff]  ;;  %v9341_v5 = vcombine.high %v710_v42, %v714_v48 }
 0x4d7   : > { %v6229_v53 = vpop.f32.mrf.mxu0  ;;  %v6902_v34 = vpop.f32.mrf.mxu1 }
 0x4d8   : > { %v11190_v23 = vadd.f32 %v6900_v50, %v6228_v10  ;;  %v9332_v50 = vcombine.low %v702_v9, %v706_v41  ;;  %v12896_v10 = vld [vmem:[#allocation39_spill] sm:$0xff]  ;;  %v718_v9 = vld [vmem:[#allocation5 + $0xf10] sm:$0xff] }
 0x4d9   : > { %v6232_v28 = vpop.f32.mrf.mxu0  ;;  %6423 = vmatmul.mubr.bf16.gmra.mxu0 %v9324_v38  ;;  %v6905_v29 = vpop.f32.mrf.mxu1  ;;  %7096 = vmatmul.mubr.bf16.gmra.mxu1 %v9326_v63  ;;  %v9334_v38 = vcombine.low %v703_v8, %v707_v21  ;;  %v722_v41 = vld [vmem:[#allocation5 + $0xf30] sm:$0xff]  ;;  %v719_v21 = vld [vmem:[#allocation5 + $0xf18] sm:$0xff] }
 0x4da   : > { %12893 = vst [vmem:[#allocation37_spill] sm:$0xff] %v11190_v23  ;;  %v6233_v51 = vadd.f32 %v6232_v28, %v12894_v2  ;;  %6430 = vmatprep.mubr.bf16.mxu0 %v9333_v12  ;;  %7103 = vmatprep.mubr.bf16.mxu1 %v9335_v4  ;;  %v9343_v2 = vcombine.high %v711_v35, %v715_v3 }
 0x4db   : > { %v6234_v32 = vpop.f32.mrf.mxu0  ;;  %v6907_v18 = vpop.f32.mrf.mxu1 }
 0x4dc   : > { %v11193_v0 = vadd.f32 %v6905_v29, %v6233_v51  ;;  %v12898_v32 = vld [vmem:[#allocation40_spill] sm:$0xff] }
 0x4dd   : > { %v6235_v53 = vpop.f32.mrf.mxu0  ;;  %v6908_v23 = vpop.f32.mrf.mxu1 }
 0x4de   : > { %12895 = vst [vmem:[#allocation38_spill] sm:$0xff] %v11193_v0  ;;  %v6236_v34 = vadd.f32 %v6235_v53, %v12896_v10  ;;  %v723_v10 = vld [vmem:[#allocation5 + $0xf38] sm:$0xff]  ;;  %v9349_v0 = vcombine.high %v718_v9, %v722_v41 }
 0x4df   : > { %v6237_v28 = vpop.f32.mrf.mxu0  ;;  %v6910_v12 = vpop.f32.mrf.mxu1 }
 0x4e0   : > { %v11196_v63 = vadd.f32 %v6908_v23, %v6236_v34  ;;  %v9340_v23 = vcombine.low %v710_v42, %v714_v48  ;;  %v12900_v34 = vld [vmem:[#allocation41_spill] sm:$0xff]  ;;  %v726_v42 = vld [vmem:[#allocation5 + $0xf50] sm:$0xff] }
 0x4e1   : > { %v6240_v4 = vpop.f32.mrf.mxu0  ;;  %6431 = vmatmul.mubr.bf16.gmra.mxu0 %v9332_v50  ;;  %v6913_v29 = vpop.f32.mrf.mxu1  ;;  %7104 = vmatmul.mubr.bf16.gmra.mxu1 %v9334_v38  ;;  %v9342_v50 = vcombine.low %v711_v35, %v715_v3  ;;  %v730_v48 = vld [vmem:[#allocation5 + $0xf70] sm:$0xff]  ;;  %v727_v3 = vld [vmem:[#allocation5 + $0xf58] sm:$0xff] }
 0x4e2   : > { %12897 = vst [vmem:[#allocation39_spill] sm:$0xff] %v11196_v63  ;;  %v6241_v51 = vadd.f32 %v6240_v4, %v12898_v32  ;;  %6438 = vmatprep.mubr.bf16.mxu0 %v9341_v5  ;;  %7111 = vmatprep.mubr.bf16.mxu1 %v9343_v2  ;;  %v9351_v32 = vcombine.high %v719_v21, %v723_v10 }
 0x4e3   : > { %v6242_v18 = vpop.f32.mrf.mxu0  ;;  %v6915_v8 = vpop.f32.mrf.mxu1 }
 0x4e4   : > { %v11199_v53 = vadd.f32 %v6913_v29, %v6241_v51  ;;  %v12902_v18 = vld [vmem:[#allocation42_spill] sm:$0xff] }
 0x4e5   : > { %v6243_v28 = vpop.f32.mrf.mxu0  ;;  %v6916_v63 = vpop.f32.mrf.mxu1 }
 0x4e6   : > { %12899 = vst [vmem:[#allocation40_spill] sm:$0xff] %v11199_v53  ;;  %v6244_v12 = vadd.f32 %v6243_v28, %v12900_v34  ;;  %v731_v34 = vld [vmem:[#allocation5 + $0xf78] sm:$0xff]  ;;  %v9357_v53 = vcombine.high %v726_v42, %v730_v48 }
 0x4e7   : > { %v6245_v4 = vpop.f32.mrf.mxu0  ;;  %v6918_v5 = vpop.f32.mrf.mxu1 }
 0x4e8   : > { %v11202_v38 = vadd.f32 %v6916_v63, %v6244_v12  ;;  %v9348_v63 = vcombine.low %v718_v9, %v722_v41  ;;  %v12904_v12 = vld [vmem:[#allocation43_spill] sm:$0xff]  ;;  %v734_v9 = vld [vmem:[#allocation5 + $0xf90] sm:$0xff] }
 0x4e9   : > { %v6248_v2 = vpop.f32.mrf.mxu0  ;;  %6439 = vmatmul.mubr.bf16.gmra.mxu0 %v9340_v23  ;;  %v6921_v29 = vpop.f32.mrf.mxu1  ;;  %7112 = vmatmul.mubr.bf16.gmra.mxu1 %v9342_v50  ;;  %v9350_v23 = vcombine.low %v719_v21, %v723_v10  ;;  %v738_v41 = vld [vmem:[#allocation5 + $0xfb0] sm:$0xff]  ;;  %v735_v10 = vld [vmem:[#allocation5 + $0xf98] sm:$0xff] }
 0x4ea   : > { %12901 = vst [vmem:[#allocation41_spill] sm:$0xff] %v11202_v38  ;;  %v6249_v51 = vadd.f32 %v6248_v2, %v12902_v18  ;;  %6446 = vmatprep.mubr.bf16.mxu0 %v9349_v0  ;;  %7119 = vmatprep.mubr.bf16.mxu1 %v9351_v32  ;;  %v9359_v18 = vcombine.high %v727_v3, %v731_v34 }
 0x4eb   : > { %v6250_v8 = vpop.f32.mrf.mxu0  ;;  %v6923_v35 = vpop.f32.mrf.mxu1 }
 0x4ec   : > { %v11205_v28 = vadd.f32 %v6921_v29, %v6249_v51  ;;  %v12906_v8 = vld [vmem:[#allocation44_spill] sm:$0xff] }
 0x4ed   : > { %v6251_v4 = vpop.f32.mrf.mxu0  ;;  %v6924_v38 = vpop.f32.mrf.mxu1 }
 0x4ee   : > { %12903 = vst [vmem:[#allocation42_spill] sm:$0xff] %v11205_v28  ;;  %v6252_v5 = vadd.f32 %v6251_v4, %v12904_v12  ;;  %v739_v12 = vld [vmem:[#allocation5 + $0xfb8] sm:$0xff]  ;;  %v9365_v28 = vcombine.high %v734_v9, %v738_v41 }
 0x4ef   : > { %v6253_v2 = vpop.f32.mrf.mxu0  ;;  %v6926_v0 = vpop.f32.mrf.mxu1 }
 0x4f0   : > { %v11208_v50 = vadd.f32 %v6924_v38, %v6252_v5  ;;  %v9356_v38 = vcombine.low %v726_v42, %v730_v48  ;;  %v12908_v5 = vld [vmem:[#allocation45_spill] sm:$0xff]  ;;  %v742_v42 = vld [vmem:[#allocation5 + $0xfd0] sm:$0xff] }
 0x4f1   : > { %v6256_v32 = vpop.f32.mrf.mxu0  ;;  %6447 = vmatmul.mubr.bf16.gmra.mxu0 %v9348_v63  ;;  %v6929_v29 = vpop.f32.mrf.mxu1  ;;  %7120 = vmatmul.mubr.bf16.gmra.mxu1 %v9350_v23  ;;  %v9358_v63 = vcombine.low %v727_v3, %v731_v34  ;;  %v746_v48 = vld [vmem:[#allocation5 + $0xff0] sm:$0xff]  ;;  %v743_v34 = vld [vmem:[#allocation5 + $0xfd8] sm:$0xff] }
 0x4f2   : > { %12905 = vst [vmem:[#allocation43_spill] sm:$0xff] %v11208_v50  ;;  %v6257_v51 = vadd.f32 %v6256_v32, %v12906_v8  ;;  %6454 = vmatprep.mubr.bf16.mxu0 %v9357_v53  ;;  %7127 = vmatprep.mubr.bf16.mxu1 %v9359_v18  ;;  %v9367_v8 = vcombine.high %v735_v10, %v739_v12 }
 0x4f3   : > { %v6258_v35 = vpop.f32.mrf.mxu0  ;;  %v6931_v21 = vpop.f32.mrf.mxu1 }
 0x4f4   : > { %v11211_v4 = vadd.f32 %v6929_v29, %v6257_v51  ;;  %v12910_v35 = vld [vmem:[#allocation46_spill] sm:$0xff] }
 0x4f5   : > { %v6259_v2 = vpop.f32.mrf.mxu0  ;;  %v6932_v50 = vpop.f32.mrf.mxu1 }
 0x4f6   : > { %12907 = vst [vmem:[#allocation44_spill] sm:$0xff] %v11211_v4  ;;  %v6260_v0 = vadd.f32 %v6259_v2, %v12908_v5  ;;  %v747_v5 = vld [vmem:[#allocation5 + $0xff8] sm:$0xff]  ;;  %v9373_v4 = vcombine.high %v742_v42, %v746_v48 }
 0x4f7   : > { %v6261_v32 = vpop.f32.mrf.mxu0  ;;  %v6934_v53 = vpop.f32.mrf.mxu1 }
 0x4f8   : > { %v11214_v23 = vadd.f32 %v6932_v50, %v6260_v0  ;;  %v9364_v50 = vcombine.low %v734_v9, %v738_v41  ;;  %v12912_v0 = vld [vmem:[#allocation47_spill] sm:$0xff]  ;;  %v750_v9 = vld [vmem:[#allocation5 + $0x1010] sm:$0xff] }
 0x4f9   : > { %v6264_v18 = vpop.f32.mrf.mxu0  ;;  %6455 = vmatmul.mubr.bf16.gmra.mxu0 %v9356_v38  ;;  %v6937_v29 = vpop.f32.mrf.mxu1  ;;  %7128 = vmatmul.mubr.bf16.gmra.mxu1 %v9358_v63  ;;  %v9366_v38 = vcombine.low %v735_v10, %v739_v12  ;;  %v754_v41 = vld [vmem:[#allocation5 + $0x1030] sm:$0xff]  ;;  %v751_v12 = vld [vmem:[#allocation5 + $0x1018] sm:$0xff] }
 0x4fa   : > { %12909 = vst [vmem:[#allocation45_spill] sm:$0xff] %v11214_v23  ;;  %v6265_v51 = vadd.f32 %v6264_v18, %v12910_v35  ;;  %6462 = vmatprep.mubr.bf16.mxu0 %v9365_v28  ;;  %7135 = vmatprep.mubr.bf16.mxu1 %v9367_v8  ;;  %v9375_v35 = vcombine.high %v743_v34, %v747_v5 }
 0x4fb   : > { %v6266_v21 = vpop.f32.mrf.mxu0  ;;  %v6939_v3 = vpop.f32.mrf.mxu1 }
 0x4fc   : > { %v11217_v2 = vadd.f32 %v6937_v29, %v6265_v51  ;;  %v12914_v21 = vld [vmem:[#allocation48_spill] sm:$0xff] }
 0x4fd   : > { %v6267_v32 = vpop.f32.mrf.mxu0  ;;  %v6940_v23 = vpop.f32.mrf.mxu1 }
 0x4fe   : > { %12911 = vst [vmem:[#allocation46_spill] sm:$0xff] %v11217_v2  ;;  %v6268_v53 = vadd.f32 %v6267_v32, %v12912_v0  ;;  %v755_v0 = vld [vmem:[#allocation5 + $0x1038] sm:$0xff]  ;;  %v9381_v2 = vcombine.high %v750_v9, %v754_v41 }
 0x4ff   : > { %v6269_v18 = vpop.f32.mrf.mxu0  ;;  %v6942_v28 = vpop.f32.mrf.mxu1 }
 0x500   : > { %v11220_v63 = vadd.f32 %v6940_v23, %v6268_v53  ;;  %v9372_v23 = vcombine.low %v742_v42, %v746_v48  ;;  %v12916_v53 = vld [vmem:[#allocation49_spill] sm:$0xff]  ;;  %v758_v42 = vld [vmem:[#allocation5 + $0x1050] sm:$0xff] }
 0x501   : > { %v6272_v8 = vpop.f32.mrf.mxu0  ;;  %6463 = vmatmul.mubr.bf16.gmra.mxu0 %v9364_v50  ;;  %v6945_v29 = vpop.f32.mrf.mxu1  ;;  %7136 = vmatmul.mubr.bf16.gmra.mxu1 %v9366_v38  ;;  %v9374_v50 = vcombine.low %v743_v34, %v747_v5  ;;  %v762_v48 = vld [vmem:[#allocation5 + $0x1070] sm:$0xff]  ;;  %v759_v5 = vld [vmem:[#allocation5 + $0x1058] sm:$0xff] }
 0x502   : > { %12913 = vst [vmem:[#allocation47_spill] sm:$0xff] %v11220_v63  ;;  %v6273_v51 = vadd.f32 %v6272_v8, %v12914_v21  ;;  %6470 = vmatprep.mubr.bf16.mxu0 %v9373_v4  ;;  %7143 = vmatprep.mubr.bf16.mxu1 %v9375_v35  ;;  %v9383_v21 = vcombine.high %v751_v12, %v755_v0 }
 0x503   : > { %v6274_v3 = vpop.f32.mrf.mxu0  ;;  %v6947_v10 = vpop.f32.mrf.mxu1 }
 0x504   : > { %v11223_v32 = vadd.f32 %v6945_v29, %v6273_v51  ;;  %v12918_v3 = vld [vmem:[#allocation50_spill] sm:$0xff] }
 0x505   : > { %v6275_v18 = vpop.f32.mrf.mxu0  ;;  %v6948_v63 = vpop.f32.mrf.mxu1 }
 0x506   : > { %12915 = vst [vmem:[#allocation48_spill] sm:$0xff] %v11223_v32  ;;  %v6276_v28 = vadd.f32 %v6275_v18, %v12916_v53  ;;  %v763_v53 = vld [vmem:[#allocation5 + $0x1078] sm:$0xff]  ;;  %v9389_v32 = vcombine.high %v758_v42, %v762_v48 }
 0x507   : > { %v6277_v8 = vpop.f32.mrf.mxu0  ;;  %v6950_v4 = vpop.f32.mrf.mxu1 }
 0x508   : > { %v11226_v38 = vadd.f32 %v6948_v63, %v6276_v28  ;;  %v9380_v63 = vcombine.low %v750_v9, %v754_v41  ;;  %v12920_v28 = vld [vmem:[#allocation51_spill] sm:$0xff]  ;;  %v766_v9 = vld [vmem:[#allocation5 + $0x1090] sm:$0xff] }
 0x509   : > { %v6280_v35 = vpop.f32.mrf.mxu0  ;;  %6471 = vmatmul.mubr.bf16.gmra.mxu0 %v9372_v23  ;;  %v6953_v29 = vpop.f32.mrf.mxu1  ;;  %7144 = vmatmul.mubr.bf16.gmra.mxu1 %v9374_v50  ;;  %v9382_v23 = vcombine.low %v751_v12, %v755_v0  ;;  %v770_v41 = vld [vmem:[#allocation5 + $0x10b0] sm:$0xff]  ;;  %v767_v12 = vld [vmem:[#allocation5 + $0x1098] sm:$0xff] }
 0x50a   : > { %12917 = vst [vmem:[#allocation49_spill] sm:$0xff] %v11226_v38  ;;  %v6281_v51 = vadd.f32 %v6280_v35, %v12918_v3  ;;  %6478 = vmatprep.mubr.bf16.mxu0 %v9381_v2  ;;  %7151 = vmatprep.mubr.bf16.mxu1 %v9383_v21  ;;  %v9391_v3 = vcombine.high %v759_v5, %v763_v53  ;;  %v771_v0 = vld [vmem:[#allocation5 + $0x10b8] sm:$0xff] }
 0x50b   : > { %v6282_v10 = vpop.f32.mrf.mxu0  ;;  %v6955_v34 = vpop.f32.mrf.mxu1 }
 0x50c   : > { %v11229_v18 = vadd.f32 %v6953_v29, %v6281_v51  ;;  %v12922_v10 = vld [vmem:[#allocation52_spill] sm:$0xff] }
 0x50d   : > { %v6283_v8 = vpop.f32.mrf.mxu0  ;;  %v6956_v38 = vpop.f32.mrf.mxu1 }
 0x50e   : > { %12919 = vst [vmem:[#allocation50_spill] sm:$0xff] %v11229_v18  ;;  %v6284_v4 = vadd.f32 %v6283_v8, %v12920_v28 }
 0x50f   : > { %v6285_v35 = vpop.f32.mrf.mxu0  ;;  %v6958_v2 = vpop.f32.mrf.mxu1 }
 0x510   : > { %v11232_v50 = vadd.f32 %v6956_v38, %v6284_v4  ;;  %v7280_v38 = vmul.f32 %v10995_v57, %v10995_v57  ;;  %v9388_v35 = vcombine.low %v758_v42, %v762_v48  ;;  %v12924_v42 = vld [vmem:[#allocation54_spill] sm:$0xff] }
 0x511   : > { %v6288_v21 = vpop.f32.mrf.mxu0  ;;  %6479 = vmatmul.mubr.bf16.gmra.mxu0 %v9380_v63  ;;  %v6961_v29 = vpop.f32.mrf.mxu1  ;;  %7152 = vmatmul.mubr.bf16.gmra.mxu1 %v9382_v23  ;;  %v12923_v63 = vld [vmem:[#allocation53_spill] sm:$0xff]  ;;  %v9397_v23 = vcombine.high %v766_v9, %v770_v41 }
 0x512   : > { %12921 = vst [vmem:[#allocation51_spill] sm:$0xff] %v11232_v50  ;;  %v6289_v51 = vadd.f32 %v6288_v21, %v12922_v10  ;;  %6486 = vmatprep.mubr.bf16.mxu0 %v9389_v32  ;;  %7159 = vmatprep.mubr.bf16.mxu1 %v9391_v3  ;;  %v9390_v10 = vcombine.low %v759_v5, %v763_v53  ;;  %v774_v53 = vld [vmem:[#allocation5 + $0x10d0] sm:$0xff] }
 0x513   : > { %v6290_v34 = vpop.f32.mrf.mxu0  ;;  %v6963_v28 = vpop.f32.mrf.mxu1 }
 0x514   : > { %v6962_v8 = vadd.f32 %v6961_v29, %v6289_v51  ;;  %v9399_v34 = vcombine.high %v767_v12, %v771_v0  ;;  %v7281_v28 = vmul.f32 %v10998_v39, %v10998_v39  ;;  %v7282_v39 = vmul.f32 %v11001_v1, %v11001_v1 }
 0x515   : > { %v6291_v4 = vpop.f32.mrf.mxu0  ;;  %v6964_v21 = vpop.f32.mrf.mxu1  ;;  %v7283_v1 = vmul.f32 %v11004_v59, %v11004_v59  ;;  %v11264_v59 = vld [vmem:[#allocation5 + $0x1138] sm:$0xff] }
 0x516   : > { %v7360_v2 = vmul.f32 %v6962_v8, %v6962_v8  ;;  %v6292_v50 = vadd.f32 %v6291_v4, %v12923_v63  ;;  %v779_v63 = vld [vmem:[#allocation5 + $0x10f8] sm:$0xff] }
 0x517   : > { %v6293_v32 = vpop.f32.mrf.mxu0  ;;  %v6966_v51 = vpop.f32.mrf.mxu1 }
 0x518   : > { %v11238_v3 = vadd.f32 %v7360_v2, %v7280_v38  ;;  %v6965_v18 = vadd.f32 %v6964_v21, %v6292_v50  ;;  %v778_v38 = vld [vmem:[#allocation5 + $0x10f0] sm:$0xff]  ;;  %v9398_v32 = vcombine.low %v767_v12, %v771_v0 }
 0x519   : > { %v6296_v29 = vpop.f32.mrf.mxu0  ;;  %6487 = vmatmul.mubr.bf16.gmra.mxu0 %v9388_v35  ;;  %v6969_v8 = vpop.f32.mrf.mxu1  ;;  %7160 = vmatmul.mubr.bf16.gmra.mxu1 %v9390_v10  ;;  %v775_v35 = vld [vmem:[#allocation5 + $0x10d8] sm:$0xff] }
 0x51a   : > { %10019 = vrsqrt.f32 %v11238_v3  ;;  %v7361_v57 = vmul.f32 %v6965_v18, %v6965_v18  ;;  %v6297_v48 = vadd.f32 %v6296_v29, %v12924_v42  ;;  %6494 = vmatprep.mubr.bf16.mxu0 %v9397_v23  ;;  %7167 = vmatprep.mubr.bf16.mxu1 %v9399_v34  ;;  %v9396_v18 = vcombine.low %v766_v9, %v770_v41  ;;  %v12925_v23 = vld [vmem:[#allocation55_spill] sm:$0xff]  ;;  %v12926_v41 = vld [vmem:[#allocation56_spill] sm:$0xff] }
 0x51b   : > { %v6298_v5 = vpop.f32.mrf.mxu0  ;;  %v6971_v2 = vpop.f32.mrf.mxu1  ;;  %v9405_v29 = vcombine.high %v774_v53, %v778_v38  ;;  %vm7522_vm0 = vcmp.eq.f32.partialorder %v11238_v3, inf  ;;  %vm7524_vm1 = vcmp.eq.f32.partialorder %v11238_v3, 0.0 }
 0x51c   : > { %v11244_v4 = vadd.f32 %v7361_v57, %v7281_v28  ;;  %v6970_v50 = vadd.f32 %v6969_v8, %v6297_v48  ;;  %v9407_v28 = vcombine.high %v775_v35, %v779_v63  ;;  %v11256_v2 = vld [vmem:[#allocation5 + $0x1110] sm:$0xff] }
 0x51d   : > { %v6299_v21 = vpop.f32.mrf.mxu0  ;;  %v6972_v34 = vpop.f32.mrf.mxu1 }
 0x51e   : > { %10021 = vrsqrt.f32 %v11244_v4  ;;  %v7362_v10 = vmul.f32 %v6970_v50, %v6970_v50  ;;  %v6300_v51 = vadd.f32 %v6299_v21, %v12925_v23  ;;  %v11262_v23 = vld [vmem:[#allocation5 + $0x1118] sm:$0xff]  ;;  %vm7529_vm2 = vcmp.eq.f32.partialorder %v11244_v4, inf }
 0x51f   : > { %v6301_v42 = vpop.f32.mrf.mxu0  ;;  %v6974_v8 = vpop.f32.mrf.mxu1  ;;  %vm7531_vm3 = vcmp.eq.f32.partialorder %v11244_v4, 0.0 }
 0x520   : > { %v11250_v57 = vadd.f32 %v7362_v10, %v7282_v39  ;;  %v6973_v48 = vadd.f32 %v6972_v34, %v6300_v51  ;;  %v11258_v39 = vld [vmem:[#allocation5 + $0x1130] sm:$0xff]  ;;  %v7284_v51 = vmul.f32 %v11007_v19, %v11007_v19 }
 0x521   : > { %v6304_v5 = vpop.f32.mrf.mxu0  ;;  %6495 = vmatmul.mubr.bf16.gmra.mxu0 %v9396_v18  ;;  %v6977_v0 = vpop.f32.mrf.mxu1  ;;  %7168 = vmatmul.mubr.bf16.gmra.mxu1 %v9398_v32  ;;  %v9404_v32 = vcombine.low %v774_v53, %v778_v38 }
 0x522   : > { %10023 = vrsqrt.f32 %v11250_v57  ;;  %v7363_v9 = vmul.f32 %v6973_v48, %v6973_v48  ;;  %v6305_v12 = vadd.f32 %v6304_v5, %v12926_v41  ;;  %6502 = vmatprep.mubr.bf16.mxu0 %v9405_v29  ;;  %7175 = vmatprep.mubr.bf16.mxu1 %v9407_v28  ;;  %v9406_v29 = vcombine.low %v775_v35, %v779_v63  ;;  %v12927_v28 = vld [vmem:[#allocation57_spill] sm:$0xff] }
 0x523   : > { %v6306_v50 = vpop.f32.mrf.mxu0  ;;  %v6979_v10 = vpop.f32.mrf.mxu1  ;;  %v9413_v5 = vcombine.high %v11256_v2, %v11258_v39  ;;  %v9415_v41 = vcombine.high %v11262_v23, %v11264_v59  ;;  %v7285_v35 = vmul.f32 %v11010_v47, %v11010_v47  ;;  %v9412_v47 = vcombine.low %v11256_v2, %v11258_v39 }
 0x524   : > { %v11260_v21 = vadd.f32 %v7363_v9, %v7283_v1  ;;  %v6978_v18 = vadd.f32 %v6977_v0, %v6305_v12  ;;  %v12928_v50 = vld [vmem:[#allocation58_spill] sm:$0xff]  ;;  %v7525_v39 = vand.u32 2147483648, %v11238_v3  ;;  %vm7536_vm4 = vcmp.eq.f32.partialorder %v11250_v57, inf }
 0x525   : > { %v6307_v34 = vpop.f32.mrf.mxu0  ;;  %v6980_v8 = vpop.f32.mrf.mxu1  ;;  %vm7538_vm5 = vcmp.eq.f32.partialorder %v11250_v57, 0.0 }
 0x526   : > { %10025 = vrsqrt.f32 %v11260_v21  ;;  %v7364_v42 = vmul.f32 %v6978_v18, %v6978_v18  ;;  %v6308_v48 = vadd.f32 %v6307_v34, %v12927_v28  ;;  %v11281_v34 = vld [vmem:[#allocation5 + $0x1150] sm:$0xff]  ;;  %v7286_v28 = vmul.f32 %v11013_v37, %v11013_v37 }
 0x527   : > { %v10020_v1 = vpop.eup %10019  ;;  %v6309_v9 = vpop.f32.mrf.mxu0  ;;  %vm7543_vm6 = vcmp.eq.f32.partialorder %v11260_v21, inf  ;;  %vm7545_vm7 = vcmp.eq.f32.partialorder %v11260_v21, 0.0 }
 0x528   : > { %v11274_v12 = vadd.f32 %v7364_v42, %v7284_v51  ;;  %v6981_v19 = vadd.f32 %v6980_v8, %v6308_v48  ;;  %v6982_v0 = vpop.f32.mrf.mxu1  ;;  %v7521_v53 = vmul.f32 %v10020_v1, %v11238_v3  ;;  %v11283_v51 = vld [vmem:[#allocation5 + $0x1170] sm:$0xff]  ;;  %v9414_v48 = vcombine.low %v11262_v23, %v11264_v59  ;;  %v11294_v1 = vld [vmem:[#allocation5 + $0x1158] sm:$0xff] }
 0x529   : > { %v6312_v38 = vpop.f32.mrf.mxu0  ;;  %6503 = vmatmul.mubr.bf16.gmra.mxu0 %v9404_v32  ;;  %7176 = vmatmul.mubr.bf16.gmra.mxu1 %v9406_v29  ;;  %v11296_v9 = vld [vmem:[#allocation5 + $0x1178] sm:$0xff]  ;;  %v9421_v2 = vcombine.high %v11281_v34, %v11283_v51 }
 0x52a   : > { %10027 = vrsqrt.f32 %v11274_v12  ;;  %v7365_v63 = vmul.f32 %v6981_v19, %v6981_v19  ;;  %v6313_v18 = vadd.f32 %v6312_v38, %v12928_v50  ;;  %v6985_v10 = vpop.f32.mrf.mxu1  ;;  %6510 = vmatprep.mubr.bf16.mxu0 %v9413_v5  ;;  %7183 = vmatprep.mubr.bf16.mxu1 %v9415_v41  ;;  %v7523_v37 = vsel %vm7522_vm0, %v11238_v3, %v7521_v53  ;;  %v12929_v59 = vld [vmem:[#allocation59_spill] sm:$0xff] }
 0x52b   : > { %v10022_v42 = vpop.eup %10021  ;;  %v6314_v32 = vpop.f32.mrf.mxu0  ;;  %v7532_v53 = vand.u32 2147483648, %v11244_v4  ;;  %v9423_v50 = vcombine.high %v11294_v1, %v11296_v9  ;;  %vm7550_vm8 = vcmp.eq.f32.partialorder %v11274_v12, inf  ;;  %vm7552_vm9 = vcmp.eq.f32.partialorder %v11274_v12, 0.0 }
 0x52c   : > { %v11292_v29 = vadd.f32 %v7365_v63, %v7285_v35  ;;  %v6986_v8 = vadd.f32 %v6985_v10, %v6313_v18  ;;  %v6987_v5 = vpop.f32.mrf.mxu1  ;;  %v7528_v19 = vmul.f32 %v10022_v42, %v11244_v4  ;;  %v11310_v18 = vsel %vm7524_vm1, %v7525_v39, %v7523_v37 }
 0x52d   : > { %v6315_v0 = vpop.f32.mrf.mxu0  ;;  %12930 = vst [vmem:[#allocation52_spill] sm:$0xff] %v11310_v18  ;;  %v7287_v37 = vmul.f32 %v11016_v16, %v11016_v16  ;;  %v9420_v16 = vcombine.low %v11281_v34, %v11283_v51  ;;  %v7539_v51 = vand.u32 2147483648, %v11250_v57  ;;  %v11584_v18 = vld [vmem:[#allocation5 + $0x1310] sm:$0xff] }
 0x52e   : > { %10029 = vrsqrt.f32 %v11292_v29  ;;  %v7366_v23 = vmul.f32 %v6986_v8, %v6986_v8  ;;  %v6316_v41 = vadd.f32 %v6315_v0, %v12929_v59  ;;  %v6988_v38 = vpop.f32.mrf.mxu1  ;;  %v7530_v10 = vsel %vm7529_vm2, %v11244_v4, %v7528_v19  ;;  %v12931_v4 = vld [vmem:[#allocation60_spill] sm:$0xff] }
 0x52f   : > { %v10024_v35 = vpop.eup %10023  ;;  %v6317_v63 = vpop.f32.mrf.mxu0  ;;  %v11317_v5 = vsel %vm7531_vm3, %v7532_v53, %v7530_v10  ;;  %v11338_v10 = vld [vmem:[#allocation5 + $0x1198] sm:$0xff]  ;;  %vm7557_vm10 = vcmp.eq.f32.partialorder %v11292_v29, inf  ;;  %vm7559_vm11 = vcmp.eq.f32.partialorder %v11292_v29, 0.0 }
 0x530   : > { %v11314_v3 = vadd.f32 %v7366_v23, %v7286_v28  ;;  %v6989_v42 = vadd.f32 %v6988_v38, %v6316_v41  ;;  %v6990_v32 = vpop.f32.mrf.mxu1  ;;  %v7535_v8 = vmul.f32 %v10024_v35, %v11250_v57  ;;  %v11325_v23 = vld [vmem:[#allocation5 + $0x1190] sm:$0xff]  ;;  %v9422_v35 = vcombine.low %v11294_v1, %v11296_v9  ;;  %v12932_v9 = vld [vmem:[#allocation61_spill] sm:$0xff] }
 0x531   : > { %v6320_v0 = vpop.f32.mrf.mxu0  ;;  %6511 = vmatmul.mubr.bf16.gmra.mxu0 %v9412_v47  ;;  %7184 = vmatmul.mubr.bf16.gmra.mxu1 %v9414_v48  ;;  %v11327_v41 = vld [vmem:[#allocation5 + $0x11b0] sm:$0xff]  ;;  %v7288_v47 = vmul.f32 %v11019_v56, %v11019_v56 }
 0x532   : > { %10031 = vrsqrt.f32 %v11314_v3  ;;  %v7367_v19 = vmul.f32 %v6989_v42, %v6989_v42  ;;  %v6321_v28 = vadd.f32 %v6320_v0, %v12931_v4  ;;  %v6993_v39 = vpop.f32.mrf.mxu1  ;;  %6518 = vmatprep.mubr.bf16.mxu0 %v9421_v2  ;;  %7191 = vmatprep.mubr.bf16.mxu1 %v9423_v50  ;;  %v11340_v42 = vld [vmem:[#allocation5 + $0x11b8] sm:$0xff]  ;;  %v7537_v56 = vsel %vm7536_vm4, %v11250_v57, %v7535_v8 }
 0x533   : > { %v10026_v38 = vpop.eup %10025  ;;  %v6322_v53 = vpop.f32.mrf.mxu0  ;;  %v9429_v34 = vcombine.high %v11325_v23, %v11327_v41  ;;  %v7546_v8 = vand.u32 2147483648, %v11260_v21  ;;  %vm7564_vm12 = vcmp.eq.f32.partialorder %v11314_v3, inf  ;;  %vm7566_vm13 = vcmp.eq.f32.partialorder %v11314_v3, 0.0 }
 0x534   : > { %v11336_v48 = vadd.f32 %v7367_v19, %v7287_v37  ;;  %v6994_v2 = vadd.f32 %v6993_v39, %v6321_v28  ;;  %v6995_v63 = vpop.f32.mrf.mxu1  ;;  %v7542_v32 = vmul.f32 %v10026_v38, %v11260_v21  ;;  %v9431_v28 = vcombine.high %v11338_v10, %v11340_v42 }
 0x535   : > { %v6323_v0 = vpop.f32.mrf.mxu0  ;;  %v11354_v39 = vsel %vm7538_vm5, %v7539_v51, %v7537_v56  ;;  %v7289_v56 = vmul.f32 %v11022_v27, %v11022_v27  ;;  %v9428_v27 = vcombine.low %v11325_v23, %v11327_v41  ;;  %v7553_v41 = vand.u32 2147483648, %v11274_v12 }
 0x536   : > { %10033 = vrsqrt.f32 %v11336_v48  ;;  %v7368_v1 = vmul.f32 %v6994_v2, %v6994_v2  ;;  %v6324_v50 = vadd.f32 %v6323_v0, %v12932_v9  ;;  %v6996_v37 = vpop.f32.mrf.mxu1  ;;  %v7544_v38 = vsel %vm7543_vm6, %v11260_v21, %v7542_v32  ;;  %v12933_v21 = vld [vmem:[#allocation62_spill] sm:$0xff] }
 0x537   : > { %v10028_v19 = vpop.eup %10027  ;;  %v6325_v4 = vpop.f32.mrf.mxu0  ;;  %v11361_v0 = vsel %vm7545_vm7, %v7546_v8, %v7544_v38  ;;  %vm7571_vm14 = vcmp.eq.f32.partialorder %v11336_v48, inf  ;;  %vm7573_vm15 = vcmp.eq.f32.partialorder %v11336_v48, 0.0 }
 0x538   : > { %v11358_v57 = vadd.f32 %v7368_v1, %v7288_v47  ;;  %v6997_v53 = vadd.f32 %v6996_v37, %v6324_v50  ;;  %v6998_v2 = vpop.f32.mrf.mxu1  ;;  %v7549_v63 = vmul.f32 %v10028_v19, %v11274_v12  ;;  %v11369_v1 = vld [vmem:[#allocation5 + $0x11d0] sm:$0xff]  ;;  %v9430_v19 = vcombine.low %v11338_v10, %v11340_v42  ;;  %v12934_v42 = vld [vmem:[#allocation63_spill] sm:$0xff] }
 0x539   : > { %v6328_v9 = vpop.f32.mrf.mxu0  ;;  %6519 = vmatmul.mubr.bf16.gmra.mxu0 %v9420_v16  ;;  %7192 = vmatmul.mubr.bf16.gmra.mxu1 %v9422_v35  ;;  %v11371_v50 = vld [vmem:[#allocation5 + $0x11f0] sm:$0xff]  ;;  %v7290_v16 = vmul.f32 %v11025_v13, %v11025_v13  ;;  %v11384_v2 = vld [vmem:[#allocation5 + $0x11f8] sm:$0xff] }
 0x53a   : > { %10035 = vrsqrt.f32 %v11358_v57  ;;  %v7369_v32 = vmul.f32 %v6997_v53, %v6997_v53  ;;  %v6329_v47 = vadd.f32 %v6328_v9, %v12933_v21  ;;  %v7001_v51 = vpop.f32.mrf.mxu1  ;;  %6526 = vmatprep.mubr.bf16.mxu0 %v9429_v34  ;;  %7199 = vmatprep.mubr.bf16.mxu1 %v9431_v28  ;;  %v11382_v53 = vld [vmem:[#allocation5 + $0x11d8] sm:$0xff]  ;;  %v7551_v13 = vsel %vm7550_vm8, %v11274_v12, %v7549_v63 }
 0x53b   : > { %v10030_v37 = vpop.eup %10029  ;;  %v6330_v8 = vpop.f32.mrf.mxu0  ;;  %v9437_v23 = vcombine.high %v11369_v1, %v11371_v50  ;;  %v7560_v63 = vand.u32 2147483648, %v11292_v29  ;;  %vm7578_vm0 = vcmp.eq.f32.partialorder %v11358_v57, inf  ;;  %vm7580_vm1 = vcmp.eq.f32.partialorder %v11358_v57, 0.0 }
 0x53c   : > { %v11380_v35 = vadd.f32 %v7369_v32, %v7289_v56  ;;  %v7002_v34 = vadd.f32 %v7001_v51, %v6329_v47  ;;  %v7003_v38 = vpop.f32.mrf.mxu1  ;;  %v7556_v9 = vmul.f32 %v10030_v37, %v11292_v29  ;;  %v9439_v51 = vcombine.high %v11382_v53, %v11384_v2 }
 0x53d   : > { %v6331_v21 = vpop.f32.mrf.mxu0  ;;  %v11398_v37 = vsel %vm7552_vm9, %v7553_v41, %v7551_v13  ;;  %v7291_v13 = vmul.f32 %v11028_v52, %v11028_v52  ;;  %v9436_v52 = vcombine.low %v11369_v1, %v11371_v50  ;;  %v7567_v50 = vand.u32 2147483648, %v11314_v3 }
 0x53e   : > { %10037 = vrsqrt.f32 %v11380_v35  ;;  %v7370_v10 = vmul.f32 %v7002_v34, %v7002_v34  ;;  %v6332_v28 = vadd.f32 %v6331_v21, %v12934_v42  ;;  %v7004_v56 = vpop.f32.mrf.mxu1  ;;  %v7558_v8 = vsel %vm7557_vm10, %v11292_v29, %v7556_v9  ;;  %v12935_v29 = vld [vmem:[#allocation64_spill] sm:$0xff] }
 0x53f   : > { %v10032_v32 = vpop.eup %10031  ;;  %v6333_v47 = vpop.f32.mrf.mxu0  ;;  %v11405_v42 = vsel %vm7559_vm11, %v7560_v63, %v7558_v8  ;;  %v11426_v8 = vld [vmem:[#allocation5 + $0x1218] sm:$0xff]  ;;  %vm7585_vm2 = vcmp.eq.f32.partialorder %v11380_v35, inf  ;;  %vm7587_vm3 = vcmp.eq.f32.partialorder %v11380_v35, 0.0 }
 0x540   : > { %v11402_v12 = vadd.f32 %v7370_v10, %v7290_v16  ;;  %v7005_v38 = vadd.f32 %v7004_v56, %v6332_v28  ;;  %v7006_v34 = vpop.f32.mrf.mxu1  ;;  %v7563_v21 = vmul.f32 %v10032_v32, %v11314_v3  ;;  %v11413_v10 = vld [vmem:[#allocation5 + $0x1210] sm:$0xff]  ;;  %v9438_v32 = vcombine.low %v11382_v53, %v11384_v2  ;;  %v12936_v2 = vld [vmem:[#allocation65_spill] sm:$0xff] }
 0x541   : > { %v6336_v59 = vpop.f32.mrf.mxu0  ;;  %6527 = vmatmul.mubr.bf16.gmra.mxu0 %v9428_v27  ;;  %7200 = vmatmul.mubr.bf16.gmra.mxu1 %v9430_v19  ;;  %v11415_v28 = vld [vmem:[#allocation5 + $0x1230] sm:$0xff]  ;;  %v7292_v27 = vmul.f32 %v11031_v33, %v11031_v33 }
 0x542   : > { %10039 = vrsqrt.f32 %v11402_v12  ;;  %v7371_v9 = vmul.f32 %v7005_v38, %v7005_v38  ;;  %v6337_v16 = vadd.f32 %v6336_v59, %v12935_v29  ;;  %v7009_v41 = vpop.f32.mrf.mxu1  ;;  %6534 = vmatprep.mubr.bf16.mxu0 %v9437_v23  ;;  %7207 = vmatprep.mubr.bf16.mxu1 %v9439_v51  ;;  %v11428_v38 = vld [vmem:[#allocation5 + $0x1238] sm:$0xff]  ;;  %v7565_v33 = vsel %vm7564_vm12, %v11314_v3, %v7563_v21 }
 0x543   : > { %v10034_v56 = vpop.eup %10033  ;;  %v6338_v63 = vpop.f32.mrf.mxu0  ;;  %v9445_v1 = vcombine.high %v11413_v10, %v11415_v28  ;;  %v7574_v21 = vand.u32 2147483648, %v11336_v48  ;;  %vm7592_vm4 = vcmp.eq.f32.partialorder %v11402_v12, inf  ;;  %vm7594_vm5 = vcmp.eq.f32.partialorder %v11402_v12, 0.0 }
 0x544   : > { %v11424_v59 = vadd.f32 %v7371_v9, %v7291_v13  ;;  %v7010_v19 = vadd.f32 %v7009_v41, %v6337_v16  ;;  %v7011_v23 = vpop.f32.mrf.mxu1  ;;  %v7570_v34 = vmul.f32 %v10034_v56, %v11336_v48  ;;  %v9447_v41 = vcombine.high %v11426_v8, %v11428_v38 }
 0x545   : > { %v6339_v29 = vpop.f32.mrf.mxu0  ;;  %v11442_v56 = vsel %vm7566_vm13, %v7567_v50, %v7565_v33  ;;  %v7293_v33 = vmul.f32 %v11034_v7, %v11034_v7  ;;  %v9444_v7 = vcombine.low %v11413_v10, %v11415_v28  ;;  %v7581_v28 = vand.u32 2147483648, %v11358_v57 }
 0x546   : > { %10041 = vrsqrt.f32 %v11424_v59  ;;  %v7372_v53 = vmul.f32 %v7010_v19, %v7010_v19  ;;  %v6340_v51 = vadd.f32 %v6339_v29, %v12936_v2  ;;  %v7012_v13 = vpop.f32.mrf.mxu1  ;;  %v7572_v63 = vsel %vm7571_vm14, %v11336_v48, %v7570_v34  ;;  %v12937_v48 = vld [vmem:[#allocation66_spill] sm:$0xff] }
 0x547   : > { %v10036_v9 = vpop.eup %10035  ;;  %v6341_v16 = vpop.f32.mrf.mxu0  ;;  %v11449_v2 = vsel %vm7573_vm15, %v7574_v21, %v7572_v63  ;;  %v11470_v63 = vld [vmem:[#allocation5 + $0x1258] sm:$0xff]  ;;  %vm7599_vm6 = vcmp.eq.f32.partialorder %v11424_v59, inf  ;;  %vm7601_vm7 = vcmp.eq.f32.partialorder %v11424_v59, 0.0 }
 0x548   : > { %v11446_v3 = vadd.f32 %v7372_v53, %v7292_v27  ;;  %v7013_v23 = vadd.f32 %v7012_v13, %v6340_v51  ;;  %v7014_v19 = vpop.f32.mrf.mxu1  ;;  %v7577_v29 = vmul.f32 %v10036_v9, %v11358_v57  ;;  %v11457_v53 = vld [vmem:[#allocation5 + $0x1250] sm:$0xff]  ;;  %v9446_v9 = vcombine.low %v11426_v8, %v11428_v38  ;;  %v12938_v38 = vld [vmem:[#allocation67_spill] sm:$0xff] }
 0x549   : > { %v6344_v4 = vpop.f32.mrf.mxu0  ;;  %6535 = vmatmul.mubr.bf16.gmra.mxu0 %v9436_v52  ;;  %7208 = vmatmul.mubr.bf16.gmra.mxu1 %v9438_v32  ;;  %v11459_v51 = vld [vmem:[#allocation5 + $0x1270] sm:$0xff]  ;;  %v7294_v52 = vmul.f32 %v11037_v54, %v11037_v54 }
 0x54a   : > { %10043 = vrsqrt.f32 %v11446_v3  ;;  %v7373_v34 = vmul.f32 %v7013_v23, %v7013_v23  ;;  %v6345_v27 = vadd.f32 %v6344_v4, %v12937_v48  ;;  %v7017_v50 = vpop.f32.mrf.mxu1  ;;  %6542 = vmatprep.mubr.bf16.mxu0 %v9445_v1  ;;  %7215 = vmatprep.mubr.bf16.mxu1 %v9447_v41  ;;  %v11472_v23 = vld [vmem:[#allocation5 + $0x1278] sm:$0xff]  ;;  %v7579_v54 = vsel %vm7578_vm0, %v11358_v57, %v7577_v29  ;;  %v11536_v16 = vld [vmem:[#allocation5 + $0x12d0] sm:$0xff] }
 0x54b   : > { %v10038_v13 = vpop.eup %10037  ;;  %v6346_v21 = vpop.f32.mrf.mxu0  ;;  %v9453_v10 = vcombine.high %v11457_v53, %v11459_v51  ;;  %v7588_v29 = vand.u32 2147483648, %v11380_v35  ;;  %vm7606_vm8 = vcmp.eq.f32.partialorder %v11446_v3, inf  ;;  %vm7608_vm9 = vcmp.eq.f32.partialorder %v11446_v3, 0.0 }
 0x54c   : > { %v11468_v4 = vadd.f32 %v7373_v34, %v7293_v33  ;;  %v7018_v32 = vadd.f32 %v7017_v50, %v6345_v27  ;;  %v7019_v1 = vpop.f32.mrf.mxu1  ;;  %v7584_v19 = vmul.f32 %v10038_v13, %v11380_v35  ;;  %v9455_v50 = vcombine.high %v11470_v63, %v11472_v23 }
 0x54d   : > { %v6347_v48 = vpop.f32.mrf.mxu0  ;;  %v11486_v13 = vsel %vm7580_vm1, %v7581_v28, %v7579_v54  ;;  %v7295_v54 = vmul.f32 %v11040_v25, %v11040_v25  ;;  %v9452_v25 = vcombine.low %v11457_v53, %v11459_v51  ;;  %v7595_v51 = vand.u32 2147483648, %v11402_v12 }
 0x54e   : > { %10045 = vrsqrt.f32 %v11468_v4  ;;  %v7374_v8 = vmul.f32 %v7018_v32, %v7018_v32  ;;  %v6348_v41 = vadd.f32 %v6347_v48, %v12938_v38  ;;  %v7020_v33 = vpop.f32.mrf.mxu1  ;;  %v7586_v21 = vsel %vm7585_vm2, %v11380_v35, %v7584_v19  ;;  %v12939_v35 = vld [vmem:[#allocation68_spill] sm:$0xff] }
 0x54f   : > { %v10040_v34 = vpop.eup %10039  ;;  %v6349_v27 = vpop.f32.mrf.mxu0  ;;  %v11493_v38 = vsel %vm7587_vm3, %v7588_v29, %v7586_v21  ;;  %v11514_v21 = vld [vmem:[#allocation5 + $0x1298] sm:$0xff]  ;;  %vm7613_vm10 = vcmp.eq.f32.partialorder %v11468_v4, inf  ;;  %vm7615_vm11 = vcmp.eq.f32.partialorder %v11468_v4, 0.0 }
 0x550   : > { %v11490_v57 = vadd.f32 %v7374_v8, %v7294_v52  ;;  %v7021_v1 = vadd.f32 %v7020_v33, %v6348_v41  ;;  %v7022_v32 = vpop.f32.mrf.mxu1  ;;  %v7591_v48 = vmul.f32 %v10040_v34, %v11402_v12  ;;  %v11501_v8 = vld [vmem:[#allocation5 + $0x1290] sm:$0xff]  ;;  %v9454_v34 = vcombine.low %v11470_v63, %v11472_v23  ;;  %v12940_v23 = vld [vmem:[#allocation69_spill] sm:$0xff] }
 0x551   : > { %v6352_v47 = vpop.f32.mrf.mxu0  ;;  %6543 = vmatmul.mubr.bf16.gmra.mxu0 %v9444_v7  ;;  %7216 = vmatmul.mubr.bf16.gmra.mxu1 %v9446_v9  ;;  %v11503_v41 = vld [vmem:[#allocation5 + $0x12b0] sm:$0xff]  ;;  %v7296_v7 = vmul.f32 %v11043_v14, %v11043_v14 }
 0x552   : > { %10047 = vrsqrt.f32 %v11490_v57  ;;  %v7375_v19 = vmul.f32 %v7021_v1, %v7021_v1  ;;  %v6353_v52 = vadd.f32 %v6352_v47, %v12939_v35  ;;  %v7025_v28 = vpop.f32.mrf.mxu1  ;;  %6550 = vmatprep.mubr.bf16.mxu0 %v9453_v10  ;;  %7223 = vmatprep.mubr.bf16.mxu1 %v9455_v50  ;;  %v11516_v1 = vld [vmem:[#allocation5 + $0x12b8] sm:$0xff]  ;;  %v7593_v14 = vsel %vm7592_vm4, %v11402_v12, %v7591_v48 }
 0x553   : > { %v10042_v33 = vpop.eup %10041  ;;  %v6354_v29 = vpop.f32.mrf.mxu0  ;;  %v9461_v53 = vcombine.high %v11501_v8, %v11503_v41  ;;  %v7602_v48 = vand.u32 2147483648, %v11424_v59  ;;  %vm7620_vm12 = vcmp.eq.f32.partialorder %v11490_v57, inf  ;;  %vm7622_vm13 = vcmp.eq.f32.partialorder %v11490_v57, 0.0 }
 0x554   : > { %v11512_v47 = vadd.f32 %v7375_v19, %v7295_v54  ;;  %v7026_v9 = vadd.f32 %v7025_v28, %v6353_v52  ;;  %v7027_v10 = vpop.f32.mrf.mxu1  ;;  %v7598_v32 = vmul.f32 %v10042_v33, %v11424_v59  ;;  %v9463_v28 = vcombine.high %v11514_v21, %v11516_v1 }
 0x555   : > { %v6355_v35 = vpop.f32.mrf.mxu0  ;;  %v11530_v33 = vsel %vm7594_vm5, %v7595_v51, %v7593_v14  ;;  %v7297_v14 = vmul.f32 %v11046_v43, %v11046_v43 }
 0x556   : > { %10049 = vrsqrt.f32 %v11512_v47  ;;  %v7376_v63 = vmul.f32 %v7026_v9, %v7026_v9  ;;  %v6356_v50 = vadd.f32 %v6355_v35, %v12940_v23  ;;  %v7028_v54 = vpop.f32.mrf.mxu1  ;;  %v7600_v29 = vsel %vm7599_vm6, %v11424_v59, %v7598_v32  ;;  %v11538_v35 = vld [vmem:[#allocation5 + $0x12f0] sm:$0xff] }
 0x557   : > { %v10044_v19 = vpop.eup %10043  ;;  %v6357_v52 = vpop.f32.mrf.mxu0  ;;  %v7298_v32 = vmul.f32 %v11049_v36, %v11049_v36  ;;  %v9462_v36 = vcombine.low %v11514_v21, %v11516_v1  ;;  %vm7627_vm14 = vcmp.eq.f32.partialorder %v11512_v47, inf  ;;  %vm7629_vm15 = vcmp.eq.f32.partialorder %v11512_v47, 0.0 }
 0x558   : > { %v11534_v12 = vadd.f32 %v7376_v63, %v7296_v7  ;;  %v7029_v10 = vadd.f32 %v7028_v54, %v6356_v50  ;;  %v7030_v9 = vpop.f32.mrf.mxu1  ;;  %v7605_v23 = vmul.f32 %v10044_v19, %v11446_v3  ;;  %v11541_v52 = vsel %vm7601_vm7, %v7602_v48, %v7600_v29  ;;  %v12941_v63 = vld [vmem:[#allocation70_spill] sm:$0xff] }
 0x559   : > { %v6360_v51 = vpop.f32.mrf.mxu0  ;;  %6551 = vmatmul.mubr.bf16.gmra.mxu0 %v9452_v25  ;;  %7224 = vmatmul.mubr.bf16.gmra.mxu1 %v9454_v34  ;;  %v9460_v48 = vcombine.low %v11501_v8, %v11503_v41  ;;  %v9469_v25 = vcombine.high %v11536_v16, %v11538_v35  ;;  %v11561_v9 = vld [vmem:[#allocation5 + $0x12d8] sm:$0xff] }
 0x55a   : > { %10051 = vrsqrt.f32 %v11534_v12  ;;  %v7377_v7 = vmul.f32 %v7029_v10, %v7029_v10  ;;  %v6361_v50 = vadd.f32 %v6360_v51, %v12941_v63  ;;  %v7033_v54 = vpop.f32.mrf.mxu1  ;;  %6558 = vmatprep.mubr.bf16.mxu0 %v9461_v53  ;;  %7231 = vmatprep.mubr.bf16.mxu1 %v9463_v28  ;;  %v11563_v8 = vld [vmem:[#allocation5 + $0x12f8] sm:$0xff]  ;;  %v7607_v41 = vsel %vm7606_vm8, %v11446_v3, %v7605_v23 }
 0x55b   : > { %v10046_v43 = vpop.eup %10045  ;;  %v6362_v19 = vpop.f32.mrf.mxu0  ;;  %v7609_v53 = vand.u32 2147483648, %v11446_v3  ;;  %v7616_v28 = vand.u32 2147483648, %v11468_v4  ;;  %v12942_v51 = vld [vmem:[#allocation71_spill] sm:$0xff]  ;;  %v7299_v3 = vmul.f32 %v11052_v62, %v11052_v62  ;;  %v9470_v62 = vcombine.low %v11561_v9, %v11563_v8 }
 0x55c   : > { %v11559_v29 = vadd.f32 %v7377_v7, %v7297_v14  ;;  %v7034_v34 = vadd.f32 %v7033_v54, %v6361_v50  ;;  %v7035_v10 = vpop.f32.mrf.mxu1  ;;  %v7612_v21 = vmul.f32 %v10046_v43, %v11468_v4  ;;  %v9471_v43 = vcombine.high %v11561_v9, %v11563_v8 }
 0x55d   : > { %v6363_v1 = vpop.f32.mrf.mxu0  ;;  %v11578_v19 = vsel %vm7608_vm9, %v7609_v53, %v7607_v41  ;;  %v7300_v41 = vmul.f32 %v11055_v60, %v11055_v60  ;;  %v7623_v8 = vand.u32 2147483648, %v11490_v57  ;;  %vm7634_vm0 = vcmp.eq.f32.partialorder %v11534_v12, inf }
 0x55e   : > { %10053 = vrsqrt.f32 %v11559_v29  ;;  %v7378_v14 = vmul.f32 %v7034_v34, %v7034_v34  ;;  %v6364_v7 = vadd.f32 %v6363_v1, %v12942_v51  ;;  %v7036_v63 = vpop.f32.mrf.mxu1  ;;  %v7614_v50 = vsel %vm7613_vm10, %v11468_v4, %v7612_v21  ;;  %v11586_v1 = vld [vmem:[#allocation5 + $0x1330] sm:$0xff] }
 0x55f   : > { %v10048_v23 = vpop.eup %10047  ;;  %v6365_v54 = vpop.f32.mrf.mxu0  ;;  %v11580_v10 = vsel %vm7615_vm11, %v7616_v28, %v7614_v50  ;;  %v12943_v28 = vld [vmem:[#allocation72_spill] sm:$0xff]  ;;  %v9477_v60 = vcombine.high %v11584_v18, %v11586_v1  ;;  %vm7636_vm1 = vcmp.eq.f32.partialorder %v11534_v12, 0.0  ;;  %vm7641_vm2 = vcmp.eq.f32.partialorder %v11559_v29, inf }
 0x560   : > { %v11582_v27 = vadd.f32 %v7378_v14, %v7298_v32  ;;  %v7037_v59 = vadd.f32 %v7036_v63, %v6364_v7  ;;  %v7038_v34 = vpop.f32.mrf.mxu1  ;;  %v7619_v4 = vmul.f32 %v10048_v23, %v11490_v57  ;;  %v8134_v21 = vpack.c.bf16 %v11580_v10, %v11578_v19  ;;  %v11607_v23 = vld [vmem:[#allocation5 + $0x1318] sm:$0xff] }
 0x561   : > { %v6368_v53 = vpop.f32.mrf.mxu0  ;;  %6559 = vmatmul.mubr.bf16.gmra.mxu0 %v9460_v48  ;;  %7232 = vmatmul.mubr.bf16.gmra.mxu1 %v9462_v36  ;;  %v9468_v7 = vcombine.low %v11536_v16, %v11538_v35  ;;  %v11609_v16 = vld [vmem:[#allocation5 + $0x1338] sm:$0xff]  ;;  %v7630_v54 = vand.u32 2147483648, %v11512_v47  ;;  %v12944_v34 = vld [vmem:[#allocation73_spill] sm:$0xff]  ;;  %vm7643_vm3 = vcmp.eq.f32.partialorder %v11559_v29, 0.0 }
 0x562   : > { %10055 = vrsqrt.f32 %v11582_v27  ;;  %v7379_v32 = vmul.f32 %v7037_v59, %v7037_v59  ;;  %v6369_v14 = vadd.f32 %v6368_v53, %v12943_v28  ;;  %v7041_v51 = vpop.f32.mrf.mxu1  ;;  %6566 = vmatprep.mubr.bf16.mxu0 %v9469_v25  ;;  %7239 = vmatprep.mubr.bf16.mxu1 %v9471_v43  ;;  %v7621_v35 = vsel %vm7620_vm12, %v11490_v57, %v7619_v4 }
 0x563   : > { %v10050_v63 = vpop.eup %10049  ;;  %v6370_v50 = vpop.f32.mrf.mxu0  ;;  %vm7648_vm4 = vcmp.eq.f32.partialorder %v11582_v27, inf  ;;  %vm7650_vm5 = vcmp.eq.f32.partialorder %v11582_v27, 0.0 }
 0x564   : > { %v11605_v59 = vadd.f32 %v7379_v32, %v7299_v3  ;;  %v7042_v48 = vadd.f32 %v7041_v51, %v6369_v14  ;;  %v7043_v36 = vpop.f32.mrf.mxu1  ;;  %v7626_v25 = vmul.f32 %v10050_v63, %v11512_v47  ;;  %v9479_v14 = vcombine.high %v11607_v23, %v11609_v16 }
 0x565   : > { %v6371_v9 = vpop.f32.mrf.mxu0  ;;  %v11624_v51 = vsel %vm7622_vm13, %v7623_v8, %v7621_v35  ;;  %v12945_v35 = vld [vmem:[#allocation74_spill] sm:$0xff] }
 0x566   : > { %10057 = vrsqrt.f32 %v11605_v59  ;;  %v7380_v43 = vmul.f32 %v7042_v48, %v7042_v48  ;;  %v6372_v3 = vadd.f32 %v6371_v9, %v12944_v34  ;;  %v7044_v53 = vpop.f32.mrf.mxu1  ;;  %v7628_v32 = vsel %vm7627_vm14, %v11512_v47, %v7626_v25 }
 0x567   : > { %v10052_v4 = vpop.eup %10051  ;;  %v6373_v28 = vpop.f32.mrf.mxu0  ;;  %v11626_v63 = vsel %vm7629_vm15, %v7630_v54, %v7628_v32  ;;  %v7301_v34 = vmul.f32 %v11058_v20, %v11058_v20  ;;  %v9476_v20 = vcombine.low %v11584_v18, %v11586_v1  ;;  %v9478_v32 = vcombine.low %v11607_v23, %v11609_v16  ;;  %v12946_v16 = vld [vmem:[#allocation75_spill] sm:$0xff] }
 0x568   : > { %v11628_v50 = vadd.f32 %v7380_v43, %v7300_v41  ;;  %v7045_v36 = vadd.f32 %v7044_v53, %v6372_v3  ;;  %v7046_v48 = vpop.f32.mrf.mxu1  ;;  %v8135_v9 = vpack.c.bf16 %v11626_v63, %v11624_v51  ;;  %v7633_v47 = vmul.f32 %v10052_v4, %v11534_v12  ;;  %v11637_v41 = vld [vmem:[#allocation5 + $0x1350] sm:$0xff]  ;;  %v11650_v28 = vld [vmem:[#allocation5 + $0x1358] sm:$0xff] }
 0x569   : > { %v6376_v25 = vpop.f32.mrf.mxu0  ;;  %6567 = vmatmul.mubr.bf16.gmra.mxu0 %v9468_v7  ;;  %7240 = vmatmul.mubr.bf16.gmra.mxu1 %v9470_v62  ;;  %v11639_v43 = vld [vmem:[#allocation5 + $0x1370] sm:$0xff]  ;;  %v7302_v53 = vmul.f32 %v11061_v24, %v11061_v24  ;;  %v7637_v1 = vand.u32 2147483648, %v11534_v12  ;;  %vm7655_vm6 = vcmp.eq.f32.partialorder %v11605_v59, inf  ;;  %vm7657_vm7 = vcmp.eq.f32.partialorder %v11605_v59, 0.0 }
 0x56a   : > { %10059 = vrsqrt.f32 %v11628_v50  ;;  %v7381_v57 = vmul.f32 %v7045_v36, %v7045_v36  ;;  %v6377_v8 = vadd.f32 %v6376_v25, %v12945_v35  ;;  %v7049_v54 = vpop.f32.mrf.mxu1  ;;  %6574 = vmatprep.mubr.bf16.mxu0 %v9477_v60  ;;  %7247 = vmatprep.mubr.bf16.mxu1 %v9479_v14  ;;  %v11652_v36 = vld [vmem:[#allocation5 + $0x1378] sm:$0xff]  ;;  %v7635_v24 = vsel %vm7634_vm0, %v11534_v12, %v7633_v47 }
 0x56b   : > { %v10054_v3 = vpop.eup %10053  ;;  %v6378_v7 = vpop.f32.mrf.mxu0  ;;  %v9485_v18 = vcombine.high %v11637_v41, %v11639_v43  ;;  %v7644_v47 = vand.u32 2147483648, %v11559_v29  ;;  %vm7662_vm8 = vcmp.eq.f32.partialorder %v11628_v50, inf  ;;  %vm7664_vm9 = vcmp.eq.f32.partialorder %v11628_v50, 0.0 }
 0x56c   : > { %v11648_v62 = vadd.f32 %v7381_v57, %v7301_v34  ;;  %v7050_v60 = vadd.f32 %v7049_v54, %v6377_v8  ;;  %v7051_v4 = vpop.f32.mrf.mxu1  ;;  %v7640_v48 = vmul.f32 %v10054_v3, %v11559_v29  ;;  %v9487_v8 = vcombine.high %v11650_v28, %v11652_v36 }
 0x56d   : > { %v6379_v25 = vpop.f32.mrf.mxu0  ;;  %v11666_v54 = vsel %vm7636_vm1, %v7637_v1, %v7635_v24  ;;  %v7303_v24 = vmul.f32 %v11064_v40, %v11064_v40  ;;  %v9484_v40 = vcombine.low %v11637_v41, %v11639_v43  ;;  %v7651_v43 = vand.u32 2147483648, %v11582_v27 }
 0x56e   : > { %10061 = vrsqrt.f32 %v11648_v62  ;;  %v7382_v23 = vmul.f32 %v7050_v60, %v7050_v60  ;;  %v6380_v14 = vadd.f32 %v6379_v25, %v12946_v16  ;;  %v7052_v34 = vpop.f32.mrf.mxu1  ;;  %v7642_v3 = vsel %vm7641_vm2, %v11559_v29, %v7640_v48  ;;  %v12947_v29 = vld [vmem:[#allocation76_spill] sm:$0xff] }
 0x56f   : > { %v10056_v57 = vpop.eup %10055  ;;  %v6381_v35 = vpop.f32.mrf.mxu0  ;;  %v11673_v25 = vsel %vm7643_vm3, %v7644_v47, %v7642_v3  ;;  %vm7669_vm10 = vcmp.eq.f32.partialorder %v11648_v62, inf  ;;  %vm7671_vm11 = vcmp.eq.f32.partialorder %v11648_v62, 0.0 }
 0x570   : > { %v11670_v12 = vadd.f32 %v7382_v23, %v7302_v53  ;;  %v7053_v7 = vadd.f32 %v7052_v34, %v6380_v14  ;;  %v7054_v60 = vpop.f32.mrf.mxu1  ;;  %v7647_v4 = vmul.f32 %v10056_v57, %v11582_v27  ;;  %v11681_v23 = vld [vmem:[#allocation5 + $0x1390] sm:$0xff]  ;;  %v9486_v57 = vcombine.low %v11650_v28, %v11652_v36  ;;  %v12948_v36 = vld [vmem:[#allocation77_spill] sm:$0xff] }
 0x571   : > { %v6384_v16 = vpop.f32.mrf.mxu0  ;;  %6575 = vmatmul.mubr.bf16.gmra.mxu0 %v9476_v20  ;;  %7248 = vmatmul.mubr.bf16.gmra.mxu1 %v9478_v32  ;;  %v11683_v14 = vld [vmem:[#allocation5 + $0x13b0] sm:$0xff]  ;;  %v7304_v20 = vmul.f32 %v11067_v49, %v11067_v49  ;;  %v11696_v60 = vld [vmem:[#allocation5 + $0x13b8] sm:$0xff] }
 0x572   : > { %10063 = vrsqrt.f32 %v11670_v12  ;;  %v7383_v48 = vmul.f32 %v7053_v7, %v7053_v7  ;;  %v6385_v53 = vadd.f32 %v6384_v16, %v12947_v29  ;;  %v7057_v1 = vpop.f32.mrf.mxu1  ;;  %6582 = vmatprep.mubr.bf16.mxu0 %v9485_v18  ;;  %7255 = vmatprep.mubr.bf16.mxu1 %v9487_v8  ;;  %v11694_v7 = vld [vmem:[#allocation5 + $0x1398] sm:$0xff]  ;;  %v7649_v49 = vsel %vm7648_vm4, %v11582_v27, %v7647_v4 }
 0x573   : > { %v10058_v34 = vpop.eup %10057  ;;  %v6386_v47 = vpop.f32.mrf.mxu0  ;;  %v9493_v41 = vcombine.high %v11681_v23, %v11683_v14  ;;  %v7658_v4 = vand.u32 2147483648, %v11605_v59  ;;  %vm7676_vm12 = vcmp.eq.f32.partialorder %v11670_v12, inf  ;;  %vm7678_vm13 = vcmp.eq.f32.partialorder %v11670_v12, 0.0 }
 0x574   : > { %v11692_v32 = vadd.f32 %v7383_v48, %v7303_v24  ;;  %v7058_v18 = vadd.f32 %v7057_v1, %v6385_v53  ;;  %v7059_v3 = vpop.f32.mrf.mxu1  ;;  %v7654_v16 = vmul.f32 %v10058_v34, %v11605_v59  ;;  %v9495_v1 = vcombine.high %v11694_v7, %v11696_v60 }
 0x575   : > { %v6387_v29 = vpop.f32.mrf.mxu0  ;;  %v11710_v34 = vsel %vm7650_vm5, %v7651_v43, %v7649_v49  ;;  %v7305_v49 = vmul.f32 %v11070_v61, %v11070_v61  ;;  %v9492_v61 = vcombine.low %v11681_v23, %v11683_v14  ;;  %v7665_v14 = vand.u32 2147483648, %v11628_v50 }
 0x576   : > { %10065 = vrsqrt.f32 %v11692_v32  ;;  %v7384_v28 = vmul.f32 %v7058_v18, %v7058_v18  ;;  %v6388_v8 = vadd.f32 %v6387_v29, %v12948_v36  ;;  %v7060_v24 = vpop.f32.mrf.mxu1  ;;  %v7656_v47 = vsel %vm7655_vm6, %v11605_v59, %v7654_v16  ;;  %v12949_v59 = vld [vmem:[#allocation78_spill] sm:$0xff] }
 0x577   : > { %v10060_v48 = vpop.eup %10059  ;;  %v6389_v53 = vpop.f32.mrf.mxu0  ;;  %v11717_v36 = vsel %vm7657_vm7, %v7658_v4, %v7656_v47  ;;  %v11738_v47 = vld [vmem:[#allocation5 + $0x13d8] sm:$0xff]  ;;  %vm7683_vm14 = vcmp.eq.f32.partialorder %v11692_v32, inf  ;;  %vm7685_vm15 = vcmp.eq.f32.partialorder %v11692_v32, 0.0 }
 0x578   : > { %v11714_v27 = vadd.f32 %v7384_v28, %v7304_v20  ;;  %v7061_v3 = vadd.f32 %v7060_v24, %v6388_v8  ;;  %v7062_v18 = vpop.f32.mrf.mxu1  ;;  %v7661_v29 = vmul.f32 %v10060_v48, %v11628_v50  ;;  %v11725_v28 = vld [vmem:[#allocation5 + $0x13d0] sm:$0xff]  ;;  %v9494_v48 = vcombine.low %v11694_v7, %v11696_v60  ;;  %v12950_v60 = vld [vmem:[#allocation79_spill] sm:$0xff] }
 0x579   : > { %v6392_v35 = vpop.f32.mrf.mxu0  ;;  %6583 = vmatmul.mubr.bf16.gmra.mxu0 %v9484_v40  ;;  %7256 = vmatmul.mubr.bf16.gmra.mxu1 %v9486_v57  ;;  %v11727_v8 = vld [vmem:[#allocation5 + $0x13f0] sm:$0xff]  ;;  %v7306_v40 = vmul.f32 %v11073_v15, %v11073_v15 }
 0x57a   : > { %10067 = vrsqrt.f32 %v11714_v27  ;;  %v7385_v16 = vmul.f32 %v7061_v3, %v7061_v3  ;;  %v6393_v20 = vadd.f32 %v6392_v35, %v12949_v59  ;;  %v7065_v43 = vpop.f32.mrf.mxu1  ;;  %6590 = vmatprep.mubr.bf16.mxu0 %v9493_v41  ;;  %7263 = vmatprep.mubr.bf16.mxu1 %v9495_v1  ;;  %v11740_v3 = vld [vmem:[#allocation5 + $0x13f8] sm:$0xff]  ;;  %v7663_v15 = vsel %vm7662_vm8, %v11628_v50, %v7661_v29 }
 0x57b   : > { %v10062_v24 = vpop.eup %10061  ;;  %v6394_v4 = vpop.f32.mrf.mxu0  ;;  %v9501_v23 = vcombine.high %v11725_v28, %v11727_v8  ;;  %v7672_v29 = vand.u32 2147483648, %v11648_v62  ;;  %vm7690_vm0 = vcmp.eq.f32.partialorder %v11714_v27, inf  ;;  %vm7692_vm1 = vcmp.eq.f32.partialorder %v11714_v27, 0.0 }
 0x57c   : > { %v11736_v35 = vadd.f32 %v7385_v16, %v7305_v49  ;;  %v7066_v57 = vadd.f32 %v7065_v43, %v6393_v20  ;;  %v7067_v41 = vpop.f32.mrf.mxu1  ;;  %v7668_v18 = vmul.f32 %v10062_v24, %v11648_v62  ;;  %v9503_v43 = vcombine.high %v11738_v47, %v11740_v3 }
 0x57d   : > { %v6395_v59 = vpop.f32.mrf.mxu0  ;;  %v11754_v24 = vsel %vm7664_vm9, %v7665_v14, %v7663_v15  ;;  %v7307_v15 = vmul.f32 %v11076_v22, %v11076_v22 }
 0x57e   : > { %10069 = vrsqrt.f32 %v11736_v35  ;;  %v7386_v7 = vmul.f32 %v7066_v57, %v7066_v57  ;;  %v6396_v1 = vadd.f32 %v6395_v59, %v12950_v60  ;;  %v7068_v49 = vpop.f32.mrf.mxu1  ;;  %v7670_v4 = vsel %vm7669_vm10, %v11648_v62, %v7668_v18  ;;  %v12951_v62 = vld [vmem:[#allocation80_spill] sm:$0xff] }
 0x57f   : > { %v10064_v16 = vpop.eup %10063  ;;  %v6397_v20 = vpop.f32.mrf.mxu0  ;;  %v11761_v60 = vsel %vm7671_vm11, %v7672_v29, %v7670_v4  ;;  %v9502_v4 = vcombine.low %v11738_v47, %v11740_v3  ;;  %vm7697_vm2 = vcmp.eq.f32.partialorder %v11736_v35, inf  ;;  %vm7699_vm3 = vcmp.eq.f32.partialorder %v11736_v35, 0.0 }
 0x580   : > { %v11758_v50 = vadd.f32 %v7386_v7, %v7306_v40  ;;  %v7069_v41 = vadd.f32 %v7068_v49, %v6396_v1  ;;  %v7070_v57 = vpop.f32.mrf.mxu1  ;;  %v7675_v59 = vmul.f32 %v10064_v16, %v11670_v12  ;;  %v7308_v1 = vmul.f32 %v11079_v44, %v11079_v44 }
 0x581   : > { %v6400_v53 = vpop.f32.mrf.mxu0  ;;  %6591 = vmatmul.mubr.bf16.gmra.mxu0 %v9492_v61  ;;  %7264 = vmatmul.mubr.bf16.gmra.mxu1 %v9494_v48  ;;  %v9500_v61 = vcombine.low %v11725_v28, %v11727_v8  ;;  %v7679_v44 = vand.u32 2147483648, %v11670_v12  ;;  %v12952_v8 = vld [vmem:[#allocation81_spill] sm:$0xff]  ;;  %v7686_v57 = vand.u32 2147483648, %v11692_v32 }
 0x582   : > { %10071 = vrsqrt.f32 %v11758_v50  ;;  %v7387_v18 = vmul.f32 %v7069_v41, %v7069_v41  ;;  %v6401_v40 = vadd.f32 %v6400_v53, %v12951_v62  ;;  %v7073_v14 = vpop.f32.mrf.mxu1  ;;  %6598 = vmatprep.mubr.bf16.mxu0 %v9501_v23  ;;  %7271 = vmatprep.mubr.bf16.mxu1 %v9503_v43  ;;  %v7677_v53 = vsel %vm7676_vm12, %v11670_v12, %v7675_v59 }
 0x583   : > { %v10066_v7 = vpop.eup %10065  ;;  %v6402_v49 = vpop.f32.mrf.mxu0  ;;  %vm7704_vm4 = vcmp.eq.f32.partialorder %v11758_v50, inf  ;;  %vm7706_vm5 = vcmp.eq.f32.partialorder %v11758_v50, 0.0 }
 0x584   : > { %v11774_v22 = vadd.f32 %v7387_v18, %v7307_v15  ;;  %v7074_v29 = vadd.f32 %v7073_v14, %v6401_v40  ;;  %v7075_v16 = vpop.f32.mrf.mxu1  ;;  %v7682_v48 = vmul.f32 %v10066_v7, %v11692_v32  ;;  %v11786_v18 = vsel %vm7678_vm13, %v7679_v44, %v7677_v53 }
 0x585   : > { %v6403_v23 = vpop.f32.mrf.mxu0 }
 0x586   : > { %10073 = vrsqrt.f32 %v11774_v22  ;;  %v7388_v28 = vmul.f32 %v7074_v29, %v7074_v29  ;;  %v6404_v43 = vadd.f32 %v6403_v23, %v12952_v8  ;;  %v7076_v41 = vpop.f32.mrf.mxu1  ;;  %v7684_v47 = vsel %vm7683_vm14, %v11692_v32, %v7682_v48  ;;  %v12953_v32 = vld [vmem:[#allocation82_spill] sm:$0xff] }
 0x587   : > { %v10068_v59 = vpop.eup %10067  ;;  %v6405_v15 = vpop.f32.mrf.mxu0  ;;  %v11793_v14 = vsel %vm7685_vm15, %v7686_v57, %v7684_v47  ;;  %v7309_v29 = vmul.f32 %v11082_v45, %v11082_v45  ;;  %v7310_v45 = vmul.f32 %v11085_v11, %v11085_v11  ;;  %vm7711_vm6 = vcmp.eq.f32.partialorder %v11774_v22, inf }
 0x588   : > { %v11790_v3 = vadd.f32 %v7388_v28, %v7308_v1  ;;  %v7077_v12 = vadd.f32 %v7076_v41, %v6404_v43  ;;  %v7078_v62 = vpop.f32.mrf.mxu1  ;;  %v7689_v40 = vmul.f32 %v10068_v59, %v11714_v27  ;;  %v8139_v49 = vpack.c.bf16 %v11793_v14, %v11786_v18  ;;  %v12954_v59 = vld [vmem:[#allocation83_spill] sm:$0xff] }
 0x589   : > { %v6408_v7 = vpop.f32.mrf.mxu0  ;;  %6599 = vmatmul.mubr.bf16.gmra.mxu0 %v9500_v61  ;;  %7272 = vmatmul.mubr.bf16.gmra.mxu1 %v9502_v4  ;;  %v7693_v4 = vand.u32 2147483648, %v11714_v27  ;;  %vm7713_vm7 = vcmp.eq.f32.partialorder %v11774_v22, 0.0  ;;  %v12971_v14 = vpack.c.bf16 %v11449_v2, %v11442_v56 }
 0x58a   : > { %10075 = vrsqrt.f32 %v11790_v3  ;;  %v7389_v16 = vmul.f32 %v7077_v12, %v7077_v12  ;;  %v6409_v1 = vadd.f32 %v6408_v7, %v12953_v32  ;;  %v7081_v53 = vpop.f32.mrf.mxu1  ;;  %v7691_v8 = vsel %vm7690_vm0, %v11714_v27, %v7689_v40 }
 0x58b   : > { %v10070_v48 = vpop.eup %10069  ;;  %v6410_v23 = vpop.f32.mrf.mxu0  ;;  %v7700_v12 = vand.u32 2147483648, %v11736_v35  ;;  %v11814_v7 = vsel %vm7692_vm1, %v7693_v4, %v7691_v8  ;;  %vm7718_vm8 = vcmp.eq.f32.partialorder %v11790_v3, inf  ;;  %vm7720_vm9 = vcmp.eq.f32.partialorder %v11790_v3, 0.0 }
 0x58c   : > { %v11802_v44 = vadd.f32 %v7389_v16, %v7309_v29  ;;  %v7082_v61 = vadd.f32 %v7081_v53, %v6409_v1  ;;  %v7083_v28 = vpop.f32.mrf.mxu1  ;;  %v7696_v43 = vmul.f32 %v10070_v48, %v11736_v35  ;;  %v7311_v23 = vmul.f32 %v11088_v6, %v11088_v6 }
 0x58d   : > { %v6411_v41 = vpop.f32.mrf.mxu0  ;;  %v12955_v28 = vld [vmem:[#allocation84_spill] sm:$0xff]  ;;  %v7312_v6 = vmul.f32 %v11091_v46, %v11091_v46 }
 0x58e   : > { %10077 = vrsqrt.f32 %v11802_v44  ;;  %v7390_v57 = vmul.f32 %v7082_v61, %v7082_v61  ;;  %v6412_v15 = vadd.f32 %v6411_v41, %v12954_v59  ;;  %v7084_v47 = vpop.f32.mrf.mxu1  ;;  %v7698_v11 = vsel %vm7697_vm2, %v11736_v35, %v7696_v43 }
 0x58f   : > { %v10072_v62 = vpop.eup %10071  ;;  %v6413_v40 = vpop.f32.mrf.mxu0  ;;  %v11821_v1 = vsel %vm7699_vm3, %v7700_v12, %v7698_v11  ;;  %v7707_v12 = vand.u32 2147483648, %v11758_v50  ;;  %vm7725_vm10 = vcmp.eq.f32.partialorder %v11802_v44, inf  ;;  %vm7727_vm11 = vcmp.eq.f32.partialorder %v11802_v44, 0.0 }
 0x590   : > { %v11818_v29 = vadd.f32 %v7390_v57, %v7310_v45  ;;  %v7085_v27 = vadd.f32 %v7084_v47, %v6412_v15  ;;  %v7086_v16 = vpop.f32.mrf.mxu1  ;;  %v7703_v32 = vmul.f32 %v10072_v62, %v11758_v50  ;;  %v8140_v48 = vpack.c.bf16 %v11821_v1, %v11814_v7  ;;  %v12956_v40 = vld [vmem:[#allocation85_spill] sm:$0xff] }
 0x591   : > { %v6416_v53 = vpop.f32.mrf.mxu0  ;;  %v7714_v16 = vand.u32 2147483648, %v11774_v22 }
 0x592   : > { %10079 = vrsqrt.f32 %v11818_v29  ;;  %v7391_v61 = vmul.f32 %v7085_v27, %v7085_v27  ;;  %v6417_v35 = vadd.f32 %v6416_v53, %v12955_v28  ;;  %v7089_v8 = vpop.f32.mrf.mxu1  ;;  %v7705_v59 = vsel %vm7704_vm4, %v11758_v50, %v7703_v32 }
 0x593   : > { %v10074_v43 = vpop.eup %10073  ;;  %v6418_v45 = vpop.f32.mrf.mxu0  ;;  %vm7732_vm12 = vcmp.eq.f32.partialorder %v11818_v29, inf  ;;  %vm7734_vm13 = vcmp.eq.f32.partialorder %v11818_v29, 0.0 }
 0x594   : > { %v11830_v41 = vadd.f32 %v7391_v61, %v7311_v23  ;;  %v7090_v4 = vadd.f32 %v7089_v8, %v6417_v35  ;;  %v7091_v57 = vpop.f32.mrf.mxu1  ;;  %v7710_v15 = vmul.f32 %v10074_v43, %v11774_v22  ;;  %v11842_v23 = vsel %vm7706_vm5, %v7707_v12, %v7705_v59  ;;  %v12957_v59 = vld [vmem:[#allocation86_spill] sm:$0xff] }
 0x595   : > { %v6419_v47 = vpop.f32.mrf.mxu0 }
 0x596   : > { %10081 = vrsqrt.f32 %v11830_v41  ;;  %v7392_v62 = vmul.f32 %v7090_v4, %v7090_v4  ;;  %v6420_v11 = vadd.f32 %v6419_v47, %v12956_v40  ;;  %v7092_v27 = vpop.f32.mrf.mxu1  ;;  %v7712_v46 = vsel %vm7711_vm6, %v11774_v22, %v7710_v15 }
 0x597   : > { %v10076_v32 = vpop.eup %10075  ;;  %v6421_v53 = vpop.f32.mrf.mxu0  ;;  %v11849_v8 = vsel %vm7713_vm7, %v7714_v16, %v7712_v46  ;;  %v7313_v4 = vmul.f32 %v11094_v31, %v11094_v31  ;;  %v7314_v47 = vmul.f32 %v11097_v17, %v11097_v17  ;;  %v7728_v17 = vand.u32 2147483648, %v11802_v44  ;;  %v12958_v46 = vld [vmem:[#allocation87_spill] sm:$0xff] }
 0x598   : > { %v11846_v61 = vadd.f32 %v7392_v62, %v7312_v6  ;;  %v7093_v50 = vadd.f32 %v7092_v27, %v6420_v11  ;;  %v7094_v28 = vpop.f32.mrf.mxu1  ;;  %v7717_v35 = vmul.f32 %v10076_v32, %v11790_v3  ;;  %v8141_v45 = vpack.c.bf16 %v11849_v8, %v11842_v23 }
 0x599   : > { %v6424_v43 = vpop.f32.mrf.mxu0  ;;  %v7721_v32 = vand.u32 2147483648, %v11790_v3  ;;  %vm7739_vm14 = vcmp.eq.f32.partialorder %v11830_v41, inf  ;;  %vm7741_vm15 = vcmp.eq.f32.partialorder %v11830_v41, 0.0  ;;  %v12965_v8 = vpack.c.bf16 %v11541_v52, %v11530_v33 }
 0x59a   : > { %10083 = vrsqrt.f32 %v11846_v61  ;;  %v7393_v57 = vmul.f32 %v7093_v50, %v7093_v50  ;;  %v6425_v22 = vadd.f32 %v6424_v43, %v12957_v59  ;;  %v7097_v15 = vpop.f32.mrf.mxu1  ;;  %v7719_v31 = vsel %vm7718_vm8, %v11790_v3, %v7717_v35 }
 0x59b   : > { %v10078_v6 = vpop.eup %10077  ;;  %v6426_v12 = vpop.f32.mrf.mxu0  ;;  %vm7746_vm0 = vcmp.eq.f32.partialorder %v11846_v61, inf  ;;  %vm7748_vm1 = vcmp.eq.f32.partialorder %v11846_v61, 0.0  ;;  %v7749_v51 = vand.u32 2147483648, %v11846_v61 }
 0x59c   : > { %v11861_v62 = vadd.f32 %v7393_v57, %v7313_v4  ;;  %v7098_v40 = vadd.f32 %v7097_v15, %v6425_v22  ;;  %v7099_v11 = vpop.f32.mrf.mxu1  ;;  %v7724_v27 = vmul.f32 %v10078_v6, %v11802_v44  ;;  %v7722_v57 = vsel %vm7720_vm9, %v7721_v32, %v7719_v31 }
 0x59d   : > { %v6427_v16 = vpop.f32.mrf.mxu0 }
 0x59e   : > { %10085 = vrsqrt.f32 %v11861_v62  ;;  %v7394_v53 = vmul.f32 %v7098_v40, %v7098_v40  ;;  %v6428_v50 = vadd.f32 %v6427_v16, %v12958_v46  ;;  %v7100_v28 = vpop.f32.mrf.mxu1  ;;  %v7726_v43 = vsel %vm7725_vm10, %v11802_v44, %v7724_v27  ;;  %v12959_v27 = vld [vmem:[#allocation88_spill] sm:$0xff] }
 0x59f   : > { %v10080_v35 = vpop.eup %10079  ;;  %v6429_v4 = vpop.f32.mrf.mxu0  ;;  %v7729_v59 = vsel %vm7727_vm11, %v7728_v17, %v7726_v43  ;;  %v7315_v40 = vmul.f32 %v11100_v58, %v11100_v58  ;;  %vm7753_vm2 = vcmp.eq.f32.partialorder %v11861_v62, inf  ;;  %vm7755_vm3 = vcmp.eq.f32.partialorder %v11861_v62, 0.0 }
 0x5a0   : > { %v11874_v22 = vadd.f32 %v7394_v53, %v7314_v47  ;;  %v7101_v15 = vadd.f32 %v7100_v28, %v6428_v50  ;;  %v7102_v6 = vpop.f32.mrf.mxu1  ;;  %v7731_v12 = vmul.f32 %v10080_v35, %v11818_v29  ;;  %v8142_v11 = vpack.c.bf16 %v7729_v59, %v7722_v57  ;;  %v12960_v35 = vld [vmem:[#allocation89_spill] sm:$0xff] }
 0x5a1   : > { %v6432_v20 = vpop.f32.mrf.mxu0  ;;  %v7316_v47 = vmul.f32 %v11103_v55, %v11103_v55  ;;  %v7742_v55 = vand.u32 2147483648, %v11830_v41 }
 0x5a2   : > { %10087 = vrsqrt.f32 %v11874_v22  ;;  %v7395_v44 = vmul.f32 %v7101_v15, %v7101_v15  ;;  %v6433_v16 = vadd.f32 %v6432_v20, %v12959_v27  ;;  %v7105_v46 = vpop.f32.mrf.mxu1  ;;  %v7733_v58 = vsel %vm7732_vm12, %v11818_v29, %v7731_v12 }
 0x5a3   : > { %v10082_v3 = vpop.eup %10081  ;;  %v6434_v31 = vpop.f32.mrf.mxu0  ;;  %v7735_v20 = vand.u32 2147483648, %v11818_v29  ;;  %vm7760_vm4 = vcmp.eq.f32.partialorder %v11874_v22, inf  ;;  %vm7762_vm5 = vcmp.eq.f32.partialorder %v11874_v22, 0.0  ;;  %v7763_v33 = vand.u32 2147483648, %v11874_v22 }
 0x5a4   : > { %v11885_v32 = vadd.f32 %v7395_v44, %v7315_v40  ;;  %v7106_v17 = vadd.f32 %v7105_v46, %v6433_v16  ;;  %v7107_v53 = vpop.f32.mrf.mxu1  ;;  %v7738_v50 = vmul.f32 %v10082_v3, %v11830_v41 }
 0x5a5   : > { %v6435_v28 = vpop.f32.mrf.mxu0  ;;  %v7736_v12 = vsel %vm7734_vm13, %v7735_v20, %v7733_v58  ;;  %v12961_v53 = vld [vmem:[#allocation90_spill] sm:$0xff] }
 0x5a6   : > { %10089 = vrsqrt.f32 %v11885_v32  ;;  %v7396_v43 = vmul.f32 %v7106_v17, %v7106_v17  ;;  %v6436_v4 = vadd.f32 %v6435_v28, %v12960_v35  ;;  %v7108_v57 = vpop.f32.mrf.mxu1  ;;  %v7740_v59 = vsel %vm7739_vm14, %v11830_v41, %v7738_v50 }
 0x5a7   : > { %v10084_v15 = vpop.eup %10083  ;;  %v6437_v6 = vpop.f32.mrf.mxu0  ;;  %v7743_v40 = vsel %vm7741_vm15, %v7742_v55, %v7740_v59  ;;  %v7317_v17 = vmul.f32 %v11106_v26, %v11106_v26  ;;  %v7318_v35 = vmul.f32 %v11109_v30, %v11109_v30  ;;  %v7756_v59 = vand.u32 2147483648, %v11861_v62 }
 0x5a8   : > { %v11898_v44 = vadd.f32 %v7396_v43, %v7316_v47  ;;  %v7109_v27 = vadd.f32 %v7108_v57, %v6436_v4  ;;  %v7110_v16 = vpop.f32.mrf.mxu1  ;;  %v8143_v46 = vpack.c.bf16 %v7743_v40, %v7736_v12  ;;  %v7745_v3 = vmul.f32 %v10084_v15, %v11846_v61 }
 0x5a9   : > { %v6440_v31 = vpop.f32.mrf.mxu0  ;;  %vm7767_vm6 = vcmp.eq.f32.partialorder %v11885_v32, inf  ;;  %vm7769_vm7 = vcmp.eq.f32.partialorder %v11885_v32, 0.0 }
 0x5aa   : > { %10091 = vrsqrt.f32 %v11898_v44  ;;  %v7397_v41 = vmul.f32 %v7109_v27, %v7109_v27  ;;  %v6441_v50 = vadd.f32 %v6440_v31, %v12961_v53  ;;  %v7113_v28 = vpop.f32.mrf.mxu1  ;;  %9615 = vmatprep.subr.bf16.mxu0 %v8143_v46  ;;  %v7747_v26 = vsel %vm7746_vm0, %v11846_v61, %v7745_v3  ;;  %v12964_v31 = vld [vmem:[#allocation92_spill] sm:$0xff] }
 0x5ab   : > { %v10086_v29 = vpop.eup %10085  ;;  %v6442_v58 = vpop.f32.mrf.mxu0  ;;  %9616 = vmatpush3.bf16.msra.mxu0 %v8135_v9  ;;  %v12962_v9 = vld [vmem:[#allocation91_spill] sm:$0xff]  ;;  %v11924_v30 = vsel %vm7748_vm1, %v7749_v51, %v7747_v26  ;;  %v12968_v51 = vpack.c.bf16 %v11493_v38, %v11486_v13  ;;  %vm7774_vm8 = vcmp.eq.f32.partialorder %v11898_v44, inf  ;;  %vm7776_vm9 = vcmp.eq.f32.partialorder %v11898_v44, 0.0 }
 0x5ac   : > { %v11909_v47 = vadd.f32 %v7397_v41, %v7317_v17  ;;  %v7114_v20 = vadd.f32 %v7113_v28, %v6441_v50  ;;  %v7115_v55 = vpop.f32.mrf.mxu1  ;;  %9617 = vmatprep.subr.bf16.mxu0 %v8142_v11  ;;  %v7752_v43 = vmul.f32 %v10086_v29, %v11861_v62  ;;  %v7777_v56 = vand.u32 2147483648, %v11898_v44 }
 0x5ad   : > { %v6443_v4 = vpop.f32.mrf.mxu0 }
 0x5ae   : > { %10093 = vrsqrt.f32 %v11909_v47  ;;  %v7398_v63 = vmul.f32 %v7114_v20, %v7114_v20  ;;  %v6444_v57 = vadd.f32 %v6443_v4, %v12962_v9  ;;  %v7116_v11 = vpop.f32.mrf.mxu1  ;;  %v7754_v61 = vsel %vm7753_vm2, %v11861_v62, %v7752_v43  ;;  %v12966_v20 = vld [vmem:[#allocation12_spill] sm:$0xff]  ;;  %v12967_v43 = vld [vmem:[#allocation93_spill] sm:$0xff] }
 0x5af   : > { %v10088_v15 = vpop.eup %10087  ;;  %v6445_v6 = vpop.f32.mrf.mxu0  ;;  %9618 = vmatpush3.bf16.msra.mxu0 %v8134_v21  ;;  %v11934_v46 = vsel %vm7755_vm3, %v7756_v59, %v7754_v61  ;;  %v12963_v21 = vld [vmem:[#allocation132_spill] sm:$0xff]  ;;  %v7320_v55 = vmul.f32 %v12966_v20, %v12966_v20  ;;  %vm7781_vm10 = vcmp.eq.f32.partialorder %v11909_v47, inf  ;;  %vm7783_vm11 = vcmp.eq.f32.partialorder %v11909_v47, 0.0 }
 0x5b0   : > { %v11928_v12 = vadd.f32 %v7398_v63, %v7318_v35  ;;  %v7117_v40 = vadd.f32 %v7116_v11, %v6444_v57  ;;  %v7118_v27 = vpop.f32.mrf.mxu1  ;;  %9619 = vmatprep.subr.bf16.mxu0 %v8141_v45  ;;  %v7759_v16 = vmul.f32 %v10088_v15, %v11874_v22  ;;  %v7319_v3 = vmul.f32 %v12963_v21, %v12963_v21  ;;  %v12969_v6 = vld [vmem:[#allocation13_spill] sm:$0xff] }
 0x5b1   : > { %v6448_v19 = vpop.f32.mrf.mxu0  ;;  %v7321_v61 = vmul.f32 %v12969_v6, %v12969_v6  ;;  %v12980_v6 = vpack.c.bf16 %v11673_v25, %v11666_v54  ;;  %v12982_v54 = vld [vmem:[#allocation97_spill] sm:$0xff] }
 0x5b2   : > { %10095 = vrsqrt.f32 %v11928_v12  ;;  %v7399_v62 = vmul.f32 %v7117_v40, %v7117_v40  ;;  %v6449_v17 = vadd.f32 %v6448_v19, %v12964_v31  ;;  %v7121_v41 = vpop.f32.mrf.mxu1  ;;  %v7761_v29 = vsel %vm7760_vm4, %v11874_v22, %v7759_v16  ;;  %v12970_v40 = vld [vmem:[#allocation94_spill] sm:$0xff] }
 0x5b3   : > { %v10090_v53 = vpop.eup %10089  ;;  %v6450_v23 = vpop.f32.mrf.mxu0  ;;  %9620 = vmatpush3.bf16.msra.mxu0 %v12965_v8  ;;  %v11964_v63 = vsel %vm7762_vm5, %v7763_v33, %v7761_v29  ;;  %v12974_v8 = vld [vmem:[#allocation95_spill] sm:$0xff]  ;;  %vm7788_vm12 = vcmp.eq.f32.partialorder %v11928_v12, inf  ;;  %vm7790_vm13 = vcmp.eq.f32.partialorder %v11928_v12, 0.0 }
 0x5b4   : > { %v11946_v45 = vadd.f32 %v7399_v62, %v7319_v3  ;;  %v7122_v50 = vadd.f32 %v7121_v41, %v6449_v17  ;;  %v7123_v28 = vpop.f32.mrf.mxu1  ;;  %9621 = vmatprep.subr.bf16.mxu0 %v8140_v48  ;;  %v7766_v58 = vmul.f32 %v10090_v53, %v11885_v32  ;;  %v7770_v48 = vand.u32 2147483648, %v11885_v32  ;;  %v12973_v41 = vld [vmem:[#allocation14_spill] sm:$0xff] }
 0x5b5   : > { %v6451_v26 = vpop.f32.mrf.mxu0  ;;  %v12972_v62 = vpack.c.bf16 %v11761_v60, %v11754_v24  ;;  %v7322_v53 = vmul.f32 %v12973_v41, %v12973_v41 }
 0x5b6   : > { %10097 = vrsqrt.f32 %v11946_v45  ;;  %v7400_v52 = vmul.f32 %v7122_v50, %v7122_v50  ;;  %v6452_v7 = vadd.f32 %v6451_v26, %v12967_v43  ;;  %v7124_v1 = vpop.f32.mrf.mxu1  ;;  %v7768_v22 = vsel %vm7767_vm6, %v11885_v32, %v7766_v58 }
 0x5b7   : > { %v10092_v35 = vpop.eup %10091  ;;  %v6453_v4 = vpop.f32.mrf.mxu0  ;;  %9622 = vmatpush3.bf16.msra.mxu0 %v12968_v51  ;;  %v11974_v15 = vsel %vm7769_vm7, %v7770_v48, %v7768_v22  ;;  %v7784_v50 = vand.u32 2147483648, %v11909_v47  ;;  %v12975_v58 = vpack.c.bf16 %v11405_v42, %v11398_v37  ;;  %v9965_v22 = vld [vmem:[#allocation7 + $0x4] ss:$20 sps:$4 sm:$0xff]   ;;  %vm7795_vm14 = vcmp.eq.f32.partialorder %v11946_v45, inf }
 0x5b8   : > { %v11968_v9 = vadd.f32 %v7400_v52, %v7320_v55  ;;  %v7125_v57 = vadd.f32 %v7124_v1, %v6452_v7  ;;  %v7126_v11 = vpop.f32.mrf.mxu1  ;;  %9623 = vmatprep.subr.bf16.mxu0 %v8139_v49  ;;  %v7773_v59 = vmul.f32 %v10092_v35, %v11898_v44  ;;  %v12976_v52 = vpack.c.bf16 %v11717_v36, %v11710_v34  ;;  %v12977_v1 = vld [vmem:[#allocation15_spill] sm:$0xff]  ;;  %v12978_v35 = vld [vmem:[#allocation96_spill] sm:$0xff] }
 0x5b9   : > { %v6456_v13 = vpop.f32.mrf.mxu0  ;;  %v7323_v48 = vmul.f32 %v12977_v1, %v12977_v1  ;;  %8408 = vmatprep.mubr.bf16.mxu0 %v9965_v22  ;;  %vm7797_vm15 = vcmp.eq.f32.partialorder %v11946_v45, 0.0 }
 0x5ba   : > { %10099 = vrsqrt.f32 %v11968_v9  ;;  %v7401_v32 = vmul.f32 %v7125_v57, %v7125_v57  ;;  %v6457_v27 = vadd.f32 %v6456_v13, %v12970_v40  ;;  %v7129_v16 = vpop.f32.mrf.mxu1  ;;  %v7775_v31 = vsel %vm7774_vm8, %v11898_v44, %v7773_v59  ;;  %v12981_v40 = vld [vmem:[#allocation16_spill] sm:$0xff] }
 0x5bb   : > { %v10094_v19 = vpop.eup %10093  ;;  %v6458_v18 = vpop.f32.mrf.mxu0  ;;  %9624 = vmatpush3.bf16.msra.mxu0 %v12971_v14  ;;  %v12004_v20 = vsel %vm7776_vm9, %v7777_v56, %v7775_v31  ;;  %v12979_v57 = vpack.c.bf16 %v11361_v0, %v11354_v39  ;;  %v7791_v39 = vand.u32 2147483648, %v11928_v12  ;;  %v9963_v14 = vld [vmem:[#allocation7] ss:$20 sps:$4 sm:$0xff]   ;;  %vm7802_vm0 = vcmp.eq.f32.partialorder %v11968_v9, inf }
 0x5bc   : > { %v11986_v49 = vadd.f32 %v7401_v32, %v7321_v61  ;;  %v7130_v21 = vadd.f32 %v7129_v16, %v6457_v27  ;;  %v7131_v3 = vpop.f32.mrf.mxu1  ;;  %9625 = vmatprep.subr.bf16.mxu0 %v12972_v62  ;;  %v7780_v17 = vmul.f32 %v10094_v19, %v11909_v47  ;;  %v7324_v27 = vmul.f32 %v12981_v40, %v12981_v40  ;;  %v12983_v62 = vld [vmem:[#allocation52_spill] sm:$0xff] }
 0x5bd   : > { %v6459_v23 = vpop.f32.mrf.mxu0  ;;  %v7798_v18 = vand.u32 2147483648, %v11946_v45  ;;  %v12984_v31 = vpack.c.bf16 %v11317_v5, %v12983_v62  ;;  %vm7804_vm1 = vcmp.eq.f32.partialorder %v11968_v9, 0.0  ;;  %v9974_v62 = vld [vmem:[#allocation7 + $0x54] ss:$20 sps:$4 sm:$0xff]  }
 0x5be   : > { %10101 = vrsqrt.f32 %v11986_v49  ;;  %v7402_v2 = vmul.f32 %v7130_v21, %v7130_v21  ;;  %v6460_v24 = vadd.f32 %v6459_v23, %v12974_v8  ;;  %v7132_v60 = vpop.f32.mrf.mxu1  ;;  %v7782_v44 = vsel %vm7781_vm10, %v11909_v47, %v7780_v17  ;;  %v9968_v8 = vld [vmem:[#allocation7 + $0xc] ss:$20 sps:$4 sm:$0xff]  }
 0x5bf   : > { %v10096_v28 = vpop.eup %10095  ;;  %v6461_v29 = vpop.f32.mrf.mxu0  ;;  %9626 = vmatpush3.bf16.msra.mxu0 %v12975_v58  ;;  %v12014_v7 = vsel %vm7783_vm11, %v7784_v50, %v7782_v44  ;;  %8505 = vmatprep.mubr.bf16.mxu1 %v9968_v8  ;;  %v9971_v44 = vld [vmem:[#allocation7 + $0x2c] ss:$20 sps:$4 sm:$0xff]   ;;  %vm7809_vm2 = vcmp.eq.f32.partialorder %v11986_v49, inf  ;;  %vm7811_vm3 = vcmp.eq.f32.partialorder %v11986_v49, 0.0 }
 0x5c0   : > { %v12008_v55 = vadd.f32 %v7402_v2, %v7322_v53  ;;  %v7133_v26 = vadd.f32 %v7132_v60, %v6460_v24  ;;  %v7134_v33 = vpop.f32.mrf.mxu1  ;;  %9627 = vmatprep.subr.bf16.mxu0 %v12976_v52  ;;  %v7787_v43 = vmul.f32 %v10096_v28, %v11928_v12  ;;  %v12985_v60 = vld [vmem:[#allocation17_spill] sm:$0xff] }
 0x5c1   : > { %v6464_v37 = vpop.f32.mrf.mxu0  ;;  %v7325_v50 = vmul.f32 %v12985_v60, %v12985_v60  ;;  %v12991_v60 = vld [vmem:[#allocation20_spill] sm:$0xff] }
 0x5c2   : > { %10103 = vrsqrt.f32 %v12008_v55  ;;  %v7403_v47 = vmul.f32 %v7133_v26, %v7133_v26  ;;  %v6465_v4 = vadd.f32 %v6464_v37, %v12978_v35  ;;  %v7137_v51 = vpop.f32.mrf.mxu1  ;;  %v7789_v61 = vsel %vm7788_vm12, %v11928_v12, %v7787_v43 }
 0x5c3   : > { %v10098_v34 = vpop.eup %10097  ;;  %v6466_v36 = vpop.f32.mrf.mxu0  ;;  %9628 = vmatpush3.bf16.msra.mxu0 %v12979_v57  ;;  %v12044_v17 = vsel %vm7790_vm13, %v7791_v39, %v7789_v61  ;;  %vm7816_vm4 = vcmp.eq.f32.partialorder %v12008_v55, inf  ;;  %vm7818_vm5 = vcmp.eq.f32.partialorder %v12008_v55, 0.0 }
 0x5c4   : > { %v12026_v11 = vadd.f32 %v7403_v47, %v7323_v48  ;;  %v7138_v59 = vadd.f32 %v7137_v51, %v6465_v4  ;;  %v7139_v13 = vpop.f32.mrf.mxu1  ;;  %9629 = vmatprep.subr.bf16.mxu0 %v12980_v6  ;;  %v7794_v32 = vmul.f32 %v10098_v34, %v11946_v45  ;;  %v12987_v47 = vld [vmem:[#allocation18_spill] sm:$0xff]  ;;  %v7805_v51 = vand.u32 2147483648, %v11968_v9  ;;  %v12988_v34 = vld [vmem:[#allocation99_spill] sm:$0xff] }
 0x5c5   : > { %v6467_v16 = vpop.f32.mrf.mxu0  ;;  %v7326_v35 = vmul.f32 %v12987_v47, %v12987_v47  ;;  %v9969_v13 = vld [vmem:[#allocation7 + $0x28] ss:$20 sps:$4 sm:$0xff]  }
 0x5c6   : > { %10105 = vrsqrt.f32 %v12026_v11  ;;  %v7404_v0 = vmul.f32 %v7138_v59, %v7138_v59  ;;  %v6468_v25 = vadd.f32 %v6467_v16, %v12982_v54  ;;  %v7140_v19 = vpop.f32.mrf.mxu1  ;;  %v7796_v12 = vsel %vm7795_vm14, %v11946_v45, %v7794_v32  ;;  %v12986_v45 = vld [vmem:[#allocation98_spill] sm:$0xff] }
 0x5c7   : > { %v10100_v21 = vpop.eup %10099  ;;  %v6469_v3 = vpop.f32.mrf.mxu0  ;;  %9630 = vmatpush3.bf16.msra.mxu0 %v12984_v31  ;;  %v12051_v2 = vsel %vm7797_vm15, %v7798_v18, %v7796_v12  ;;  %v7812_v59 = vand.u32 2147483648, %v11986_v49  ;;  %vm7823_vm6 = vcmp.eq.f32.partialorder %v12026_v11, inf  ;;  %vm7825_vm7 = vcmp.eq.f32.partialorder %v12026_v11, 0.0 }
 0x5c8   : > { %v12048_v41 = vadd.f32 %v7404_v0, %v7324_v27  ;;  %v7141_v53 = vadd.f32 %v7140_v19, %v6468_v25  ;;  %v7142_v23 = vpop.f32.mrf.mxu1  ;;  %v7801_v56 = vmul.f32 %v10100_v21, %v11968_v9  ;;  %v12989_v19 = vld [vmem:[#allocation19_spill] sm:$0xff]  ;;  %v12990_v21 = vld [vmem:[#allocation100_spill] sm:$0xff] }
 0x5c9   : > { %v6472_v24 = vpop.f32.mrf.mxu0  ;;  %v7327_v18 = vmul.f32 %v12989_v19, %v12989_v19 }
 0x5ca   : > { %10107 = vrsqrt.f32 %v12048_v41  ;;  %v7405_v28 = vmul.f32 %v7141_v53, %v7141_v53  ;;  %v6473_v29 = vadd.f32 %v6472_v24, %v12986_v45  ;;  %v7145_v58 = vpop.f32.mrf.mxu1  ;;  %8409 = vmatmul.mubr.bf16.vlgmr.msra.gmra.mxu0 %v9963_v14  ;;  %v7803_v1 = vsel %vm7802_vm0, %v11968_v9, %v7801_v56 }
 0x5cb   : > { %v10102_v26 = vpop.eup %10101  ;;  %v6474_v33 = vpop.f32.mrf.mxu0  ;;  %8416 = vmatprep.mubr.bf16.mxu0 %v9971_v44  ;;  %v12072_v32 = vsel %vm7804_vm1, %v7805_v51, %v7803_v1  ;;  %v7819_v45 = vand.u32 2147483648, %v12008_v55  ;;  %vm7830_vm8 = vcmp.eq.f32.partialorder %v12048_v41, inf  ;;  %vm7832_vm9 = vcmp.eq.f32.partialorder %v12048_v41, 0.0 }
 0x5cc   : > { %v12060_v52 = vadd.f32 %v7405_v28, %v7325_v50  ;;  %v7146_v43 = vadd.f32 %v7145_v58, %v6473_v29  ;;  %v7147_v37 = vpop.f32.mrf.mxu1  ;;  %v7808_v48 = vmul.f32 %v10102_v26, %v11986_v49  ;;  %v7328_v50 = vmul.f32 %v12991_v60, %v12991_v60  ;;  %v12992_v58 = vld [vmem:[#allocation101_spill] sm:$0xff] }
 0x5cd   : > { %v6475_v4 = vpop.f32.mrf.mxu0  ;;  %v7826_v33 = vand.u32 2147483648, %v12026_v11  ;;  %v9975_v60 = vld [vmem:[#allocation7 + $0x78] ss:$20 sps:$4 sm:$0xff]  }
 0x5ce   : > { %10109 = vrsqrt.f32 %v12060_v52  ;;  %v7406_v22 = vmul.f32 %v7146_v43, %v7146_v43  ;;  %v6476_v36 = vadd.f32 %v6475_v4, %v12988_v34  ;;  %v7148_v57 = vpop.f32.mrf.mxu1  ;;  %v7810_v40 = vsel %vm7809_vm2, %v11986_v49, %v7808_v48  ;;  %v9972_v43 = vld [vmem:[#allocation7 + $0x50] ss:$20 sps:$4 sm:$0xff]  }
 0x5cf   : > { %v10104_v6 = vpop.eup %10103  ;;  %v6477_v61 = vpop.f32.mrf.mxu0  ;;  %v12079_v0 = vsel %vm7811_vm3, %v7812_v59, %v7810_v40  ;;  %v9977_v40 = vld [vmem:[#allocation7 + $0x7c] ss:$20 sps:$4 sm:$0xff]   ;;  %vm7837_vm10 = vcmp.eq.f32.partialorder %v12060_v52, inf  ;;  %vm7839_vm11 = vcmp.eq.f32.partialorder %v12060_v52, 0.0 }
 0x5d0   : > { %v12076_v9 = vadd.f32 %v7406_v22, %v7326_v35  ;;  %v7149_v27 = vadd.f32 %v7148_v57, %v6476_v36  ;;  %v7150_v16 = vpop.f32.mrf.mxu1  ;;  %v7815_v39 = vmul.f32 %v10104_v6, %v12008_v55  ;;  %v8148_v25 = vpack.c.bf16 %v12079_v0, %v12072_v32  ;;  %v12993_v57 = vld [vmem:[#allocation21_spill] sm:$0xff]  ;;  %v12994_v6 = vld [vmem:[#allocation102_spill] sm:$0xff] }
 0x5d1   : > { %v6480_v54 = vpop.f32.mrf.mxu0  ;;  %v7329_v59 = vmul.f32 %v12993_v57, %v12993_v57  ;;  %v12995_v16 = vld [vmem:[#allocation22_spill] sm:$0xff]  ;;  %v12999_v57 = vld [vmem:[#allocation24_spill] sm:$0xff] }
 0x5d2   : > { %10111 = vrsqrt.f32 %v12076_v9  ;;  %v7407_v14 = vmul.f32 %v7149_v27, %v7149_v27  ;;  %v6481_v49 = vadd.f32 %v6480_v54, %v12990_v21  ;;  %v7153_v3 = vpop.f32.mrf.mxu1  ;;  %8417 = vmatmul.mubr.bf16.gmra.mxu0 %v9969_v13  ;;  %v7817_v8 = vsel %vm7816_vm4, %v12008_v55, %v7815_v39 }
 0x5d3   : > { %v10106_v31 = vpop.eup %10105  ;;  %v6482_v12 = vpop.f32.mrf.mxu0  ;;  %8424 = vmatprep.mubr.bf16.mxu0 %v9974_v62  ;;  %v12100_v48 = vsel %vm7818_vm5, %v7819_v45, %v7817_v8  ;;  %v7330_v39 = vmul.f32 %v12995_v16, %v12995_v16  ;;  %v7833_v62 = vand.u32 2147483648, %v12048_v41  ;;  %vm7844_vm12 = vcmp.eq.f32.partialorder %v12076_v9, inf }
 0x5d4   : > { %v12088_v53 = vadd.f32 %v7407_v14, %v7327_v18  ;;  %v7154_v23 = vadd.f32 %v7153_v3, %v6481_v49  ;;  %v7155_v56 = vpop.f32.mrf.mxu1  ;;  %v7822_v24 = vmul.f32 %v10106_v31, %v12026_v11  ;;  %v7840_v31 = vand.u32 2147483648, %v12060_v52 }
 0x5d5   : > { %v6483_v28 = vpop.f32.mrf.mxu0  ;;  %vm7846_vm13 = vcmp.eq.f32.partialorder %v12076_v9, 0.0 }
 0x5d6   : > { %10113 = vrsqrt.f32 %v12088_v53  ;;  %v7408_v29 = vmul.f32 %v7154_v23, %v7154_v23  ;;  %v6484_v44 = vadd.f32 %v6483_v28, %v12992_v58  ;;  %v7156_v26 = vpop.f32.mrf.mxu1  ;;  %v7824_v47 = vsel %vm7823_vm6, %v12026_v11, %v7822_v24  ;;  %v12996_v23 = vld [vmem:[#allocation103_spill] sm:$0xff] }
 0x5d7   : > { %v10108_v37 = vpop.eup %10107  ;;  %v6485_v1 = vpop.f32.mrf.mxu0  ;;  %v12107_v22 = vsel %vm7825_vm7, %v7826_v33, %v7824_v47  ;;  %v12998_v47 = vld [vmem:[#allocation104_spill] sm:$0xff]  ;;  %vm7851_vm14 = vcmp.eq.f32.partialorder %v12088_v53, inf  ;;  %vm7853_vm15 = vcmp.eq.f32.partialorder %v12088_v53, 0.0 }
 0x5d8   : > { %v12104_v55 = vadd.f32 %v7408_v29, %v7328_v50  ;;  %v7157_v35 = vadd.f32 %v7156_v26, %v6484_v44  ;;  %v7158_v4 = vpop.f32.mrf.mxu1  ;;  %v7829_v51 = vmul.f32 %v10108_v37, %v12048_v41  ;;  %v8149_v36 = vpack.c.bf16 %v12107_v22, %v12100_v48 }
 0x5d9   : > { %v6488_v34 = vpop.f32.mrf.mxu0 }
 0x5da   : > { %10115 = vrsqrt.f32 %v12104_v55  ;;  %v7409_v13 = vmul.f32 %v7157_v35, %v7157_v35  ;;  %v6489_v11 = vadd.f32 %v6488_v34, %v12994_v6  ;;  %v7161_v61 = vpop.f32.mrf.mxu1  ;;  %8425 = vmatmul.mubr.bf16.gmra.mxu0 %v9972_v43  ;;  %v7831_v21 = vsel %vm7830_vm8, %v12048_v41, %v7829_v51  ;;  %v9980_v51 = vld [vmem:[#allocation7 + $0xa4] ss:$20 sps:$4 sm:$0xff]  }
 0x5db   : > { %v10110_v27 = vpop.eup %10109  ;;  %v6490_v54 = vpop.f32.mrf.mxu0  ;;  %8432 = vmatprep.mubr.bf16.mxu0 %v9977_v40  ;;  %v12132_v45 = vsel %vm7832_vm9, %v7833_v62, %v7831_v21  ;;  %v9978_v62 = vld [vmem:[#allocation7 + $0xa0] ss:$20 sps:$4 sm:$0xff]   ;;  %vm7858_vm0 = vcmp.eq.f32.partialorder %v12104_v55, inf  ;;  %vm7860_vm1 = vcmp.eq.f32.partialorder %v12104_v55, 0.0 }
 0x5dc   : > { %v12119_v19 = vadd.f32 %v7409_v13, %v7329_v59  ;;  %v7162_v18 = vadd.f32 %v7161_v61, %v6489_v11  ;;  %v7163_v14 = vpop.f32.mrf.mxu1  ;;  %v7836_v49 = vmul.f32 %v10110_v27, %v12060_v52  ;;  %v7332_v59 = vmul.f32 %v12999_v57, %v12999_v57 }
 0x5dd   : > { %v6491_v3 = vpop.f32.mrf.mxu0  ;;  %v7854_v54 = vand.u32 2147483648, %v12088_v53  ;;  %v13000_v14 = vld [vmem:[#allocation105_spill] sm:$0xff] }
 0x5de   : > { %10117 = vrsqrt.f32 %v12119_v19  ;;  %v7410_v12 = vmul.f32 %v7162_v18, %v7162_v18  ;;  %v6492_v56 = vadd.f32 %v6491_v3, %v12996_v23  ;;  %v7164_v8 = vpop.f32.mrf.mxu1  ;;  %v7838_v24 = vsel %vm7837_vm10, %v12060_v52, %v7836_v49  ;;  %v12997_v52 = vld [vmem:[#allocation23_spill] sm:$0xff] }
 0x5df   : > { %v10112_v50 = vpop.eup %10111  ;;  %v6493_v28 = vpop.f32.mrf.mxu0  ;;  %v12134_v29 = vsel %vm7839_vm11, %v7840_v31, %v7838_v24  ;;  %v7331_v1 = vmul.f32 %v12997_v52, %v12997_v52  ;;  %vm7865_vm2 = vcmp.eq.f32.partialorder %v12119_v19, inf  ;;  %vm7867_vm3 = vcmp.eq.f32.partialorder %v12119_v19, 0.0 }
 0x5e0   : > { %v12136_v58 = vadd.f32 %v7410_v12, %v7330_v39  ;;  %v7165_v44 = vadd.f32 %v7164_v8, %v6492_v56  ;;  %v7166_v26 = vpop.f32.mrf.mxu1  ;;  %v7843_v33 = vmul.f32 %v10112_v50, %v12076_v9  ;;  %v8150_v43 = vpack.c.bf16 %v12134_v29, %v12132_v45 }
 0x5e1   : > { %v6496_v37 = vpop.f32.mrf.mxu0  ;;  %v7847_v39 = vand.u32 2147483648, %v12076_v9 }
 0x5e2   : > { %10119 = vrsqrt.f32 %v12136_v58  ;;  %v7411_v41 = vmul.f32 %v7165_v44, %v7165_v44  ;;  %v6497_v35 = vadd.f32 %v6496_v37, %v12998_v47  ;;  %v7169_v4 = vpop.f32.mrf.mxu1  ;;  %8433 = vmatmul.mubr.bf16.gmra.mxu0 %v9975_v60  ;;  %v7845_v40 = vsel %vm7844_vm12, %v12076_v9, %v7843_v33  ;;  %v13002_v33 = vld [vmem:[#allocation106_spill] sm:$0xff] }
 0x5e3   : > { %v10114_v34 = vpop.eup %10113  ;;  %v6498_v13 = vpop.f32.mrf.mxu0  ;;  %8440 = vmatprep.mubr.bf16.mxu0 %v9980_v51  ;;  %v12162_v23 = vsel %vm7846_vm13, %v7847_v39, %v7845_v40  ;;  %vm7872_vm4 = vcmp.eq.f32.partialorder %v12136_v58, inf  ;;  %vm7874_vm5 = vcmp.eq.f32.partialorder %v12136_v58, 0.0 }
 0x5e4   : > { %v12149_v6 = vadd.f32 %v7411_v41, %v7331_v1  ;;  %v7170_v11 = vadd.f32 %v7169_v4, %v6497_v35  ;;  %v7171_v61 = vpop.f32.mrf.mxu1  ;;  %v7850_v27 = vmul.f32 %v10114_v34, %v12088_v53  ;;  %v9983_v1 = vld [vmem:[#allocation7 + $0xcc] ss:$20 sps:$4 sm:$0xff]  }
 0x5e5   : > { %v6499_v16 = vpop.f32.mrf.mxu0  ;;  %v7861_v61 = vand.u32 2147483648, %v12104_v55 }
 0x5e6   : > { %10121 = vrsqrt.f32 %v12149_v6  ;;  %v7412_v18 = vmul.f32 %v7170_v11, %v7170_v11  ;;  %v6500_v21 = vadd.f32 %v6499_v16, %v13000_v14  ;;  %v7172_v49 = vpop.f32.mrf.mxu1  ;;  %v7852_v3 = vsel %vm7851_vm14, %v12088_v53, %v7850_v27  ;;  %v13001_v53 = vld [vmem:[#allocation25_spill] sm:$0xff]  ;;  %v13004_v27 = vld [vmem:[#allocation107_spill] sm:$0xff] }
 0x5e7   : > { %v10116_v31 = vpop.eup %10115  ;;  %v6501_v12 = vpop.f32.mrf.mxu0  ;;  %v12164_v56 = vsel %vm7853_vm15, %v7854_v54, %v7852_v3  ;;  %v7333_v26 = vmul.f32 %v13001_v53, %v13001_v53  ;;  %v7868_v54 = vand.u32 2147483648, %v12119_v19  ;;  %vm7879_vm6 = vcmp.eq.f32.partialorder %v12149_v6, inf }
 0x5e8   : > { %v12166_v8 = vadd.f32 %v7412_v18, %v7332_v59  ;;  %v7173_v24 = vadd.f32 %v7172_v49, %v6500_v21  ;;  %v7174_v60 = vpop.f32.mrf.mxu1  ;;  %v8151_v50 = vpack.c.bf16 %v12164_v56, %v12162_v23  ;;  %v7857_v28 = vmul.f32 %v10116_v31, %v12104_v55  ;;  %v13003_v59 = vld [vmem:[#allocation26_spill] sm:$0xff]  ;;  %v9981_v18 = vld [vmem:[#allocation7 + $0xc8] ss:$20 sps:$4 sm:$0xff]  }
 0x5e9   : > { %v6504_v44 = vpop.f32.mrf.mxu0  ;;  %v7334_v13 = vmul.f32 %v13003_v59, %v13003_v59  ;;  %vm7881_vm7 = vcmp.eq.f32.partialorder %v12149_v6, 0.0  ;;  %v13036_v56 = vld [vmem:[#allocation123_spill] sm:$0xff] }
 0x5ea   : > { %10123 = vrsqrt.f32 %v12166_v8  ;;  %v7413_v9 = vmul.f32 %v7173_v24, %v7173_v24  ;;  %v6505_v37 = vadd.f32 %v6504_v44, %v13002_v33  ;;  %v7177_v52 = vpop.f32.mrf.mxu1  ;;  %8441 = vmatmul.mubr.bf16.gmra.mxu0 %v9978_v62  ;;  %v7859_v34 = vsel %vm7858_vm0, %v12104_v55, %v7857_v28  ;;  %v13005_v44 = vld [vmem:[#allocation27_spill] sm:$0xff] }
 0x5eb   : > { %v10118_v41 = vpop.eup %10117  ;;  %v6506_v47 = vpop.f32.mrf.mxu0  ;;  %8448 = vmatprep.mubr.bf16.mxu0 %v9983_v1  ;;  %v12188_v49 = vsel %vm7860_vm1, %v7861_v61, %v7859_v34  ;;  %v7335_v53 = vmul.f32 %v13005_v44, %v13005_v44  ;;  %vm7886_vm8 = vcmp.eq.f32.partialorder %v12166_v8, inf  ;;  %vm7888_vm9 = vcmp.eq.f32.partialorder %v12166_v8, 0.0 }
 0x5ec   : > { %v12176_v35 = vadd.f32 %v7413_v9, %v7333_v26  ;;  %v7178_v4 = vadd.f32 %v7177_v52, %v6505_v37  ;;  %v7179_v51 = vpop.f32.mrf.mxu1  ;;  %v7864_v57 = vmul.f32 %v10118_v41, %v12119_v19  ;;  %v13006_v9 = vld [vmem:[#allocation108_spill] sm:$0xff]  ;;  %v9989_v37 = vld [vmem:[#allocation7 + $0xf4] ss:$20 sps:$4 sm:$0xff]  }
 0x5ed   : > { %v6507_v11 = vpop.f32.mrf.mxu0 }
 0x5ee   : > { %10125 = vrsqrt.f32 %v12176_v35  ;;  %v7414_v40 = vmul.f32 %v7178_v4, %v7178_v4  ;;  %v6508_v16 = vadd.f32 %v6507_v11, %v13004_v27  ;;  %v7180_v39 = vpop.f32.mrf.mxu1  ;;  %v7866_v3 = vsel %vm7865_vm2, %v12119_v19, %v7864_v57  ;;  %v13007_v57 = vld [vmem:[#allocation28_spill] sm:$0xff] }
 0x5ef   : > { %v10120_v14 = vpop.eup %10119  ;;  %v6509_v21 = vpop.f32.mrf.mxu0  ;;  %v12195_v24 = vsel %vm7867_vm3, %v7868_v54, %v7866_v3  ;;  %v7336_v59 = vmul.f32 %v13007_v57, %v13007_v57  ;;  %v7875_v11 = vand.u32 2147483648, %v12136_v58  ;;  %v9987_v54 = vld [vmem:[#allocation7 + $0xf0] ss:$20 sps:$4 sm:$0xff]   ;;  %vm7893_vm10 = vcmp.eq.f32.partialorder %v12176_v35, inf }
 0x5f0   : > { %v12192_v55 = vadd.f32 %v7414_v40, %v7334_v13  ;;  %v7181_v62 = vadd.f32 %v7180_v39, %v6508_v16  ;;  %v7182_v31 = vpop.f32.mrf.mxu1  ;;  %v7871_v12 = vmul.f32 %v10120_v14, %v12136_v58  ;;  %v13008_v40 = vld [vmem:[#allocation109_spill] sm:$0xff]  ;;  %v7882_v39 = vand.u32 2147483648, %v12149_v6 }
 0x5f1   : > { %v6512_v60 = vpop.f32.mrf.mxu0  ;;  %vm7895_vm11 = vcmp.eq.f32.partialorder %v12176_v35, 0.0 }
 0x5f2   : > { %10127 = vrsqrt.f32 %v12192_v55  ;;  %v7415_v26 = vmul.f32 %v7181_v62, %v7181_v62  ;;  %v6513_v19 = vadd.f32 %v6512_v60, %v13006_v9  ;;  %v7185_v33 = vpop.f32.mrf.mxu1  ;;  %8449 = vmatmul.mubr.bf16.gmra.mxu0 %v9981_v18  ;;  %v7873_v51 = vsel %vm7872_vm4, %v12136_v58, %v7871_v12 }
 0x5f3   : > { %v10122_v52 = vpop.eup %10121  ;;  %v6514_v1 = vpop.f32.mrf.mxu0  ;;  %8456 = vmatprep.mubr.bf16.mxu0 %v9989_v37  ;;  %v12216_v21 = vsel %vm7874_vm5, %v7875_v11, %v7873_v51  ;;  %vm7900_vm12 = vcmp.eq.f32.partialorder %v12192_v55, inf  ;;  %vm7902_vm13 = vcmp.eq.f32.partialorder %v12192_v55, 0.0 }
 0x5f4   : > { %v12204_v41 = vadd.f32 %v7415_v26, %v7335_v53  ;;  %v7186_v47 = vadd.f32 %v7185_v33, %v6513_v19  ;;  %v7187_v4 = vpop.f32.mrf.mxu1  ;;  %v7878_v34 = vmul.f32 %v10122_v52, %v12149_v6  ;;  %v13009_v26 = vld [vmem:[#allocation29_spill] sm:$0xff]  ;;  %v13010_v33 = vld [vmem:[#allocation110_spill] sm:$0xff] }
 0x5f5   : > { %v6515_v13 = vpop.f32.mrf.mxu0  ;;  %v7337_v9 = vmul.f32 %v13009_v26, %v13009_v26  ;;  %v9995_v52 = vld [vmem:[#allocation7 + $0x11c] ss:$20 sps:$4 sm:$0xff]  }
 0x5f6   : > { %10129 = vrsqrt.f32 %v12204_v41  ;;  %v7416_v61 = vmul.f32 %v7186_v47, %v7186_v47  ;;  %v6516_v27 = vadd.f32 %v6515_v13, %v13008_v40  ;;  %v7188_v16 = vpop.f32.mrf.mxu1  ;;  %v7880_v3 = vsel %vm7879_vm6, %v12149_v6, %v7878_v34  ;;  %v13011_v13 = vld [vmem:[#allocation30_spill] sm:$0xff] }
 0x5f7   : > { %v10124_v18 = vpop.eup %10123  ;;  %v6517_v14 = vpop.f32.mrf.mxu0  ;;  %v12223_v60 = vsel %vm7881_vm7, %v7882_v39, %v7880_v3  ;;  %v7338_v11 = vmul.f32 %v13011_v13, %v13011_v13  ;;  %v7889_v40 = vand.u32 2147483648, %v12166_v8  ;;  %vm7907_vm14 = vcmp.eq.f32.partialorder %v12204_v41, inf }
 0x5f8   : > { %v12220_v58 = vadd.f32 %v7416_v61, %v7336_v59  ;;  %v7189_v62 = vadd.f32 %v7188_v16, %v6516_v27  ;;  %v7190_v31 = vpop.f32.mrf.mxu1  ;;  %v7885_v12 = vmul.f32 %v10124_v18, %v12166_v8  ;;  %v13012_v16 = vld [vmem:[#allocation111_spill] sm:$0xff]  ;;  %v7896_v18 = vand.u32 2147483648, %v12176_v35 }
 0x5f9   : > { %v6520_v44 = vpop.f32.mrf.mxu0  ;;  %v9993_v14 = vld [vmem:[#allocation7 + $0x118] ss:$20 sps:$4 sm:$0xff]   ;;  %vm7909_vm15 = vcmp.eq.f32.partialorder %v12204_v41, 0.0 }
 0x5fa   : > { %10131 = vrsqrt.f32 %v12220_v58  ;;  %v7417_v19 = vmul.f32 %v7189_v62, %v7189_v62  ;;  %v6521_v6 = vadd.f32 %v6520_v44, %v13010_v33  ;;  %v7193_v37 = vpop.f32.mrf.mxu1  ;;  %8457 = vmatmul.mubr.bf16.gmra.mxu0 %v9987_v54  ;;  %v7887_v57 = vsel %vm7886_vm8, %v12166_v8, %v7885_v12 }
 0x5fb   : > { %v10126_v1 = vpop.eup %10125  ;;  %v6522_v47 = vpop.f32.mrf.mxu0  ;;  %8464 = vmatprep.mubr.bf16.mxu0 %v9995_v52  ;;  %v12244_v31 = vsel %vm7888_vm9, %v7889_v40, %v7887_v57  ;;  %vm7914_vm0 = vcmp.eq.f32.partialorder %v12220_v58, inf  ;;  %vm7916_vm1 = vcmp.eq.f32.partialorder %v12220_v58, 0.0 }
 0x5fc   : > { %v12232_v4 = vadd.f32 %v7417_v19, %v7337_v9  ;;  %v7194_v51 = vadd.f32 %v7193_v37, %v6521_v6  ;;  %v7195_v34 = vpop.f32.mrf.mxu1  ;;  %v7892_v59 = vmul.f32 %v10126_v1, %v12176_v35  ;;  %v13013_v37 = vld [vmem:[#allocation31_spill] sm:$0xff]  ;;  %v13014_v47 = vld [vmem:[#allocation112_spill] sm:$0xff] }
 0x5fd   : > { %v6523_v61 = vpop.f32.mrf.mxu0  ;;  %v7339_v52 = vmul.f32 %v13013_v37, %v13013_v37  ;;  %v10002_v37 = vld [vmem:[#allocation7 + $0x10] ss:$20 sps:$4 sm:$0xff]  }
 0x5fe   : > { %10133 = vrsqrt.f32 %v12232_v4  ;;  %v7418_v27 = vmul.f32 %v7194_v51, %v7194_v51  ;;  %v6524_v39 = vadd.f32 %v6523_v61, %v13012_v16  ;;  %v7196_v54 = vpop.f32.mrf.mxu1  ;;  %v7894_v12 = vsel %vm7893_vm10, %v12176_v35, %v7892_v59 }
 0x5ff   : > { %v10128_v3 = vpop.eup %10127  ;;  %v6525_v62 = vpop.f32.mrf.mxu0  ;;  %v12251_v19 = vsel %vm7895_vm11, %v7896_v18, %v7894_v12  ;;  %v7910_v12 = vand.u32 2147483648, %v12204_v41  ;;  %vm7921_vm2 = vcmp.eq.f32.partialorder %v12232_v4, inf  ;;  %vm7923_vm3 = vcmp.eq.f32.partialorder %v12232_v4, 0.0 }
 0x600   : > { %v12248_v8 = vadd.f32 %v7418_v27, %v7338_v11  ;;  %v7197_v44 = vadd.f32 %v7196_v54, %v6524_v39  ;;  %v7198_v26 = vpop.f32.mrf.mxu1  ;;  %v7899_v9 = vmul.f32 %v10128_v3, %v12192_v55  ;;  %v13015_v27 = vld [vmem:[#allocation32_spill] sm:$0xff]  ;;  %v7903_v54 = vand.u32 2147483648, %v12192_v55 }
 0x601   : > { %v6528_v33 = vpop.f32.mrf.mxu0  ;;  %v7340_v16 = vmul.f32 %v13015_v27, %v13015_v27 }
 0x602   : > { %10135 = vrsqrt.f32 %v12248_v8  ;;  %v7419_v1 = vmul.f32 %v7197_v44, %v7197_v44  ;;  %v6529_v35 = vadd.f32 %v6528_v33, %v13014_v47  ;;  %v7201_v51 = vpop.f32.mrf.mxu1  ;;  %8465 = vmatmul.mubr.bf16.gmra.mxu0 %v9993_v14  ;;  %v7901_v61 = vsel %vm7900_vm12, %v12192_v55, %v7899_v9  ;;  %v13016_v14 = vld [vmem:[#allocation113_spill] sm:$0xff] }
 0x603   : > { %v10130_v34 = vpop.eup %10129  ;;  %v6530_v57 = vpop.f32.mrf.mxu0  ;;  %v12272_v9 = vsel %vm7902_vm13, %v7903_v54, %v7901_v61  ;;  %9775 = vmatprep.mubr.bf16.mxu0 %v10002_v37  ;;  %v13020_v37 = vld [vmem:[#allocation115_spill] sm:$0xff]  ;;  %vm7928_vm4 = vcmp.eq.f32.partialorder %v12248_v8, inf  ;;  %vm7930_vm5 = vcmp.eq.f32.partialorder %v12248_v8, 0.0 }
 0x604   : > { %v12260_v59 = vadd.f32 %v7419_v1, %v7339_v52  ;;  %v7202_v13 = vadd.f32 %v7201_v51, %v6529_v35  ;;  %v7203_v11 = vpop.f32.mrf.mxu1  ;;  %v7906_v40 = vmul.f32 %v10130_v34, %v12204_v41  ;;  %v13017_v57 = vld [vmem:[#allocation33_spill] sm:$0xff] }
 0x605   : > { %v6531_v39 = vpop.f32.mrf.mxu0  ;;  %v13018_v11 = vld [vmem:[#allocation114_spill] sm:$0xff] }
 0x606   : > { %10137 = vrsqrt.f32 %v12260_v59  ;;  %v7420_v18 = vmul.f32 %v7202_v13, %v7202_v13  ;;  %v6532_v3 = vadd.f32 %v6531_v39, %v13016_v14  ;;  %v7204_v62 = vpop.f32.mrf.mxu1  ;;  %v7908_v33 = vsel %vm7907_vm14, %v12204_v41, %v7906_v40 }
 0x607   : > { %v10132_v44 = vpop.eup %10131  ;;  %v6533_v26 = vpop.f32.mrf.mxu0  ;;  %v12279_v35 = vsel %vm7909_vm15, %v7910_v12, %v7908_v33  ;;  %v7341_v13 = vmul.f32 %v13017_v57, %v13017_v57  ;;  %vm7935_vm6 = vcmp.eq.f32.partialorder %v12260_v59, inf  ;;  %vm7937_vm7 = vcmp.eq.f32.partialorder %v12260_v59, 0.0 }
 0x608   : > { %v12276_v55 = vadd.f32 %v7420_v18, %v7340_v16  ;;  %v7205_v52 = vadd.f32 %v7204_v62, %v6532_v3  ;;  %v7206_v1 = vpop.f32.mrf.mxu1  ;;  %v7913_v47 = vmul.f32 %v10132_v44, %v12220_v58  ;;  %v8155_v34 = vpack.c.bf16 %v12279_v35, %v12272_v9  ;;  %v13019_v62 = vld [vmem:[#allocation34_spill] sm:$0xff] }
 0x609   : > { %v6536_v51 = vpop.f32.mrf.mxu0  ;;  %v7342_v12 = vmul.f32 %v13019_v62, %v13019_v62  ;;  %v7917_v26 = vand.u32 2147483648, %v12220_v58  ;;  %v13022_v62 = vld [vmem:[#allocation116_spill] sm:$0xff]  ;;  %v13043_v35 = vpack.c.bf16 %v12051_v2, %v12044_v17 }
 0x60a   : > { %10139 = vrsqrt.f32 %v12276_v55  ;;  %v7421_v41 = vmul.f32 %v7205_v52, %v7205_v52  ;;  %v6537_v61 = vadd.f32 %v6536_v51, %v13018_v11  ;;  %v7209_v40 = vpop.f32.mrf.mxu1  ;;  %v7915_v14 = vsel %vm7914_vm0, %v12220_v58, %v7913_v47 }
 0x60b   : > { %v10134_v27 = vpop.eup %10133  ;;  %v6538_v16 = vpop.f32.mrf.mxu0  ;;  %v7924_v47 = vand.u32 2147483648, %v12232_v4  ;;  %vm7942_vm8 = vcmp.eq.f32.partialorder %v12276_v55, inf  ;;  %vm7944_vm9 = vcmp.eq.f32.partialorder %v12276_v55, 0.0 }
 0x60c   : > { %v12288_v39 = vadd.f32 %v7421_v41, %v7341_v13  ;;  %v7210_v54 = vadd.f32 %v7209_v40, %v6537_v61  ;;  %v7211_v18 = vpop.f32.mrf.mxu1  ;;  %v7920_v3 = vmul.f32 %v10134_v27, %v12232_v4  ;;  %v12300_v13 = vsel %vm7916_vm1, %v7917_v26, %v7915_v14 }
 0x60d   : > { %v6539_v44 = vpop.f32.mrf.mxu0  ;;  %v13021_v18 = vld [vmem:[#allocation35_spill] sm:$0xff] }
 0x60e   : > { %10141 = vrsqrt.f32 %v12288_v39  ;;  %v7422_v33 = vmul.f32 %v7210_v54, %v7210_v54  ;;  %v6540_v52 = vadd.f32 %v6539_v44, %v13020_v37  ;;  %v7212_v1 = vpop.f32.mrf.mxu1  ;;  %v7922_v41 = vsel %vm7921_vm2, %v12232_v4, %v7920_v3 }
 0x60f   : > { %v10136_v51 = vpop.eup %10135  ;;  %v6541_v57 = vpop.f32.mrf.mxu0  ;;  %v12307_v27 = vsel %vm7923_vm3, %v7924_v47, %v7922_v41  ;;  %v7343_v14 = vmul.f32 %v13021_v18, %v13021_v18  ;;  %vm7949_vm10 = vcmp.eq.f32.partialorder %v12288_v39, inf  ;;  %vm7951_vm11 = vcmp.eq.f32.partialorder %v12288_v39, 0.0 }
 0x610   : > { %v12304_v11 = vadd.f32 %v7422_v33, %v7342_v12  ;;  %v7213_v58 = vadd.f32 %v7212_v1, %v6540_v52  ;;  %v7214_v61 = vpop.f32.mrf.mxu1  ;;  %v7927_v40 = vmul.f32 %v10136_v51, %v12248_v8  ;;  %v8156_v54 = vpack.c.bf16 %v12307_v27, %v12300_v13  ;;  %v13023_v51 = vld [vmem:[#allocation36_spill] sm:$0xff] }
 0x611   : > { %v6544_v16 = vpop.f32.mrf.mxu0  ;;  %v7344_v57 = vmul.f32 %v13023_v51, %v13023_v51 }
 0x612   : > { %10143 = vrsqrt.f32 %v12304_v11  ;;  %v7423_v3 = vmul.f32 %v7213_v58, %v7213_v58  ;;  %v6545_v4 = vadd.f32 %v6544_v16, %v13022_v62  ;;  %v7217_v12 = vpop.f32.mrf.mxu1  ;;  %v7929_v1 = vsel %vm7928_vm4, %v12248_v8, %v7927_v40  ;;  %v13024_v16 = vld [vmem:[#allocation117_spill] sm:$0xff] }
 0x613   : > { %v10138_v44 = vpop.eup %10137  ;;  %v6546_v26 = vpop.f32.mrf.mxu0  ;;  %v7931_v58 = vand.u32 2147483648, %v12248_v8  ;;  %v7938_v40 = vand.u32 2147483648, %v12260_v59  ;;  %vm7956_vm12 = vcmp.eq.f32.partialorder %v12304_v11, inf  ;;  %vm7958_vm13 = vcmp.eq.f32.partialorder %v12304_v11, 0.0 }
 0x614   : > { %v12316_v33 = vadd.f32 %v7423_v3, %v7343_v14  ;;  %v7218_v37 = vadd.f32 %v7217_v12, %v6545_v4  ;;  %v7219_v52 = vpop.f32.mrf.mxu1  ;;  %v7934_v47 = vmul.f32 %v10138_v44, %v12260_v59 }
 0x615   : > { %v6547_v41 = vpop.f32.mrf.mxu0  ;;  %v12328_v4 = vsel %vm7930_vm5, %v7931_v58, %v7929_v1  ;;  %v13026_v58 = vld [vmem:[#allocation118_spill] sm:$0xff] }
 0x616   : > { %10145 = vrsqrt.f32 %v12316_v33  ;;  %v7424_v61 = vmul.f32 %v7218_v37, %v7218_v37  ;;  %v6548_v18 = vadd.f32 %v6547_v41, %v13024_v16  ;;  %v7220_v14 = vpop.f32.mrf.mxu1  ;;  %v7936_v12 = vsel %vm7935_vm6, %v12260_v59, %v7934_v47  ;;  %v13025_v16 = vld [vmem:[#allocation37_spill] sm:$0xff] }
 0x617   : > { %v10140_v3 = vpop.eup %10139  ;;  %v6549_v62 = vpop.f32.mrf.mxu0  ;;  %v12335_v37 = vsel %vm7937_vm7, %v7938_v40, %v7936_v12  ;;  %v7345_v1 = vmul.f32 %v13025_v16, %v13025_v16  ;;  %vm7963_vm14 = vcmp.eq.f32.partialorder %v12316_v33, inf  ;;  %vm7965_vm15 = vcmp.eq.f32.partialorder %v12316_v33, 0.0 }
 0x618   : > { %v12332_v44 = vadd.f32 %v7424_v61, %v7344_v57  ;;  %v7221_v8 = vadd.f32 %v7220_v14, %v6548_v18  ;;  %v7222_v26 = vpop.f32.mrf.mxu1  ;;  %v7941_v52 = vmul.f32 %v10140_v3, %v12276_v55  ;;  %v8157_v41 = vpack.c.bf16 %v12335_v37, %v12328_v4  ;;  %v13027_v18 = vld [vmem:[#allocation38_spill] sm:$0xff] }
 0x619   : > { %v6552_v51 = vpop.f32.mrf.mxu0  ;;  %v7346_v14 = vmul.f32 %v13027_v18, %v13027_v18 }
 0x61a   : > { %10147 = vrsqrt.f32 %v12332_v44  ;;  %v7425_v47 = vmul.f32 %v7221_v8, %v7221_v8  ;;  %v6553_v59 = vadd.f32 %v6552_v51, %v13026_v58  ;;  %v7225_v57 = vpop.f32.mrf.mxu1  ;;  %v7943_v26 = vsel %vm7942_vm8, %v12276_v55, %v7941_v52 }
 0x61b   : > { %v10142_v61 = vpop.eup %10141  ;;  %v6554_v3 = vpop.f32.mrf.mxu0  ;;  %v7945_v51 = vand.u32 2147483648, %v12276_v55  ;;  %v7952_v58 = vand.u32 2147483648, %v12288_v39  ;;  %vm7970_vm0 = vcmp.eq.f32.partialorder %v12332_v44, inf  ;;  %vm7972_vm2 = vcmp.eq.f32.partialorder %v12332_v44, 0.0 }
 0x61c   : > { %v12347_v40 = vadd.f32 %v7425_v47, %v7345_v1  ;;  %v7226_v62 = vadd.f32 %v7225_v57, %v6553_v59  ;;  %v7227_v12 = vpop.f32.mrf.mxu1  ;;  %v7948_v8 = vmul.f32 %v10142_v61, %v12288_v39  ;;  %v13028_v1 = vld [vmem:[#allocation119_spill] sm:$0xff] }
 0x61d   : > { %v6555_v16 = vpop.f32.mrf.mxu0  ;;  %v7946_v61 = vsel %vm7944_vm9, %v7945_v51, %v7943_v26  ;;  %v13031_v26 = vld [vmem:[#allocation40_spill] sm:$0xff] }
 0x61e   : > { %10149 = vrsqrt.f32 %v12347_v40  ;;  %v7426_v18 = vmul.f32 %v7226_v62, %v7226_v62  ;;  %v6556_v47 = vadd.f32 %v6555_v16, %v13028_v1  ;;  %v7228_v59 = vpop.f32.mrf.mxu1  ;;  %v7950_v57 = vsel %vm7949_vm10, %v12288_v39, %v7948_v8  ;;  %v13029_v62 = vld [vmem:[#allocation39_spill] sm:$0xff]  ;;  %v13030_v8 = vld [vmem:[#allocation120_spill] sm:$0xff] }
 0x61f   : > { %v10144_v52 = vpop.eup %10143  ;;  %v6557_v3 = vpop.f32.mrf.mxu0  ;;  %v7953_v12 = vsel %vm7951_vm11, %v7952_v58, %v7950_v57  ;;  %v7347_v16 = vmul.f32 %v13029_v62, %v13029_v62  ;;  %v7966_v57 = vand.u32 2147483648, %v12316_v33  ;;  %vm7977_vm1 = vcmp.eq.f32.partialorder %v12347_v40, inf }
 0x620   : > { %v12360_v10 = vadd.f32 %v7426_v18, %v7346_v14  ;;  %v7229_v28 = vadd.f32 %v7228_v59, %v6556_v47  ;;  %v7230_v38 = vpop.f32.mrf.mxu1  ;;  %v7955_v53 = vmul.f32 %v10144_v52, %v12304_v11  ;;  %v8158_v42 = vpack.c.bf16 %v7953_v12, %v7946_v61  ;;  %v13032_v61 = vld [vmem:[#allocation121_spill] sm:$0xff] }
 0x621   : > { %v6560_v6 = vpop.f32.mrf.mxu0  ;;  %v7348_v14 = vmul.f32 %v13031_v26, %v13031_v26  ;;  %vm7979_vm3 = vcmp.eq.f32.partialorder %v12347_v40, 0.0 }
 0x622   : > { %10151 = vrsqrt.f32 %v12360_v10  ;;  %v7427_v39 = vmul.f32 %v7229_v28, %v7229_v28  ;;  %v6561_v1 = vadd.f32 %v6560_v6, %v13030_v8  ;;  %v7233_v3 = vpop.f32.mrf.mxu1  ;;  %v7957_v47 = vsel %vm7956_vm12, %v12304_v11, %v7955_v53 }
 0x623   : > { %v10146_v55 = vpop.eup %10145  ;;  %v6562_v51 = vpop.f32.mrf.mxu0  ;;  %v7959_v6 = vand.u32 2147483648, %v12304_v11  ;;  %vm7984_vm4 = vcmp.eq.f32.partialorder %v12360_v10, inf  ;;  %v7987_v48 = vand.u32 2147483648, %v12360_v10  ;;  %vm7986_vm6 = vcmp.eq.f32.partialorder %v12360_v10, 0.0 }
 0x624   : > { %v12371_v38 = vadd.f32 %v7427_v39, %v7347_v16  ;;  %v7234_v58 = vadd.f32 %v7233_v3, %v6561_v1  ;;  %v7235_v18 = vpop.f32.mrf.mxu1  ;;  %v7962_v28 = vmul.f32 %v10146_v55, %v12316_v33 }
 0x625   : > { %v6563_v59 = vpop.f32.mrf.mxu0  ;;  %v7960_v8 = vsel %vm7958_vm13, %v7959_v6, %v7957_v47 }
 0x626   : > { %10153 = vrsqrt.f32 %v12371_v38  ;;  %v7428_v52 = vmul.f32 %v7234_v58, %v7234_v58  ;;  %v6564_v12 = vadd.f32 %v6563_v59, %v13032_v61  ;;  %v7236_v62 = vpop.f32.mrf.mxu1  ;;  %v7964_v16 = vsel %vm7963_vm14, %v12316_v33, %v7962_v28  ;;  %v13033_v58 = vld [vmem:[#allocation41_spill] sm:$0xff]  ;;  %v13034_v28 = vld [vmem:[#allocation122_spill] sm:$0xff] }
 0x627   : > { %v10148_v53 = vpop.eup %10147  ;;  %v6565_v39 = vpop.f32.mrf.mxu0  ;;  %v7967_v1 = vsel %vm7965_vm15, %v7966_v57, %v7964_v16  ;;  %v7349_v59 = vmul.f32 %v13033_v58, %v13033_v58  ;;  %vm7991_vm5 = vcmp.eq.f32.partialorder %v12371_v38, inf  ;;  %vm7993_vm7 = vcmp.eq.f32.partialorder %v12371_v38, 0.0 }
 0x628   : > { %v12384_v3 = vadd.f32 %v7428_v52, %v7348_v14  ;;  %v7237_v55 = vadd.f32 %v7236_v62, %v6564_v12  ;;  %v7238_v26 = vpop.f32.mrf.mxu1  ;;  %v8159_v51 = vpack.c.bf16 %v7967_v1, %v7960_v8  ;;  %v7969_v5 = vmul.f32 %v10148_v53, %v12332_v44  ;;  %v13035_v62 = vld [vmem:[#allocation42_spill] sm:$0xff] }
 0x629   : > { %v6568_v18 = vpop.f32.mrf.mxu0  ;;  %v7350_v16 = vmul.f32 %v13035_v62, %v13035_v62  ;;  %v7973_v8 = vand.u32 2147483648, %v12332_v44  ;;  %v7980_v1 = vand.u32 2147483648, %v12347_v40 }
 0x62a   : > { %10155 = vrsqrt.f32 %v12384_v3  ;;  %v7429_v33 = vmul.f32 %v7237_v55, %v7237_v55  ;;  %v6569_v61 = vadd.f32 %v6568_v18, %v13034_v28  ;;  %9679 = vmatprep.subr.bf16.mxu1 %v8159_v51  ;;  %v7241_v11 = vpop.f32.mrf.mxu1  ;;  %v7971_v39 = vsel %vm7970_vm0, %v12332_v44, %v7969_v5 }
 0x62b   : > { %v10150_v47 = vpop.eup %10149  ;;  %v6570_v6 = vpop.f32.mrf.mxu0  ;;  %9680 = vmatpush3.bf16.msra.mxu1 %v8151_v50  ;;  %vm7998_vm8 = vcmp.eq.f32.partialorder %v12384_v3, inf  ;;  %v8001_v17 = vand.u32 2147483648, %v12384_v3  ;;  %vm8000_vm10 = vcmp.eq.f32.partialorder %v12384_v3, 0.0 }
 0x62c   : > { %v12394_v14 = vadd.f32 %v7429_v33, %v7349_v59  ;;  %v7242_v57 = vadd.f32 %v7241_v11, %v6569_v61  ;;  %9681 = vmatprep.subr.bf16.mxu1 %v8158_v42  ;;  %v7243_v52 = vpop.f32.mrf.mxu1  ;;  %v7976_v12 = vmul.f32 %v10150_v47, %v12347_v40  ;;  %v7974_v59 = vsel %vm7972_vm2, %v7973_v8, %v7971_v39  ;;  %v13038_v61 = vld [vmem:[#allocation124_spill] sm:$0xff] }
 0x62d   : > { %v6571_v53 = vpop.f32.mrf.mxu0 }
 0x62e   : > { %10157 = vrsqrt.f32 %v12394_v14  ;;  %v7430_v23 = vmul.f32 %v7242_v57, %v7242_v57  ;;  %v6572_v42 = vadd.f32 %v6571_v53, %v13036_v56  ;;  %v7244_v50 = vpop.f32.mrf.mxu1  ;;  %v7978_v5 = vsel %vm7977_vm1, %v12347_v40, %v7976_v12  ;;  %v13039_v12 = vld [vmem:[#allocation44_spill] sm:$0xff] }
 0x62f   : > { %v10152_v55 = vpop.eup %10151  ;;  %v6573_v26 = vpop.f32.mrf.mxu0  ;;  %9682 = vmatpush3.bf16.msra.mxu1 %v8150_v43  ;;  %v7981_v33 = vsel %vm7979_vm3, %v7980_v1, %v7978_v5  ;;  %v13037_v43 = vld [vmem:[#allocation43_spill] sm:$0xff]  ;;  %v7352_v62 = vmul.f32 %v13039_v12, %v13039_v12  ;;  %v13042_v5 = vld [vmem:[#allocation126_spill] sm:$0xff]  ;;  %vm8005_vm9 = vcmp.eq.f32.partialorder %v12394_v14, inf  ;;  %vm8007_vm11 = vcmp.eq.f32.partialorder %v12394_v14, 0.0 }
 0x630   : > { %v12412_v51 = vadd.f32 %v7430_v23, %v7350_v16  ;;  %v7245_v18 = vadd.f32 %v7244_v50, %v6572_v42  ;;  %9683 = vmatprep.subr.bf16.mxu1 %v8157_v41  ;;  %v7246_v58 = vpop.f32.mrf.mxu1  ;;  %v7983_v45 = vmul.f32 %v10152_v55, %v12360_v10  ;;  %v12418_v29 = vpack.c.bf16 %v7981_v33, %v7974_v59 }
 0x631   : > { %v6576_v28 = vpop.f32.mrf.mxu0  ;;  %v7351_v44 = vmul.f32 %v13037_v43, %v13037_v43 }
 0x632   : > { %10159 = vrsqrt.f32 %v12412_v51  ;;  %v7431_v40 = vmul.f32 %v7245_v18, %v7245_v18  ;;  %v6577_v11 = vadd.f32 %v6576_v28, %v13038_v61  ;;  %v7249_v47 = vpop.f32.mrf.mxu1  ;;  %v7985_v53 = vsel %vm7984_vm4, %v12360_v10, %v7983_v45  ;;  %v13041_v10 = vld [vmem:[#allocation45_spill] sm:$0xff] }
 0x633   : > { %v10154_v6 = vpop.eup %10153  ;;  %v6578_v4 = vpop.f32.mrf.mxu0  ;;  %9684 = vmatpush3.bf16.msra.mxu1 %v8149_v36  ;;  %v13040_v36 = vld [vmem:[#allocation125_spill] sm:$0xff]  ;;  %v7988_v1 = vsel %vm7986_vm6, %v7987_v48, %v7985_v53  ;;  %v13044_v28 = vpack.c.bf16 %v12251_v19, %v12244_v31  ;;  %v13046_v31 = vld [vmem:[#allocation127_spill] sm:$0xff]  ;;  %vm8012_vm12 = vcmp.eq.f32.partialorder %v12412_v51, inf  ;;  %vm8014_vm14 = vcmp.eq.f32.partialorder %v12412_v51, 0.0 }
 0x634   : > { %v12427_v37 = vadd.f32 %v7431_v40, %v7351_v44  ;;  %v7250_v41 = vadd.f32 %v7249_v47, %v6577_v11  ;;  %9685 = vmatprep.subr.bf16.mxu1 %v8156_v54  ;;  %v7251_v57 = vpop.f32.mrf.mxu1  ;;  %v7990_v52 = vmul.f32 %v10154_v6, %v12371_v38  ;;  %v7994_v54 = vand.u32 2147483648, %v12371_v38  ;;  %v13045_v44 = vld [vmem:[#allocation46_spill] sm:$0xff] }
 0x635   : > { %v6579_v16 = vpop.f32.mrf.mxu0  ;;  %v7354_v40 = vmul.f32 %v13045_v44, %v13045_v44  ;;  %v8008_v6 = vand.u32 2147483648, %v12394_v14  ;;  %v13047_v57 = vpack.c.bf16 %v12014_v7, %v12004_v20 }
 0x636   : > { %10161 = vrsqrt.f32 %v12427_v37  ;;  %v7432_v22 = vmul.f32 %v7250_v41, %v7250_v41  ;;  %v6580_v13 = vadd.f32 %v6579_v16, %v13040_v36  ;;  %v7252_v27 = vpop.f32.mrf.mxu1  ;;  %v7992_v23 = vsel %vm7991_vm5, %v12371_v38, %v7990_v52 }
 0x637   : > { %v10156_v39 = vpop.eup %10155  ;;  %v6581_v8 = vpop.f32.mrf.mxu0  ;;  %9686 = vmatpush3.bf16.msra.mxu1 %v8148_v25  ;;  %v7995_v55 = vsel %vm7993_vm7, %v7994_v54, %v7992_v23  ;;  %v7353_v25 = vmul.f32 %v13041_v10, %v13041_v10  ;;  %v13048_v16 = vpack.c.bf16 %v12223_v60, %v12216_v21  ;;  %v13051_v60 = vpack.c.bf16 %v11974_v15, %v11964_v63 }
 0x638   : > { %v12448_v56 = vadd.f32 %v7432_v22, %v7352_v62  ;;  %v7253_v42 = vadd.f32 %v7252_v27, %v6580_v13  ;;  %9687 = vmatprep.subr.bf16.mxu1 %v8155_v34  ;;  %v7254_v50 = vpop.f32.mrf.mxu1  ;;  %v7997_v32 = vmul.f32 %v10156_v39, %v12384_v3  ;;  %v12454_v0 = vpack.c.bf16 %v7995_v55, %v7988_v1  ;;  %v13050_v27 = vld [vmem:[#allocation128_spill] sm:$0xff] }
 0x639   : > { %v6584_v26 = vpop.f32.mrf.mxu0  ;;  %v13052_v50 = vpack.c.bf16 %v12195_v24, %v12188_v49  ;;  %v8015_v63 = vand.u32 2147483648, %v12412_v51  ;;  %vm8019_vm13 = vcmp.eq.f32.partialorder %v12427_v37, inf  ;;  %v13054_v49 = vld [vmem:[#allocation129_spill] sm:$0xff]  ;;  %vm8021_vm15 = vcmp.eq.f32.partialorder %v12427_v37, 0.0 }
 0x63a   : > { %10163 = vrsqrt.f32 %v12448_v56  ;;  %v7433_v38 = vmul.f32 %v7253_v42, %v7253_v42  ;;  %v6585_v18 = vadd.f32 %v6584_v26, %v13042_v5  ;;  %v7257_v58 = vpop.f32.mrf.mxu1  ;;  %v7999_v11 = vsel %vm7998_vm8, %v12384_v3, %v7997_v32  ;;  %v13049_v3 = vld [vmem:[#allocation47_spill] sm:$0xff]  ;;  %v13053_v26 = vld [vmem:[#allocation48_spill] sm:$0xff] }
 0x63b   : > { %v10158_v59 = vpop.eup %10157  ;;  %v6586_v9 = vpop.f32.mrf.mxu0  ;;  %9688 = vmatpush3.bf16.msra.mxu1 %v13043_v35  ;;  %v8002_v48 = vsel %vm8000_vm10, %v8001_v17, %v7999_v11  ;;  %v7355_v13 = vmul.f32 %v13049_v3, %v13049_v3  ;;  %v7356_v32 = vmul.f32 %v13053_v26, %v13053_v26  ;;  %v9966_v5 = vld [vmem:[#allocation7 + $0x8] ss:$20 sps:$4 sm:$0xff]   ;;  %vm8026_vm0 = vcmp.eq.f32.partialorder %v12448_v56, inf }
 0x63c   : > { %v12463_v34 = vadd.f32 %v7433_v38, %v7353_v25  ;;  %v7258_v33 = vadd.f32 %v7257_v58, %v6585_v18  ;;  %9689 = vmatprep.subr.bf16.mxu1 %v13044_v28  ;;  %v7259_v45 = vpop.f32.mrf.mxu1  ;;  %v8004_v43 = vmul.f32 %v10158_v59, %v12394_v14  ;;  %v8022_v18 = vand.u32 2147483648, %v12427_v37 }
 0x63d   : > { %v6587_v61 = vpop.f32.mrf.mxu0  ;;  %v13055_v9 = vpack.c.bf16 %v11934_v46, %v11924_v30  ;;  %v13056_v30 = vld [vmem:[#allocation49_spill] sm:$0xff]  ;;  %vm8028_vm2 = vcmp.eq.f32.partialorder %v12448_v56, 0.0 }
 0x63e   : > { %10165 = vrsqrt.f32 %v12463_v34  ;;  %v7434_v2 = vmul.f32 %v7258_v33, %v7258_v33  ;;  %v6588_v19 = vadd.f32 %v6587_v61, %v13046_v31  ;;  %v7260_v47 = vpop.f32.mrf.mxu1  ;;  %v8006_v52 = vsel %vm8005_vm9, %v12394_v14, %v8004_v43  ;;  %v9986_v33 = vld [vmem:[#allocation7 + $0x34] ss:$20 sps:$4 sm:$0xff]  }
 0x63f   : > { %v10160_v4 = vpop.eup %10159  ;;  %v6589_v41 = vpop.f32.mrf.mxu0  ;;  %9690 = vmatpush3.bf16.msra.mxu1 %v13047_v57  ;;  %v8009_v22 = vsel %vm8007_vm11, %v8008_v6, %v8006_v52  ;;  %v7357_v46 = vmul.f32 %v13056_v30, %v13056_v30  ;;  %v13058_v52 = vld [vmem:[#allocation50_spill] sm:$0xff]  ;;  %vm8033_vm1 = vcmp.eq.f32.partialorder %v12463_v34, inf  ;;  %vm8035_vm3 = vcmp.eq.f32.partialorder %v12463_v34, 0.0 }
 0x640   : > { %v12484_v12 = vadd.f32 %v7434_v2, %v7354_v40  ;;  %v7261_v62 = vadd.f32 %v7260_v47, %v6588_v19  ;;  %9691 = vmatprep.subr.bf16.mxu1 %v13048_v16  ;;  %v7262_v53 = vpop.f32.mrf.mxu1  ;;  %v8011_v20 = vmul.f32 %v10160_v4, %v12412_v51  ;;  %v12490_v7 = vpack.c.bf16 %v8009_v22, %v8002_v48  ;;  %v13057_v2 = vld [vmem:[#allocation130_spill] sm:$0xff] }
 0x641   : > { %v6592_v36 = vpop.f32.mrf.mxu0  ;;  %v8029_v48 = vand.u32 2147483648, %v12448_v56 }
 0x642   : > { %10167 = vrsqrt.f32 %v12484_v12  ;;  %v7435_v14 = vmul.f32 %v7261_v62, %v7261_v62  ;;  %v6593_v54 = vadd.f32 %v6592_v36, %v13050_v27  ;;  %v7265_v39 = vpop.f32.mrf.mxu1  ;;  %v8013_v25 = vsel %vm8012_vm12, %v12412_v51, %v8011_v20  ;;  %v13059_v36 = vld [vmem:[#allocation131_spill] sm:$0xff] }
 0x643   : > { %v10162_v8 = vpop.eup %10161  ;;  %v6594_v21 = vpop.f32.mrf.mxu0  ;;  %9692 = vmatpush3.bf16.msra.mxu1 %v13051_v60  ;;  %v8016_v44 = vsel %vm8014_vm14, %v8015_v63, %v8013_v25  ;;  %v7358_v62 = vmul.f32 %v13058_v52, %v13058_v52  ;;  %vm8040_vm4 = vcmp.eq.f32.partialorder %v12484_v12, inf  ;;  %vm8042_vm6 = vcmp.eq.f32.partialorder %v12484_v12, 0.0 }
 0x644   : > { %v12499_v23 = vadd.f32 %v7435_v14, %v7355_v13  ;;  %v7266_v42 = vadd.f32 %v7265_v39, %v6593_v54  ;;  %9693 = vmatprep.subr.bf16.mxu1 %v13052_v50  ;;  %v7267_v1 = vpop.f32.mrf.mxu1  ;;  %v8018_v55 = vmul.f32 %v10162_v8, %v12427_v37  ;;  %v8036_v13 = vand.u32 2147483648, %v12463_v34  ;;  %v9984_v14 = vld [vmem:[#allocation7 + $0x30] ss:$20 sps:$4 sm:$0xff]  }
 0x645   : > { %v6595_v10 = vpop.f32.mrf.mxu0  ;;  %v9992_v8 = vld [vmem:[#allocation7 + $0x5c] ss:$20 sps:$4 sm:$0xff]  }
 0x646   : > { %10169 = vrsqrt.f32 %v12499_v23  ;;  %v7436_v15 = vmul.f32 %v7266_v42, %v7266_v42  ;;  %v6596_v24 = vadd.f32 %v6595_v10, %v13054_v49  ;;  %v7268_v38 = vpop.f32.mrf.mxu1  ;;  %v8020_v35 = vsel %vm8019_vm13, %v12427_v37, %v8018_v55 }
 0x647   : > { %v10164_v58 = vpop.eup %10163  ;;  %v6597_v59 = vpop.f32.mrf.mxu0  ;;  %9694 = vmatpush3.bf16.msra.mxu1 %v13055_v9  ;;  %v8023_v40 = vsel %vm8021_vm15, %v8022_v18, %v8020_v35  ;;  %v8043_v49 = vand.u32 2147483648, %v12484_v12  ;;  %vm8047_vm5 = vcmp.eq.f32.partialorder %v12499_v23, inf  ;;  %vm8049_vm7 = vcmp.eq.f32.partialorder %v12499_v23, 0.0 }
 0x648   : > { %v12520_v28 = vadd.f32 %v7436_v15, %v7356_v32  ;;  %v7269_v45 = vadd.f32 %v7268_v38, %v6596_v24  ;;  %v7270_v43 = vpop.f32.mrf.mxu1  ;;  %v8025_v11 = vmul.f32 %v10164_v58, %v12448_v56  ;;  %v12523_v17 = vpack.c.bf16 %v8023_v40, %v8016_v44  ;;  %v13060_v32 = vld [vmem:[#allocation51_spill] sm:$0xff] }
 0x649   : > { %v6600_v61 = vpop.f32.mrf.mxu0  ;;  %v7359_v10 = vmul.f32 %v13060_v32, %v13060_v32  ;;  %v8050_v24 = vand.u32 2147483648, %v12499_v23  ;;  %v9990_v38 = vld [vmem:[#allocation7 + $0x58] ss:$20 sps:$4 sm:$0xff]  }
 0x64a   : > { %10171 = vrsqrt.f32 %v12520_v28  ;;  %v7437_v51 = vmul.f32 %v7269_v45, %v7269_v45  ;;  %v6601_v37 = vadd.f32 %v6600_v61, %v13057_v2  ;;  %v7273_v31 = vpop.f32.mrf.mxu1  ;;  %8506 = vmatmul.mubr.bf16.vlgmr.msra.gmra.mxu1 %v9966_v5  ;;  %v8027_v53 = vsel %vm8026_vm0, %v12448_v56, %v8025_v11  ;;  %v9998_v58 = vld [vmem:[#allocation7 + $0x84] ss:$20 sps:$4 sm:$0xff]   ;;  %v9996_v61 = vld [vmem:[#allocation7 + $0x80] ss:$20 sps:$4 sm:$0xff]  }
 0x64b   : > { %v10166_v19 = vpop.eup %10165  ;;  %v6602_v47 = vpop.f32.mrf.mxu0  ;;  %8513 = vmatprep.mubr.bf16.mxu1 %v9986_v33  ;;  %v8030_v42 = vsel %vm8028_vm2, %v8029_v48, %v8027_v53  ;;  %vm8054_vm8 = vcmp.eq.f32.partialorder %v12520_v28, inf  ;;  %vm8056_vm10 = vcmp.eq.f32.partialorder %v12520_v28, 0.0  ;;  %v10004_v53 = vld [vmem:[#allocation7 + $0xd0] ss:$20 sps:$4 sm:$0xff]  }
 0x64c   : > { %v12529_v6 = vadd.f32 %v7437_v51, %v7357_v46  ;;  %v7274_v4 = vadd.f32 %v7273_v31, %v6601_v37  ;;  %v7275_v41 = vpop.f32.mrf.mxu1  ;;  %v8032_v57 = vmul.f32 %v10166_v19, %v12463_v34  ;;  %v10001_v51 = vld [vmem:[#allocation7 + $0xac] ss:$20 sps:$4 sm:$0xff]   ;;  %v10009_v48 = vld [vmem:[#allocation7 + $0xfc] ss:$20 sps:$4 sm:$0xff]  }
 0x64d   : > { %v6603_v16 = vpop.f32.mrf.mxu0 }
 0x64e   : > { %10173 = vrsqrt.f32 %v12529_v6  ;;  %v7438_v22 = vmul.f32 %v7274_v4, %v7274_v4  ;;  %v6604_v20 = vadd.f32 %v6603_v16, %v13059_v36  ;;  %v7276_v3 = vpop.f32.mrf.mxu1  ;;  %v8034_v54 = vsel %vm8033_vm1, %v12463_v34, %v8032_v57  ;;  %v10006_v16 = vld [vmem:[#allocation7 + $0xd4] ss:$20 sps:$4 sm:$0xff]   ;;  %v10014_v36 = vld [vmem:[#allocation7 + $0x124] ss:$20 sps:$4 sm:$0xff]  }
 0x64f   : > { %v10168_v27 = vpop.eup %10167  ;;  %v6605_v39 = vpop.f32.mrf.mxu0  ;;  %v8037_v50 = vsel %vm8035_vm3, %v8036_v13, %v8034_v54  ;;  %vm8061_vm9 = vcmp.eq.f32.partialorder %v12529_v6, inf  ;;  %vm8063_vm11 = vcmp.eq.f32.partialorder %v12529_v6, 0.0  ;;  %v10016_v13 = vld [vmem:[#allocation7 + $0xd8] ss:$20 sps:$4 sm:$0xff]  }
 0x650   : > { %v12544_v21 = vadd.f32 %v7438_v22, %v7358_v62  ;;  %v7277_v60 = vadd.f32 %v7276_v3, %v6604_v20  ;;  %v7278_v1 = vpop.f32.mrf.mxu1  ;;  %v8039_v55 = vmul.f32 %v10168_v27, %v12484_v12  ;;  %v12547_v26 = vpack.c.bf16 %v8037_v50, %v8030_v42  ;;  %v9999_v62 = vld [vmem:[#allocation7 + $0xa8] ss:$20 sps:$4 sm:$0xff]   ;;  %v10007_v22 = vld [vmem:[#allocation7 + $0xf8] ss:$20 sps:$4 sm:$0xff]   ;;  %v10012_v20 = vld [vmem:[#allocation7 + $0x120] ss:$20 sps:$4 sm:$0xff]  }
 0x651   : > { %v10015_v3 = vld [vmem:[#allocation7 + $0xb0] ss:$20 sps:$4 sm:$0xff]   ;;  %v10011_v27 = vld [vmem:[#allocation7 + $0x88] ss:$20 sps:$4 sm:$0xff]  }
 0x652   : > { %10175 = vrsqrt.f32 %v12544_v21  ;;  %v7439_v56 = vmul.f32 %v7277_v60, %v7277_v60  ;;  %8514 = vmatmul.mubr.bf16.gmra.mxu1 %v9984_v14  ;;  %v8041_v15 = vsel %vm8040_vm4, %v12484_v12, %v8039_v55  ;;  %v8057_v12 = vand.u32 2147483648, %v12520_v28  ;;  %v10017_v14 = vld [vmem:[#allocation7 + $0x100] ss:$20 sps:$4 sm:$0xff]  }
 0x653   : > { %v10170_v34 = vpop.eup %10169  ;;  %8521 = vmatprep.mubr.bf16.mxu1 %v9992_v8  ;;  %v8044_v9 = vsel %vm8042_vm6, %v8043_v49, %v8041_v15  ;;  %vm8068_vm12 = vcmp.eq.f32.partialorder %v12544_v21, inf  ;;  %v8071_v47 = vand.u32 2147483648, %v12544_v21  ;;  %vm8070_vm14 = vcmp.eq.f32.partialorder %v12544_v21, 0.0 }
 0x654   : > { %v7519_v25 = vadd.f32 %v7439_v56, %v7359_v10  ;;  %v8046_v63 = vmul.f32 %v10170_v34, %v12499_v23 }
 0x656   : > { %10177 = vrsqrt.f32 %v7519_v25  ;;  %v8048_v18 = vsel %vm8047_vm5, %v12499_v23, %v8046_v63  ;;  %v8064_v23 = vand.u32 2147483648, %v12529_v6  ;;  %vm8075_vm13 = vcmp.eq.f32.partialorder %v7519_v25, inf }
 0x657   : > { %v10172_v5 = vpop.eup %10171  ;;  %v8051_v35 = vsel %vm8049_vm7, %v8050_v24, %v8048_v18  ;;  %vm8077_vm15 = vcmp.eq.f32.partialorder %v7519_v25, 0.0 }
 0x658   : > { %v8053_v59 = vmul.f32 %v10172_v5, %v12520_v28  ;;  %v8165_v33 = vpack.c.bf16 %v8051_v35, %v8044_v9 }
 0x65a   : > { %8522 = vmatmul.mubr.bf16.gmra.mxu1 %v9990_v38  ;;  %v8055_v43 = vsel %vm8054_vm8, %v12520_v28, %v8053_v59 }
 0x65b   : > { %v10174_v45 = vpop.eup %10173  ;;  %8529 = vmatprep.mubr.bf16.mxu1 %v9998_v58  ;;  %v8058_v30 = vsel %vm8056_vm10, %v8057_v12, %v8055_v43 }
 0x65c   : > { %v8060_v44 = vmul.f32 %v10174_v45, %v12529_v6 }
 0x65e   : > { %v8062_v40 = vsel %vm8061_vm9, %v12529_v6, %v8060_v44  ;;  %v8078_v6 = vand.u32 2147483648, %v7519_v25 }
 0x65f   : > { %v10176_v11 = vpop.eup %10175  ;;  %v8065_v46 = vsel %vm8063_vm11, %v8064_v23, %v8062_v40 }
 0x660   : > { %v8067_v2 = vmul.f32 %v10176_v11, %v12544_v21  ;;  %v8166_v37 = vpack.c.bf16 %v8065_v46, %v8058_v30 }
 0x662   : > { %8530 = vmatmul.mubr.bf16.gmra.mxu1 %v9996_v61  ;;  %v8069_v19 = vsel %vm8068_vm12, %v12544_v21, %v8067_v2 }
 0x663   : > { %v10178_v31 = vpop.eup %10177  ;;  %8537 = vmatprep.mubr.bf16.mxu1 %v10001_v51  ;;  %v8072_v41 = vsel %vm8070_vm14, %v8071_v47, %v8069_v19 }
 0x664   : > { %v8074_v28 = vmul.f32 %v10178_v31, %v7519_v25 }
 0x666   : > { %v8076_v4 = vsel %vm8075_vm13, %v7519_v25, %v8074_v28 }
 0x667   : > { %v8079_v57 = vsel %vm8077_vm15, %v8078_v6, %v8076_v4 }
 0x668   : > { %v8167_v52 = vpack.c.bf16 %v8079_v57, %v8072_v41 }
 0x66a   : > { %9759 = vmatprep.subr.bf16.mxu0 %v8167_v52  ;;  %9791 = vmatprep.subr.bf16.mxu1 %v8167_v52 }
 0x66b   : > { %9760 = vmatpush3.bf16.msra.mxu0 %v8167_v52  ;;  %9799 = vmatpush3.bf16.msra.mxu1 %v8167_v52 }
 0x66c   : > { %9761 = vmatprep.subr.bf16.mxu0 %v8166_v37  ;;  %9792 = vmatprep.subr.bf16.mxu1 %v8166_v37 }
 0x66d   : > { %8538 = vmatmul.mubr.bf16.gmra.mxu1 %v9999_v62 }
 0x66e   : > { %8545 = vmatprep.mubr.bf16.mxu1 %v10006_v16 }
 0x66f   : > { %9762 = vmatpush3.bf16.msra.mxu0 %v8166_v37  ;;  %9800 = vmatpush3.bf16.msra.mxu1 %v8166_v37 }
 0x670   : > { %9763 = vmatprep.subr.bf16.mxu0 %v8165_v33  ;;  %9793 = vmatprep.subr.bf16.mxu1 %v8165_v33 }
 0x673   : > { %9764 = vmatpush3.bf16.msra.mxu0 %v8165_v33  ;;  %9801 = vmatpush3.bf16.msra.mxu1 %v8165_v33 }
 0x674   : > { %9765 = vmatprep.subr.bf16.mxu0 %v12547_v26  ;;  %9794 = vmatprep.subr.bf16.mxu1 %v12547_v26 }
 0x675   : > { %8546 = vmatmul.mubr.bf16.gmra.mxu1 %v10004_v53 }
 0x676   : > { %8553 = vmatprep.mubr.bf16.mxu1 %v10009_v48 }
 0x677   : > { %9766 = vmatpush3.bf16.msra.mxu0 %v12547_v26  ;;  %9802 = vmatpush3.bf16.msra.mxu1 %v12547_v26 }
 0x678   : > { %9767 = vmatprep.subr.bf16.mxu0 %v12523_v17  ;;  %9795 = vmatprep.subr.bf16.mxu1 %v12523_v17 }
 0x67b   : > { %9768 = vmatpush3.bf16.msra.mxu0 %v12523_v17  ;;  %9803 = vmatpush3.bf16.msra.mxu1 %v12523_v17  ;;  %v10003_v17 = vld [vmem:[#allocation7 + $0x38] ss:$20 sps:$4 sm:$0xff]  }
 0x67c   : > { %9769 = vmatprep.subr.bf16.mxu0 %v12490_v7  ;;  %9796 = vmatprep.subr.bf16.mxu1 %v12490_v7 }
 0x67d   : > { %8554 = vmatmul.mubr.bf16.gmra.mxu1 %v10007_v22 }
 0x67e   : > { %8561 = vmatprep.mubr.bf16.mxu1 %v10014_v36 }
 0x67f   : > { %9770 = vmatpush3.bf16.msra.mxu0 %v12490_v7  ;;  %9804 = vmatpush3.bf16.msra.mxu1 %v12490_v7  ;;  %v10010_v7 = vld [vmem:[#allocation7 + $0x60] ss:$20 sps:$4 sm:$0xff]  }
 0x680   : > { %9771 = vmatprep.subr.bf16.mxu0 %v12454_v0  ;;  %9797 = vmatprep.subr.bf16.mxu1 %v12454_v0 }
 0x683   : > { %9772 = vmatpush3.bf16.msra.mxu0 %v12454_v0  ;;  %9805 = vmatpush3.bf16.msra.mxu1 %v12454_v0  ;;  %v10018_v0 = vld [vmem:[#allocation7 + $0x128] ss:$20 sps:$4 sm:$0xff]  }
 0x684   : > { %9773 = vmatprep.subr.bf16.mxu0 %v12418_v29  ;;  %9798 = vmatprep.subr.bf16.mxu1 %v12418_v29 }
 0x685   : > { %8562 = vmatmul.mubr.bf16.gmra.mxu1 %v10012_v20 }
 0x686   : > { %9783 = vmatprep.mubr.bf16.mxu1 %v10015_v3 }
 0x687   : > { %9774 = vmatpush3.bf16.msra.mxu0 %v12418_v29  ;;  %9806 = vmatpush3.bf16.msra.mxu1 %v12418_v29 }
 0x68a   : > { %9776 = vmatmul.mubr.bf16.vlgmr.msra.gmra.mxu0 %v10003_v17  ;;  %v9631_v54 = vpop.f32.mrf.mxu0 }
 0x68b   : > { %9779 = vmatprep.mubr.bf16.mxu0 %v10010_v7 }
 0x68c   : > { %v9632_v39 = vpop.f32.mrf.mxu0 }
 0x68d   : > { %9784 = vmatmul.mubr.bf16.vlgmr.msra.gmra.mxu1 %v10016_v13  ;;  %v9633_v7 = vadd.f32 %v9632_v39, %v9631_v54 }
 0x68e   : > { %9787 = vmatprep.mubr.bf16.mxu1 %v10017_v14  ;;  %v9634_v8 = vpop.f32.mrf.mxu0 }
 0x690   : > { %v9635_v21 = vpop.f32.mrf.mxu0 }
 0x691   : > { %v9636_v13 = vadd.f32 %v9635_v21, %v9634_v8 }
 0x692   : > { %9780 = vmatmul.mubr.bf16.gmra.mxu0 %v10011_v27  ;;  %v9637_v60 = vpop.f32.mrf.mxu0 }
 0x694   : > { %v9638_v42 = vpop.f32.mrf.mxu0 }
 0x695   : > { %9788 = vmatmul.mubr.bf16.gmra.mxu1 %v10018_v0  ;;  %v9639_v14 = vadd.f32 %v9638_v42, %v9637_v60 }
 0x696   : > { %v9640_v50 = vpop.f32.mrf.mxu0 }
 0x698   : > { %v9641_v1 = vpop.f32.mrf.mxu0 }
 0x69a   : > { %v9643_v29 = vpop.f32.mrf.mxu0 }
 0x69c   : > { %v9644_v55 = vpop.f32.mrf.mxu0 }
 0x69e   : > { %v9646_v26 = vpop.f32.mrf.mxu0 }
 0x6a0   : > { %v9647_v32 = vpop.f32.mrf.mxu0 }
 0x6a2   : > { %v9649_v10 = vpop.f32.mrf.mxu0 }
 0x6a4   : > { %v9650_v56 = vpop.f32.mrf.mxu0 }
 0x6a6   : > { %v9652_v34 = vpop.f32.mrf.mxu0 }
 0x6a8   : > { %v9653_v25 = vpop.f32.mrf.mxu0 }
 0x6aa   : > { %v9655_v15 = vpop.f32.mrf.mxu0 }
 0x6ac   : > { %v9656_v38 = vpop.f32.mrf.mxu0 }
 0x6ae   : > { %v9658_v58 = vpop.f32.mrf.mxu0 }
 0x6b0   : > { %v9659_v35 = vpop.f32.mrf.mxu0 }
 0x6b1   : > { %v9660_v21 = vadd.f32 %v9659_v35, %v9658_v58 }
 0x6b2   : > { %v9661_v43 = vpop.f32.mrf.mxu0 }
 0x6b4   : > { %v9662_v23 = vpop.f32.mrf.mxu0 }
 0x6b5   : > { %v9663_v42 = vadd.f32 %v9662_v23, %v9661_v43 }
 0x6b6   : > { %v9664_v11 = vpop.f32.mrf.mxu0 }
 0x6b8   : > { %v9665_v51 = vpop.f32.mrf.mxu0 }
 0x6ba   : > { %v9667_v37 = vpop.f32.mrf.mxu0 }
 0x6bc   : > { %v9668_v28 = vpop.f32.mrf.mxu0 }
 0x6be   : > { %v9670_v4 = vpop.f32.mrf.mxu0 }
 0x6c0   : > { %v9671_v52 = vpop.f32.mrf.mxu0 }
 0x6c2   : > { %v9673_v53 = vpop.f32.mrf.mxu0 }
 0x6c4   : > { %v9674_v36 = vpop.f32.mrf.mxu0 }
 0x6c6   : > { %v9676_v17 = vpop.f32.mrf.mxu0 }
 0x70a   : > { %v9695_v63 = vpop.f32.mrf.mxu1 }
 0x70c   : > { %v9696_v49 = vpop.f32.mrf.mxu1 }
 0x70d   : > { %v9697_v39 = vadd.f32 %v9696_v49, %v9695_v63 }
 0x70e   : > { %v9698_v24 = vpop.f32.mrf.mxu1 }
 0x710   : > { %v9699_v5 = vpop.f32.mrf.mxu1 }
 0x711   : > { %v9700_v54 = vadd.f32 %v9699_v5, %v9698_v24 }
 0x712   : > { %v9701_v18 = vpop.f32.mrf.mxu1 }
 0x713   : > { %v8511_v49 = vadd.f32 %v9700_v54, %v9636_v13 }
 0x714   : > { %v9702_v59 = vpop.f32.mrf.mxu1 }
 0x715   : > { %v9703_v27 = vadd.f32 %v9702_v59, %v9701_v18  ;;  %v9677_v18 = vpop.f32.mrf.mxu0 }
 0x716   : > { %v9704_v9 = vpop.f32.mrf.mxu1 }
 0x718   : > { %v9705_v33 = vpop.f32.mrf.mxu1 }
 0x719   : > { %v9706_v60 = vadd.f32 %v9705_v33, %v9704_v9 }
 0x71a   : > { %v9707_v45 = vpop.f32.mrf.mxu1 }
 0x71c   : > { %v9708_v44 = vpop.f32.mrf.mxu1 }
 0x71e   : > { %v12596_v12 = vpop.f32.mrf.mxu1 }
 0x71f   : > { %13061 = vst [vmem:[#allocation53_spill] sm:$0xff] %v12596_v12  ;;  %v9645_v12 = vadd.f32 %v9644_v55, %v9643_v29  ;;  %v9709_v29 = vadd.f32 %v9708_v44, %v9707_v45  ;;  %v8516_v55 = vadd.f32 %v9703_v27, %v9639_v14 }
 0x720   : > { %v12598_v40 = vpop.f32.mrf.mxu1 }
 0x721   : > { %13062 = vst [vmem:[#allocation54_spill] sm:$0xff] %v12598_v40  ;;  %v9642_v40 = vadd.f32 %v9641_v1, %v9640_v50  ;;  %v9666_v1 = vadd.f32 %v9665_v51, %v9664_v11  ;;  %v12610_v50 = vadd.f32 %v9668_v28, %v9667_v37  ;;  %v8524_v11 = vadd.f32 %v9709_v29, %v9645_v12 }
 0x722   : > { %v9713_v61 = vpop.f32.mrf.mxu1 }
 0x723   : > { %v8519_v58 = vadd.f32 %v9706_v60, %v9642_v40 }
 0x724   : > { %v9714_v30 = vpop.f32.mrf.mxu1 }
 0x726   : > { %v9716_v46 = vpop.f32.mrf.mxu1  ;;  %v13068_v33 = vld [vmem:[#allocation53_spill] sm:$0xff] }
 0x728   : > { %v9717_v2 = vpop.f32.mrf.mxu1  ;;  %v13069_v45 = vld [vmem:[#allocation54_spill] sm:$0xff] }
 0x729   : > { %v9712_v43 = vadd.f32 %v13069_v45, %v13068_v33 }
 0x72d   : > { %v9719_v31 = vpop.f32.mrf.mxu1 }
 0x72f   : > { %v9720_v19 = vpop.f32.mrf.mxu1 }
 0x731   : > { %v9722_v47 = vpop.f32.mrf.mxu1 }
 0x733   : > { %v9723_v6 = vpop.f32.mrf.mxu1 }
 0x734   : > { %v9724_v51 = vadd.f32 %v9723_v6, %v9722_v47 }
 0x735   : > { %v9725_v41 = vpop.f32.mrf.mxu1 }
 0x737   : > { %v9726_v57 = vpop.f32.mrf.mxu1 }
 0x738   : > { %v9727_v59 = vadd.f32 %v9726_v57, %v9725_v41 }
 0x739   : > { %v9728_v62 = vpop.f32.mrf.mxu1 }
 0x73a   : > { %v8548_v35 = vadd.f32 %v9727_v59, %v9663_v42 }
 0x73b   : > { %v9729_v16 = vpop.f32.mrf.mxu1 }
 0x73c   : > { %v9730_v9 = vadd.f32 %v9729_v16, %v9728_v62 }
 0x73d   : > { %v12600_v48 = vpop.f32.mrf.mxu1 }
 0x73e   : > { %13063 = vst [vmem:[#allocation55_spill] sm:$0xff] %v12600_v48  ;;  %v12608_v48 = vadd.f32 %v9647_v32, %v9646_v26  ;;  %v12612_v32 = vadd.f32 %v9671_v52, %v9670_v4  ;;  %v8551_v62 = vadd.f32 %v9730_v9, %v9666_v1 }
 0x73f   : > { %v12602_v22 = vpop.f32.mrf.mxu1 }
 0x740   : > { %13064 = vst [vmem:[#allocation56_spill] sm:$0xff] %v12602_v22  ;;  %13067 = vst [vmem:[#allocation59_spill] sm:$0xff] %v12608_v48  ;;  %v9651_v22 = vadd.f32 %v9650_v56, %v9649_v10  ;;  %v9675_v48 = vadd.f32 %v9674_v36, %v9673_v53  ;;  %v9715_v10 = vadd.f32 %v9714_v30, %v9713_v61 }
 0x741   : > { %v12604_v20 = vpop.f32.mrf.mxu1 }
 0x742   : > { %13065 = vst [vmem:[#allocation57_spill] sm:$0xff] %v12604_v20  ;;  %v9654_v20 = vadd.f32 %v9653_v25, %v9652_v34  ;;  %v9721_v34 = vadd.f32 %v9720_v19, %v9719_v31  ;;  %v12614_v25 = vadd.f32 %v9677_v18, %v9676_v17  ;;  %v8532_v37 = vadd.f32 %v9715_v10, %v9651_v22 }
 0x743   : > { %v12606_v3 = vpop.f32.mrf.mxu1 }
 0x744   : > { %13066 = vst [vmem:[#allocation58_spill] sm:$0xff] %v12606_v3  ;;  %v9657_v3 = vadd.f32 %v9656_v38, %v9655_v15  ;;  %v8508_v15 = vadd.f32 %v9697_v39, %v9633_v7  ;;  %v9718_v38 = vadd.f32 %v9717_v2, %v9716_v46  ;;  %v8543_v7 = vadd.f32 %v9724_v51, %v9660_v21 }
 0x745   : > { %v9737_v0 = vpop.f32.mrf.mxu1  ;;  %v13070_v12 = vld [vmem:[#allocation55_spill] sm:$0xff] }
 0x746   : > { %v8540_v19 = vadd.f32 %v9721_v34, %v9657_v3  ;;  %v8535_v41 = vadd.f32 %v9718_v38, %v9654_v20 }
 0x747   : > { %v9738_v8 = vpop.f32.mrf.mxu1  ;;  %v13071_v36 = vld [vmem:[#allocation56_spill] sm:$0xff]  ;;  %v13074_v34 = vld [vmem:[#allocation59_spill] sm:$0xff] }
 0x748   : > { %v9739_v46 = vadd.f32 %v9738_v8, %v9737_v0  ;;  %v9733_v17 = vadd.f32 %v13071_v36, %v13070_v12 }
 0x749   : > { %v9740_v26 = vpop.f32.mrf.mxu1  ;;  %v13072_v29 = vld [vmem:[#allocation57_spill] sm:$0xff] }
 0x74a   : > { %v9777_v56 = vpop.f32.mrf.mxu0  ;;  %v8564_v20 = vadd.f32 %v9739_v46, %v9675_v48  ;;  %v8556_v59 = vadd.f32 %v9733_v17, %v12610_v50 }
 0x74b   : > { %v8613_v63 = vadd.f32 %v9777_v56, %v8516_v55  ;;  %v9741_v24 = vpop.f32.mrf.mxu1  ;;  %v13073_v21 = vld [vmem:[#allocation58_spill] sm:$0xff] }
 0x74c   : > { %v8604_v5 = vpop.f32.mrf.mxu0  ;;  %v9742_v39 = vadd.f32 %v9741_v24, %v9740_v26  ;;  %v9736_v55 = vadd.f32 %v13073_v21, %v13072_v29 }
 0x74d   : > { %v8669_v44 = vmax.f32 %v8613_v63, 1e-05  ;;  %v8605_v23 = vadd.f32 %v8604_v5, %v8508_v15  ;;  %v9785_v61 = vpop.f32.mrf.mxu1  ;;  %v8527_v63 = vadd.f32 %v9712_v43, %v13074_v34 }
 0x74e   : > { %v9778_v30 = vpop.f32.mrf.mxu0  ;;  %v8645_v31 = vadd.f32 %v9785_v61, %v8548_v35  ;;  %v8567_v50 = vadd.f32 %v9742_v39, %v12614_v25  ;;  %v8559_v45 = vadd.f32 %v9736_v55, %v12612_v32 }
 0x74f   : > { %10179 = vlog2.f32 %v8669_v44  ;;  %v8667_v28 = vmax.f32 %v8605_v23, 1e-05  ;;  %v8616_v4 = vadd.f32 %v9778_v30, %v8519_v58  ;;  %v8636_v2 = vpop.f32.mrf.mxu1 }
 0x750   : > { %v8607_v40 = vpop.f32.mrf.mxu0  ;;  %v8677_v57 = vmax.f32 %v8645_v31, 1e-05  ;;  %v8637_v52 = vadd.f32 %v8636_v2, %v8540_v19 }
 0x751   : > { %10181 = vlog2.f32 %v8667_v28  ;;  %v8670_v16 = vmax.f32 %v8616_v4, 1e-05  ;;  %v8608_v53 = vadd.f32 %v8607_v40, %v8511_v49  ;;  %v9786_v47 = vpop.f32.mrf.mxu1 }
 0x752   : > { %v9781_v6 = vpop.f32.mrf.mxu0  ;;  %10183 = vlog2.f32 %v8677_v57  ;;  %v8675_v22 = vmax.f32 %v8637_v52, 1e-05  ;;  %v8648_v3 = vadd.f32 %v9786_v47, %v8551_v62 }
 0x753   : > { %10185 = vlog2.f32 %v8670_v16  ;;  %v8668_v13 = vmax.f32 %v8608_v53, 1e-05  ;;  %v8629_v14 = vadd.f32 %v9781_v6, %v8532_v37  ;;  %v8639_v27 = vpop.f32.mrf.mxu1 }
 0x754   : > { %v8620_v0 = vpop.f32.mrf.mxu0  ;;  %10187 = vlog2.f32 %v8675_v22  ;;  %v8678_v54 = vmax.f32 %v8648_v3, 1e-05  ;;  %v8640_v8 = vadd.f32 %v8639_v27, %v8543_v7 }
 0x755   : > { %10189 = vlog2.f32 %v8668_v13  ;;  %v8673_v42 = vmax.f32 %v8629_v14, 1e-05  ;;  %v8621_v60 = vadd.f32 %v8620_v0, %v8524_v11  ;;  %v9789_v18 = vpop.f32.mrf.mxu1 }
 0x756   : > { %v9782_v1 = vpop.f32.mrf.mxu0  ;;  %10191 = vlog2.f32 %v8678_v54  ;;  %v8676_v10 = vmax.f32 %v8640_v8, 1e-05  ;;  %v8661_v56 = vadd.f32 %v9789_v18, %v8564_v20 }
 0x757   : > { %10193 = vlog2.f32 %v8673_v42  ;;  %v8671_v48 = vmax.f32 %v8621_v60, 1e-05  ;;  %v8632_v26 = vadd.f32 %v9782_v1, %v8535_v41  ;;  %v8652_v15 = vpop.f32.mrf.mxu1 }
 0x758   : > { %v8623_v49 = vpop.f32.mrf.mxu0  ;;  %10195 = vlog2.f32 %v8676_v10  ;;  %v8681_v24 = vmax.f32 %v8661_v56, 1e-05  ;;  %v8653_v38 = vadd.f32 %v8652_v15, %v8556_v59 }
 0x759   : > { %10197 = vlog2.f32 %v8671_v48  ;;  %v8674_v5 = vmax.f32 %v8632_v26, 1e-05  ;;  %v8624_v58 = vadd.f32 %v8623_v49, %v8527_v63  ;;  %v9790_v9 = vpop.f32.mrf.mxu1 }
 0x75a   : > { %10199 = vlog2.f32 %v8681_v24  ;;  %v8679_v35 = vmax.f32 %v8653_v38, 1e-05  ;;  %v8664_v33 = vadd.f32 %v9790_v9, %v8567_v50 }
 0x75b   : > { %10201 = vlog2.f32 %v8674_v5  ;;  %v8672_v44 = vmax.f32 %v8624_v58, 1e-05  ;;  %v8655_v43 = vpop.f32.mrf.mxu1 }
 0x75c   : > { %v10180_v23 = vpop.eup %10179  ;;  %10203 = vlog2.f32 %v8679_v35  ;;  %v8682_v11 = vmax.f32 %v8664_v33, 1e-05  ;;  %v8656_v61 = vadd.f32 %v8655_v43, %v8559_v45 }
 0x75d   : > { %v8688_v30 = vmul.f32 0.6931472, %v10180_v23  ;;  %10205 = vlog2.f32 %v8672_v44 }
 0x75e   : > { %v10182_v25 = vpop.eup %10181  ;;  %10207 = vlog2.f32 %v8682_v11  ;;  %v8680_v51 = vmax.f32 %v8656_v61, 1e-05 }
 0x75f   : > { %v10184_v37 = vpop.eup %10183  ;;  %8717 = vst [vmem:[%s12627_s22 + $0x10] sm:$0xff] %v8688_v30  ;;  %v8684_v32 = vmul.f32 0.6931472, %v10182_v25 }
 0x760   : > { %v10186_v31 = vpop.eup %10185  ;;  %v8704_v19 = vmul.f32 0.6931472, %v10184_v37  ;;  %10209 = vlog2.f32 %v8680_v51 }
 0x761   : > { %v10188_v28 = vpop.eup %10187  ;;  %8715 = vst [vmem:[%s12627_s22] sm:$0xff] %v8684_v32  ;;  %v8690_v4 = vmul.f32 0.6931472, %v10186_v31 }
 0x762   : > { %v10190_v46 = vpop.eup %10189  ;;  %8725 = vst [vmem:[%s12627_s22 + $0x50] sm:$0xff] %v8704_v19  ;;  %v8700_v2 = vmul.f32 0.6931472, %v10188_v28 }
 0x763   : > { %v10192_v40 = vpop.eup %10191  ;;  %8718 = vst [vmem:[%s12627_s22 + $0x18] sm:$0xff] %v8690_v4  ;;  %v8686_v41 = vmul.f32 0.6931472, %v10190_v46 }
 0x764   : > { %v10194_v57 = vpop.eup %10193  ;;  %8723 = vst [vmem:[%s12627_s22 + $0x40] sm:$0xff] %v8700_v2  ;;  %v8706_v52 = vmul.f32 0.6931472, %v10192_v40 }
 0x765   : > { %v10196_v62 = vpop.eup %10195  ;;  %8716 = vst [vmem:[%s12627_s22 + $0x8] sm:$0xff] %v8686_v41  ;;  %v8696_v16 = vmul.f32 0.6931472, %v10194_v57 }
 0x766   : > { %v10198_v53 = vpop.eup %10197  ;;  %8726 = vst [vmem:[%s12627_s22 + $0x58] sm:$0xff] %v8706_v52  ;;  %v8702_v12 = vmul.f32 0.6931472, %v10196_v62 }
 0x767   : > { %v10200_v36 = vpop.eup %10199  ;;  %8721 = vst [vmem:[%s12627_s22 + $0x30] sm:$0xff] %v8696_v16  ;;  %v8692_v17 = vmul.f32 0.6931472, %v10198_v53 }
 0x768   : > { %v10202_v47 = vpop.eup %10201  ;;  %8724 = vst [vmem:[%s12627_s22 + $0x48] sm:$0xff] %v8702_v12  ;;  %v8712_v6 = vmul.f32 0.6931472, %v10200_v36 }
 0x769   : > { %v10204_v22 = vpop.eup %10203  ;;  %8719 = vst [vmem:[%s12627_s22 + $0x20] sm:$0xff] %v8692_v17  ;;  %v8698_v3 = vmul.f32 0.6931472, %v10202_v47 }
 0x76a   : > { %v10206_v7 = vpop.eup %10205  ;;  %8729 = vst [vmem:[%s12627_s22 + $0x70] sm:$0xff] %v8712_v6  ;;  %v8708_v13 = vmul.f32 0.6931472, %v10204_v22 }
 0x76b   : > { %v10208_v14 = vpop.eup %10207  ;;  %8722 = vst [vmem:[%s12627_s22 + $0x38] sm:$0xff] %v8698_v3  ;;  %v8694_v27 = vmul.f32 0.6931472, %v10206_v7 }
 0x76c   : > { %8727 = vst [vmem:[%s12627_s22 + $0x60] sm:$0xff] %v8708_v13  ;;  %v8714_v20 = vmul.f32 0.6931472, %v10208_v14 }
 0x76d   : > { %v10210_v0 = vpop.eup %10209  ;;  %8720 = vst [vmem:[%s12627_s22 + $0x28] sm:$0xff] %v8694_v27 }
 0x76e   : > { %8730 = vst [vmem:[%s12627_s22 + $0x78] sm:$0xff] %v8714_v20  ;;  %v8710_v39 = vmul.f32 0.6931472, %v10210_v0 }
 0x770   : > { %8728 = vst [vmem:[%s12627_s22 + $0x68] sm:$0xff] %v8710_v39 }
 0x771   : > { %10304 = shalt.err (!%p10301_p5)
}
 0x772   : > { %s10305_s29 = scalar_lea.hbm %s12648_s10, 2048  ;;  %s10309_s6 = scalar_lea.hbm %s12703_s3, 4096 }
 0x773   : > { %p10306_p10 = scmp.ne.s32.totalorder %s12648_s10, %s10305_s29  ;;  %p10310_p6 = scmp.lt.s32.totalorder %s12648_s10, %s12703_s3 }
 0x774   : > { %p10311_p12 = scmp.lt.s32.totalorder %s10309_s6, %s10305_s29 }
 0x775   : > { %p10307_p1 = pnand %p10306_p10, %p10505_p7 }
 0x776   : > { %p10312_p3 = por %p10311_p12, %p10310_p6 }
 0x777   : > { %p10308_p4 = pneg %p10307_p1 }
 0x779   : > { %p10313_p8 = pnand %p10312_p3, %p10308_p4 }
 0x77b   : > { %10316 = shalt.err (!%p10313_p8)
}
 0x77c   : > { %s10388_s22 = smov 128   ;;  %s10389_s24 = smov 8  }
 0x77d   : > { %9817 = dma.vmem_to_hbm [thread:$0]  (%p10505_p7), %s12650_s7, 2048, %s12648_s10, %s8732_s15, %s10388_s22, %s10388_s22, %s10389_s24  }
 0x77e PF: > { %s8761_s9 = sand.u32 1, %s10355_s12   ;;  %p13075_p9 = scmp.ne.s32.totalorder %s12713_s23, 0 }
 0x77f   : > { %p13076_p11 = scmp.ge.s32.totalorder %s10375_s17, 2  ;;  %s8762_s21 = scalar_lea.sflag [#allocation4], %s8761_s9 }
 0x781   : > { %p9831_p2 = pnand %p13076_p11, %p13075_p9 }
 0x783   : > { %p9832_p13 = pneg %p9831_p2 }
 0x785   : > { %10350 = dma.done.wait (%p9832_p13), %s8762_s21, 2048  }
 0x786   : > { %10352 = vsyncadd (%p9832_p13), %s8762_s21, 4294965248  ;;  %s20_s17 = sadd.s32 1, %s10375_s17   ;;  %s13077_s12 = smov %s10359_s13 }
 0x787   : > { %p17_p0 = scmp.ge.s32.totalorder %s20_s17, 4   ;;  %s13078_s13 = smov %s10363_s14 }
 0x788   : > { %s13079_s14 = smov %s10514_s4  ;;  %s13080_s15 = smov %s10371_s16 }
 0x789   : > { %s13081_s16 = smov %s13083_s19  ;;  %19 = sbr.rel (!%p17_p0) target bundleno = 7 (0x7), region = 85 }
 0x78e   :  { %8767 = vsyncpa [#allocation3], 1 }
 0x78f   :  { %8769 = vsyncpa [#allocation3 + $0x1], 1 }
 0x790   :  { %8770 = vsyncpa [#allocation6], 1 }
 0x791   :  { %8771 = vsyncpa [#allocation4], 1 }
 0x792   :  { %8773 = vsyncpa [#allocation4 + $0x1], 1 }

</bundles_post_ra>
